<compile_context>
chip_gen: v7x
topology: tpu7x:2x2x1
jax: 0.10.0
libtpu: 0.0.40
codegen_flags: <defaults>
</compile_context>

<pallas_src>
import functools

import jax
import jax.numpy as jnp
from jax import lax
from jax.experimental import pallas as pl
from jax.experimental.pallas import tpu as pltpu

CPAD = 128  # lane-dense channel padding for the shrink output / head outputs


# ----------------------------- Pallas kernels ------------------------------

def _pg_proj_kernel(x_ref, w_ref, b_ref, out_ref):
    """Fused phi/g 1x1x1 projection: (TR, C) @ (C, 2*Ci) -> (TR, 2*Ci) bf16.

    Computed once per row (instead of once per (q-tile, kv-tile) pair inside
    the flash loop), halving the NLB's redundant MXU work and letting the
    flash kernel stream bf16 kv data from HBM.
    """
    out_ref[...] = (jnp.dot(x_ref[...], w_ref[...],
                            preferred_element_type=jnp.float32)
                    + b_ref[...]).astype(out_ref.dtype)


def _nlb_shrink_kernel(xq_ref, pg_ref, thw_ref, thb_ref, wzw_ref, wzs_ref,
                       shw_ref, shs_ref, out_ref,
                       theta_sc, m_sc, l_sc, acc_sc):
    """Flash-style embedded-gaussian non-local block + fused shrink (1x1+BN).

    Grid: (batch, q-tile, kv-tile), kv innermost ("arbitrary").
    xq_ref: (TQ, C) bf16 query rows; pg_ref: (TK, 2*Ci) bf16 precomputed
    phi/g rows of the same flattened (T*H*W, C) batch element.
    Output block is (TQ, 128) lane-dense bf16 (real channels = C/4 = 64).
    """
    ki = pl.program_id(2)
    ci = thw_ref.shape[-1]

    @pl.when(ki == 0)
    def _init():
        theta_sc[...] = (jnp.dot(xq_ref[...], thw_ref[...],
                                 preferred_element_type=jnp.float32)
                         + thb_ref[...]).astype(jnp.bfloat16)
        m_sc[...] = jnp.full_like(m_sc, -jnp.inf)
        l_sc[...] = jnp.zeros_like(l_sc)
        acc_sc[...] = jnp.zeros_like(acc_sc)

    pg = pg_ref[...]                       # (TK, 2*Ci) bf16
    phi_k = pg[:, :ci]                     # (TK, Ci)
    g_k = pg[:, ci:]                       # (TK, Ci)

    # s[q, k] = theta[q] . phi[k]  (rhs-contracted matmul, no explicit .T)
    s = lax.dot_general(theta_sc[...], phi_k,
                        (((1,), (1,)), ((), ())),
                        preferred_element_type=jnp.float32)          # (TQ, TK)

    # online softmax over the kv axis (never materializes (THW, THW) in HBM)
    m_prev = m_sc[...]
    m_new = jnp.maximum(m_prev, jnp.max(s, axis=-1, keepdims=True))
    alpha = jnp.exp(m_prev - m_new)
    p = jnp.exp(s - m_new)
    l_sc[...] = alpha * l_sc[...] + jnp.sum(p, axis=-1, keepdims=True)
    acc_sc[...] = alpha * acc_sc[...] + jnp.dot(
        p.astype(jnp.bfloat16), g_k, preferred_element_type=jnp.float32)
    m_sc[...] = m_new

    @pl.when(ki == pl.num_programs(2) - 1)
    def _finalize():
        # exact normalization (approx reciprocal dropped for numeric parity)
        y = acc_sc[...] / l_sc[...]                                   # (TQ, Ci)
        # W_z (1x1x1 conv, BN folded) + residual
        wy = jnp.dot(y.astype(jnp.bfloat16), wzw_ref[...],
                     preferred_element_type=jnp.float32) + wzs_ref[...]
        z = wy + xq_ref[...].astype(jnp.float32)                      # (TQ, C)
        # shrink: 1x1 conv + BN folded, lane-dense (padded-128) output
        s_out = jnp.dot(z.astype(jnp.bfloat16), shw_ref[...],
                        preferred_element_type=jnp.float32) + shs_ref[...]
        out_ref[...] = s_out.astype(out_ref.dtype)


def _head3x3_kernel(x_ref, w1_ref, b1_ref, w2_ref, b2_ref, out_ref, pad_sc,
                    *, n_sig):
    """3x3 conv (pad=1) + bias + ReLU, then 1x1 conv + bias, for G images.

    x_ref:  (G, H, W, Cin) channels-last, Cin padded to a multiple of 128.
    w1_ref: (9*Cin, 128)  im2col-ordered 3x3 weights (tap-major, Cmid padded).
    w2_ref: (128, 128)    lane-dense 1x1 weights.
    Sigmoid is applied to the first `n_sig` output channels (hm head).
    G images are stacked along the matmul M axis to fill the MXU and
    amortize per-grid-step overhead.
    """
    g, h, w, cin = x_ref.shape
    # halo padding into a VMEM scratch (zeroed every step: cheap at these
    # sizes and safe under megacore grid sharding, unlike a first-step-only
    # memset).  TODO(synk): row-tile H*W inside this kernel for large
    # (72x72+) feature maps so the im2col patch fits v7x's 64 MiB VMEM.
    pad_sc[...] = jnp.zeros_like(pad_sc)
    pad_sc[:, pl.ds(1, h), pl.ds(1, w), :] = x_ref[...]
    xp = pad_sc[...]                                        # (G, H+2, W+2, Cin)

    # im2col: one long-K matmul instead of nine short-K dots; Cin is a
    # multiple of 128 so every tap boundary is 128-lane aligned.
    patches = [xp[:, dy:dy + h, dx:dx + w, :].reshape(g * h * w, cin)
               for dy in range(3) for dx in range(3)]
    patch = jnp.concatenate(patches, axis=-1)               # (G*H*W, 9*Cin) bf16

    hid = jnp.dot(patch, w1_ref[...],
                  preferred_element_type=jnp.float32) + b1_ref[...]
    hid = jnp.maximum(hid, 0.0)
    o = jnp.dot(hid.astype(jnp.bfloat16), w2_ref[...],
                preferred_element_type=jnp.float32) + b2_ref[...]     # (GHW, 128)
    if n_sig > 0:
        ch = lax.broadcasted_iota(jnp.int32, o.shape, 1)
        o = jnp.where(ch < n_sig, jax.nn.sigmoid(o), o)
    out_ref[...] = o.reshape(g, h * w, o.shape[-1]).astype(out_ref.dtype)


# --------------------------- pallas_call wrappers ---------------------------

def _full_spec(shape):
    zeros = (0,) * len(shape)
    return pl.BlockSpec(shape, lambda *args, _z=zeros: _z)


def _pick_tile(n, cap):
    for t in (cap, 512, 256, 128, 64):
        if t <= n and n % t == 0:
            return t
    return n  # legal fallback: full-dim block (watch VMEM at very large THW)


def _pick_group(n, hw, row_cap=512):
    """Images per head grid step: fill M (rows) toward row_cap while keeping
    a grid extent >= 2 when possible (v7x has 2 TensorCores)."""
    g = 1
    for cand in range(1, n + 1):
        if n % cand:
            continue
        if cand * hw > row_cap:
            continue
        if n >= 2 and n // cand < 2:
            continue
        g = cand
    return g


def pg_projection(x_bf, pg_w, pg_b):
    """x_bf: (B, THW, C) bf16 -> fused phi/g rows (B, THW, 2*Ci) bf16."""
    B, THW, C = x_bf.shape
    C2 = pg_w.shape[1]
    TR = _pick_tile(THW, 512)
    return pl.pallas_call(
        _pg_proj_kernel,
        out_shape=jax.ShapeDtypeStruct((B, THW, C2), jnp.bfloat16),
        grid=(B, THW // TR),
        in_specs=[pl.BlockSpec((None, TR, C), lambda b, i: (b, i, 0)),
                  _full_spec(pg_w.shape), _full_spec(pg_b.shape)],
        out_specs=pl.BlockSpec((None, TR, C2), lambda b, i: (b, i, 0)),
        compiler_params=pltpu.CompilerParams(
            dimension_semantics=("parallel", "parallel")),
    )(x_bf, pg_w, pg_b)


def nlb_shrink_forward(x_bf, pg, p):
    """x_bf: (B, THW, C) bf16, pg: (B, THW, 2*Ci) bf16 -> (B, THW, 128) bf16."""
    B, THW, C = x_bf.shape
    Ci = p["theta_w"].shape[1]
    TQ = _pick_tile(THW, 256)
    TK = _pick_tile(THW, 512)
    nq, nk = THW // TQ, THW // TK

    return pl.pallas_call(
        _nlb_shrink_kernel,
        out_shape=jax.ShapeDtypeStruct((B, THW, CPAD), jnp.bfloat16),
        grid=(B, nq, nk),
        in_specs=[
            pl.BlockSpec((None, TQ, C), lambda b, qi, ki: (b, qi, 0)),
            pl.BlockSpec((None, TK, 2 * Ci), lambda b, qi, ki: (b, ki, 0)),
            _full_spec(p["theta_w"].shape), _full_spec(p["theta_b"].shape),
            _full_spec(p["wz_w"].shape), _full_spec(p["wz_shift"].shape),
            _full_spec(p["shrink_w"].shape), _full_spec(p["shrink_shift"].shape),
        ],
        out_specs=pl.BlockSpec((None, TQ, CPAD), lambda b, qi, ki: (b, qi, 0)),
        scratch_shapes=[
            pltpu.VMEM((TQ, Ci), jnp.bfloat16),   # theta for the q-tile
            pltpu.VMEM((TQ, 1), jnp.float32),     # running max
            pltpu.VMEM((TQ, 1), jnp.float32),     # running denom
            pltpu.VMEM((TQ, Ci), jnp.float32),    # output accumulator
        ],
        compiler_params=pltpu.CompilerParams(
            dimension_semantics=("parallel", "parallel", "arbitrary")),
    )(x_bf, pg, p["theta_w"], p["theta_b"], p["wz_w"], p["wz_shift"],
      p["shrink_w"], p["shrink_shift"])


def head3x3(x, w1, b1, w2, b2, *, n_sig):
    """x: (N, H, W, Cin) -> (N, H*W, 128) with the last dim lane-dense."""
    N, H, W, Cin = x.shape
    G = _pick_group(N, H * W)
    kernel = functools.partial(_head3x3_kernel, n_sig=n_sig)
    return pl.pallas_call(
        kernel,
        out_shape=jax.ShapeDtypeStruct((N, H * W, CPAD), x.dtype),
        grid=(N // G,),
        in_specs=[
            pl.BlockSpec((G, H, W, Cin), lambda n: (n, 0, 0, 0)),
            _full_spec(w1.shape), _full_spec(b1.shape),
            _full_spec(w2.shape), _full_spec(b2.shape),
        ],
        out_specs=pl.BlockSpec((G, H * W, CPAD), lambda n: (n, 0, 0)),
        scratch_shapes=[pltpu.VMEM((G, H + 2, W + 2, Cin), jnp.bfloat16)],
        compiler_params=pltpu.CompilerParams(
            dimension_semantics=("parallel",)),
    )(x, w1, b1, w2, b2)


# ------------------------------ forward (glue) ------------------------------

def moc_branch_forward(input_chunk, K, kp, meta):
    """input_chunk: (B*K, C, H, W) NCHW (PyTorch convention).

    `meta` holds plain-Python ints (real head output widths) and is closed
    over statically — it must NOT be passed through jit as a pytree leaf
    (that turned slices/reshapes into traced sizes and broke tracing).
    """
    bbK, cc, hh, ww = input_chunk.shape
    B = bbK // K
    THW = K * hh * ww

    # ---- NLBlockND over (B, C, T=K, H, W) fused with shrink 1x1+BN ----
    x_flat = (input_chunk.reshape(B, K, cc, hh, ww)
              .transpose(0, 1, 3, 4, 2)                 # (B, K, H, W, C)
              .reshape(B, THW, cc)
              .astype(jnp.bfloat16))                    # bf16 kv/q stream

    pg = pg_projection(x_flat, kp["nlb"]["pg_w"], kp["nlb"]["pg_b"])
    s = nlb_shrink_forward(x_flat, pg, kp["nlb"])       # (B, THW, 128) bf16

    # ---- wh head (per frame) ----
    wh_in = s.reshape(B * K, hh, ww, CPAD)
    wh_flat = head3x3(wh_in, kp["wh_w1"], kp["wh_b1"], kp["wh_w2"],
                      kp["wh_b2"], n_sig=0)             # (B*K, HW, 128)
    wh_pk = meta["wh_cout"]
    output_wh = (wh_flat[..., :wh_pk]
                 .reshape(B, K, hh, ww, wh_pk)
                 .transpose(0, 1, 4, 2, 3)
                 .reshape(B, K * wh_pk, hh, ww)
                 .astype(jnp.float32))                  # NCHW

    # ---- hm + mov heads fused (frames stacked on channels) ----
    hmmov_in = (s.reshape(B, K, hh, ww, CPAD)
                .transpose(0, 2, 3, 1, 4)
                .reshape(B, hh, ww, K * CPAD))
    n_hm, n_mov = meta["hm_cout"], meta["mov_cout"]
    fused = head3x3(hmmov_in, kp["hmmov_w1"], kp["hmmov_b1"],
                    kp["hmmov_w2"], kp["hmmov_b2"], n_sig=n_hm)  # (B, HW, 128)
    hm = fused[..., :n_hm]
    mov = fused[..., n_hm:n_hm + n_mov]

    def to_nchw(flat, c_out):
        return (flat.reshape(B, hh, ww, c_out)
                .transpose(0, 3, 1, 2).astype(jnp.float32))

    return {"hm": to_nchw(hm, n_hm), "mov": to_nchw(mov, n_mov), "wh": output_wh}


# ------------------------------ parameters ------------------------------

def init_params(key, cc, K, head_conv, branch_info):
    ci = cc // 2          # NLB inter_channels (256 -> 128)
    c4 = cc // 4
    ks = jax.random.split(key, 16)

    def w(k, shape, scale=0.05):
        return scale * jax.random.normal(k, shape, jnp.float32)

    nlb = {
        "theta_w": w(ks[0], (cc, ci)), "theta_b": w(ks[1], (1, ci)),
        "phi_w":   w(ks[2], (cc, ci)), "phi_b":   w(ks[3], (1, ci)),
        "g_w":     w(ks[4], (cc, ci)), "g_b":     w(ks[5], (1, ci)),
        "wz_w":    w(ks[6], (ci, cc)), "wz_b":    w(ks[7], (1, cc)),
        # W_z BatchNorm3d (eval mode).  NOTE (intentional deviation): the
        # PyTorch module inits gamma=0 which makes a fresh NLB an identity;
        # we use gamma=1 so the attention path is numerically exercised.
        # Real trained gamma/beta/running stats fold in prepare_kernel_params.
        "wz_gamma": jnp.ones((1, cc), jnp.float32),
        "wz_beta": jnp.zeros((1, cc), jnp.float32),
        "wz_mean": jnp.zeros((1, cc), jnp.float32),
        "wz_var": jnp.ones((1, cc), jnp.float32),
    }
    return {
        "nlb": nlb,
        # shrink: 1x1 conv (bias=False) + BN2d (gamma=1, beta=0 per init_weights)
        "shrink_w": w(ks[8], (cc, c4)),
        "shrink_gamma": jnp.ones((1, c4), jnp.float32),
        "shrink_beta": jnp.zeros((1, c4), jnp.float32),
        "shrink_mean": jnp.zeros((1, c4), jnp.float32),
        "shrink_var": jnp.ones((1, c4), jnp.float32),
        # hm: 3x3 conv(K*c4 -> head_conv)+ReLU ; hm_cls: 1x1 conv, bias=-2.19
        "hm_w1": w(ks[9], (9, K * c4, head_conv)),
        "hm_b1": w(ks[10], (1, head_conv)),
        "hm_w2": w(ks[11], (head_conv, branch_info["hm"])),
        "hm_b2": jnp.full((1, branch_info["hm"]), -2.19, jnp.float32),
        # mov: biases zeroed by fill_fc_weights
        "mov_w1": w(ks[12], (9, K * c4, head_conv)),
        "mov_b1": jnp.zeros((1, head_conv), jnp.float32),
        "mov_w2": w(ks[13], (head_conv, branch_info["mov"])),
        "mov_b2": jnp.zeros((1, branch_info["mov"]), jnp.float32),
        # wh: biases zeroed by fill_fc_weights (wh_head_conv == head_conv)
        "wh_w1": w(ks[14], (9, c4, head_conv)),
        "wh_b1": jnp.zeros((1, head_conv), jnp.float32),
        "wh_w2": w(ks[15], (head_conv, branch_info["wh"] // K)),
        "wh_b2": jnp.zeros((1, branch_info["wh"] // K), jnp.float32),
    }


def _bn_fold(gamma, beta, mean, var, eps=1e-5):
    scale = gamma / jnp.sqrt(var + eps)
    shift = beta - mean * scale
    return scale, shift


def prepare_kernel_params(params, K):
    """Fold BNs (eval mode), fuse projections/heads, cast MXU operands to bf16,
    and zero-pad all head Cin / Cmid / Cout dims to lane-dense 128.

    Returns (kparams, meta): kparams holds only arrays (jit pytree), meta holds
    plain-Python ints used for static slicing/reshaping in the wrapper.
    """
    bf = jnp.bfloat16
    nlb = params["nlb"]
    c4 = params["shrink_w"].shape[1]
    hc = params["hm_w1"].shape[-1]
    n_hm = params["hm_w2"].shape[-1]
    n_mov = params["mov_w2"].shape[-1]
    wh_pk = params["wh_w2"].shape[-1]

    wz_scale, wz_shift = _bn_fold(nlb["wz_gamma"], nlb["wz_beta"],
                                  nlb["wz_mean"], nlb["wz_var"])
    sh_scale, sh_shift = _bn_fold(params["shrink_gamma"], params["shrink_beta"],
                                  params["shrink_mean"], params["shrink_var"])

    def pad_cols(a, width=CPAD):
        return jnp.pad(a, ((0, 0), (0, width - a.shape[-1])))

    kp_nlb = {
        "theta_w": nlb["theta_w"].astype(bf),
        "theta_b": nlb["theta_b"],
        # fused phi/g projection -> one (C, 2*Ci) matmul (precomputed once)
        "pg_w": jnp.concatenate([nlb["phi_w"], nlb["g_w"]], axis=1).astype(bf),
        "pg_b": jnp.concatenate([nlb["phi_b"], nlb["g_b"]], axis=1),
        # W_z conv + BN folded: w' = w*scale (per out col), b' = b*scale + shift
        "wz_w": (nlb["wz_w"] * wz_scale).astype(bf),
        "wz_shift": nlb["wz_b"] * wz_scale + wz_shift,
        # shrink conv (bias=False) + BN folded, lane-padded to 128 out cols
        "shrink_w": pad_cols(params["shrink_w"] * sh_scale).astype(bf),
        "shrink_shift": pad_cols(sh_shift),
    }

    # --- wh head: Cin 64 -> 128 (matches lane-dense shrink output), Cmid -> 128
    wh_w1 = jnp.pad(params["wh_w1"],
                    ((0, 0), (0, CPAD - c4), (0, CPAD - hc)))      # (9,128,128)
    wh_w2 = jnp.pad(params["wh_w2"], ((0, CPAD - hc), (0, CPAD - wh_pk)))

    # --- hm + mov fused: shared 3x3 (concat along Cmid), block-diagonal 1x1.
    # Input channel layout per frame k is [k*128 : k*128+64] real, rest zero,
    # so weight rows are re-laid out to (tap, frame, 128) before flattening.
    hm_w1 = params["hm_w1"].reshape(9, K, c4, hc)
    mov_w1 = params["mov_w1"].reshape(9, K, c4, hc)
    w1_f = jnp.concatenate([hm_w1, mov_w1], axis=-1)               # (9,K,64,2hc)
    w1_f = jnp.pad(w1_f, ((0, 0), (0, 0), (0, CPAD - c4), (0, CPAD - 2 * hc)))
    w2_f = jnp.zeros((CPAD, CPAD), jnp.float32)
    w2_f = w2_f.at[:hc, :n_hm].set(params["hm_w2"])
    w2_f = w2_f.at[hc:2 * hc, n_hm:n_hm + n_mov].set(params["mov_w2"])
    b1_f = pad_cols(jnp.concatenate([params["hm_b1"], params["mov_b1"]], axis=1))
    b2_f = pad_cols(jnp.concatenate([params["hm_b2"], params["mov_b2"]], axis=1))

    kparams = {
        "nlb": kp_nlb,
        "wh_w1": wh_w1.reshape(9 * CPAD, CPAD).astype(bf),
        "wh_b1": pad_cols(params["wh_b1"]),
        "wh_w2": wh_w2.astype(bf),
        "wh_b2": pad_cols(params["wh_b2"]),
        "hmmov_w1": w1_f.reshape(9 * K * CPAD, CPAD).astype(bf),
        "hmmov_b1": b1_f,
        "hmmov_w2": w2_f.astype(bf),
        "hmmov_b2": b2_f,
    }
    meta = {"hm_cout": int(n_hm), "mov_cout": int(n_mov), "wh_cout": int(wh_pk)}
    return kparams, meta


# ------------------------------ main ------------------------------

if __name__ == "__main__":
    B, K = 2, 2
    cc = 256                       # NLBlockND is hard-coded to in_channels=256
    H = W = 8
    head_conv = 32
    branch_info = {"hm": 3, "mov": 2 * K, "wh": 2 * K}

    key = jax.random.PRNGKey(0)
    kx, kp_key = jax.random.split(key)
    input_chunk = jax.random.normal(kx, (B * K, cc, H, W), jnp.float32)  # NCHW
    params = init_params(kp_key, cc, K, head_conv, branch_info)
    kparams, meta = prepare_kernel_params(params, K)

    fwd = jax.jit(lambda x, p: moc_branch_forward(x, K, p, meta))
    out = fwd(input_chunk, kparams)
    out = jax.tree_util.tree_map(jax.block_until_ready, out)

    assert out["hm"].shape == (B, branch_info["hm"], H, W)
    assert out["mov"].shape == (B, branch_info["mov"], H, W)
    assert out["wh"].shape == (B, branch_info["wh"], H, W)
    assert bool(jnp.all(jnp.isfinite(out["hm"])))
    assert bool(jnp.all(jnp.isfinite(out["mov"])))
    assert bool(jnp.all(jnp.isfinite(out["wh"])))
    assert bool(jnp.all((out["hm"] >= 0.0) & (out["hm"] <= 1.0)))
    print("KERNEL_OK")
</pallas_src>

<mosaic_0001>
module attributes {stable_mosaic.version = 11 : i64} {
  func.func @_pg_proj_kernel(%arg0: i32, %arg1: i32, %arg2: memref<1x128x256xbf16, #tpu.memory_space<vmem>>, %arg3: memref<256x256xbf16, #tpu.memory_space<vmem>>, %arg4: memref<1x256xf32, #tpu.memory_space<vmem>>, %arg5: memref<1x128x256xbf16, #tpu.memory_space<vmem>>) attributes {dimension_semantics = [#tpu.dimension_semantics<parallel>, #tpu.dimension_semantics<parallel>], iteration_bounds = array<i64: 2, 1>, scalar_prefetch = 0 : i64, scratch_operands = 0 : i64, tpu.core_type = #tpu.core_type<tc>, window_params = [{transform_indices = @transform_0, window_bounds = array<i64: 1, 128, 256>}, {pipeline_mode = #tpu.pipeline_mode<synchronous>, transform_indices = @transform_1, window_bounds = array<i64: 256, 256>}, {pipeline_mode = #tpu.pipeline_mode<synchronous>, transform_indices = @transform_2, window_bounds = array<i64: 1, 256>}, {transform_indices = @transform_3, window_bounds = array<i64: 1, 128, 256>}]} {
    %c0 = arith.constant 0 : index
    %c0_0 = arith.constant 0 : index
    %c0_1 = arith.constant 0 : index
    %0 = vector.load %arg2[%c0, %c0_0, %c0_1] : memref<1x128x256xbf16, #tpu.memory_space<vmem>>, vector<1x128x256xbf16>
    %1 = vector.shape_cast %0 : vector<1x128x256xbf16> to vector<128x256xbf16>
    %c0_2 = arith.constant 0 : index
    %c0_3 = arith.constant 0 : index
    %2 = vector.load %arg3[%c0_2, %c0_3] : memref<256x256xbf16, #tpu.memory_space<vmem>>, vector<256x256xbf16>
    %cst = arith.constant dense<0.000000e+00> : vector<128x256xf32>
    %3 = tpu.matmul %1, %2, %cst {dimension_numbers = #tpu.dot_dimension_numbers<[1], [0], [0], [1], [0, 0, 1, 1], [], []>} : vector<128x256xbf16>, vector<256x256xbf16>, vector<128x256xf32> -> vector<128x256xf32>
    %c0_4 = arith.constant 0 : index
    %c0_5 = arith.constant 0 : index
    %4 = vector.load %arg4[%c0_4, %c0_5] : memref<1x256xf32, #tpu.memory_space<vmem>>, vector<1x256xf32>
    %5 = vector.broadcast %4 : vector<1x256xf32> to vector<128x256xf32>
    %6 = arith.addf %3, %5 : vector<128x256xf32>
    %7 = arith.truncf %6 : vector<128x256xf32> to vector<128x256xbf16>
    %c0_6 = arith.constant 0 : index
    %c0_7 = arith.constant 0 : index
    %c0_8 = arith.constant 0 : index
    %8 = vector.load %arg5[%c0_6, %c0_7, %c0_8] : memref<1x128x256xbf16, #tpu.memory_space<vmem>>, vector<1x128x256xbf16>
    %9 = vector.shape_cast %8 : vector<1x128x256xbf16> to vector<128x256xbf16>
    %10 = vector.shape_cast %7 : vector<128x256xbf16> to vector<1x128x256xbf16>
    tpu.vector_store %arg5[%c0_6, %c0_7, %c0_8], %10 {strides = array<i32>} : memref<1x128x256xbf16, #tpu.memory_space<vmem>>, vector<1x128x256xbf16>,
    return
  }
  func.func @transform_0(%arg0: i32, %arg1: i32) -> (i32, i32, i32) {
    %c0_i32 = arith.constant 0 : i32
    %c0_i32_0 = arith.constant 0 : i32
    return %arg0, %arg1, %c0_i32 : i32, i32, i32
  }
  func.func @transform_1(%arg0: i32, %arg1: i32) -> (i32, i32) {
    %c0_i32 = arith.constant 0 : i32
    %c0_i32_0 = arith.constant 0 : i32
    %c0_i32_1 = arith.constant 0 : i32
    return %c0_i32, %c0_i32_0 : i32, i32
  }
  func.func @transform_2(%arg0: i32, %arg1: i32) -> (i32, i32) {
    %c0_i32 = arith.constant 0 : i32
    %c0_i32_0 = arith.constant 0 : i32
    %c0_i32_1 = arith.constant 0 : i32
    return %c0_i32, %c0_i32_0 : i32, i32
  }
  func.func @transform_3(%arg0: i32, %arg1: i32) -> (i32, i32, i32) {
    %c0_i32 = arith.constant 0 : i32
    %c0_i32_0 = arith.constant 0 : i32
    return %arg0, %arg1, %c0_i32 : i32, i32, i32
  }
}

module attributes {stable_mosaic.version = 11 : i64} {
  func.func @_nlb_shrink_kernel(%arg0: i32, %arg1: i32, %arg2: i32, %arg3: memref<1x128x256xbf16, #tpu.memory_space<vmem>>, %arg4: memref<1x128x256xbf16, #tpu.memory_space<vmem>>, %arg5: memref<256x128xbf16, #tpu.memory_space<vmem>>, %arg6: memref<1x128xf32, #tpu.memory_space<vmem>>, %arg7: memref<128x256xbf16, #tpu.memory_space<vmem>>, %arg8: memref<1x256xf32, #tpu.memory_space<vmem>>, %arg9: memref<256x128xbf16, #tpu.memory_space<vmem>>, %arg10: memref<1x128xf32, #tpu.memory_space<vmem>>, %arg11: memref<1x128x128xbf16, #tpu.memory_space<vmem>>, %arg12: memref<128x128xbf16, #tpu.memory_space<vmem>>, %arg13: memref<128x1xf32, #tpu.memory_space<vmem>>, %arg14: memref<128x1xf32, #tpu.memory_space<vmem>>, %arg15: memref<128x128xf32, #tpu.memory_space<vmem>>) attributes {dimension_semantics = [#tpu.dimension_semantics<parallel>, #tpu.dimension_semantics<parallel>, #tpu.dimension_semantics<arbitrary>], iteration_bounds = array<i64: 2, 1, 1>, scalar_prefetch = 0 : i64, scratch_operands = 4 : i64, tpu.core_type = #tpu.core_type<tc>, window_params = [{transform_indices = @transform_0, window_bounds = array<i64: 1, 128, 256>}, {transform_indices = @transform_1, window_bounds = array<i64: 1, 128, 256>}, {pipeline_mode = #tpu.pipeline_mode<synchronous>, transform_indices = @transform_2, window_bounds = array<i64: 256, 128>}, {pipeline_mode = #tpu.pipeline_mode<synchronous>, transform_indices = @transform_3, window_bounds = array<i64: 1, 128>}, {pipeline_mode = #tpu.pipeline_mode<synchronous>, transform_indices = @transform_4, window_bounds = array<i64: 128, 256>}, {pipeline_mode = #tpu.pipeline_mode<synchronous>, transform_indices = @transform_5, window_bounds = array<i64: 1, 256>}, {pipeline_mode = #tpu.pipeline_mode<synchronous>, transform_indices = @transform_6, window_bounds = array<i64: 256, 128>}, {pipeline_mode = #tpu.pipeline_mode<synchronous>, transform_indices = @transform_7, window_bounds = array<i64: 1, 128>}, {transform_indices = @transform_8, window_bounds = array<i64: 1, 128, 128>}]} {
    %c0_i32 = arith.constant 0 : i32
    %0 = arith.cmpi eq, %arg2, %c0_i32 : i32
    %1 = arith.extui %0 : i1 to i32
    %c0_i32_0 = arith.constant 0 : i32
    %2 = arith.cmpi ne, %1, %c0_i32_0 : i32
    scf.if %2 {
      %c0_22 = arith.constant 0 : index
      %c0_23 = arith.constant 0 : index
      %c0_24 = arith.constant 0 : index
      %35 = vector.load %arg3[%c0_22, %c0_23, %c0_24] : memref<1x128x256xbf16, #tpu.memory_space<vmem>>, vector<1x128x256xbf16>
      %36 = vector.shape_cast %35 : vector<1x128x256xbf16> to vector<128x256xbf16>
      %c0_25 = arith.constant 0 : index
      %c0_26 = arith.constant 0 : index
      %37 = vector.load %arg5[%c0_25, %c0_26] : memref<256x128xbf16, #tpu.memory_space<vmem>>, vector<256x128xbf16>
      %cst_27 = arith.constant dense<0.000000e+00> : vector<128x128xf32>
      %38 = tpu.matmul %36, %37, %cst_27 {dimension_numbers = #tpu.dot_dimension_numbers<[1], [0], [0], [1], [0, 0, 1, 1], [], []>} : vector<128x256xbf16>, vector<256x128xbf16>, vector<128x128xf32> -> vector<128x128xf32>
      %c0_28 = arith.constant 0 : index
      %c0_29 = arith.constant 0 : index
      %39 = vector.load %arg6[%c0_28, %c0_29] : memref<1x128xf32, #tpu.memory_space<vmem>>, vector<1x128xf32>
      %40 = vector.broadcast %39 : vector<1x128xf32> to vector<128x128xf32>
      %41 = arith.addf %38, %40 : vector<128x128xf32>
      %42 = arith.truncf %41 : vector<128x128xf32> to vector<128x128xbf16>
      %c0_30 = arith.constant 0 : index
      %c0_31 = arith.constant 0 : index
      %43 = vector.load %arg12[%c0_30, %c0_31] : memref<128x128xbf16, #tpu.memory_space<vmem>>, vector<128x128xbf16>
      tpu.vector_store %arg12[%c0_30, %c0_31], %42 {strides = array<i32>} : memref<128x128xbf16, #tpu.memory_space<vmem>>, vector<128x128xbf16>,
      %cst_32 = arith.constant 0xFF800000 : f32
      %44 = vector.broadcast %cst_32 : f32 to vector<128x1xf32>
      %c0_33 = arith.constant 0 : index
      %c0_34 = arith.constant 0 : index
      %45 = vector.load %arg13[%c0_33, %c0_34] : memref<128x1xf32, #tpu.memory_space<vmem>>, vector<128x1xf32>
      tpu.vector_store %arg13[%c0_33, %c0_34], %44 {strides = array<i32>} : memref<128x1xf32, #tpu.memory_space<vmem>>, vector<128x1xf32>,
      %cst_35 = arith.constant 0.000000e+00 : f32
      %46 = vector.broadcast %cst_35 : f32 to vector<128x1xf32>
      %c0_36 = arith.constant 0 : index
      %c0_37 = arith.constant 0 : index
      %47 = vector.load %arg14[%c0_36, %c0_37] : memref<128x1xf32, #tpu.memory_space<vmem>>, vector<128x1xf32>
      tpu.vector_store %arg14[%c0_36, %c0_37], %46 {strides = array<i32>} : memref<128x1xf32, #tpu.memory_space<vmem>>, vector<128x1xf32>,
      %cst_38 = arith.constant 0.000000e+00 : f32
      %48 = vector.broadcast %cst_38 : f32 to vector<128x128xf32>
      %c0_39 = arith.constant 0 : index
      %c0_40 = arith.constant 0 : index
      %49 = vector.load %arg15[%c0_39, %c0_40] : memref<128x128xf32, #tpu.memory_space<vmem>>, vector<128x128xf32>
      tpu.vector_store %arg15[%c0_39, %c0_40], %48 {strides = array<i32>} : memref<128x128xf32, #tpu.memory_space<vmem>>, vector<128x128xf32>,
    } else {
    }
    %c0 = arith.constant 0 : index
    %c0_1 = arith.constant 0 : index
    %c0_2 = arith.constant 0 : index
    %3 = vector.load %arg4[%c0, %c0_1, %c0_2] : memref<1x128x256xbf16, #tpu.memory_space<vmem>>, vector<1x128x256xbf16>
    %4 = vector.shape_cast %3 : vector<1x128x256xbf16> to vector<128x256xbf16>
    %5 = vector.extract_strided_slice %4 {offsets = [0, 0], sizes = [128, 128], strides = [1, 1]} : vector<128x256xbf16> to vector<128x128xbf16>
    %6 = vector.extract_strided_slice %4 {offsets = [0, 128], sizes = [128, 128], strides = [1, 1]} : vector<128x256xbf16> to vector<128x128xbf16>
    %c0_3 = arith.constant 0 : index
    %c0_4 = arith.constant 0 : index
    %7 = vector.load %arg12[%c0_3, %c0_4] : memref<128x128xbf16, #tpu.memory_space<vmem>>, vector<128x128xbf16>
    %cst = arith.constant dense<0.000000e+00> : vector<128x128xf32>
    %8 = tpu.matmul %7, %5, %cst {dimension_numbers = #tpu.dot_dimension_numbers<[1], [1], [0], [0], [0, 0, 1, 0], [], []>} : vector<128x128xbf16>, vector<128x128xbf16>, vector<128x128xf32> -> vector<128x128xf32>
    %c0_5 = arith.constant 0 : index
    %c0_6 = arith.constant 0 : index
    %9 = vector.load %arg13[%c0_5, %c0_6] : memref<128x1xf32, #tpu.memory_space<vmem>>, vector<128x1xf32>
    %cst_7 = arith.constant dense<0xFF800000> : vector<128xf32>
    %10 = vector.multi_reduction <maximumf>, %8, %cst_7 [1] : vector<128x128xf32> to vector<128xf32>
    %11 = vector.shape_cast %10 : vector<128xf32> to vector<128x1xf32>
    %12 = arith.maximumf %9, %11 : vector<128x1xf32>
    %13 = arith.subf %9, %12 : vector<128x1xf32>
    %14 = math.exp %13 : vector<128x1xf32>
    %15 = vector.broadcast %12 : vector<128x1xf32> to vector<128x128xf32>
    %16 = arith.subf %8, %15 : vector<128x128xf32>
    %17 = math.exp %16 : vector<128x128xf32>
    %c0_8 = arith.constant 0 : index
    %c0_9 = arith.constant 0 : index
    %18 = vector.load %arg14[%c0_8, %c0_9] : memref<128x1xf32, #tpu.memory_space<vmem>>, vector<128x1xf32>
    %19 = arith.mulf %14, %18 : vector<128x1xf32>
    %cst_10 = arith.constant dense<0.000000e+00> : vector<128xf32>
    %20 = vector.multi_reduction <add>, %17, %cst_10 [1] : vector<128x128xf32> to vector<128xf32>
    %21 = vector.shape_cast %20 : vector<128xf32> to vector<128x1xf32>
    %22 = arith.addf %19, %21 : vector<128x1xf32>
    %c0_11 = arith.constant 0 : index
    %c0_12 = arith.constant 0 : index
    %23 = vector.load %arg14[%c0_11, %c0_12] : memref<128x1xf32, #tpu.memory_space<vmem>>, vector<128x1xf32>
    tpu.vector_store %arg14[%c0_11, %c0_12], %22 {strides = array<i32>} : memref<128x1xf32, #tpu.memory_space<vmem>>, vector<128x1xf32>,
    %c0_13 = arith.constant 0 : index
    %c0_14 = arith.constant 0 : index
    %24 = vector.load %arg15[%c0_13, %c0_14] : memref<128x128xf32, #tpu.memory_space<vmem>>, vector<128x128xf32>
    %25 = vector.broadcast %14 : vector<128x1xf32> to vector<128x128xf32>
    %26 = arith.mulf %25, %24 : vector<128x128xf32>
    %27 = arith.truncf %17 : vector<128x128xf32> to vector<128x128xbf16>
    %cst_15 = arith.constant dense<0.000000e+00> : vector<128x128xf32>
    %28 = tpu.matmul %27, %6, %cst_15 {dimension_numbers = #tpu.dot_dimension_numbers<[1], [0], [0], [1], [0, 0, 1, 1], [], []>} : vector<128x128xbf16>, vector<128x128xbf16>, vector<128x128xf32> -> vector<128x128xf32>
    %29 = arith.addf %26, %28 : vector<128x128xf32>
    %c0_16 = arith.constant 0 : index
    %c0_17 = arith.constant 0 : index
    %30 = vector.load %arg15[%c0_16, %c0_17] : memref<128x128xf32, #tpu.memory_space<vmem>>, vector<128x128xf32>
    tpu.vector_store %arg15[%c0_16, %c0_17], %29 {strides = array<i32>} : memref<128x128xf32, #tpu.memory_space<vmem>>, vector<128x128xf32>,
    %c0_18 = arith.constant 0 : index
    %c0_19 = arith.constant 0 : index
    %31 = vector.load %arg13[%c0_18, %c0_19] : memref<128x1xf32, #tpu.memory_space<vmem>>, vector<128x1xf32>
    tpu.vector_store %arg13[%c0_18, %c0_19], %12 {strides = array<i32>} : memref<128x1xf32, #tpu.memory_space<vmem>>, vector<128x1xf32>,
    %c0_i32_20 = arith.constant 0 : i32
    %32 = arith.cmpi eq, %arg2, %c0_i32_20 : i32
    %33 = arith.extui %32 : i1 to i32
    %c0_i32_21 = arith.constant 0 : i32
    %34 = arith.cmpi ne, %33, %c0_i32_21 : i32
    scf.if %34 {
      %c0_22 = arith.constant 0 : index
      %c0_23 = arith.constant 0 : index
      %35 = vector.load %arg15[%c0_22, %c0_23] : memref<128x128xf32, #tpu.memory_space<vmem>>, vector<128x128xf32>
      %c0_24 = arith.constant 0 : index
      %c0_25 = arith.constant 0 : index
      %36 = vector.load %arg14[%c0_24, %c0_25] : memref<128x1xf32, #tpu.memory_space<vmem>>, vector<128x1xf32>
      %37 = vector.broadcast %36 : vector<128x1xf32> to vector<128x128xf32>
      %38 = arith.divf %35, %37 : vector<128x128xf32>
      %39 = arith.truncf %38 : vector<128x128xf32> to vector<128x128xbf16>
      %c0_26 = arith.constant 0 : index
      %c0_27 = arith.constant 0 : index
      %40 = vector.load %arg7[%c0_26, %c0_27] : memref<128x256xbf16, #tpu.memory_space<vmem>>, vector<128x256xbf16>
      %cst_28 = arith.constant dense<0.000000e+00> : vector<128x256xf32>
      %41 = tpu.matmul %39, %40, %cst_28 {dimension_numbers = #tpu.dot_dimension_numbers<[1], [0], [0], [1], [0, 0, 1, 1], [], []>} : vector<128x128xbf16>, vector<128x256xbf16>, vector<128x256xf32> -> vector<128x256xf32>
      %c0_29 = arith.constant 0 : index
      %c0_30 = arith.constant 0 : index
      %42 = vector.load %arg8[%c0_29, %c0_30] : memref<1x256xf32, #tpu.memory_space<vmem>>, vector<1x256xf32>
      %43 = vector.broadcast %42 : vector<1x256xf32> to vector<128x256xf32>
      %44 = arith.addf %41, %43 : vector<128x256xf32>
      %c0_31 = arith.constant 0 : index
      %c0_32 = arith.constant 0 : index
      %c0_33 = arith.constant 0 : index
      %45 = vector.load %arg3[%c0_31, %c0_32, %c0_33] : memref<1x128x256xbf16, #tpu.memory_space<vmem>>, vector<1x128x256xbf16>
      %46 = vector.shape_cast %45 : vector<1x128x256xbf16> to vector<128x256xbf16>
      %47 = arith.extf %46 : vector<128x256xbf16> to vector<128x256xf32>
      %48 = arith.addf %44, %47 : vector<128x256xf32>
      %49 = arith.truncf %48 : vector<128x256xf32> to vector<128x256xbf16>
      %c0_34 = arith.constant 0 : index
      %c0_35 = arith.constant 0 : index
      %50 = vector.load %arg9[%c0_34, %c0_35] : memref<256x128xbf16, #tpu.memory_space<vmem>>, vector<256x128xbf16>
      %cst_36 = arith.constant dense<0.000000e+00> : vector<128x128xf32>
      %51 = tpu.matmul %49, %50, %cst_36 {dimension_numbers = #tpu.dot_dimension_numbers<[1], [0], [0], [1], [0, 0, 1, 1], [], []>} : vector<128x256xbf16>, vector<256x128xbf16>, vector<128x128xf32> -> vector<128x128xf32>
      %c0_37 = arith.constant 0 : index
      %c0_38 = arith.constant 0 : index
      %52 = vector.load %arg10[%c0_37, %c0_38] : memref<1x128xf32, #tpu.memory_space<vmem>>, vector<1x128xf32>
      %53 = vector.broadcast %52 : vector<1x128xf32> to vector<128x128xf32>
      %54 = arith.addf %51, %53 : vector<128x128xf32>
      %55 = arith.truncf %54 : vector<128x128xf32> to vector<128x128xbf16>
      %c0_39 = arith.constant 0 : index
      %c0_40 = arith.constant 0 : index
      %c0_41 = arith.constant 0 : index
      %56 = vector.load %arg11[%c0_39, %c0_40, %c0_41] : memref<1x128x128xbf16, #tpu.memory_space<vmem>>, vector<1x128x128xbf16>
      %57 = vector.shape_cast %56 : vector<1x128x128xbf16> to vector<128x128xbf16>
      %58 = vector.shape_cast %55 : vector<128x128xbf16> to vector<1x128x128xbf16>
      tpu.vector_store %arg11[%c0_39, %c0_40, %c0_41], %58 {strides = array<i32>} : memref<1x128x128xbf16, #tpu.memory_space<vmem>>, vector<1x128x128xbf16>,
    } else {
    }
    return
  }
  func.func @transform_0(%arg0: i32, %arg1: i32, %arg2: i32) -> (i32, i32, i32) {
    %c0_i32 = arith.constant 0 : i32
    %c0_i32_0 = arith.constant 0 : i32
    return %arg0, %arg1, %c0_i32 : i32, i32, i32
  }
  func.func @transform_1(%arg0: i32, %arg1: i32, %arg2: i32) -> (i32, i32, i32) {
    %c0_i32 = arith.constant 0 : i32
    %c0_i32_0 = arith.constant 0 : i32
    return %arg0, %arg2, %c0_i32 : i32, i32, i32
  }
  func.func @transform_2(%arg0: i32, %arg1: i32, %arg2: i32) -> (i32, i32) {
    %c0_i32 = arith.constant 0 : i32
    %c0_i32_0 = arith.constant 0 : i32
    %c0_i32_1 = arith.constant 0 : i32
    return %c0_i32, %c0_i32_0 : i32, i32
  }
  func.func @transform_3(%arg0: i32, %arg1: i32, %arg2: i32) -> (i32, i32) {
    %c0_i32 = arith.constant 0 : i32
    %c0_i32_0 = arith.constant 0 : i32
    %c0_i32_1 = arith.constant 0 : i32
    return %c0_i32, %c0_i32_0 : i32, i32
  }
  func.func @transform_4(%arg0: i32, %arg1: i32, %arg2: i32) -> (i32, i32) {
    %c0_i32 = arith.constant 0 : i32
    %c0_i32_0 = arith.constant 0 : i32
    %c0_i32_1 = arith.constant 0 : i32
    return %c0_i32, %c0_i32_0 : i32, i32
  }
  func.func @transform_5(%arg0: i32, %arg1: i32, %arg2: i32) -> (i32, i32) {
    %c0_i32 = arith.constant 0 : i32
    %c0_i32_0 = arith.constant 0 : i32
    %c0_i32_1 = arith.constant 0 : i32
    return %c0_i32, %c0_i32_0 : i32, i32
  }
  func.func @transform_6(%arg0: i32, %arg1: i32, %arg2: i32) -> (i32, i32) {
    %c0_i32 = arith.constant 0 : i32
    %c0_i32_0 = arith.constant 0 : i32
    %c0_i32_1 = arith.constant 0 : i32
    return %c0_i32, %c0_i32_0 : i32, i32
  }
  func.func @transform_7(%arg0: i32, %arg1: i32, %arg2: i32) -> (i32, i32) {
    %c0_i32 = arith.constant 0 : i32
    %c0_i32_0 = arith.constant 0 : i32
    %c0_i32_1 = arith.constant 0 : i32
    return %c0_i32, %c0_i32_0 : i32, i32
  }
  func.func @transform_8(%arg0: i32, %arg1: i32, %arg2: i32) -> (i32, i32, i32) {
    %c0_i32 = arith.constant 0 : i32
    %c0_i32_0 = arith.constant 0 : i32
    return %arg0, %arg1, %c0_i32 : i32, i32, i32
  }
}

module attributes {stable_mosaic.version = 11 : i64} {
  func.func @_head3x3_kernel(%arg0: i32, %arg1: memref<1x8x8x256xbf16, #tpu.memory_space<vmem>>, %arg2: memref<2304x128xbf16, #tpu.memory_space<vmem>>, %arg3: memref<1x128xf32, #tpu.memory_space<vmem>>, %arg4: memref<128x128xbf16, #tpu.memory_space<vmem>>, %arg5: memref<1x128xf32, #tpu.memory_space<vmem>>, %arg6: memref<1x64x128xbf16, #tpu.memory_space<vmem>>, %arg7: memref<1x10x10x256xbf16, #tpu.memory_space<vmem>>) attributes {dimension_semantics = [#tpu.dimension_semantics<parallel>], iteration_bounds = array<i64: 2>, scalar_prefetch = 0 : i64, scratch_operands = 1 : i64, tpu.core_type = #tpu.core_type<tc>, window_params = [{transform_indices = @transform_0, window_bounds = array<i64: 1, 8, 8, 256>}, {pipeline_mode = #tpu.pipeline_mode<synchronous>, transform_indices = @transform_1, window_bounds = array<i64: 2304, 128>}, {pipeline_mode = #tpu.pipeline_mode<synchronous>, transform_indices = @transform_2, window_bounds = array<i64: 1, 128>}, {pipeline_mode = #tpu.pipeline_mode<synchronous>, transform_indices = @transform_3, window_bounds = array<i64: 128, 128>}, {pipeline_mode = #tpu.pipeline_mode<synchronous>, transform_indices = @transform_4, window_bounds = array<i64: 1, 128>}, {transform_indices = @transform_5, window_bounds = array<i64: 1, 64, 128>}]} {
    %cst = arith.constant 0.000000e+00 : bf16
    %0 = vector.broadcast %cst : bf16 to vector<1x10x10x256xbf16>
    %c0 = arith.constant 0 : index
    %c0_0 = arith.constant 0 : index
    %c0_1 = arith.constant 0 : index
    %c0_2 = arith.constant 0 : index
    %1 = vector.load %arg7[%c0, %c0_0, %c0_1, %c0_2] : memref<1x10x10x256xbf16, #tpu.memory_space<vmem>>, vector<1x10x10x256xbf16>
    tpu.vector_store %arg7[%c0, %c0_0, %c0_1, %c0_2], %0 {strides = array<i32>} : memref<1x10x10x256xbf16, #tpu.memory_space<vmem>>, vector<1x10x10x256xbf16>,
    %c0_3 = arith.constant 0 : index
    %c0_4 = arith.constant 0 : index
    %c0_5 = arith.constant 0 : index
    %c0_6 = arith.constant 0 : index
    %2 = vector.load %arg1[%c0_3, %c0_4, %c0_5, %c0_6] : memref<1x8x8x256xbf16, #tpu.memory_space<vmem>>, vector<1x8x8x256xbf16>
    %c0_7 = arith.constant 0 : index
    %c1 = arith.constant 1 : index
    %c1_8 = arith.constant 1 : index
    %c0_9 = arith.constant 0 : index
    %3 = vector.load %arg7[%c0_7, %c1, %c1_8, %c0_9] : memref<1x10x10x256xbf16, #tpu.memory_space<vmem>>, vector<1x8x8x256xbf16>
    tpu.vector_store %arg7[%c0_7, %c1, %c1_8, %c0_9], %2 {strides = array<i32>} : memref<1x10x10x256xbf16, #tpu.memory_space<vmem>>, vector<1x8x8x256xbf16>,
    %c0_10 = arith.constant 0 : index
    %c0_11 = arith.constant 0 : index
    %c0_12 = arith.constant 0 : index
    %c0_13 = arith.constant 0 : index
    %4 = vector.load %arg7[%c0_10, %c0_11, %c0_12, %c0_13] : memref<1x10x10x256xbf16, #tpu.memory_space<vmem>>, vector<1x10x10x256xbf16>
    %5 = vector.extract_strided_slice %4 {offsets = [0, 0, 0, 0], sizes = [1, 8, 8, 256], strides = [1, 1, 1, 1]} : vector<1x10x10x256xbf16> to vector<1x8x8x256xbf16>
    %6 = vector.shape_cast %5 : vector<1x8x8x256xbf16> to vector<64x256xbf16>
    %7 = vector.extract_strided_slice %4 {offsets = [0, 0, 1, 0], sizes = [1, 8, 8, 256], strides = [1, 1, 1, 1]} : vector<1x10x10x256xbf16> to vector<1x8x8x256xbf16>
    %8 = vector.shape_cast %7 : vector<1x8x8x256xbf16> to vector<64x256xbf16>
    %9 = vector.extract_strided_slice %4 {offsets = [0, 0, 2, 0], sizes = [1, 8, 8, 256], strides = [1, 1, 1, 1]} : vector<1x10x10x256xbf16> to vector<1x8x8x256xbf16>
    %10 = vector.shape_cast %9 : vector<1x8x8x256xbf16> to vector<64x256xbf16>
    %11 = vector.extract_strided_slice %4 {offsets = [0, 1, 0, 0], sizes = [1, 8, 8, 256], strides = [1, 1, 1, 1]} : vector<1x10x10x256xbf16> to vector<1x8x8x256xbf16>
    %12 = vector.shape_cast %11 : vector<1x8x8x256xbf16> to vector<64x256xbf16>
    %13 = vector.extract_strided_slice %4 {offsets = [0, 1, 1, 0], sizes = [1, 8, 8, 256], strides = [1, 1, 1, 1]} : vector<1x10x10x256xbf16> to vector<1x8x8x256xbf16>
    %14 = vector.shape_cast %13 : vector<1x8x8x256xbf16> to vector<64x256xbf16>
    %15 = vector.extract_strided_slice %4 {offsets = [0, 1, 2, 0], sizes = [1, 8, 8, 256], strides = [1, 1, 1, 1]} : vector<1x10x10x256xbf16> to vector<1x8x8x256xbf16>
    %16 = vector.shape_cast %15 : vector<1x8x8x256xbf16> to vector<64x256xbf16>
    %17 = vector.extract_strided_slice %4 {offsets = [0, 2, 0, 0], sizes = [1, 8, 8, 256], strides = [1, 1, 1, 1]} : vector<1x10x10x256xbf16> to vector<1x8x8x256xbf16>
    %18 = vector.shape_cast %17 : vector<1x8x8x256xbf16> to vector<64x256xbf16>
    %19 = vector.extract_strided_slice %4 {offsets = [0, 2, 1, 0], sizes = [1, 8, 8, 256], strides = [1, 1, 1, 1]} : vector<1x10x10x256xbf16> to vector<1x8x8x256xbf16>
    %20 = vector.shape_cast %19 : vector<1x8x8x256xbf16> to vector<64x256xbf16>
    %21 = vector.extract_strided_slice %4 {offsets = [0, 2, 2, 0], sizes = [1, 8, 8, 256], strides = [1, 1, 1, 1]} : vector<1x10x10x256xbf16> to vector<1x8x8x256xbf16>
    %22 = vector.shape_cast %21 : vector<1x8x8x256xbf16> to vector<64x256xbf16>
    %23 = tpu.concatenate %6, %8, %10, %12, %14, %16, %18, %20, %22 in 1 : vector<64x256xbf16>, vector<64x256xbf16>, vector<64x256xbf16>, vector<64x256xbf16>, vector<64x256xbf16>, vector<64x256xbf16>, vector<64x256xbf16>, vector<64x256xbf16>, vector<64x256xbf16> -> vector<64x2304xbf16>
    %c0_14 = arith.constant 0 : index
    %c0_15 = arith.constant 0 : index
    %24 = vector.load %arg2[%c0_14, %c0_15] : memref<2304x128xbf16, #tpu.memory_space<vmem>>, vector<2304x128xbf16>
    %cst_16 = arith.constant dense<0.000000e+00> : vector<64x128xf32>
    %25 = tpu.matmul %23, %24, %cst_16 {dimension_numbers = #tpu.dot_dimension_numbers<[1], [0], [0], [1], [0, 0, 1, 1], [], []>} : vector<64x2304xbf16>, vector<2304x128xbf16>, vector<64x128xf32> -> vector<64x128xf32>
    %c0_17 = arith.constant 0 : index
    %c0_18 = arith.constant 0 : index
    %26 = vector.load %arg3[%c0_17, %c0_18] : memref<1x128xf32, #tpu.memory_space<vmem>>, vector<1x128xf32>
    %27 = vector.broadcast %26 : vector<1x128xf32> to vector<64x128xf32>
    %28 = arith.addf %25, %27 : vector<64x128xf32>
    %cst_19 = arith.constant 0.000000e+00 : f32
    %29 = vector.broadcast %cst_19 : f32 to vector<64x128xf32>
    %30 = arith.maximumf %28, %29 : vector<64x128xf32>
    %31 = arith.truncf %30 : vector<64x128xf32> to vector<64x128xbf16>
    %c0_20 = arith.constant 0 : index
    %c0_21 = arith.constant 0 : index
    %32 = vector.load %arg4[%c0_20, %c0_21] : memref<128x128xbf16, #tpu.memory_space<vmem>>, vector<128x128xbf16>
    %cst_22 = arith.constant dense<0.000000e+00> : vector<64x128xf32>
    %33 = tpu.matmul %31, %32, %cst_22 {dimension_numbers = #tpu.dot_dimension_numbers<[1], [0], [0], [1], [0, 0, 1, 1], [], []>} : vector<64x128xbf16>, vector<128x128xbf16>, vector<64x128xf32> -> vector<64x128xf32>
    %c0_23 = arith.constant 0 : index
    %c0_24 = arith.constant 0 : index
    %34 = vector.load %arg5[%c0_23, %c0_24] : memref<1x128xf32, #tpu.memory_space<vmem>>, vector<1x128xf32>
    %35 = vector.broadcast %34 : vector<1x128xf32> to vector<64x128xf32>
    %36 = arith.addf %33, %35 : vector<64x128xf32>
    %37 = tpu.iota {dimensions = array<i32: 1>} : vector<64x128xi32>
    %c3_i32 = arith.constant 3 : i32
    %38 = vector.broadcast %c3_i32 : i32 to vector<64x128xi32>
    %39 = arith.cmpi slt, %37, %38 : vector<64x128xi32>
    %40 = arith.negf %36 : vector<64x128xf32>
    %41 = math.exp %40 : vector<64x128xf32>
    %cst_25 = arith.constant 1.000000e+00 : f32
    %42 = vector.broadcast %cst_25 : f32 to vector<64x128xf32>
    %43 = arith.addf %42, %41 : vector<64x128xf32>
    %44 = arith.divf %42, %43 : vector<64x128xf32>
    %45 = arith.select %39, %44, %36 : vector<64x128xi1>, vector<64x128xf32>
    %46 = vector.shape_cast %45 : vector<64x128xf32> to vector<1x64x128xf32>
    %47 = arith.truncf %46 : vector<1x64x128xf32> to vector<1x64x128xbf16>
    %c0_26 = arith.constant 0 : index
    %c0_27 = arith.constant 0 : index
    %c0_28 = arith.constant 0 : index
    %48 = vector.load %arg6[%c0_26, %c0_27, %c0_28] : memref<1x64x128xbf16, #tpu.memory_space<vmem>>, vector<1x64x128xbf16>
    tpu.vector_store %arg6[%c0_26, %c0_27, %c0_28], %47 {strides = array<i32>} : memref<1x64x128xbf16, #tpu.memory_space<vmem>>, vector<1x64x128xbf16>,
    return
  }
  func.func @transform_0(%arg0: i32) -> (i32, i32, i32, i32) {
    %c0_i32 = arith.constant 0 : i32
    %c0_i32_0 = arith.constant 0 : i32
    %c0_i32_1 = arith.constant 0 : i32
    %c0_i32_2 = arith.constant 0 : i32
    return %arg0, %c0_i32, %c0_i32_0, %c0_i32_1 : i32, i32, i32, i32
  }
  func.func @transform_1(%arg0: i32) -> (i32, i32) {
    %c0_i32 = arith.constant 0 : i32
    %c0_i32_0 = arith.constant 0 : i32
    %c0_i32_1 = arith.constant 0 : i32
    return %c0_i32, %c0_i32_0 : i32, i32
  }
  func.func @transform_2(%arg0: i32) -> (i32, i32) {
    %c0_i32 = arith.constant 0 : i32
    %c0_i32_0 = arith.constant 0 : i32
    %c0_i32_1 = arith.constant 0 : i32
    return %c0_i32, %c0_i32_0 : i32, i32
  }
  func.func @transform_3(%arg0: i32) -> (i32, i32) {
    %c0_i32 = arith.constant 0 : i32
    %c0_i32_0 = arith.constant 0 : i32
    %c0_i32_1 = arith.constant 0 : i32
    return %c0_i32, %c0_i32_0 : i32, i32
  }
  func.func @transform_4(%arg0: i32) -> (i32, i32) {
    %c0_i32 = arith.constant 0 : i32
    %c0_i32_0 = arith.constant 0 : i32
    %c0_i32_1 = arith.constant 0 : i32
    return %c0_i32, %c0_i32_0 : i32, i32
  }
  func.func @transform_5(%arg0: i32) -> (i32, i32, i32) {
    %c0_i32 = arith.constant 0 : i32
    %c0_i32_0 = arith.constant 0 : i32
    %c0_i32_1 = arith.constant 0 : i32
    return %arg0, %c0_i32, %c0_i32_0 : i32, i32, i32
  }
}

module attributes {stable_mosaic.version = 11 : i64} {
  func.func @_head3x3_kernel(%arg0: i32, %arg1: memref<2x8x8x128xbf16, #tpu.memory_space<vmem>>, %arg2: memref<1152x128xbf16, #tpu.memory_space<vmem>>, %arg3: memref<1x128xf32, #tpu.memory_space<vmem>>, %arg4: memref<128x128xbf16, #tpu.memory_space<vmem>>, %arg5: memref<1x128xf32, #tpu.memory_space<vmem>>, %arg6: memref<2x64x128xbf16, #tpu.memory_space<vmem>>, %arg7: memref<2x10x10x128xbf16, #tpu.memory_space<vmem>>) attributes {dimension_semantics = [#tpu.dimension_semantics<parallel>], iteration_bounds = array<i64: 2>, scalar_prefetch = 0 : i64, scratch_operands = 1 : i64, tpu.core_type = #tpu.core_type<tc>, window_params = [{transform_indices = @transform_0, window_bounds = array<i64: 2, 8, 8, 128>}, {pipeline_mode = #tpu.pipeline_mode<synchronous>, transform_indices = @transform_1, window_bounds = array<i64: 1152, 128>}, {pipeline_mode = #tpu.pipeline_mode<synchronous>, transform_indices = @transform_2, window_bounds = array<i64: 1, 128>}, {pipeline_mode = #tpu.pipeline_mode<synchronous>, transform_indices = @transform_3, window_bounds = array<i64: 128, 128>}, {pipeline_mode = #tpu.pipeline_mode<synchronous>, transform_indices = @transform_4, window_bounds = array<i64: 1, 128>}, {transform_indices = @transform_5, window_bounds = array<i64: 2, 64, 128>}]} {
    %cst = arith.constant 0.000000e+00 : bf16
    %0 = vector.broadcast %cst : bf16 to vector<2x10x10x128xbf16>
    %c0 = arith.constant 0 : index
    %c0_0 = arith.constant 0 : index
    %c0_1 = arith.constant 0 : index
    %c0_2 = arith.constant 0 : index
    %1 = vector.load %arg7[%c0, %c0_0, %c0_1, %c0_2] : memref<2x10x10x128xbf16, #tpu.memory_space<vmem>>, vector<2x10x10x128xbf16>
    tpu.vector_store %arg7[%c0, %c0_0, %c0_1, %c0_2], %0 {strides = array<i32>} : memref<2x10x10x128xbf16, #tpu.memory_space<vmem>>, vector<2x10x10x128xbf16>,
    %c0_3 = arith.constant 0 : index
    %c0_4 = arith.constant 0 : index
    %c0_5 = arith.constant 0 : index
    %c0_6 = arith.constant 0 : index
    %2 = vector.load %arg1[%c0_3, %c0_4, %c0_5, %c0_6] : memref<2x8x8x128xbf16, #tpu.memory_space<vmem>>, vector<2x8x8x128xbf16>
    %c0_7 = arith.constant 0 : index
    %c1 = arith.constant 1 : index
    %c1_8 = arith.constant 1 : index
    %c0_9 = arith.constant 0 : index
    %3 = vector.load %arg7[%c0_7, %c1, %c1_8, %c0_9] : memref<2x10x10x128xbf16, #tpu.memory_space<vmem>>, vector<2x8x8x128xbf16>
    tpu.vector_store %arg7[%c0_7, %c1, %c1_8, %c0_9], %2 {strides = array<i32>} : memref<2x10x10x128xbf16, #tpu.memory_space<vmem>>, vector<2x8x8x128xbf16>,
    %c0_10 = arith.constant 0 : index
    %c0_11 = arith.constant 0 : index
    %c0_12 = arith.constant 0 : index
    %c0_13 = arith.constant 0 : index
    %4 = vector.load %arg7[%c0_10, %c0_11, %c0_12, %c0_13] : memref<2x10x10x128xbf16, #tpu.memory_space<vmem>>, vector<2x10x10x128xbf16>
    %5 = vector.extract_strided_slice %4 {offsets = [0, 0, 0, 0], sizes = [2, 8, 8, 128], strides = [1, 1, 1, 1]} : vector<2x10x10x128xbf16> to vector<2x8x8x128xbf16>
    %6 = vector.shape_cast %5 : vector<2x8x8x128xbf16> to vector<128x128xbf16>
    %7 = vector.extract_strided_slice %4 {offsets = [0, 0, 1, 0], sizes = [2, 8, 8, 128], strides = [1, 1, 1, 1]} : vector<2x10x10x128xbf16> to vector<2x8x8x128xbf16>
    %8 = vector.shape_cast %7 : vector<2x8x8x128xbf16> to vector<128x128xbf16>
    %9 = vector.extract_strided_slice %4 {offsets = [0, 0, 2, 0], sizes = [2, 8, 8, 128], strides = [1, 1, 1, 1]} : vector<2x10x10x128xbf16> to vector<2x8x8x128xbf16>
    %10 = vector.shape_cast %9 : vector<2x8x8x128xbf16> to vector<128x128xbf16>
    %11 = vector.extract_strided_slice %4 {offsets = [0, 1, 0, 0], sizes = [2, 8, 8, 128], strides = [1, 1, 1, 1]} : vector<2x10x10x128xbf16> to vector<2x8x8x128xbf16>
    %12 = vector.shape_cast %11 : vector<2x8x8x128xbf16> to vector<128x128xbf16>
    %13 = vector.extract_strided_slice %4 {offsets = [0, 1, 1, 0], sizes = [2, 8, 8, 128], strides = [1, 1, 1, 1]} : vector<2x10x10x128xbf16> to vector<2x8x8x128xbf16>
    %14 = vector.shape_cast %13 : vector<2x8x8x128xbf16> to vector<128x128xbf16>
    %15 = vector.extract_strided_slice %4 {offsets = [0, 1, 2, 0], sizes = [2, 8, 8, 128], strides = [1, 1, 1, 1]} : vector<2x10x10x128xbf16> to vector<2x8x8x128xbf16>
    %16 = vector.shape_cast %15 : vector<2x8x8x128xbf16> to vector<128x128xbf16>
    %17 = vector.extract_strided_slice %4 {offsets = [0, 2, 0, 0], sizes = [2, 8, 8, 128], strides = [1, 1, 1, 1]} : vector<2x10x10x128xbf16> to vector<2x8x8x128xbf16>
    %18 = vector.shape_cast %17 : vector<2x8x8x128xbf16> to vector<128x128xbf16>
    %19 = vector.extract_strided_slice %4 {offsets = [0, 2, 1, 0], sizes = [2, 8, 8, 128], strides = [1, 1, 1, 1]} : vector<2x10x10x128xbf16> to vector<2x8x8x128xbf16>
    %20 = vector.shape_cast %19 : vector<2x8x8x128xbf16> to vector<128x128xbf16>
    %21 = vector.extract_strided_slice %4 {offsets = [0, 2, 2, 0], sizes = [2, 8, 8, 128], strides = [1, 1, 1, 1]} : vector<2x10x10x128xbf16> to vector<2x8x8x128xbf16>
    %22 = vector.shape_cast %21 : vector<2x8x8x128xbf16> to vector<128x128xbf16>
    %23 = tpu.concatenate %6, %8, %10, %12, %14, %16, %18, %20, %22 in 1 : vector<128x128xbf16>, vector<128x128xbf16>, vector<128x128xbf16>, vector<128x128xbf16>, vector<128x128xbf16>, vector<128x128xbf16>, vector<128x128xbf16>, vector<128x128xbf16>, vector<128x128xbf16> -> vector<128x1152xbf16>
    %c0_14 = arith.constant 0 : index
    %c0_15 = arith.constant 0 : index
    %24 = vector.load %arg2[%c0_14, %c0_15] : memref<1152x128xbf16, #tpu.memory_space<vmem>>, vector<1152x128xbf16>
    %cst_16 = arith.constant dense<0.000000e+00> : vector<128x128xf32>
    %25 = tpu.matmul %23, %24, %cst_16 {dimension_numbers = #tpu.dot_dimension_numbers<[1], [0], [0], [1], [0, 0, 1, 1], [], []>} : vector<128x1152xbf16>, vector<1152x128xbf16>, vector<128x128xf32> -> vector<128x128xf32>
    %c0_17 = arith.constant 0 : index
    %c0_18 = arith.constant 0 : index
    %26 = vector.load %arg3[%c0_17, %c0_18] : memref<1x128xf32, #tpu.memory_space<vmem>>, vector<1x128xf32>
    %27 = vector.broadcast %26 : vector<1x128xf32> to vector<128x128xf32>
    %28 = arith.addf %25, %27 : vector<128x128xf32>
    %cst_19 = arith.constant 0.000000e+00 : f32
    %29 = vector.broadcast %cst_19 : f32 to vector<128x128xf32>
    %30 = arith.maximumf %28, %29 : vector<128x128xf32>
    %31 = arith.truncf %30 : vector<128x128xf32> to vector<128x128xbf16>
    %c0_20 = arith.constant 0 : index
    %c0_21 = arith.constant 0 : index
    %32 = vector.load %arg4[%c0_20, %c0_21] : memref<128x128xbf16, #tpu.memory_space<vmem>>, vector<128x128xbf16>
    %cst_22 = arith.constant dense<0.000000e+00> : vector<128x128xf32>
    %33 = tpu.matmul %31, %32, %cst_22 {dimension_numbers = #tpu.dot_dimension_numbers<[1], [0], [0], [1], [0, 0, 1, 1], [], []>} : vector<128x128xbf16>, vector<128x128xbf16>, vector<128x128xf32> -> vector<128x128xf32>
    %c0_23 = arith.constant 0 : index
    %c0_24 = arith.constant 0 : index
    %34 = vector.load %arg5[%c0_23, %c0_24] : memref<1x128xf32, #tpu.memory_space<vmem>>, vector<1x128xf32>
    %35 = vector.broadcast %34 : vector<1x128xf32> to vector<128x128xf32>
    %36 = arith.addf %33, %35 : vector<128x128xf32>
    %37 = vector.shape_cast %36 : vector<128x128xf32> to vector<2x64x128xf32>
    %38 = arith.truncf %37 : vector<2x64x128xf32> to vector<2x64x128xbf16>
    %c0_25 = arith.constant 0 : index
    %c0_26 = arith.constant 0 : index
    %c0_27 = arith.constant 0 : index
    %39 = vector.load %arg6[%c0_25, %c0_26, %c0_27] : memref<2x64x128xbf16, #tpu.memory_space<vmem>>, vector<2x64x128xbf16>
    tpu.vector_store %arg6[%c0_25, %c0_26, %c0_27], %38 {strides = array<i32>} : memref<2x64x128xbf16, #tpu.memory_space<vmem>>, vector<2x64x128xbf16>,
    return
  }
  func.func @transform_0(%arg0: i32) -> (i32, i32, i32, i32) {
    %c0_i32 = arith.constant 0 : i32
    %c0_i32_0 = arith.constant 0 : i32
    %c0_i32_1 = arith.constant 0 : i32
    %c0_i32_2 = arith.constant 0 : i32
    return %arg0, %c0_i32, %c0_i32_0, %c0_i32_1 : i32, i32, i32, i32
  }
  func.func @transform_1(%arg0: i32) -> (i32, i32) {
    %c0_i32 = arith.constant 0 : i32
    %c0_i32_0 = arith.constant 0 : i32
    %c0_i32_1 = arith.constant 0 : i32
    return %c0_i32, %c0_i32_0 : i32, i32
  }
  func.func @transform_2(%arg0: i32) -> (i32, i32) {
    %c0_i32 = arith.constant 0 : i32
    %c0_i32_0 = arith.constant 0 : i32
    %c0_i32_1 = arith.constant 0 : i32
    return %c0_i32, %c0_i32_0 : i32, i32
  }
  func.func @transform_3(%arg0: i32) -> (i32, i32) {
    %c0_i32 = arith.constant 0 : i32
    %c0_i32_0 = arith.constant 0 : i32
    %c0_i32_1 = arith.constant 0 : i32
    return %c0_i32, %c0_i32_0 : i32, i32
  }
  func.func @transform_4(%arg0: i32) -> (i32, i32) {
    %c0_i32 = arith.constant 0 : i32
    %c0_i32_0 = arith.constant 0 : i32
    %c0_i32_1 = arith.constant 0 : i32
    return %c0_i32, %c0_i32_0 : i32, i32
  }
  func.func @transform_5(%arg0: i32) -> (i32, i32, i32) {
    %c0_i32 = arith.constant 0 : i32
    %c0_i32_0 = arith.constant 0 : i32
    %c0_i32_1 = arith.constant 0 : i32
    return %arg0, %c0_i32, %c0_i32_0 : i32, i32, i32
  }
}

</mosaic_0001>

<bundles_post_ra>
// kernel: _lambda_.4
= control target key start
LH: loop header
LB: loop body
LE: loop exit
PB: predicated region body
PF: predicated region fallthrough
CT: control target
= control target key end

     0   :  { %s1101_s12 = smov 0   ;;  %s1103_s13 = smov 0   ;;  %s1316_s0 = inlined_call_operand.vmem [shape: bf16[2,128,256], index: 0, kind: input, shape index: {}]   ;;  %s1317_s1 = inlined_call_operand.vmem [shape: bf16[256,256], index: 1, kind: input, shape index: {}]   ;;  %s1318_s2 = inlined_call_operand.vmem [shape: f32[1,256], index: 2, kind: input, shape index: {}]   ;;  %s1319_s3 = inlined_call_operand.vmem [shape: bf16[2,128,256], index: 3, kind: output, shape index: {}]  }
   0x1   :  { %s1105_s14 = smov 0  }
   0x2 LB: > { %s25_s15 = sadd.s32 1, %s1075_s13  ;;  %p840_p0 = scmp.ge.s32.totalorder %s1079_s14, 1  ;;  %s1079_s14 = sphi %s1105_s14, %s13_s14   ;;  %s1075_s13 = sphi %s1103_s13, %s1321_s13   ;;  %s1071_s12 = sphi %s1101_s12, %s1320_s12  }
   0x3   : > { %p27_p1 = scmp.ge.s32.totalorder %s25_s15, 2  ;;  %p159_p2 = scmp.lt.s32.totalorder %s1079_s14, 3 }
   0x5   : > { %s1323_s15 = smov (%p27_p1, %s25_s15), 0  ;;  %p160_p3 = pnand %p840_p0, %p159_p2 }
   0x6   : > { %v985_v0 = vld [vmem:[%s1317_s1 + $0x4] ss:$8 sps:$4 sm:$0xff] (!%p160_p3)   ;;  %v987_v1 = vld [vmem:[%s1317_s1] ss:$8 sps:$4 sm:$0xff] (!%p160_p3)   ;;  %v988_v2 = vld [vmem:[%s1317_s1 + $0x14] ss:$8 sps:$4 sm:$0xff] (!%p160_p3)   ;;  %v265_v48 = vlaneseq (!%p160_p3) }
   0x7   : > { %163 = sbr.rel (%p160_p3) target bundleno = 315 (0x13b), region = 32  ;;  %515 = vmatprep.subr.bf16.mxu0 (!%p160_p3), %v985_v0  ;;  %929 = vmatprep.subr.bf16.mxu1 (!%p160_p3), %v985_v0  ;;  %v990_v3 = vld [vmem:[%s1317_s1 + $0x10] ss:$8 sps:$4 sm:$0xff] (!%p160_p3)   ;;  %v991_v4 = vld [vmem:[%s1317_s1 + $0x24] ss:$8 sps:$4 sm:$0xff] (!%p160_p3)   ;;  %p194_p4 = scmp.lt.s32.totalorder (!%p160_p3), %s1071_s12, 1 }
   0x8   : > { %516 = vmatpush1.bf16.msra.mxu0 (!%p160_p3), %v987_v1  ;;  %945 = vmatpush1.bf16.msra.mxu1 (!%p160_p3), %v987_v1  ;;  %v993_v5 = vld [vmem:[%s1317_s1 + $0x20] ss:$8 sps:$4 sm:$0xff] (!%p160_p3)   ;;  %v994_v6 = vld [vmem:[%s1317_s1 + $0x34] ss:$8 sps:$4 sm:$0xff] (!%p160_p3)   ;;  %v996_v7 = vld [vmem:[%s1317_s1 + $0x30] ss:$8 sps:$4 sm:$0xff] (!%p160_p3)  }
   0x9   : > { %517 = vmatprep.subr.bf16.mxu0 (!%p160_p3), %v988_v2  ;;  %930 = vmatprep.subr.bf16.mxu1 (!%p160_p3), %v988_v2  ;;  %v997_v8 = vld [vmem:[%s1317_s1 + $0x44] ss:$8 sps:$4 sm:$0xff] (!%p160_p3)   ;;  %v999_v9 = vld [vmem:[%s1317_s1 + $0x40] ss:$8 sps:$4 sm:$0xff] (!%p160_p3)   ;;  %v1000_v10 = vld [vmem:[%s1317_s1 + $0x54] ss:$8 sps:$4 sm:$0xff] (!%p160_p3)  }
   0xa   : > { %v1002_v11 = vld [vmem:[%s1317_s1 + $0x50] ss:$8 sps:$4 sm:$0xff] (!%p160_p3)   ;;  %v1003_v12 = vld [vmem:[%s1317_s1 + $0x64] ss:$8 sps:$4 sm:$0xff] (!%p160_p3)   ;;  %v1005_v14 = vld [vmem:[%s1317_s1 + $0x60] ss:$8 sps:$4 sm:$0xff] (!%p160_p3)  }
   0xb   : > { %v1006_v16 = vld [vmem:[%s1317_s1 + $0x74] ss:$8 sps:$4 sm:$0xff] (!%p160_p3)   ;;  %v1008_v17 = vld [vmem:[%s1317_s1 + $0x70] ss:$8 sps:$4 sm:$0xff] (!%p160_p3)   ;;  %v1009_v18 = vld [vmem:[%s1317_s1 + $0x84] ss:$8 sps:$4 sm:$0xff] (!%p160_p3)  }
   0xc   : > { %518 = vmatpush1.bf16.msra.mxu0 (!%p160_p3), %v990_v3  ;;  %946 = vmatpush1.bf16.msra.mxu1 (!%p160_p3), %v990_v3  ;;  %v1011_v19 = vld [vmem:[%s1317_s1 + $0x80] ss:$8 sps:$4 sm:$0xff] (!%p160_p3)   ;;  %v1012_v20 = vld [vmem:[%s1317_s1 + $0x94] ss:$8 sps:$4 sm:$0xff] (!%p160_p3)   ;;  %v1014_v21 = vld [vmem:[%s1317_s1 + $0x90] ss:$8 sps:$4 sm:$0xff] (!%p160_p3)  }
   0xd   : > { %519 = vmatprep.subr.bf16.mxu0 (!%p160_p3), %v991_v4  ;;  %931 = vmatprep.subr.bf16.mxu1 (!%p160_p3), %v991_v4  ;;  %v1015_v22 = vld [vmem:[%s1317_s1 + $0xa4] ss:$8 sps:$4 sm:$0xff] (!%p160_p3)   ;;  %v1017_v23 = vld [vmem:[%s1317_s1 + $0xa0] ss:$8 sps:$4 sm:$0xff] (!%p160_p3)   ;;  %v1018_v24 = vld [vmem:[%s1317_s1 + $0xb4] ss:$8 sps:$4 sm:$0xff] (!%p160_p3)  }
   0xe   : > { %s1325_s12 = smov (!%p194_p4, %s1071_s12), 1  ;;  %v1020_v25 = vld [vmem:[%s1317_s1 + $0xb0] ss:$8 sps:$4 sm:$0xff]   ;;  %v1021_v26 = vld [vmem:[%s1317_s1 + $0xc4] ss:$8 sps:$4 sm:$0xff]   ;;  %v266_v49 = vshrl.u32 %v265_v48, 7 }
   0xf   : > { %s911_s11 = sshll.u32 %s1325_s12, 7  ;;  %v1023_v27 = vld [vmem:[%s1317_s1 + $0xc0] ss:$8 sps:$4 sm:$0xff]   ;;  %v1024_v28 = vld [vmem:[%s1317_s1 + $0xd4] ss:$8 sps:$4 sm:$0xff]  }
  0x10   : > { %520 = vmatpush1.bf16.msra.mxu0 %v993_v5  ;;  %947 = vmatpush1.bf16.msra.mxu1 %v993_v5  ;;  %s1167_s20 = scalar_lea.vmem %s1316_s0, %s911_s11  ;;  %v1026_v29 = vld [vmem:[%s1317_s1 + $0xd0] ss:$8 sps:$4 sm:$0xff]   ;;  %v1027_v30 = vld [vmem:[%s1317_s1 + $0xe4] ss:$8 sps:$4 sm:$0xff]   ;;  %v1029_v31 = vld [vmem:[%s1317_s1 + $0xe0] ss:$8 sps:$4 sm:$0xff]   ;;  %s1261_s22 = scalar_lea.vmem %s1319_s3, %s911_s11 }
  0x11   : > { %521 = vmatprep.subr.bf16.mxu0 %v994_v6  ;;  %932 = vmatprep.subr.bf16.mxu1 %v994_v6  ;;  %v1035_v13 = vld [vmem:[%s1167_s20 + $0x4] ss:$8 sps:$4 sm:$0xff]   ;;  %v1030_v32 = vld [vmem:[%s1317_s1 + $0xf4] ss:$8 sps:$4 sm:$0xff]   ;;  %v1032_v33 = vld [vmem:[%s1317_s1 + $0xf0] ss:$8 sps:$4 sm:$0xff]  }
  0x12   : > { %v1038_v15 = vld [vmem:[%s1167_s20 + $0x44] ss:$8 sps:$4 sm:$0xff]   ;;  %547 = vmatprep.mubr.bf16.mxu0 %v1035_v13  ;;  %v1033_v34 = vld [vmem:[%s1167_s20] ss:$8 sps:$4 sm:$0xff]   ;;  %v1039_v36 = vld [vmem:[%s1167_s20 + $0x14] ss:$8 sps:$4 sm:$0xff]  }
  0x13   : > { %587 = vmatprep.mubr.bf16.mxu1 %v1038_v15  ;;  %v1036_v35 = vld [vmem:[%s1167_s20 + $0x40] ss:$8 sps:$4 sm:$0xff]   ;;  %v1041_v37 = vld [vmem:[%s1167_s20 + $0x54] ss:$8 sps:$4 sm:$0xff]   ;;  %v1043_v38 = vld [vmem:[%s1167_s20 + $0x10] ss:$8 sps:$4 sm:$0xff]  }
  0x14   : > { %522 = vmatpush1.bf16.msra.mxu0 %v996_v7  ;;  %948 = vmatpush1.bf16.msra.mxu1 %v996_v7  ;;  %v1044_v39 = vld [vmem:[%s1167_s20 + $0x50] ss:$8 sps:$4 sm:$0xff]   ;;  %v1045_v40 = vld [vmem:[%s1167_s20 + $0x24] ss:$8 sps:$4 sm:$0xff]   ;;  %v1049_v42 = vld [vmem:[%s1167_s20 + $0x20] ss:$8 sps:$4 sm:$0xff]  }
  0x15   : > { %523 = vmatprep.subr.bf16.mxu0 %v997_v8  ;;  %933 = vmatprep.subr.bf16.mxu1 %v997_v8  ;;  %v1047_v41 = vld [vmem:[%s1167_s20 + $0x64] ss:$8 sps:$4 sm:$0xff]   ;;  %v1050_v43 = vld [vmem:[%s1167_s20 + $0x60] ss:$8 sps:$4 sm:$0xff]   ;;  %v1051_v44 = vld [vmem:[%s1167_s20 + $0x34] ss:$8 sps:$4 sm:$0xff]  }
  0x16   : > { %v1053_v45 = vld [vmem:[%s1167_s20 + $0x74] ss:$8 sps:$4 sm:$0xff]   ;;  %v1055_v46 = vld [vmem:[%s1167_s20 + $0x30] ss:$8 sps:$4 sm:$0xff]   ;;  %v267_v50 = vsub.s32 0, %v266_v49  ;;  %v271_v52 = vsub.s32 1, %v266_v49 }
  0x17   : > { %v1056_v47 = vld [vmem:[%s1167_s20 + $0x70] ss:$8 sps:$4 sm:$0xff]   ;;  %v263_v51 = vld [vmem:[%s1318_s2] sm:$0x3] }
  0x18   : > { %524 = vmatpush1.bf16.msra.mxu0 %v999_v9  ;;  %949 = vmatpush1.bf16.msra.mxu1 %v999_v9  ;;  %v1248_v53 = vrot.slane %v263_v51, %v267_v50  ;;  %v1250_v54 = vrot.slane %v263_v51, %v271_v52 }
  0x19   : > { %525 = vmatprep.subr.bf16.mxu0 %v1000_v10  ;;  %934 = vmatprep.subr.bf16.mxu1 %v1000_v10 }
  0x1c   : > { %526 = vmatpush1.bf16.msra.mxu0 %v1002_v11  ;;  %950 = vmatpush1.bf16.msra.mxu1 %v1002_v11 }
  0x1d   : > { %527 = vmatprep.subr.bf16.mxu0 %v1003_v12  ;;  %935 = vmatprep.subr.bf16.mxu1 %v1003_v12 }
  0x20   : > { %528 = vmatpush1.bf16.msra.mxu0 %v1005_v14  ;;  %951 = vmatpush1.bf16.msra.mxu1 %v1005_v14 }
  0x21   : > { %529 = vmatprep.subr.bf16.mxu0 %v1006_v16  ;;  %936 = vmatprep.subr.bf16.mxu1 %v1006_v16 }
  0x24   : > { %530 = vmatpush1.bf16.msra.mxu0 %v1008_v17  ;;  %952 = vmatpush1.bf16.msra.mxu1 %v1008_v17 }
  0x25   : > { %531 = vmatprep.subr.bf16.mxu0 %v1009_v18  ;;  %937 = vmatprep.subr.bf16.mxu1 %v1009_v18 }
  0x28   : > { %532 = vmatpush1.bf16.msra.mxu0 %v1011_v19  ;;  %953 = vmatpush1.bf16.msra.mxu1 %v1011_v19 }
  0x29   : > { %533 = vmatprep.subr.bf16.mxu0 %v1012_v20  ;;  %938 = vmatprep.subr.bf16.mxu1 %v1012_v20 }
  0x2c   : > { %534 = vmatpush1.bf16.msra.mxu0 %v1014_v21  ;;  %954 = vmatpush1.bf16.msra.mxu1 %v1014_v21 }
  0x2d   : > { %535 = vmatprep.subr.bf16.mxu0 %v1015_v22  ;;  %939 = vmatprep.subr.bf16.mxu1 %v1015_v22 }
  0x30   : > { %536 = vmatpush1.bf16.msra.mxu0 %v1017_v23  ;;  %955 = vmatpush1.bf16.msra.mxu1 %v1017_v23 }
  0x31   : > { %537 = vmatprep.subr.bf16.mxu0 %v1018_v24  ;;  %940 = vmatprep.subr.bf16.mxu1 %v1018_v24 }
  0x34   : > { %538 = vmatpush1.bf16.msra.mxu0 %v1020_v25  ;;  %956 = vmatpush1.bf16.msra.mxu1 %v1020_v25 }
  0x35   : > { %539 = vmatprep.subr.bf16.mxu0 %v1021_v26  ;;  %941 = vmatprep.subr.bf16.mxu1 %v1021_v26 }
  0x38   : > { %540 = vmatpush1.bf16.msra.mxu0 %v1023_v27  ;;  %957 = vmatpush1.bf16.msra.mxu1 %v1023_v27 }
  0x39   : > { %541 = vmatprep.subr.bf16.mxu0 %v1024_v28  ;;  %942 = vmatprep.subr.bf16.mxu1 %v1024_v28 }
  0x3c   : > { %542 = vmatpush1.bf16.msra.mxu0 %v1026_v29  ;;  %958 = vmatpush1.bf16.msra.mxu1 %v1026_v29 }
  0x3d   : > { %543 = vmatprep.subr.bf16.mxu0 %v1027_v30  ;;  %943 = vmatprep.subr.bf16.mxu1 %v1027_v30 }
  0x40   : > { %544 = vmatpush1.bf16.msra.mxu0 %v1029_v31  ;;  %959 = vmatpush1.bf16.msra.mxu1 %v1029_v31 }
  0x41   : > { %545 = vmatprep.subr.bf16.mxu0 %v1030_v32  ;;  %944 = vmatprep.subr.bf16.mxu1 %v1030_v32 }
  0x44   : > { %546 = vmatpush1.bf16.msra.mxu0 %v1032_v33  ;;  %960 = vmatpush1.bf16.msra.mxu1 %v1032_v33 }
  0x47   : > { %548 = vmatmul.mubr.bf16.vlgmr.msra.gmra.mrb[0].mxu0 %v1033_v34  ;;  %588 = vmatmul.mubr.bf16.vlgmr.msra.gmra.mrb[0].mxu1 %v1036_v35 }
  0x48   : > { %557 = vmatprep.mubr.bf16.mxu0 %v1039_v36  ;;  %597 = vmatprep.mubr.bf16.mxu1 %v1041_v37 }
  0x4f   : > { %558 = vmatmul.mubr.bf16.gmra.mrb[4].mxu0 %v1043_v38  ;;  %598 = vmatmul.mubr.bf16.gmra.mrb[4].mxu1 %v1044_v39 }
  0x50   : > { %567 = vmatprep.mubr.bf16.mxu0 %v1045_v40  ;;  %607 = vmatprep.mubr.bf16.mxu1 %v1047_v41 }
  0x57   : > { %568 = vmatmul.mubr.bf16.gmra.mrb[8].mxu0 %v1049_v42  ;;  %608 = vmatmul.mubr.bf16.gmra.mrb[8].mxu1 %v1050_v43 }
  0x58   : > { %577 = vmatprep.mubr.bf16.mxu0 %v1051_v44  ;;  %617 = vmatprep.mubr.bf16.mxu1 %v1053_v45 }
  0x5f   : > { %578 = vmatmul.mubr.bf16.gmra.mrb[12].mxu0 %v1055_v46  ;;  %618 = vmatmul.mubr.bf16.gmra.mrb[12].mxu1 %v1056_v47 }
 0x11a   : > { %v549_v55 = vpop.f32.mrb[0].mxu0  ;;  %v589_v56 = vpop.f32.mrb[0].mxu1 }
 0x11b   : > { %v550_v57 = vadd.f32 %v549_v55, %v1248_v53  ;;  %v590_v58 = vadd.f32 %v589_v56, %v1248_v53  ;;  %v551_v59 = vpop.f32.mrb[1].mxu0  ;;  %v591_v60 = vpop.f32.mrb[1].mxu1 }
 0x11c   : > { %v552_v61 = vadd.f32 %v551_v59, %v1250_v54  ;;  %v592_v62 = vadd.f32 %v591_v60, %v1250_v54  ;;  %v553_v63 = vpop.f32.mrb[2].mxu0  ;;  %v593_v0 = vpop.f32.mrb[2].mxu1 }
 0x11d   : > { %v554_v1 = vadd.f32 %v553_v63, %v1248_v53  ;;  %v594_v2 = vadd.f32 %v593_v0, %v1248_v53  ;;  %v555_v3 = vpop.f32.mrb[3].mxu0  ;;  %v595_v4 = vpop.f32.mrb[3].mxu1 }
 0x11e   : > { %v913_v5 = vpack.c.bf16 %v552_v61, %v550_v57  ;;  %v921_v6 = vpack.c.bf16 %v592_v62, %v590_v58  ;;  %v556_v7 = vadd.f32 %v555_v3, %v1250_v54  ;;  %v596_v8 = vadd.f32 %v595_v4, %v1250_v54 }
 0x120   : > { %724 = vst [vmem:[%s1261_s22] sm:$0xff] %v913_v5  ;;  %732 = vst [vmem:[%s1261_s22 + $0x40] sm:$0xff] %v921_v6  ;;  %v914_v9 = vpack.c.bf16 %v556_v7, %v554_v1  ;;  %v922_v10 = vpack.c.bf16 %v596_v8, %v594_v2 }
 0x122   : > { %725 = vst [vmem:[%s1261_s22 + $0x8] sm:$0xff] %v914_v9  ;;  %733 = vst [vmem:[%s1261_s22 + $0x48] sm:$0xff] %v922_v10  ;;  %v559_v11 = vpop.f32.mrb[4].mxu0  ;;  %v599_v12 = vpop.f32.mrb[4].mxu1 }
 0x123   : > { %v560_v13 = vadd.f32 %v559_v11, %v1248_v53  ;;  %v600_v14 = vadd.f32 %v599_v12, %v1248_v53  ;;  %v561_v15 = vpop.f32.mrb[5].mxu0  ;;  %v601_v16 = vpop.f32.mrb[5].mxu1 }
 0x124   : > { %v562_v17 = vadd.f32 %v561_v15, %v1250_v54  ;;  %v602_v18 = vadd.f32 %v601_v16, %v1250_v54  ;;  %v563_v19 = vpop.f32.mrb[6].mxu0  ;;  %v603_v20 = vpop.f32.mrb[6].mxu1 }
 0x125   : > { %v564_v21 = vadd.f32 %v563_v19, %v1248_v53  ;;  %v604_v22 = vadd.f32 %v603_v20, %v1248_v53  ;;  %v565_v23 = vpop.f32.mrb[7].mxu0  ;;  %v605_v24 = vpop.f32.mrb[7].mxu1 }
 0x126   : > { %v915_v25 = vpack.c.bf16 %v562_v17, %v560_v13  ;;  %v923_v26 = vpack.c.bf16 %v602_v18, %v600_v14  ;;  %v566_v27 = vadd.f32 %v565_v23, %v1250_v54  ;;  %v606_v28 = vadd.f32 %v605_v24, %v1250_v54 }
 0x128   : > { %726 = vst [vmem:[%s1261_s22 + $0x10] sm:$0xff] %v915_v25  ;;  %734 = vst [vmem:[%s1261_s22 + $0x50] sm:$0xff] %v923_v26  ;;  %v916_v29 = vpack.c.bf16 %v566_v27, %v564_v21  ;;  %v924_v30 = vpack.c.bf16 %v606_v28, %v604_v22 }
 0x12a   : > { %727 = vst [vmem:[%s1261_s22 + $0x18] sm:$0xff] %v916_v29  ;;  %735 = vst [vmem:[%s1261_s22 + $0x58] sm:$0xff] %v924_v30  ;;  %v569_v31 = vpop.f32.mrb[8].mxu0  ;;  %v609_v32 = vpop.f32.mrb[8].mxu1 }
 0x12b   : > { %v570_v33 = vadd.f32 %v569_v31, %v1248_v53  ;;  %v610_v34 = vadd.f32 %v609_v32, %v1248_v53  ;;  %v571_v35 = vpop.f32.mrb[9].mxu0  ;;  %v611_v36 = vpop.f32.mrb[9].mxu1 }
 0x12c   : > { %v572_v37 = vadd.f32 %v571_v35, %v1250_v54  ;;  %v612_v38 = vadd.f32 %v611_v36, %v1250_v54  ;;  %v573_v39 = vpop.f32.mrb[10].mxu0  ;;  %v613_v40 = vpop.f32.mrb[10].mxu1 }
 0x12d   : > { %v574_v41 = vadd.f32 %v573_v39, %v1248_v53  ;;  %v614_v42 = vadd.f32 %v613_v40, %v1248_v53  ;;  %v575_v43 = vpop.f32.mrb[11].mxu0  ;;  %v615_v44 = vpop.f32.mrb[11].mxu1 }
 0x12e   : > { %v917_v45 = vpack.c.bf16 %v572_v37, %v570_v33  ;;  %v925_v46 = vpack.c.bf16 %v612_v38, %v610_v34  ;;  %v576_v47 = vadd.f32 %v575_v43, %v1250_v54  ;;  %v616_v48 = vadd.f32 %v615_v44, %v1250_v54 }
 0x130   : > { %728 = vst [vmem:[%s1261_s22 + $0x20] sm:$0xff] %v917_v45  ;;  %736 = vst [vmem:[%s1261_s22 + $0x60] sm:$0xff] %v925_v46  ;;  %v918_v49 = vpack.c.bf16 %v576_v47, %v574_v41  ;;  %v926_v50 = vpack.c.bf16 %v616_v48, %v614_v42 }
 0x132   : > { %729 = vst [vmem:[%s1261_s22 + $0x28] sm:$0xff] %v918_v49  ;;  %737 = vst [vmem:[%s1261_s22 + $0x68] sm:$0xff] %v926_v50  ;;  %v579_v51 = vpop.f32.mrb[12].mxu0  ;;  %v619_v52 = vpop.f32.mrb[12].mxu1 }
 0x133   : > { %v580_v55 = vadd.f32 %v579_v51, %v1248_v53  ;;  %v620_v56 = vadd.f32 %v619_v52, %v1248_v53  ;;  %v581_v57 = vpop.f32.mrb[13].mxu0  ;;  %v621_v58 = vpop.f32.mrb[13].mxu1 }
 0x134   : > { %v582_v59 = vadd.f32 %v581_v57, %v1250_v54  ;;  %v622_v60 = vadd.f32 %v621_v58, %v1250_v54  ;;  %v583_v61 = vpop.f32.mrb[14].mxu0  ;;  %v623_v62 = vpop.f32.mrb[14].mxu1 }
 0x135   : > { %v584_v63 = vadd.f32 %v583_v61, %v1248_v53  ;;  %v624_v0 = vadd.f32 %v623_v62, %v1248_v53  ;;  %v585_v1 = vpop.f32.mrb[15].mxu0  ;;  %v625_v2 = vpop.f32.mrb[15].mxu1 }
 0x136   : > { %v919_v3 = vpack.c.bf16 %v582_v59, %v580_v55  ;;  %v927_v4 = vpack.c.bf16 %v622_v60, %v620_v56  ;;  %v586_v5 = vadd.f32 %v585_v1, %v1250_v54  ;;  %v626_v6 = vadd.f32 %v625_v2, %v1250_v54 }
 0x138   : > { %730 = vst [vmem:[%s1261_s22 + $0x30] sm:$0xff] %v919_v3  ;;  %738 = vst [vmem:[%s1261_s22 + $0x70] sm:$0xff] %v927_v4  ;;  %v920_v7 = vpack.c.bf16 %v586_v5, %v584_v63  ;;  %v928_v8 = vpack.c.bf16 %v626_v6, %v624_v0 }
 0x13a   : > { %731 = vst [vmem:[%s1261_s22 + $0x38] sm:$0xff] %v920_v7  ;;  %739 = vst [vmem:[%s1261_s22 + $0x78] sm:$0xff] %v928_v8 }
 0x13b PF: > { %s13_s14 = sadd.s32 1, %s1079_s14   ;;  %s1320_s12 = smov %s1075_s13 }
 0x13c   : > { %p10_p5 = scmp.ge.s32.totalorder %s13_s14, 4   ;;  %s1321_s13 = smov %s1323_s15 }
 0x13e   :  { %12 = sbr.rel (!%p10_p5) target bundleno = 2 (0x2), region = 62 }

// kernel: _lambda_.5
= control target key start
LH: loop header
LB: loop body
LE: loop exit
PB: predicated region body
PF: predicated region fallthrough
CT: control target
= control target key end

     0   :  { %s3204_s27 = smov 0   ;;  %s3206_s28 = smov 0   ;;  %s3966_s0 = inlined_call_operand.vmem [shape: bf16[2,128,256], index: 0, kind: input, shape index: {}]   ;;  %s3967_s1 = inlined_call_operand.vmem [shape: bf16[2,128,256], index: 1, kind: input, shape index: {}]   ;;  %s3968_s2 = inlined_call_operand.vmem [shape: bf16[256,128], index: 2, kind: input, shape index: {}]   ;;  %s3969_s3 = inlined_call_operand.vmem [shape: f32[1,128], index: 3, kind: input, shape index: {}]   ;;  %s3970_s4 = inlined_call_operand.vmem [shape: bf16[128,256], index: 4, kind: input, shape index: {}]   ;;  %s3971_s5 = inlined_call_operand.vmem [shape: f32[1,256], index: 5, kind: input, shape index: {}]   ;;  %s3972_s6 = inlined_call_operand.vmem [shape: bf16[256,128], index: 6, kind: input, shape index: {}]   ;;  %s3973_s7 = inlined_call_operand.vmem [shape: f32[1,128], index: 7, kind: input, shape index: {}]   ;;  %s3974_s8 = inlined_call_operand.vmem [shape: bf16[2,128,128], index: 8, kind: output, shape index: {}]  }
   0x1   :  { %s3208_s29 = smov 0  }
   0x2 LB: > { %s37_s30 = sadd.s32 1, %s3150_s28  ;;  %p2497_p0 = scmp.ge.s32.totalorder %s3154_s29, 1  ;;  %s3154_s29 = sphi %s3208_s29, %s18_s29   ;;  %s3150_s28 = sphi %s3206_s28, %s3993_s28   ;;  %s3146_s27 = sphi %s3204_s27, %s3992_s27  }
   0x3   : > { %p39_p1 = scmp.ge.s32.totalorder %s37_s30, 2  ;;  %p309_p2 = scmp.lt.s32.totalorder %s3154_s29, 3 }
   0x5   : > { %s3995_s30 = smov (%p39_p1, %s37_s30), 0  ;;  %p310_p3 = pnand %p2497_p0, %p309_p2 }
   0x6   : > { %v2939_v0 = vld [vmem:[%s3968_s2 + $0x40] sm:$0xff] (!%p310_p3)   ;;  %v2941_v2 = vld [vmem:[%s3968_s2 + $0x48] sm:$0xff] (!%p310_p3)   ;;  %p363_p4 = scmp.lt.s32.totalorder (!%p310_p3), %s3146_s27, 1  ;;  %v2943_v4 = vld [vmem:[%s3968_s2 + $0x50] sm:$0xff] (!%p310_p3)   ;;  %vm743_vm0 = vcmask (!%p310_p3), 7168  }
   0x7   : > { %313 = sbr.rel (%p310_p3) target bundleno = 1576 (0x628), region = 52  ;;  %v2940_v1 = vld [vmem:[%s3968_s2] sm:$0xff] (!%p310_p3)   ;;  %2670 = vmatprep.subr.bf16.mxu0 (!%p310_p3), %v2939_v0  ;;  %v2942_v3 = vld [vmem:[%s3968_s2 + $0x8] sm:$0xff] (!%p310_p3)   ;;  %v2944_v5 = vld [vmem:[%s3968_s2 + $0x10] sm:$0xff] (!%p310_p3)  }
   0x8   : > { %2671 = vmatpush3.bf16.msra.mxu0 (!%p310_p3), %v2940_v1  ;;  %v2945_v6 = vld [vmem:[%s3968_s2 + $0x58] sm:$0xff] (!%p310_p3)   ;;  %v2947_v8 = vld [vmem:[%s3968_s2 + $0x60] sm:$0xff] (!%p310_p3)   ;;  %v2949_v10 = vld [vmem:[%s3968_s2 + $0x68] sm:$0xff] (!%p310_p3)  }
   0x9   : > { %2672 = vmatprep.subr.bf16.mxu0 (!%p310_p3), %v2941_v2  ;;  %v2946_v7 = vld [vmem:[%s3968_s2 + $0x18] sm:$0xff] (!%p310_p3)   ;;  %v2948_v9 = vld [vmem:[%s3968_s2 + $0x20] sm:$0xff] (!%p310_p3)   ;;  %v2950_v12 = vld [vmem:[%s3968_s2 + $0x28] sm:$0xff] (!%p310_p3)  }
   0xa   : > { %v2951_v13 = vld [vmem:[%s3968_s2 + $0x70] sm:$0xff] (!%p310_p3)   ;;  %v2953_v15 = vld [vmem:[%s3968_s2 + $0x78] sm:$0xff] (!%p310_p3)   ;;  %v3311_v46 = vld [vmem:[%s3969_s3] ss:$0 sm:$0xff] (!%p310_p3) }
   0xb   : > { %v2952_v14 = vld [vmem:[%s3968_s2 + $0x30] sm:$0xff] (!%p310_p3)   ;;  %v2954_v16 = vld [vmem:[%s3968_s2 + $0x38] sm:$0xff] (!%p310_p3)  }
   0xc   : > { %2673 = vmatpush3.bf16.msra.mxu0 (!%p310_p3), %v2942_v3 }
   0xd   : > { %2674 = vmatprep.subr.bf16.mxu0 (!%p310_p3), %v2943_v4 }
   0xe   : > { %s3997_s27 = smov (!%p363_p4, %s3146_s27), 1 }
   0xf   : > { %s2604_s25 = sshll.u32 %s3997_s27, 7  ;;  %s2606_s14 = sshll.u32 %s3997_s27, 6 }
  0x10   : > { %2675 = vmatpush3.bf16.msra.mxu0 %v2944_v5  ;;  %s3255_s12 = scalar_lea.vmem %s3966_s0, %s2604_s25  ;;  %s3279_s10 = scalar_lea.vmem %s3967_s1, %s2604_s25 }
  0x11   : > { %2676 = vmatprep.subr.bf16.mxu0 %v2945_v6  ;;  %v2957_v11 = vld [vmem:[%s3255_s12 + $0x4] ss:$8 sps:$4 sm:$0xff]   ;;  %v2979_v17 = vld [vmem:[%s3279_s10] ss:$8 sps:$4 sm:$0xff]   ;;  %v2982_v19 = vld [vmem:[%s3279_s10 + $0x10] ss:$8 sps:$4 sm:$0xff]   ;;  %s3933_s17 = scalar_lea.vmem %s3974_s8, %s2606_s14 }
  0x12   : > { %662 = vmatprep.mubr.bf16.mxu0 %v2957_v11  ;;  %v2981_v18 = vld [vmem:[%s3279_s10 + $0x4] ss:$8 sps:$4 sm:$0xff]   ;;  %2830 = vmatprep.subr.bf16.mxu1 %v2979_v17  ;;  %v2955_v20 = vld [vmem:[%s3255_s12] ss:$8 sps:$4 sm:$0xff]   ;;  %v2958_v21 = vld [vmem:[%s3255_s12 + $0x14] ss:$8 sps:$4 sm:$0xff]  }
  0x13   : > { %2831 = vmatpush3.bf16.xpose.msra.mxu1 %v2979_v17  ;;  %v2984_v22 = vld [vmem:[%s3279_s10 + $0x20] ss:$8 sps:$4 sm:$0xff]   ;;  %v2960_v23 = vld [vmem:[%s3255_s12 + $0x10] ss:$8 sps:$4 sm:$0xff]   ;;  %v2961_v24 = vld [vmem:[%s3255_s12 + $0x24] ss:$8 sps:$4 sm:$0xff]  }
  0x14   : > { %2677 = vmatpush3.bf16.msra.mxu0 %v2946_v7  ;;  %2832 = vmatprep.subr.bf16.mxu1 %v2982_v19  ;;  %v2986_v25 = vld [vmem:[%s3279_s10 + $0x30] ss:$8 sps:$4 sm:$0xff]   ;;  %v2963_v26 = vld [vmem:[%s3255_s12 + $0x20] ss:$8 sps:$4 sm:$0xff]   ;;  %v2964_v27 = vld [vmem:[%s3255_s12 + $0x34] ss:$8 sps:$4 sm:$0xff]  }
  0x15   : > { %2678 = vmatprep.subr.bf16.mxu0 %v2947_v8  ;;  %v2988_v28 = vld [vmem:[%s3279_s10 + $0x40] ss:$8 sps:$4 sm:$0xff]   ;;  %v2966_v29 = vld [vmem:[%s3255_s12 + $0x30] ss:$8 sps:$4 sm:$0xff]   ;;  %v2967_v30 = vld [vmem:[%s3255_s12 + $0x44] ss:$8 sps:$4 sm:$0xff]  }
  0x16   : > { %v2990_v31 = vld [vmem:[%s3279_s10 + $0x50] ss:$8 sps:$4 sm:$0xff]   ;;  %v2969_v32 = vld [vmem:[%s3255_s12 + $0x40] ss:$8 sps:$4 sm:$0xff]   ;;  %v2970_v33 = vld [vmem:[%s3255_s12 + $0x54] ss:$8 sps:$4 sm:$0xff]  }
  0x17   : > { %v2972_v34 = vld [vmem:[%s3255_s12 + $0x50] ss:$8 sps:$4 sm:$0xff]   ;;  %v2973_v35 = vld [vmem:[%s3255_s12 + $0x64] ss:$8 sps:$4 sm:$0xff]   ;;  %v2975_v36 = vld [vmem:[%s3255_s12 + $0x60] ss:$8 sps:$4 sm:$0xff]  }
  0x18   : > { %2679 = vmatpush3.bf16.msra.mxu0 %v2948_v9  ;;  %v2976_v37 = vld [vmem:[%s3255_s12 + $0x74] ss:$8 sps:$4 sm:$0xff]   ;;  %v2978_v38 = vld [vmem:[%s3255_s12 + $0x70] ss:$8 sps:$4 sm:$0xff]   ;;  %v2992_v39 = vld [vmem:[%s3279_s10 + $0x60] ss:$8 sps:$4 sm:$0xff]  }
  0x19   : > { %2680 = vmatprep.subr.bf16.mxu0 %v2949_v10  ;;  %v2994_v40 = vld [vmem:[%s3279_s10 + $0x70] ss:$8 sps:$4 sm:$0xff]  }
  0x1b   : > { %2833 = vmatpush3.bf16.xpose.msra.mxu1 %v2982_v19 }
  0x1c   : > { %2681 = vmatpush3.bf16.msra.mxu0 %v2950_v12  ;;  %2834 = vmatprep.subr.bf16.mxu1 %v2984_v22 }
  0x1d   : > { %2682 = vmatprep.subr.bf16.mxu0 %v2951_v13 }
  0x20   : > { %2683 = vmatpush3.bf16.msra.mxu0 %v2952_v14 }
  0x21   : > { %2684 = vmatprep.subr.bf16.mxu0 %v2953_v15 }
  0x23   : > { %2835 = vmatpush3.bf16.xpose.msra.mxu1 %v2984_v22 }
  0x24   : > { %2685 = vmatpush3.bf16.msra.mxu0 %v2954_v16  ;;  %2836 = vmatprep.subr.bf16.mxu1 %v2986_v25 }
  0x25   : > { %2862 = vmatprep.subr.bf16.mxu0 %v2981_v18 }
  0x27   : > { %663 = vmatmul.mubr.bf16.vlgmr.msra.gmra.mrb[0].mxu0 %v2955_v20 }
  0x28   : > { %670 = vmatprep.mubr.bf16.mxu0 %v2958_v21  ;;  %2863 = vmatpush3.bf16.msra.mxu0 %v2981_v18 }
  0x2b   : > { %2837 = vmatpush3.bf16.xpose.msra.mxu1 %v2986_v25 }
  0x2c   : > { %2838 = vmatprep.subr.bf16.mxu1 %v2988_v28 }
  0x2f   : > { %671 = vmatmul.mubr.bf16.gmra.mrb[4].mxu0 %v2960_v23 }
  0x30   : > { %678 = vmatprep.mubr.bf16.mxu0 %v2961_v24 }
  0x33   : > { %2839 = vmatpush3.bf16.xpose.msra.mxu1 %v2988_v28 }
  0x34   : > { %2840 = vmatprep.subr.bf16.mxu1 %v2990_v31 }
  0x37   : > { %679 = vmatmul.mubr.bf16.gmra.mrb[8].mxu0 %v2963_v26 }
  0x38   : > { %686 = vmatprep.mubr.bf16.mxu0 %v2964_v27 }
  0x3b   : > { %2841 = vmatpush3.bf16.xpose.msra.mxu1 %v2990_v31 }
  0x3c   : > { %2842 = vmatprep.subr.bf16.mxu1 %v2992_v39 }
  0x3f   : > { %687 = vmatmul.mubr.bf16.gmra.mrb[12].mxu0 %v2966_v29 }
  0x40   : > { %694 = vmatprep.mubr.bf16.mxu0 %v2967_v30 }
  0x43   : > { %2843 = vmatpush3.bf16.xpose.msra.mxu1 %v2992_v39 }
  0x44   : > { %2844 = vmatprep.subr.bf16.mxu1 %v2994_v40 }
  0x47   : > { %695 = vmatmul.mubr.bf16.gmra.mrb[16].mxu0 %v2969_v32 }
  0x48   : > { %702 = vmatprep.mubr.bf16.mxu0 %v2970_v33 }
  0x4b   : > { %2845 = vmatpush3.bf16.xpose.msra.mxu1 %v2994_v40 }
  0x4f   : > { %703 = vmatmul.mubr.bf16.gmra.mrb[20].mxu0 %v2972_v34 }
  0x50   : > { %710 = vmatprep.mubr.bf16.mxu0 %v2973_v35 }
  0x57   : > { %711 = vmatmul.mubr.bf16.gmra.mrb[24].mxu0 %v2975_v36 }
  0x58   : > { %718 = vmatprep.mubr.bf16.mxu0 %v2976_v37 }
  0x5f   : > { %719 = vmatmul.mubr.bf16.gmra.mrb[28].mxu0 %v2978_v38 }
  0xfa   : > { %v2686_v41 = vpop.f32.mrb[0].mxu0 }
  0xfb   : > { %v2687_v42 = vpop.f32.mrb[1].mxu0 }
  0xfc   : > { %v2688_v43 = vadd.f32 %v2687_v42, %v2686_v41  ;;  %v2689_v44 = vpop.f32.mrb[2].mxu0 }
  0xfd   : > { %v2690_v45 = vpop.f32.mrb[3].mxu0 }
  0xfe   : > { %v2691_v47 = vadd.f32 %v2690_v45, %v2689_v44  ;;  %v665_v48 = vadd.f32 %v2688_v43, %v3311_v46 }
 0x100   : > { %v668_v49 = vadd.f32 %v2691_v47, %v3311_v46 }
 0x102   : > { %v2692_v50 = vpop.f32.mrb[4].mxu0  ;;  %v727_v51 = vpack.c.bf16 %v668_v49, %v665_v48 }
 0x103   : > { %v2693_v52 = vpop.f32.mrb[5].mxu0 }
 0x104   : > { %v2694_v53 = vadd.f32 %v2693_v52, %v2692_v50  ;;  %v2695_v54 = vpop.f32.mrb[6].mxu0  ;;  %2846 = vmatprep.mubr.bf16.mxu1 %v727_v51  ;;  %v3156_v51 = vmov -inf  }
 0x105   : > { %v2696_v55 = vpop.f32.mrb[7].mxu0  ;;  %746 = vst.msk [vmem:[#allocation3 + $0x10] sm:$0xff] %vm743_vm0, %v3156_v51  ;;  %744 = vst.msk [vmem:[#allocation3] sm:$0xff] %vm743_vm0, %v3156_v51 }
 0x106   : > { %v2697_v56 = vadd.f32 %v2696_v55, %v2695_v54  ;;  %v673_v57 = vadd.f32 %v2694_v53, %v3311_v46  ;;  %745 = vst.msk [vmem:[#allocation3 + $0x8] sm:$0xff] %vm743_vm0, %v3156_v51  ;;  %747 = vst.msk [vmem:[#allocation3 + $0x18] sm:$0xff] %vm743_vm0, %v3156_v51 }
 0x107   : > { %748 = vst.msk [vmem:[#allocation3 + $0x20] sm:$0xff] %vm743_vm0, %v3156_v51  ;;  %749 = vst.msk [vmem:[#allocation3 + $0x28] sm:$0xff] %vm743_vm0, %v3156_v51 }
 0x108   : > { %v676_v58 = vadd.f32 %v2697_v56, %v3311_v46  ;;  %750 = vst.msk [vmem:[#allocation3 + $0x30] sm:$0xff] %vm743_vm0, %v3156_v51  ;;  %751 = vst.msk [vmem:[#allocation3 + $0x38] sm:$0xff] %vm743_vm0, %v3156_v51  ;;  %v3975_v56 = vmov 0  }
 0x109   : > { %752 = vst.msk [vmem:[#allocation3 + $0x40] sm:$0xff] %vm743_vm0, %v3156_v51  ;;  %753 = vst.msk [vmem:[#allocation3 + $0x48] sm:$0xff] %vm743_vm0, %v3156_v51  ;;  %2938 = vset.pattern.permute.xlu1 %v3975_v56  ;;  %2937 = vset.pattern.permute.xlu0 %v3975_v56 }
 0x10a   : > { %v2698_v59 = vpop.f32.mrb[8].mxu0  ;;  %v728_v60 = vpack.c.bf16 %v676_v58, %v673_v57  ;;  %754 = vst.msk [vmem:[#allocation3 + $0x50] sm:$0xff] %vm743_vm0, %v3156_v51  ;;  %755 = vst.msk [vmem:[#allocation3 + $0x58] sm:$0xff] %vm743_vm0, %v3156_v51 }
 0x10b   : > { %v2699_v61 = vpop.f32.mrb[9].mxu0  ;;  %756 = vst.msk [vmem:[#allocation3 + $0x60] sm:$0xff] %vm743_vm0, %v3156_v51  ;;  %757 = vst.msk [vmem:[#allocation3 + $0x68] sm:$0xff] %vm743_vm0, %v3156_v51 }
 0x10c   : > { %v2700_v62 = vadd.f32 %v2699_v61, %v2698_v59  ;;  %v2701_v63 = vpop.f32.mrb[10].mxu0  ;;  %2847 = vmatmul.mubr.bf16.vlgmr.msra.gmra.mrb[0].mxu1 %v728_v60  ;;  %758 = vst.msk [vmem:[#allocation3 + $0x70] sm:$0xff] %vm743_vm0, %v3156_v51  ;;  %759 = vst.msk [vmem:[#allocation3 + $0x78] sm:$0xff] %vm743_vm0, %v3156_v51  ;;  %v3158_v60 = vmov 0.0  }
 0x10d   : > { %v2702_v0 = vpop.f32.mrb[11].mxu0  ;;  %760 = vst.msk [vmem:[#allocation4] sm:$0xff] %vm743_vm0, %v3158_v60  ;;  %761 = vst.msk [vmem:[#allocation4 + $0x8] sm:$0xff] %vm743_vm0, %v3158_v60 }
 0x10e   : > { %v2703_v1 = vadd.f32 %v2702_v0, %v2701_v63  ;;  %v681_v2 = vadd.f32 %v2700_v62, %v3311_v46  ;;  %762 = vst.msk [vmem:[#allocation4 + $0x10] sm:$0xff] %vm743_vm0, %v3158_v60  ;;  %763 = vst.msk [vmem:[#allocation4 + $0x18] sm:$0xff] %vm743_vm0, %v3158_v60 }
 0x10f   : > { %764 = vst.msk [vmem:[#allocation4 + $0x20] sm:$0xff] %vm743_vm0, %v3158_v60  ;;  %765 = vst.msk [vmem:[#allocation4 + $0x28] sm:$0xff] %vm743_vm0, %v3158_v60 }
 0x110   : > { %v684_v3 = vadd.f32 %v2703_v1, %v3311_v46  ;;  %766 = vst.msk [vmem:[#allocation4 + $0x30] sm:$0xff] %vm743_vm0, %v3158_v60  ;;  %767 = vst.msk [vmem:[#allocation4 + $0x38] sm:$0xff] %vm743_vm0, %v3158_v60 }
 0x111   : > { %768 = vst.msk [vmem:[#allocation4 + $0x40] sm:$0xff] %vm743_vm0, %v3158_v60  ;;  %769 = vst.msk [vmem:[#allocation4 + $0x48] sm:$0xff] %vm743_vm0, %v3158_v60 }
 0x112   : > { %v2704_v4 = vpop.f32.mrb[12].mxu0  ;;  %v729_v5 = vpack.c.bf16 %v684_v3, %v681_v2  ;;  %770 = vst.msk [vmem:[#allocation4 + $0x50] sm:$0xff] %vm743_vm0, %v3158_v60  ;;  %771 = vst.msk [vmem:[#allocation4 + $0x58] sm:$0xff] %vm743_vm0, %v3158_v60 }
 0x113   : > { %v2705_v6 = vpop.f32.mrb[13].mxu0  ;;  %772 = vst.msk [vmem:[#allocation4 + $0x60] sm:$0xff] %vm743_vm0, %v3158_v60  ;;  %773 = vst.msk [vmem:[#allocation4 + $0x68] sm:$0xff] %vm743_vm0, %v3158_v60 }
 0x114   : > { %v2706_v7 = vadd.f32 %v2705_v6, %v2704_v4  ;;  %v2707_v8 = vpop.f32.mrb[14].mxu0  ;;  %2850 = vmatprep.mubr.bf16.mxu1 %v729_v5  ;;  %774 = vst.msk [vmem:[#allocation4 + $0x70] sm:$0xff] %vm743_vm0, %v3158_v60  ;;  %775 = vst.msk [vmem:[#allocation4 + $0x78] sm:$0xff] %vm743_vm0, %v3158_v60  ;;  %v794_v5 = vld [vmem:[%s3279_s10 + $0x10] sm:$0xff]  ;;  %v795_v6 = vld [vmem:[%s3279_s10 + $0x18] sm:$0xff] }
 0x115   : > { %v2708_v9 = vpop.f32.mrb[15].mxu0 }
 0x116   : > { %v2709_v10 = vadd.f32 %v2708_v9, %v2707_v8  ;;  %v689_v11 = vadd.f32 %v2706_v7, %v3311_v46  ;;  %v2546_v7 = vcombine.high %v794_v5, %v795_v6  ;;  %v3414_v8 = vld [vmem:[#allocation3 + $0x10] sm:$0xff]  ;;  %v3416_v9 = vld [vmem:[#allocation3] sm:$0xff] }
 0x118   : > { %v692_v12 = vadd.f32 %v2709_v10, %v3311_v46  ;;  %2864 = vmatprep.subr.bf16.mxu0 %v2546_v7  ;;  %v796_v10 = vld [vmem:[%s3279_s10 + $0x20] sm:$0xff] }
 0x119   : > { %2865 = vmatpush3.bf16.msra.mxu0 %v2546_v7 }
 0x11a   : > { %v2710_v13 = vpop.f32.mrb[16].mxu0  ;;  %v730_v14 = vpack.c.bf16 %v692_v12, %v689_v11  ;;  %v797_v11 = vld [vmem:[%s3279_s10 + $0x28] sm:$0xff] }
 0x11b   : > { %v2711_v15 = vpop.f32.mrb[17].mxu0 }
 0x11c   : > { %v2712_v16 = vadd.f32 %v2711_v15, %v2710_v13  ;;  %v2713_v17 = vpop.f32.mrb[18].mxu0  ;;  %2851 = vmatmul.mubr.bf16.gmra.mrb[4].mxu1 %v730_v14 }
 0x11d   : > { %v2714_v18 = vpop.f32.mrb[19].mxu0 }
 0x11e   : > { %v2715_v19 = vadd.f32 %v2714_v18, %v2713_v17  ;;  %v697_v20 = vadd.f32 %v2712_v16, %v3311_v46  ;;  %v3426_v16 = vld [vmem:[#allocation3 + $0x18] sm:$0xff]  ;;  %v3433_v18 = vld [vmem:[#allocation3 + $0x8] sm:$0xff] }
 0x120   : > { %v700_v21 = vadd.f32 %v2715_v19, %v3311_v46  ;;  %v2547_v19 = vcombine.high %v796_v10, %v797_v11 }
 0x122   : > { %v2716_v22 = vpop.f32.mrb[20].mxu0  ;;  %v731_v23 = vpack.c.bf16 %v700_v21, %v697_v20  ;;  %v798_v20 = vld [vmem:[%s3279_s10 + $0x30] sm:$0xff]  ;;  %v799_v21 = vld [vmem:[%s3279_s10 + $0x38] sm:$0xff]  ;;  %2866 = vmatprep.subr.bf16.mxu0 %v2547_v19 }
 0x123   : > { %v2717_v24 = vpop.f32.mrb[21].mxu0  ;;  %2867 = vmatpush3.bf16.msra.mxu0 %v2547_v19  ;;  %v3507_v19 = vld [vmem:[#allocation3 + $0x58] sm:$0xff] }
 0x124   : > { %v2718_v25 = vadd.f32 %v2717_v24, %v2716_v22  ;;  %v2719_v26 = vpop.f32.mrb[22].mxu0  ;;  %2854 = vmatprep.mubr.bf16.mxu1 %v731_v23 }
 0x125   : > { %v2720_v27 = vpop.f32.mrb[23].mxu0 }
 0x126   : > { %v2721_v28 = vadd.f32 %v2720_v27, %v2719_v26  ;;  %v705_v29 = vadd.f32 %v2718_v25, %v3311_v46 }
 0x128   : > { %v708_v30 = vadd.f32 %v2721_v28, %v3311_v46  ;;  %v2548_v28 = vcombine.high %v798_v20, %v799_v21 }
 0x12a   : > { %v2722_v31 = vpop.f32.mrb[24].mxu0  ;;  %v732_v32 = vpack.c.bf16 %v708_v30, %v705_v29  ;;  %v800_v29 = vld [vmem:[%s3279_s10 + $0x40] sm:$0xff]  ;;  %v801_v30 = vld [vmem:[%s3279_s10 + $0x48] sm:$0xff]  ;;  %2868 = vmatprep.subr.bf16.mxu0 %v2548_v28 }
 0x12b   : > { %v2723_v33 = vpop.f32.mrb[25].mxu0  ;;  %2869 = vmatpush3.bf16.msra.mxu0 %v2548_v28  ;;  %v3515_v28 = vld [vmem:[#allocation3 + $0x50] sm:$0xff] }
 0x12c   : > { %v2724_v34 = vadd.f32 %v2723_v33, %v2722_v31  ;;  %v2725_v35 = vpop.f32.mrb[26].mxu0  ;;  %2855 = vmatmul.mubr.bf16.gmra.mrb[8].mxu1 %v732_v32  ;;  %v2549_v32 = vcombine.high %v800_v29, %v801_v30  ;;  %v802_v33 = vld [vmem:[%s3279_s10 + $0x50] sm:$0xff]  ;;  %v3522_v30 = vld [vmem:[#allocation3 + $0x48] sm:$0xff] }
 0x12d   : > { %v2726_v36 = vpop.f32.mrb[27].mxu0 }
 0x12e   : > { %v2727_v37 = vadd.f32 %v2726_v36, %v2725_v35  ;;  %v713_v38 = vadd.f32 %v2724_v34, %v3311_v46  ;;  %v803_v34 = vld [vmem:[%s3279_s10 + $0x58] sm:$0xff]  ;;  %2870 = vmatprep.subr.bf16.mxu0 %v2549_v32  ;;  %v3462_v35 = vld [vmem:[#allocation3 + $0x20] sm:$0xff] }
 0x12f   : > { %2871 = vmatpush3.bf16.msra.mxu0 %v2549_v32  ;;  %v2550_v36 = vcombine.high %v802_v33, %v803_v34 }
 0x130   : > { %v716_v39 = vadd.f32 %v2727_v37, %v3311_v46  ;;  %v804_v37 = vld [vmem:[%s3279_s10 + $0x60] sm:$0xff] }
 0x131   : > { %2872 = vmatprep.subr.bf16.mxu0 %v2550_v36 }
 0x132   : > { %v2728_v40 = vpop.f32.mrb[28].mxu0  ;;  %v733_v41 = vpack.c.bf16 %v716_v39, %v713_v38  ;;  %v805_v38 = vld [vmem:[%s3279_s10 + $0x68] sm:$0xff]  ;;  %v3466_v39 = vld [vmem:[#allocation3 + $0x38] sm:$0xff] }
 0x133   : > { %v2729_v42 = vpop.f32.mrb[29].mxu0  ;;  %2873 = vmatpush3.bf16.msra.mxu0 %v2550_v36 }
 0x134   : > { %v2730_v43 = vadd.f32 %v2729_v42, %v2728_v40  ;;  %v2731_v44 = vpop.f32.mrb[30].mxu0  ;;  %2858 = vmatprep.mubr.bf16.mxu1 %v733_v41 }
 0x135   : > { %v2732_v45 = vpop.f32.mrb[31].mxu0 }
 0x136   : > { %v2733_v47 = vadd.f32 %v2732_v45, %v2731_v44  ;;  %v721_v48 = vadd.f32 %v2730_v43, %v3311_v46  ;;  %v3474_v44 = vld [vmem:[#allocation3 + $0x30] sm:$0xff]  ;;  %v2551_v45 = vcombine.high %v804_v37, %v805_v38 }
 0x138   : > { %v724_v49 = vadd.f32 %v2733_v47, %v3311_v46  ;;  %v806_v47 = vld [vmem:[%s3279_s10 + $0x70] sm:$0xff]  ;;  %2874 = vmatprep.subr.bf16.mxu0 %v2551_v45 }
 0x139   : > { %2875 = vmatpush3.bf16.msra.mxu0 %v2551_v45 }
 0x13a   : > { %v734_v50 = vpack.c.bf16 %v724_v49, %v721_v48  ;;  %v807_v48 = vld [vmem:[%s3279_s10 + $0x78] sm:$0xff] }
 0x13b   : > { %v2552_v10 = vcombine.high %v806_v47, %v807_v48  ;;  %v3548_v47 = vld [vmem:[#allocation3 + $0x78] sm:$0xff] }
 0x13c   : > { %2859 = vmatmul.mubr.bf16.gmra.mrb[12].mxu1 %v734_v50  ;;  %v3482_v50 = vld [vmem:[#allocation3 + $0x28] sm:$0xff] }
 0x13d   : > { %1890 = vmatprep.mubr.bf16.mxu1 %v3975_v56  ;;  %2876 = vmatprep.subr.bf16.mxu0 %v2552_v10 }
 0x13e   : > { %2877 = vmatpush3.bf16.msra.mxu0 %v2552_v10 }
 0x1df   : > { %v3345_v46 = vpop.f32.mrb[0].mxu1 }
 0x1e0   : > { %981 = vmax.xlane.f32.xlu1 %v3345_v46  ;;  %v3348_v52 = vpop.f32.mrb[1].mxu1 }
 0x1e1   : > { %977 = vmax.xlane.f32.xlu0 %v3348_v52  ;;  %v3351_v53 = vpop.f32.mrb[2].mxu1 }
 0x1e2   : > { %v3353_v54 = vpop.f32.mrb[3].mxu1 }
 0x1e4   : > { %983 = vmax.xlane.f32.xlu1 %v3351_v53 }
 0x1e5   : > { %979 = vmax.xlane.f32.xlu0 %v3353_v54 }
 0x1ef   : > { %v3357_v55 = vpop.f32.mrb[4].mxu1 }
 0x1f0   : > { %v3361_v57 = vpop.f32.mrb[5].mxu1 }
 0x1f1   : > { %985 = vmax.xlane.f32.xlu0 %v3361_v57  ;;  %v3365_v58 = vpop.f32.mrb[6].mxu1 }
 0x1f2   : > { %991 = vmax.xlane.f32.xlu1 %v3365_v58  ;;  %v3368_v59 = vpop.f32.mrb[7].mxu1 }
 0x1f5   : > { %989 = vmax.xlane.f32.xlu0 %v3357_v55 }
 0x1f6   : > { %987 = vmax.xlane.f32.xlu1 %v3368_v59 }
 0x1ff   : > { %v3388_v61 = vpop.f32.mrb[8].mxu1 }
 0x200   : > { %v3390_v62 = vpop.f32.mrb[9].mxu1 }
 0x201   : > { %993 = vmax.xlane.f32.xlu0 %v3390_v62  ;;  %v3393_v63 = vpop.f32.mrb[10].mxu1 }
 0x202   : > { %999 = vmax.xlane.f32.xlu1 %v3393_v63  ;;  %v3396_v0 = vpop.f32.mrb[11].mxu1 }
 0x205   : > { %997 = vmax.xlane.f32.xlu0 %v3388_v61 }
 0x206   : > { %995 = vmax.xlane.f32.xlu1 %v3396_v0 }
 0x20f   : > { %v3400_v1 = vpop.f32.mrb[12].mxu1 }
 0x210   : > { %1005 = vmax.xlane.f32.xlu0 %v3400_v1  ;;  %v3403_v2 = vpop.f32.mrb[13].mxu1 }
 0x211   : > { %v3405_v3 = vpop.f32.mrb[14].mxu1 }
 0x212   : > { %1007 = vmax.xlane.f32.xlu1 %v3405_v3  ;;  %v3408_v4 = vpop.f32.mrb[15].mxu1 }
 0x214   : > { %1001 = vmax.xlane.f32.xlu0 %v3403_v2 }
 0x216   : > { %1003 = vmax.xlane.f32.xlu1 %v3408_v4 }
 0x26d   : > { %v982_v12 = vpop.xlane.xlu1 %981 }
 0x26e   : > { %v3421_v13 = vmax.f32 %v3414_v8, %v982_v12  ;;  %v978_v14 = vpop.xlane.xlu0 %977 }
 0x26f   : > { %v3424_v15 = vmax.f32 %v3416_v9, %v978_v14  ;;  %v3504_v14 = vld [vmem:[#allocation3 + $0x40] sm:$0xff] }
 0x270   : > { %1581 = vst.msk [vmem:[#allocation3 + $0x10] sm:$0xff] %vm743_vm0, %v3421_v13  ;;  %1085 = vperm.xlu1 %2938, %v3421_v13  }
 0x271   : > { %v1025_v22 = vsub.f32 %v3416_v9, %v3424_v15  ;;  %1579 = vst.msk [vmem:[#allocation3] sm:$0xff] %vm743_vm0, %v3424_v15  ;;  %v984_v23 = vpop.xlane.xlu1 %983  ;;  %1075 = vperm.xlu0 %2937, %v3424_v15  }
 0x272   : > { %v3443_v24 = vmax.f32 %v3426_v16, %v984_v23  ;;  %v980_v25 = vpop.xlane.xlu0 %979 }
 0x273   : > { %v3446_v26 = vmax.f32 %v3433_v18, %v980_v25 }
 0x274   : > { %1582 = vst.msk [vmem:[#allocation3 + $0x18] sm:$0xff] %vm743_vm0, %v3443_v24  ;;  %v3978_v9 = vsub.f32 %v3426_v16, %v3443_v24 }
 0x275   : > { %v1026_v31 = vsub.f32 %v3433_v18, %v3446_v26  ;;  %1580 = vst.msk [vmem:[#allocation3 + $0x8] sm:$0xff] %vm743_vm0, %v3446_v26  ;;  %1080 = vperm.xlu1 %2938, %v3446_v26  }
 0x276   : > { %v1047_v15 = vmul.f32 1.442695, %v3978_v9  ;;  %v1205_v9 = vld [vmem:[#allocation4 + $0x20] sm:$0xff] }
 0x279   : > { %1090 = vperm.xlu1 %2938, %v3443_v24  }
 0x27e   : > { %v986_v40 = vpop.xlane.xlu0 %985 }
 0x27f   : > { %v3469_v41 = vmax.f32 %v3462_v35, %v986_v40  ;;  %v992_v42 = vpop.xlane.xlu1 %991 }
 0x280   : > { %v3472_v43 = vmax.f32 %v3466_v39, %v992_v42  ;;  %v3546_v42 = vld [vmem:[#allocation3 + $0x70] sm:$0xff] }
 0x281   : > { %1583 = vst.msk [vmem:[#allocation3 + $0x20] sm:$0xff] %vm743_vm0, %v3469_v41 }
 0x282   : > { %1586 = vst.msk [vmem:[#allocation3 + $0x38] sm:$0xff] %vm743_vm0, %v3472_v43  ;;  %v990_v60 = vpop.xlane.xlu0 %989 }
 0x283   : > { %v3489_v5 = vmax.f32 %v3474_v44, %v990_v60  ;;  %v988_v6 = vpop.xlane.xlu1 %987 }
 0x284   : > { %v3492_v7 = vmax.f32 %v3482_v50, %v988_v6  ;;  %v3553_v6 = vld [vmem:[#allocation3 + $0x60] sm:$0xff] }
 0x285   : > { %1585 = vst.msk [vmem:[#allocation3 + $0x30] sm:$0xff] %vm743_vm0, %v3489_v5  ;;  %1105 = vperm.xlu1 %2938, %v3489_v5  }
 0x286   : > { %1584 = vst.msk [vmem:[#allocation3 + $0x28] sm:$0xff] %vm743_vm0, %v3492_v7 }
 0x289   : > { %1095 = vperm.xlu1 %2938, %v3469_v41  }
 0x28d   : > { %1100 = vperm.xlu1 %2938, %v3492_v7  }
 0x28e   : > { %v994_v20 = vpop.xlane.xlu0 %993 }
 0x28f   : > { %v3510_v21 = vmax.f32 %v3504_v14, %v994_v20  ;;  %v1000_v23 = vpop.xlane.xlu1 %999 }
 0x290   : > { %v3513_v25 = vmax.f32 %v3507_v19, %v1000_v23 }
 0x291   : > { %1587 = vst.msk [vmem:[#allocation3 + $0x40] sm:$0xff] %vm743_vm0, %v3510_v21  ;;  %1110 = vperm.xlu1 %2938, %v3472_v43  }
 0x292   : > { %1590 = vst.msk [vmem:[#allocation3 + $0x58] sm:$0xff] %vm743_vm0, %v3513_v25  ;;  %v998_v33 = vpop.xlane.xlu0 %997 }
 0x293   : > { %v3529_v34 = vmax.f32 %v3515_v28, %v998_v33  ;;  %v996_v36 = vpop.xlane.xlu1 %995  ;;  %v3562_v33 = vld [vmem:[#allocation3 + $0x68] sm:$0xff] }
 0x294   : > { %v3532_v37 = vmax.f32 %v3522_v30, %v996_v36 }
 0x295   : > { %1589 = vst.msk [vmem:[#allocation3 + $0x50] sm:$0xff] %vm743_vm0, %v3529_v34  ;;  %1115 = vperm.xlu1 %2938, %v3510_v21  }
 0x296   : > { %1588 = vst.msk [vmem:[#allocation3 + $0x48] sm:$0xff] %vm743_vm0, %v3532_v37  ;;  %1120 = vperm.xlu0 %2937, %v3532_v37  }
 0x299   : > { %1125 = vperm.xlu1 %2938, %v3529_v34  }
 0x29a   : > { %1130 = vperm.xlu0 %2937, %v3513_v25  }
 0x29d   : > { %v1006_v45 = vpop.xlane.xlu0 %1005 }
 0x29e   : > { %v3551_v48 = vmax.f32 %v3546_v42, %v1006_v45 }
 0x29f   : > { %v1008_v60 = vpop.xlane.xlu1 %1007 }
 0x2a0   : > { %1593 = vst.msk [vmem:[#allocation3 + $0x70] sm:$0xff] %vm743_vm0, %v3551_v48  ;;  %v3560_v20 = vmax.f32 %v3548_v47, %v1008_v60 }
 0x2a1   : > { %v1002_v23 = vpop.xlane.xlu0 %1001 }
 0x2a2   : > { %1594 = vst.msk [vmem:[#allocation3 + $0x78] sm:$0xff] %vm743_vm0, %v3560_v20  ;;  %v3569_v45 = vmax.f32 %v3553_v6, %v1002_v23 }
 0x2a3   : > { %v1004_v56 = vpop.xlane.xlu1 %1003 }
 0x2a4   : > { %1591 = vst.msk [vmem:[#allocation3 + $0x60] sm:$0xff] %vm743_vm0, %v3569_v45  ;;  %v3576_v60 = vmax.f32 %v3562_v33, %v1004_v56  ;;  %1135 = vperm.xlu1 %2938, %v3569_v45  }
 0x2a6   : > { %1592 = vst.msk [vmem:[#allocation3 + $0x68] sm:$0xff] %vm743_vm0, %v3576_v60  ;;  %1140 = vperm.xlu0 %2937, %v3576_v60  }
 0x2a8   : > { %1145 = vperm.xlu1 %2938, %v3551_v48  }
 0x2aa   : > { %1150 = vperm.xlu0 %2937, %v3560_v20  }
 0x2ef   : > { %v1086_v23 = vpop.permute.xlu1 %1085 }
 0x2f0   : > { %v1076_v10 = vpop.permute.xlu0 %1075  ;;  %v1155_v38 = vsub.f32 %v3345_v46, %v1086_v23 }
 0x2f1   : > { %v1153_v32 = vsub.f32 %v3348_v52, %v1076_v10 }
 0x2f2   : > { %v1173_v51 = vmul.f32 1.442695, %v1155_v38 }
 0x2f3   : > { %v1169_v56 = vmul.f32 1.442695, %v1153_v32 }
 0x2f4   : > { %v1081_v40 = vpop.permute.xlu1 %1080 }
 0x2f5   : > { %3036 = vpow2.f32 %v1169_v56  ;;  %v1154_v36 = vsub.f32 %v3353_v54, %v1081_v40 }
 0x2f7   : > { %v1171_v29 = vmul.f32 1.442695, %v1154_v36 }
 0x2f8   : > { %v1091_v12 = vpop.permute.xlu1 %1090 }
 0x2f9   : > { %3038 = vpow2.f32 %v1171_v29  ;;  %v1156_v11 = vsub.f32 %v3351_v53, %v1091_v12 }
 0x2fa   : > { %3040 = vpow2.f32 %v1173_v51 }
 0x2fb   : > { %v1175_v49 = vmul.f32 1.442695, %v1156_v11 }
 0x2fd   : > { %3042 = vpow2.f32 %v1175_v49 }
 0x2ff   : > { %v3037_v27 = vpop.eup %3036 }
 0x300   : > { %1233 = vadd.xlane.f32.xlu1 %v3037_v27 }
 0x303   : > { %v3039_v17 = vpop.eup %3038 }
 0x304   : > { %1235 = vadd.xlane.f32.xlu0 %v3039_v17  ;;  %v1106_v52 = vpop.permute.xlu1 %1105  ;;  %v1410_v32 = vpack.c.bf16 %v3039_v17, %v3037_v27  ;;  %v3041_v46 = vpop.eup %3040 }
 0x305   : > { %v1159_v54 = vsub.f32 %v3357_v55, %v1106_v52 }
 0x306   : > { %2878 = vmatprep.mubr.bf16.mxu0 %v1410_v32 }
 0x307   : > { %v3043_v10 = vpop.eup %3042  ;;  %v1181_v49 = vmul.f32 1.442695, %v1159_v54 }
 0x308   : > { %1237 = vadd.xlane.f32.xlu0 %v3041_v46  ;;  %1239 = vadd.xlane.f32.xlu1 %v3043_v10  ;;  %v1096_v38 = vpop.permute.xlu1 %1095  ;;  %v1411_v29 = vpack.c.bf16 %v3043_v10, %v3041_v46 }
 0x309   : > { %v1157_v53 = vsub.f32 %v3361_v57, %v1096_v38 }
 0x30a   : > { %2879 = vmatmul.mubr.bf16.vlgmr.msra.gmra.mrb[32].mxu0 %v1411_v29 }
 0x30b   : > { %v1177_v51 = vmul.f32 1.442695, %v1157_v53 }
 0x30c   : > { %v1101_v11 = vpop.permute.xlu1 %1100 }
 0x30d   : > { %3044 = vpow2.f32 %v1177_v51  ;;  %v1158_v12 = vsub.f32 %v3368_v59, %v1101_v11 }
 0x30e   : > { %3046 = vpow2.f32 %v1181_v49 }
 0x30f   : > { %v1179_v40 = vmul.f32 1.442695, %v1158_v12 }
 0x310   : > { %v1111_v17 = vpop.permute.xlu1 %1110 }
 0x311   : > { %3048 = vpow2.f32 %v1179_v40  ;;  %v1160_v27 = vsub.f32 %v3365_v58, %v1111_v17 }
 0x313   : > { %v1183_v55 = vmul.f32 1.442695, %v1160_v27 }
 0x314   : > { %v1116_v36 = vpop.permute.xlu1 %1115 }
 0x315   : > { %3050 = vpow2.f32 %v1183_v55  ;;  %v1161_v23 = vsub.f32 %v3390_v62, %v1116_v36  ;;  %v1121_v56 = vpop.permute.xlu0 %1120 }
 0x316   : > { %v1162_v57 = vsub.f32 %v3396_v0, %v1121_v56 }
 0x317   : > { %v3045_v52 = vpop.eup %3044  ;;  %v1185_v32 = vmul.f32 1.442695, %v1161_v23 }
 0x318   : > { %v1187_v46 = vmul.f32 1.442695, %v1162_v57  ;;  %1241 = vadd.xlane.f32.xlu0 %v3045_v52  ;;  %v1126_v10 = vpop.permute.xlu1 %1125  ;;  %v3047_v38 = vpop.eup %3046 }
 0x319   : > { %3052 = vpow2.f32 %v1185_v32  ;;  %v1163_v59 = vsub.f32 %v3388_v61, %v1126_v10  ;;  %v1131_v54 = vpop.permute.xlu0 %1130 }
 0x31a   : > { %3054 = vpow2.f32 %v1187_v46  ;;  %v1164_v58 = vsub.f32 %v3393_v63, %v1131_v54 }
 0x31b   : > { %v3049_v29 = vpop.eup %3048  ;;  %v1189_v53 = vmul.f32 1.442695, %v1163_v59 }
 0x31c   : > { %v1191_v51 = vmul.f32 1.442695, %v1164_v58  ;;  %1245 = vadd.xlane.f32.xlu0 %v3047_v38  ;;  %1243 = vadd.xlane.f32.xlu1 %v3049_v29  ;;  %v1412_v62 = vpack.c.bf16 %v3049_v29, %v3045_v52 }
 0x31d   : > { %3056 = vpow2.f32 %v1189_v53  ;;  %v1043_v53 = vmul.f32 1.442695, %v1026_v31 }
 0x31e   : > { %3058 = vpow2.f32 %v1191_v51  ;;  %2882 = vmatprep.mubr.bf16.mxu0 %v1412_v62  ;;  %v2996_v51 = vld [vmem:[%s3970_s4] ss:$8 sps:$4 sm:$0xff]   ;;  %v2998_v62 = vld [vmem:[%s3970_s4 + $0x4] ss:$8 sps:$4 sm:$0xff]  }
 0x31f   : > { %v3051_v0 = vpop.eup %3050  ;;  %1858 = vmatprep.subr.bf16.mxu1 %v2998_v62 }
 0x320   : > { %1247 = vadd.xlane.f32.xlu1 %v3051_v0  ;;  %v1413_v49 = vpack.c.bf16 %v3051_v0, %v3047_v38  ;;  %v3977_v0 = vsub.f32 %v3414_v8, %v3421_v13  ;;  %1859 = vmatpush1.bf16.msra.mxu1 %v2996_v51  ;;  %v3001_v8 = vld [vmem:[%s3970_s4 + $0x14] ss:$8 sps:$4 sm:$0xff]   ;;  %v2999_v13 = vld [vmem:[%s3970_s4 + $0x10] ss:$8 sps:$4 sm:$0xff]   ;;  %v3983_v51 = vsub.f32 %v3504_v14, %v3510_v21 }
 0x321   : > { %1860 = vmatprep.subr.bf16.mxu1 %v3001_v8  ;;  %v3985_v14 = vsub.f32 %v3515_v28, %v3529_v34  ;;  %v1207_v34 = vld [vmem:[#allocation4 + $0x30] sm:$0xff] }
 0x322   : > { %2883 = vmatmul.mubr.bf16.gmra.mrb[36].mxu0 %v1413_v49  ;;  %v1045_v49 = vmul.f32 1.442695, %v3977_v0  ;;  %v1057_v62 = vmul.f32 1.442695, %v3983_v51  ;;  %v3019_v8 = vld [vmem:[%s3970_s4 + $0x74] ss:$8 sps:$4 sm:$0xff]  }
 0x323   : > { %v3053_v11 = vpop.eup %3052  ;;  %v1136_v61 = vpop.permute.xlu1 %1135  ;;  %v1061_v21 = vmul.f32 1.442695, %v3985_v14 }
 0x324   : > { %v3055_v12 = vpop.eup %3054  ;;  %v1165_v40 = vsub.f32 %v3403_v2, %v1136_v61  ;;  %1249 = vadd.xlane.f32.xlu0 %v3053_v11  ;;  %v1202_v61 = vld [vmem:[#allocation4 + $0x8] sm:$0xff]  ;;  %1861 = vmatpush1.bf16.msra.mxu1 %v2999_v13 }
 0x325   : > { %v1141_v63 = vpop.permute.xlu0 %1140  ;;  %1251 = vadd.xlane.f32.xlu1 %v3055_v12  ;;  %v1414_v17 = vpack.c.bf16 %v3055_v12, %v3053_v11 }
 0x326   : > { %v1193_v27 = vmul.f32 1.442695, %v1165_v40  ;;  %v1166_v55 = vsub.f32 %v3408_v4, %v1141_v63  ;;  %v1203_v40 = vld [vmem:[#allocation4 + $0x10] sm:$0xff] }
 0x327   : > { %v3057_v36 = vpop.eup %3056  ;;  %2886 = vmatprep.mubr.bf16.mxu0 %v1414_v17  ;;  %v1146_v23 = vpop.permute.xlu1 %1145 }
 0x328   : > { %v3059_v56 = vpop.eup %3058  ;;  %3060 = vpow2.f32 %v1193_v27  ;;  %v1195_v57 = vmul.f32 1.442695, %v1166_v55  ;;  %v1167_v52 = vsub.f32 %v3400_v1, %v1146_v23  ;;  %1253 = vadd.xlane.f32.xlu0 %v3057_v36  ;;  %v1204_v27 = vld [vmem:[#allocation4 + $0x18] sm:$0xff]  ;;  %v3002_v55 = vld [vmem:[%s3970_s4 + $0x20] ss:$8 sps:$4 sm:$0xff]  }
 0x329   : > { %v1151_v32 = vpop.permute.xlu0 %1150  ;;  %1255 = vadd.xlane.f32.xlu1 %v3059_v56  ;;  %v1415_v46 = vpack.c.bf16 %v3059_v56, %v3057_v36  ;;  %v3004_v36 = vld [vmem:[%s3970_s4 + $0x24] ss:$8 sps:$4 sm:$0xff]   ;;  %v3007_v56 = vld [vmem:[%s3970_s4 + $0x34] ss:$8 sps:$4 sm:$0xff]  }
 0x32a   : > { %3062 = vpow2.f32 %v1195_v57  ;;  %v1197_v2 = vmul.f32 1.442695, %v1167_v52  ;;  %v1168_v10 = vsub.f32 %v3405_v3, %v1151_v32  ;;  %v1041_v3 = vmul.f32 1.442695, %v1025_v22  ;;  %v1201_v22 = vld [vmem:[#allocation4] sm:$0xff]  ;;  %1862 = vmatprep.subr.bf16.mxu1 %v3004_v36 }
 0x32b   : > { %2887 = vmatmul.mubr.bf16.gmra.mrb[40].mxu0 %v1415_v46  ;;  %v3979_v57 = vsub.f32 %v3462_v35, %v3469_v41  ;;  %1863 = vmatpush1.bf16.msra.mxu1 %v3002_v55  ;;  %v3981_v41 = vsub.f32 %v3482_v50, %v3492_v7  ;;  %v3982_v50 = vsub.f32 %v3466_v39, %v3472_v43 }
 0x32c   : > { %3064 = vpow2.f32 %v1197_v2  ;;  %v1199_v59 = vmul.f32 1.442695, %v1168_v10  ;;  %1864 = vmatprep.subr.bf16.mxu1 %v3007_v56  ;;  %v3984_v43 = vsub.f32 %v3522_v30, %v3532_v37  ;;  %v3014_v30 = vld [vmem:[%s3970_s4 + $0x60] ss:$8 sps:$4 sm:$0xff]  }
 0x32d   : > { %v1049_v52 = vmul.f32 1.442695, %v3979_v57 }
 0x32e   : > { %3066 = vpow2.f32 %v1199_v59  ;;  %v3005_v59 = vld [vmem:[%s3970_s4 + $0x30] ss:$8 sps:$4 sm:$0xff]   ;;  %v1059_v0 = vmul.f32 1.442695, %v3984_v43 }
 0x32f   : > { %3068 = vpow2.f32 %v1041_v3  ;;  %1865 = vmatpush1.bf16.msra.mxu1 %v3005_v59  ;;  %v3011_v3 = vld [vmem:[%s3970_s4 + $0x50] ss:$8 sps:$4 sm:$0xff]  }
 0x330   : > { %3070 = vpow2.f32 %v1043_v53  ;;  %v3013_v53 = vld [vmem:[%s3970_s4 + $0x54] ss:$8 sps:$4 sm:$0xff]  }
 0x331   : > { %3072 = vpow2.f32 %v1045_v49 }
 0x332   : > { %v3061_v4 = vpop.eup %3060  ;;  %3074 = vpow2.f32 %v1047_v15  ;;  %v3016_v15 = vld [vmem:[%s3970_s4 + $0x64] ss:$8 sps:$4 sm:$0xff]  }
 0x333   : > { %1257 = vadd.xlane.f32.xlu0 %v3061_v4  ;;  %3076 = vpow2.f32 %v1049_v52  ;;  %v3987_v52 = vsub.f32 %v3553_v6, %v3569_v45 }
 0x334   : > { %v3063_v54 = vpop.eup %3062 }
 0x335   : > { %v1416_v38 = vpack.c.bf16 %v3063_v54, %v3061_v4  ;;  %v3980_v4 = vsub.f32 %v3474_v44, %v3489_v5  ;;  %v3008_v44 = vld [vmem:[%s3970_s4 + $0x40] ss:$8 sps:$4 sm:$0xff]   ;;  %v1055_v5 = vmul.f32 1.442695, %v3982_v50 }
 0x336   : > { %v3065_v58 = vpop.eup %3064 }
 0x337   : > { %2890 = vmatprep.mubr.bf16.mxu0 %v1416_v38  ;;  %1261 = vadd.xlane.f32.xlu0 %v3065_v58 }
 0x338   : > { %v3067_v1 = vpop.eup %3066 }
 0x339   : > { %1263 = vadd.xlane.f32.xlu1 %v3067_v1  ;;  %v1417_v29 = vpack.c.bf16 %v3067_v1, %v3065_v58  ;;  %v3069_v18 = vpop.eup %3068  ;;  %v1051_v58 = vmul.f32 1.442695, %v3981_v41 }
 0x33a   : > { %v1217_v26 = vmul.f32 %v3069_v18, %v1201_v22  ;;  %v3071_v31 = vpop.eup %3070 }
 0x33b   : > { %2891 = vmatmul.mubr.bf16.gmra.mrb[44].mxu0 %v1417_v29  ;;  %v3626_v16 = vpop.eup %3072  ;;  %v1218_v24 = vmul.f32 %v3071_v31, %v1202_v61  ;;  %v3010_v29 = vld [vmem:[%s3970_s4 + $0x44] ss:$8 sps:$4 sm:$0xff]  }
 0x33c   : > { %v3075_v63 = vpop.eup %3074  ;;  %v1219_v32 = vmul.f32 %v3626_v16, %v1203_v40  ;;  %1866 = vmatprep.subr.bf16.mxu1 %v3010_v29  ;;  %v1206_v61 = vld [vmem:[#allocation4 + $0x28] sm:$0xff]  ;;  %v1212_v29 = vld [vmem:[#allocation4 + $0x58] sm:$0xff] }
 0x33d   : > { %1259 = vadd.xlane.f32.xlu1 %v3063_v54  ;;  %v1220_v46 = vmul.f32 %v3075_v63, %v1204_v27  ;;  %v1053_v54 = vmul.f32 1.442695, %v3980_v4  ;;  %1867 = vmatpush1.bf16.msra.mxu1 %v3008_v44  ;;  %v3675_v49 = vpop.eup %3076 }
 0x33e   : > { %1868 = vmatprep.subr.bf16.mxu1 %v3013_v53 }
 0x33f   : > { %3078 = vpow2.f32 %v1053_v54 }
 0x340   : > { %3080 = vpow2.f32 %v1051_v58  ;;  %v3988_v58 = vsub.f32 %v3546_v42, %v3551_v48 }
 0x341   : > { %3082 = vpow2.f32 %v1055_v5  ;;  %1869 = vmatpush1.bf16.msra.mxu1 %v3011_v3  ;;  %v3989_v5 = vsub.f32 %v3548_v47, %v3560_v20  ;;  %v3990_v47 = vsub.f32 %v3562_v33, %v3576_v60  ;;  %v1215_v60 = vld [vmem:[#allocation4 + $0x70] sm:$0xff] }
 0x342   : > { %3084 = vpow2.f32 %v1057_v62  ;;  %1870 = vmatprep.subr.bf16.mxu1 %v3016_v15  ;;  %v1069_v6 = vmul.f32 1.442695, %v3988_v58  ;;  %v3798_v58 = vld [vmem:[%s3972_s6 + $0x20] sm:$0xff]  }
 0x343   : > { %3086 = vpow2.f32 %v1059_v0  ;;  %v1067_v20 = vmul.f32 1.442695, %v3990_v47 }
 0x344   : > { %3088 = vpow2.f32 %v1061_v21 }
 0x345   : > { %1871 = vmatpush1.bf16.msra.mxu1 %v3014_v30  ;;  %v1216_v30 = vld [vmem:[#allocation4 + $0x78] sm:$0xff] }
 0x346   : > { %1872 = vmatprep.subr.bf16.mxu1 %v3019_v8 }
 0x349   : > { %v3686_v37 = vpop.eup %3078 }
 0x38d   : > { %v1234_v11 = vpop.xlane.xlu1 %1233 }
 0x38e   : > { %v1265_v12 = vadd.f32 %v1234_v11, %v1217_v26  ;;  %v3692_v11 = vpop.eup %3080 }
 0x38f   : > { %v1222_v13 = vmul.f32 %v3692_v11, %v1206_v61  ;;  %v1214_v61 = vld [vmem:[#allocation4 + $0x68] sm:$0xff] }
 0x390   : > { %1282 = vst.msk [vmem:[#allocation4] sm:$0xff] %vm743_vm0, %v1265_v12 }
 0x391   : > { %v1236_v17 = vpop.xlane.xlu0 %1235 }
 0x392   : > { %v1266_v23 = vadd.f32 %v1236_v17, %v1218_v24  ;;  %v3083_v24 = vpop.eup %3082  ;;  %v1208_v17 = vld [vmem:[#allocation4 + $0x38] sm:$0xff] }
 0x393   : > { %v1224_v36 = vmul.f32 %v3083_v24, %v1208_v17 }
 0x394   : > { %1283 = vst.msk [vmem:[#allocation4 + $0x8] sm:$0xff] %vm743_vm0, %v1266_v23  ;;  %v3085_v23 = vpop.eup %3084 }
 0x395   : > { %v1238_v2 = vpop.xlane.xlu0 %1237  ;;  %v1240_v10 = vpop.xlane.xlu1 %1239 }
 0x396   : > { %v1267_v38 = vadd.f32 %v1238_v2, %v1219_v32  ;;  %v1268_v35 = vadd.f32 %v1240_v10, %v1220_v46  ;;  %v3706_v57 = vpop.eup %3086  ;;  %v1065_v32 = vmul.f32 1.442695, %v3987_v52  ;;  %v1210_v2 = vld [vmem:[#allocation4 + $0x48] sm:$0xff] }
 0x397   : > { %v1614_v1 = vld [vmem:[#allocation4] sm:$0xff]  ;;  %v3712_v4 = vpop.eup %3088  ;;  %v3022_v52 = vld [vmem:[%s3972_s6 + $0x48] sm:$0xff]  }
 0x398   : > { %1284 = vst.msk [vmem:[#allocation4 + $0x10] sm:$0xff] %vm743_vm0, %v1267_v38  ;;  %1285 = vst.msk [vmem:[#allocation4 + $0x18] sm:$0xff] %vm743_vm0, %v1268_v35  ;;  %1632 = vperm.xlu0 %2937, %v1614_v1   ;;  %v1226_v38 = vmul.f32 %v3706_v57, %v1210_v2  ;;  %v1211_v35 = vld [vmem:[#allocation4 + $0x50] sm:$0xff] }
 0x399   : > { %v1227_v3 = vmul.f32 %v3712_v4, %v1211_v35  ;;  %v3766_v2 = vld [vmem:[%s3972_s6 + $0x10] sm:$0xff]  }
 0x39b   : > { %v1615_v7 = vld [vmem:[#allocation4 + $0x8] sm:$0xff] }
 0x39c   : > { %1637 = vperm.xlu1 %2938, %v1615_v7   ;;  %1321 = vperm.xlu0 %2937, %v3071_v31   ;;  %v1221_v31 = vmul.f32 %v3675_v49, %v1205_v9  ;;  %v1071_v7 = vmul.f32 1.442695, %v3989_v5 }
 0x39f   : > { %v1617_v39 = vld [vmem:[#allocation4 + $0x18] sm:$0xff]  ;;  %v1616_v22 = vld [vmem:[#allocation4 + $0x10] sm:$0xff] }
 0x3a0   : > { %1316 = vperm.xlu1 %2938, %v3069_v18   ;;  %1647 = vperm.xlu0 %2937, %v1617_v39   ;;  %v3986_v18 = vsub.f32 %v3507_v19, %v3513_v25  ;;  %v3017_v19 = vld [vmem:[%s3970_s4 + $0x70] ss:$8 sps:$4 sm:$0xff]   ;;  %v1223_v25 = vmul.f32 %v3686_v37, %v1207_v34 }
 0x3a1   : > { %1873 = vmatpush1.bf16.msra.mxu1 %v3017_v19 }
 0x3a2   : > { %v1063_v26 = vmul.f32 1.442695, %v3986_v18 }
 0x3a4   : > { %1642 = vperm.xlu1 %2938, %v1616_v22   ;;  %1331 = vperm.xlu0 %2937, %v3075_v63   ;;  %3090 = vpow2.f32 %v1063_v26 }
 0x3a5   : > { %v1242_v28 = vpop.xlane.xlu0 %1241  ;;  %3092 = vpow2.f32 %v1065_v32  ;;  %v3023_v32 = vld [vmem:[%s3972_s6 + $0x8] sm:$0xff]  }
 0x3a6   : > { %v1269_v12 = vadd.f32 %v1242_v28, %v1221_v31  ;;  %3094 = vpow2.f32 %v1069_v6  ;;  %v3804_v6 = vld [vmem:[%s3972_s6 + $0x68] sm:$0xff]  }
 0x3a7   : > { %3096 = vpow2.f32 %v1071_v7 }
 0x3a8   : > { %1286 = vst.msk [vmem:[#allocation4 + $0x20] sm:$0xff] %vm743_vm0, %v1269_v12  ;;  %1326 = vperm.xlu1 %2938, %v3626_v16   ;;  %v1209_v16 = vld [vmem:[#allocation4 + $0x40] sm:$0xff]  ;;  %3098 = vpow2.f32 %v1067_v20 }
 0x3a9   : > { %v1246_v40 = vpop.xlane.xlu0 %1245  ;;  %v1244_v63 = vpop.xlane.xlu1 %1243  ;;  %v1225_v59 = vmul.f32 %v3085_v23, %v1209_v16  ;;  %v3020_v16 = vld [vmem:[%s3972_s6 + $0x40] sm:$0xff]  }
 0x3aa   : > { %v1271_v27 = vadd.f32 %v1246_v40, %v1223_v25  ;;  %v1270_v55 = vadd.f32 %v1244_v63, %v1222_v13  ;;  %2766 = vmatprep.subr.bf16.mxu0 %v3020_v16  ;;  %2894 = vmatprep.subr.bf16.mxu1 %v3020_v16 }
 0x3ac   : > { %1288 = vst.msk [vmem:[#allocation4 + $0x30] sm:$0xff] %vm743_vm0, %v1271_v27  ;;  %1287 = vst.msk [vmem:[#allocation4 + $0x28] sm:$0xff] %vm743_vm0, %v1270_v55 }
 0x3ad   : > { %v1248_v56 = vpop.xlane.xlu1 %1247 }
 0x3ae   : > { %v1272_v46 = vadd.f32 %v1248_v56, %v1224_v36  ;;  %v3715_v41 = vpop.eup %3090 }
 0x3af   : > { %v1618_v10 = vld [vmem:[#allocation4 + $0x20] sm:$0xff]  ;;  %v1228_v48 = vmul.f32 %v3715_v41, %v1212_v29  ;;  %v3093_v0 = vpop.eup %3092 }
 0x3b0   : > { %1289 = vst.msk [vmem:[#allocation4 + $0x38] sm:$0xff] %vm743_vm0, %v1272_v46  ;;  %1652 = vperm.xlu1 %2938, %v1618_v10   ;;  %v3095_v14 = vpop.eup %3094  ;;  %v3761_v46 = vld [vmem:[%s3972_s6 + $0x50] sm:$0xff]   ;;  %v3772_v10 = vld [vmem:[%s3972_s6 + $0x58] sm:$0xff]  }
 0x3b1   : > { %v1250_v54 = vpop.xlane.xlu0 %1249  ;;  %v3097_v22 = vpop.eup %3096  ;;  %v1231_v18 = vmul.f32 %v3095_v14, %v1215_v60 }
 0x3b2   : > { %v1273_v45 = vadd.f32 %v1250_v54, %v1225_v59  ;;  %v1252_v1 = vpop.xlane.xlu1 %1251  ;;  %v3099_v28 = vpop.eup %3098 }
 0x3b3   : > { %v1274_v44 = vadd.f32 %v1252_v1, %v1226_v38  ;;  %v1619_v50 = vld [vmem:[#allocation4 + $0x28] sm:$0xff]  ;;  %v1620_v39 = vld [vmem:[#allocation4 + $0x30] sm:$0xff]  ;;  %v1230_v19 = vmul.f32 %v3099_v28, %v1214_v61  ;;  %v3784_v38 = vld [vmem:[%s3972_s6 + $0x18] sm:$0xff]  }
 0x3b4   : > { %1290 = vst.msk [vmem:[#allocation4 + $0x40] sm:$0xff] %vm743_vm0, %v1273_v45  ;;  %1336 = vperm.xlu1 %2938, %v3675_v49   ;;  %1657 = vperm.xlu0 %2937, %v1619_v50   ;;  %v1213_v49 = vld [vmem:[#allocation4 + $0x60] sm:$0xff] }
 0x3b5   : > { %1291 = vst.msk [vmem:[#allocation4 + $0x48] sm:$0xff] %vm743_vm0, %v1274_v44  ;;  %v1254_v42 = vpop.xlane.xlu0 %1253  ;;  %v1229_v15 = vmul.f32 %v3093_v0, %v1213_v49 }
 0x3b6   : > { %v1275_v53 = vadd.f32 %v1254_v42, %v1227_v3  ;;  %v1256_v51 = vpop.xlane.xlu1 %1255 }
 0x3b7   : > { %v1276_v62 = vadd.f32 %v1256_v51, %v1228_v48  ;;  %v1621_v43 = vld [vmem:[#allocation4 + $0x38] sm:$0xff] }
 0x3b8   : > { %1292 = vst.msk [vmem:[#allocation4 + $0x50] sm:$0xff] %vm743_vm0, %v1275_v53  ;;  %1662 = vperm.xlu1 %2938, %v1620_v39   ;;  %1341 = vperm.xlu0 %2937, %v3692_v11   ;;  %v1232_v11 = vmul.f32 %v3097_v22, %v1216_v30 }
 0x3b9   : > { %1293 = vst.msk [vmem:[#allocation4 + $0x58] sm:$0xff] %vm743_vm0, %v1276_v62 }
 0x3bb   : > { %v1622_v9 = vld [vmem:[#allocation4 + $0x40] sm:$0xff] }
 0x3bc   : > { %1346 = vperm.xlu1 %2938, %v3686_v37   ;;  %1667 = vperm.xlu0 %2937, %v1621_v43   ;;  %v1623_v26 = vld [vmem:[#allocation4 + $0x48] sm:$0xff] }
 0x3bf   : > { %v1624_v8 = vld [vmem:[#allocation4 + $0x50] sm:$0xff] }
 0x3c0   : > { %1672 = vperm.xlu1 %2938, %v1622_v9   ;;  %v1258_v33 = vpop.xlane.xlu0 %1257  ;;  %1351 = vperm.xlu0 %2937, %v3083_v24   ;;  %v1625_v24 = vld [vmem:[#allocation4 + $0x58] sm:$0xff] }
 0x3c1   : > { %v1277_v21 = vadd.f32 %v1258_v33, %v1229_v15 }
 0x3c3   : > { %1294 = vst.msk [vmem:[#allocation4 + $0x60] sm:$0xff] %vm743_vm0, %v1277_v21 }
 0x3c4   : > { %1356 = vperm.xlu1 %2938, %v3085_v23   ;;  %v1262_v31 = vpop.xlane.xlu0 %1261  ;;  %1677 = vperm.xlu0 %2937, %v1623_v26   ;;  %v3991_v26 = vmov 0  }
 0x3c5   : > { %v1279_v37 = vadd.f32 %v1262_v31, %v1231_v18 }
 0x3c6   : > { %v1264_v34 = vpop.xlane.xlu1 %1263 }
 0x3c7   : > { %1296 = vst.msk [vmem:[#allocation4 + $0x70] sm:$0xff] %vm743_vm0, %v1279_v37  ;;  %v1280_v12 = vadd.f32 %v1264_v34, %v1232_v11 }
 0x3c8   : > { %1682 = vperm.xlu1 %2938, %v1624_v8   ;;  %1361 = vperm.xlu0 %2937, %v3706_v57   ;;  %v3021_v57 = vld [vmem:[%s3972_s6] sm:$0xff]  }
 0x3c9   : > { %1297 = vst.msk [vmem:[#allocation4 + $0x78] sm:$0xff] %vm743_vm0, %v1280_v12  ;;  %2767 = vmatpush3.bf16.msra.mxu0 %v3021_v57 }
 0x3ca   : > { %v1260_v25 = vpop.xlane.xlu1 %1259  ;;  %v1626_v40 = vld [vmem:[#allocation4 + $0x60] sm:$0xff]  ;;  %2768 = vmatprep.subr.bf16.mxu0 %v3022_v52 }
 0x3cb   : > { %v1278_v13 = vadd.f32 %v1260_v25, %v1230_v19 }
 0x3cc   : > { %1366 = vperm.xlu1 %2938, %v3712_v4   ;;  %1687 = vperm.xlu0 %2937, %v1625_v24  }
 0x3cd   : > { %1295 = vst.msk [vmem:[#allocation4 + $0x68] sm:$0xff] %vm743_vm0, %v1278_v13  ;;  %2769 = vmatpush3.bf16.msra.mxu0 %v3023_v32 }
 0x3ce   : > { %v1628_v17 = vld [vmem:[#allocation4 + $0x70] sm:$0xff]  ;;  %2770 = vmatprep.subr.bf16.mxu0 %v3761_v46 }
 0x3d0   : > { %1692 = vperm.xlu1 %2938, %v1626_v40   ;;  %1371 = vperm.xlu0 %2937, %v3715_v41   ;;  %v1629_v27 = vld [vmem:[#allocation4 + $0x78] sm:$0xff]  ;;  %v3792_v41 = vld [vmem:[%s3972_s6 + $0x60] sm:$0xff]  }
 0x3d1   : > { %2771 = vmatpush3.bf16.msra.mxu0 %v3766_v2 }
 0x3d2   : > { %2772 = vmatprep.subr.bf16.mxu0 %v3772_v10 }
 0x3d4   : > { %1376 = vperm.xlu1 %2938, %v3093_v0   ;;  %v1627_v63 = vld [vmem:[#allocation4 + $0x68] sm:$0xff] }
 0x3d5   : > { %1697 = vperm.xlu0 %2937, %v1627_v63   ;;  %2773 = vmatpush3.bf16.msra.mxu0 %v3784_v38 }
 0x3d6   : > { %2774 = vmatprep.subr.bf16.mxu0 %v3792_v41 }
 0x3d8   : > { %1702 = vperm.xlu1 %2938, %v1628_v17  }
 0x3d9   : > { %1381 = vperm.xlu0 %2937, %v3099_v28   ;;  %2775 = vmatpush3.bf16.msra.mxu0 %v3798_v58 }
 0x3da   : > { %2776 = vmatprep.subr.bf16.mxu0 %v3804_v6 }
 0x3dc   : > { %1386 = vperm.xlu1 %2938, %v3095_v14  }
 0x3dd   : > { %v3742_v55 = vpop.f32.mrb[32].mxu0  ;;  %1707 = vperm.xlu0 %2937, %v1629_v27  }
 0x3de   : > { %v1484_v36 = vpop.f32.mrb[33].mxu0 }
 0x3df   : > { %v3744_v23 = vpop.f32.mrb[34].mxu0 }
 0x3e0   : > { %v1487_v56 = vpop.f32.mrb[35].mxu0 }
 0x3e1   : > { %1391 = vperm.xlu0 %2937, %v3097_v22  }
 0x3f5   : > { %v3774_v59 = vpop.f32.mrb[36].mxu0 }
 0x3f6   : > { %v3776_v4 = vpop.f32.mrb[37].mxu0 }
 0x3f7   : > { %v3778_v54 = vpop.f32.mrb[38].mxu0 }
 0x3f8   : > { %v3786_v35 = vpop.f32.mrb[39].mxu0 }
 0x3fe   : > { %v3806_v45 = vpop.f32.mrb[40].mxu0 }
 0x3ff   : > { %v3808_v1 = vpop.f32.mrb[41].mxu0 }
 0x400   : > { %v3811_v29 = vpop.f32.mrb[42].mxu0 }
 0x401   : > { %v3814_v44 = vpop.f32.mrb[43].mxu0 }
 0x40e   : > { %v3816_v50 = vpop.f32.mrb[44].mxu0 }
 0x40f   : > { %v3818_v5 = vpop.f32.mrb[45].mxu0 }
 0x410   : > { %v3820_v7 = vpop.f32.mrb[46].mxu0 }
 0x411   : > { %v3822_v3 = vpop.f32.mrb[47].mxu0 }
 0x417   : > { %v1633_v42 = vpop.permute.xlu0 %1632 }
 0x418   : > { %3100 = vrcp.f32 %v1633_v42 }
 0x41b   : > { %v1322_v48 = vpop.permute.xlu0 %1321  ;;  %v1638_v53 = vpop.permute.xlu1 %1637 }
 0x41c   : > { %3102 = vrcp.f32 %v1638_v53  ;;  %v1395_v47 = vmul.f32 0.0, %v1322_v48 }
 0x41e   : > { %v1548_v49 = vadd.f32 %v1487_v56, %v1395_v47 }
 0x41f   : > { %v1648_v51 = vpop.permute.xlu0 %1647  ;;  %v1317_v62 = vpop.permute.xlu1 %1316 }
 0x420   : > { %v1394_v39 = vmul.f32 0.0, %v1317_v62  ;;  %3104 = vrcp.f32 %v1648_v51 }
 0x422   : > { %v1547_v20 = vadd.f32 %v1484_v36, %v1394_v39  ;;  %v3101_v0 = vpop.eup %3100 }
 0x423   : > { %v1643_v43 = vpop.permute.xlu1 %1642  ;;  %v1332_v15 = vpop.permute.xlu0 %1331 }
 0x424   : > { %3106 = vrcp.f32 %v1643_v43  ;;  %v1711_v33 = vmul.f32 %v3101_v0, %v1547_v20  ;;  %v1397_v22 = vmul.f32 0.0, %v1332_v15 }
 0x426   : > { %v3103_v9 = vpop.eup %3102  ;;  %v1550_v31 = vadd.f32 %v3744_v23, %v1397_v22 }
 0x427   : > { %v1713_v14 = vmul.f32 %v3103_v9, %v1548_v49  ;;  %v1327_v60 = vpop.permute.xlu1 %1326 }
 0x428   : > { %v1396_v30 = vmul.f32 0.0, %v1327_v60 }
 0x429   : > { %v1742_v21 = vpack.c.bf16 %v1713_v14, %v1711_v33 }
 0x42a   : > { %v3105_v18 = vpop.eup %3104  ;;  %v1549_v37 = vadd.f32 %v3742_v55, %v1396_v30 }
 0x42b   : > { %1891 = vmatmul.mubr.bf16.vlgmr.msra.gmra.mrb[16].mxu1 %v1742_v21  ;;  %v1717_v28 = vmul.f32 %v3105_v18, %v1550_v31 }
 0x42c   : > { %1900 = vmatprep.mubr.bf16.mxu1 %v3991_v26  ;;  %2902 = vmatpush3.bf16.msra.mxu1 %v3021_v57 }
 0x42d   : > { %2895 = vmatprep.subr.bf16.mxu1 %v3022_v52 }
 0x42e   : > { %v3107_v11 = vpop.eup %3106 }
 0x42f   : > { %v1715_v34 = vmul.f32 %v3107_v11, %v1549_v37  ;;  %v1653_v61 = vpop.permute.xlu1 %1652 }
 0x430   : > { %2903 = vmatpush3.bf16.msra.mxu1 %v3023_v32  ;;  %3108 = vrcp.f32 %v1653_v61 }
 0x431   : > { %v1743_v12 = vpack.c.bf16 %v1717_v28, %v1715_v34  ;;  %2896 = vmatprep.subr.bf16.mxu1 %v3761_v46 }
 0x433   : > { %v1658_v8 = vpop.permute.xlu0 %1657  ;;  %1901 = vmatmul.mubr.bf16.gmra.mrb[20].mxu1 %v1743_v12  ;;  %v1337_v19 = vpop.permute.xlu1 %1336 }
 0x434   : > { %3110 = vrcp.f32 %v1658_v8  ;;  %1910 = vmatprep.mubr.bf16.mxu1 %v3991_v26  ;;  %2904 = vmatpush3.bf16.msra.mxu1 %v3766_v2  ;;  %v1398_v24 = vmul.f32 0.0, %v1337_v19 }
 0x435   : > { %2897 = vmatprep.subr.bf16.mxu1 %v3772_v10 }
 0x436   : > { %v1551_v55 = vadd.f32 %v3776_v4, %v1398_v24 }
 0x437   : > { %v1342_v25 = vpop.permute.xlu0 %1341  ;;  %v1663_v13 = vpop.permute.xlu1 %1662 }
 0x438   : > { %2905 = vmatpush3.bf16.msra.mxu1 %v3784_v38  ;;  %v1399_v40 = vmul.f32 0.0, %v1342_v25  ;;  %3112 = vrcp.f32 %v1663_v13 }
 0x439   : > { %2898 = vmatprep.subr.bf16.mxu1 %v3792_v41 }
 0x43a   : > { %v3109_v27 = vpop.eup %3108  ;;  %v1552_v36 = vadd.f32 %v3786_v35, %v1399_v40 }
 0x43b   : > { %v1668_v63 = vpop.permute.xlu0 %1667  ;;  %v1347_v17 = vpop.permute.xlu1 %1346  ;;  %v1719_v56 = vmul.f32 %v3109_v27, %v1551_v55 }
 0x43c   : > { %3114 = vrcp.f32 %v1668_v63  ;;  %2906 = vmatpush3.bf16.msra.mxu1 %v3798_v58  ;;  %v1400_v32 = vmul.f32 0.0, %v1347_v17 }
 0x43d   : > { %2899 = vmatprep.subr.bf16.mxu1 %v3804_v6 }
 0x43e   : > { %v3111_v23 = vpop.eup %3110  ;;  %v1553_v4 = vadd.f32 %v3774_v59, %v1400_v32  ;;  %v3031_v32 = vld [vmem:[%s3972_s6 + $0x28] sm:$0xff]  }
 0x43f   : > { %v1721_v16 = vmul.f32 %v3111_v23, %v1552_v36  ;;  %v1352_v57 = vpop.permute.xlu0 %1351  ;;  %v1673_v52 = vpop.permute.xlu1 %1672  ;;  %2777 = vmatpush3.bf16.msra.mxu0 %v3031_v32 }
 0x440   : > { %v1401_v46 = vmul.f32 0.0, %v1352_v57  ;;  %3116 = vrcp.f32 %v1673_v52  ;;  %2907 = vmatpush3.bf16.msra.mxu1 %v3031_v32 }
 0x441   : > { %v1744_v2 = vpack.c.bf16 %v1721_v16, %v1719_v56 }
 0x442   : > { %v3113_v41 = vpop.eup %3112  ;;  %v1554_v35 = vadd.f32 %v3778_v54, %v1401_v46  ;;  %v3032_v46 = vld [vmem:[%s3972_s6 + $0x70] sm:$0xff]  }
 0x443   : > { %v1678_v10 = vpop.permute.xlu0 %1677  ;;  %1911 = vmatmul.mubr.bf16.gmra.mrb[24].mxu1 %v1744_v2  ;;  %v1357_v38 = vpop.permute.xlu1 %1356  ;;  %v1723_v6 = vmul.f32 %v3113_v41, %v1553_v4  ;;  %2778 = vmatprep.subr.bf16.mxu0 %v3032_v46  ;;  %v1768_v2 = vlaneseq  ;;  %v1766_v41 = vld [vmem:[%s3971_s5] sm:$0x3] }
 0x444   : > { %3118 = vrcp.f32 %v1678_v10  ;;  %1920 = vmatprep.mubr.bf16.mxu1 %v3991_v26  ;;  %v1402_v51 = vmul.f32 0.0, %v1357_v38  ;;  %2900 = vmatprep.subr.bf16.mxu1 %v3032_v46 }
 0x445   : > { %v1769_v10 = vshrl.u32 %v1768_v2, 7 }
 0x446   : > { %v3115_v58 = vpop.eup %3114  ;;  %v1555_v59 = vadd.f32 %v3808_v1, %v1402_v51 }
 0x447   : > { %v1725_v42 = vmul.f32 %v3115_v58, %v1554_v35  ;;  %v1362_v48 = vpop.permute.xlu0 %1361  ;;  %v1683_v53 = vpop.permute.xlu1 %1682  ;;  %v1770_v38 = vsub.s32 0, %v1769_v10  ;;  %v1774_v4 = vsub.s32 1, %v1769_v10  ;;  %v1971_v58 = vld [vmem:[%s3255_s12] sm:$0xff]  ;;  %v1977_v10 = vld [vmem:[%s3255_s12 + $0x30] sm:$0xff] }
 0x448   : > { %v1403_v62 = vmul.f32 0.0, %v1362_v48  ;;  %3120 = vrcp.f32 %v1683_v53  ;;  %v1987_v51 = vunpack.c.l.bf16 %v1971_v58 }
 0x449   : > { %v1745_v39 = vpack.c.bf16 %v1725_v42, %v1723_v6  ;;  %v3870_v35 = vrot.slane %v1766_v41, %v1770_v38  ;;  %v3873_v6 = vrot.slane %v1766_v41, %v1774_v4  ;;  %v1972_v42 = vld [vmem:[%s3255_s12 + $0x8] sm:$0xff]  ;;  %v1978_v38 = vld [vmem:[%s3255_s12 + $0x38] sm:$0xff] }
 0x44a   : > { %v3117_v43 = vpop.eup %3116  ;;  %v1556_v54 = vadd.f32 %v3814_v44, %v1403_v62 }
 0x44b   : > { %v1688_v47 = vpop.permute.xlu0 %1687  ;;  %1921 = vmatmul.mubr.bf16.gmra.mrb[28].mxu1 %v1745_v39  ;;  %v1367_v20 = vpop.permute.xlu1 %1366  ;;  %v1727_v49 = vmul.f32 %v3117_v43, %v1555_v59  ;;  %v1989_v39 = vunpack.c.l.bf16 %v1972_v42  ;;  %v1990_v59 = vunpack.c.h.bf16 %v1972_v42 }
 0x44c   : > { %3122 = vrcp.f32 %v1688_v47  ;;  %1930 = vmatprep.mubr.bf16.mxu1 %v3991_v26  ;;  %v1404_v33 = vmul.f32 0.0, %v1367_v20  ;;  %v1988_v20 = vunpack.c.h.bf16 %v1971_v58 }
 0x44e   : > { %v3119_v0 = vpop.eup %3118  ;;  %v1557_v31 = vadd.f32 %v3806_v45, %v1404_v33 }
 0x44f   : > { %v1729_v9 = vmul.f32 %v3119_v0, %v1556_v54  ;;  %v1372_v15 = vpop.permute.xlu0 %1371  ;;  %v1693_v14 = vpop.permute.xlu1 %1692 }
 0x450   : > { %v1405_v60 = vmul.f32 0.0, %v1372_v15  ;;  %3124 = vrcp.f32 %v1693_v14 }
 0x451   : > { %v1746_v21 = vpack.c.bf16 %v1729_v9, %v1727_v49 }
 0x452   : > { %v3121_v30 = vpop.eup %3120  ;;  %v1558_v1 = vadd.f32 %v3811_v29, %v1405_v60  ;;  %v1973_v60 = vld [vmem:[%s3255_s12 + $0x10] sm:$0xff] }
 0x453   : > { %1931 = vmatmul.mubr.bf16.gmra.mrb[32].mxu1 %v1746_v21  ;;  %v1377_v22 = vpop.permute.xlu1 %1376  ;;  %v1731_v37 = vmul.f32 %v3121_v30, %v1557_v31  ;;  %v1974_v21 = vld [vmem:[%s3255_s12 + $0x18] sm:$0xff] }
 0x454   : > { %v1698_v18 = vpop.permute.xlu0 %1697  ;;  %1940 = vmatprep.mubr.bf16.mxu1 %v3991_v26  ;;  %v1406_v12 = vmul.f32 0.0, %v1377_v22 }
 0x455   : > { %3126 = vrcp.f32 %v1698_v18 }
 0x456   : > { %v3123_v44 = vpop.eup %3122  ;;  %v1559_v45 = vadd.f32 %v3818_v5, %v1406_v12 }
 0x457   : > { %v1733_v11 = vmul.f32 %v3123_v44, %v1558_v1  ;;  %v1703_v28 = vpop.permute.xlu1 %1702  ;;  %v1991_v1 = vunpack.c.l.bf16 %v1973_v60 }
 0x458   : > { %v1382_v34 = vpop.permute.xlu0 %1381  ;;  %3128 = vrcp.f32 %v1703_v28  ;;  %v1992_v28 = vunpack.c.h.bf16 %v1973_v60 }
 0x459   : > { %v1747_v61 = vpack.c.bf16 %v1733_v11, %v1731_v37  ;;  %v1407_v8 = vmul.f32 0.0, %v1382_v34  ;;  %v1993_v37 = vunpack.c.l.bf16 %v1974_v21 }
 0x45a   : > { %v3125_v25 = vpop.eup %3124 }
 0x45b   : > { %1941 = vmatmul.mubr.bf16.gmra.mrb[36].mxu1 %v1747_v61  ;;  %v1560_v29 = vadd.f32 %v3822_v3, %v1407_v8  ;;  %v1387_v24 = vpop.permute.xlu1 %1386  ;;  %v1735_v40 = vmul.f32 %v3125_v25, %v1559_v45  ;;  %v1994_v61 = vunpack.c.h.bf16 %v1974_v21 }
 0x45c   : > { %v1708_v19 = vpop.permute.xlu0 %1707  ;;  %1950 = vmatprep.mubr.bf16.mxu1 %v3991_v26  ;;  %v1408_v27 = vmul.f32 0.0, %v1387_v24 }
 0x45d   : > { %3130 = vrcp.f32 %v1708_v19 }
 0x45e   : > { %v1561_v56 = vadd.f32 %v3816_v50, %v1408_v27  ;;  %v3033_v50 = vld [vmem:[%s3972_s6 + $0x30] sm:$0xff]  }
 0x45f   : > { %v3127_v13 = vpop.eup %3126  ;;  %2779 = vmatpush3.bf16.msra.mxu0 %v3033_v50  ;;  %2908 = vmatpush3.bf16.msra.mxu1 %v3033_v50 }
 0x460   : > { %v1737_v63 = vmul.f32 %v3127_v13, %v1560_v29  ;;  %v1392_v17 = vpop.permute.xlu0 %1391 }
 0x461   : > { %v1409_v55 = vmul.f32 0.0, %v1392_v17  ;;  %v1976_v17 = vld [vmem:[%s3255_s12 + $0x28] sm:$0xff] }
 0x462   : > { %v1748_v36 = vpack.c.bf16 %v1737_v63, %v1735_v40  ;;  %v3129_v23 = vpop.eup %3128  ;;  %v1975_v63 = vld [vmem:[%s3255_s12 + $0x20] sm:$0xff] }
 0x463   : > { %v1562_v16 = vadd.f32 %v3820_v7, %v1409_v55  ;;  %v1739_v5 = vmul.f32 %v3129_v23, %v1561_v56  ;;  %v3034_v7 = vld [vmem:[%s3972_s6 + $0x78] sm:$0xff]   ;;  %v1997_v56 = vunpack.c.l.bf16 %v1976_v17 }
 0x464   : > { %1951 = vmatmul.mubr.bf16.gmra.mrb[40].mxu1 %v1748_v36  ;;  %2780 = vmatprep.subr.bf16.mxu0 %v3034_v7  ;;  %v1995_v36 = vunpack.c.l.bf16 %v1975_v63 }
 0x465   : > { %1960 = vmatprep.mubr.bf16.mxu1 %v3991_v26  ;;  %v3035_v26 = vld [vmem:[%s3972_s6 + $0x38] sm:$0xff]   ;;  %2901 = vmatprep.subr.bf16.mxu1 %v3034_v7 }
 0x466   : > { %2781 = vmatpush3.bf16.msra.mxu0 %v3035_v26  ;;  %2909 = vmatpush3.bf16.msra.mxu1 %v3035_v26 }
 0x467   : > { %v3131_v57 = vpop.eup %3130 }
 0x468   : > { %v1741_v52 = vmul.f32 %v3131_v57, %v1562_v16  ;;  %v1996_v57 = vunpack.c.h.bf16 %v1975_v63 }
 0x46a   : > { %v1749_v3 = vpack.c.bf16 %v1741_v52, %v1739_v5  ;;  %v1998_v52 = vunpack.c.h.bf16 %v1976_v17 }
 0x46c   : > { %1961 = vmatmul.mubr.bf16.gmra.mrb[44].mxu1 %v1749_v3 }
 0x4fe   : > { %v1892_v48 = vpop.f32.mrb[16].mxu1 }
 0x4ff   : > { %v1893_v53 = vadd.f32 %v1892_v48, %v3870_v35  ;;  %v1894_v62 = vpop.f32.mrb[17].mxu1  ;;  %v1999_v48 = vunpack.c.l.bf16 %v1977_v10 }
 0x500   : > { %v1895_v47 = vadd.f32 %v1894_v62, %v3873_v6  ;;  %v1896_v43 = vpop.f32.mrb[18].mxu1 }
 0x501   : > { %v1897_v54 = vadd.f32 %v1896_v43, %v3870_v35  ;;  %v1898_v0 = vpop.f32.mrb[19].mxu1  ;;  %v2019_v9 = vadd.f32 %v1987_v51, %v1893_v53  ;;  %v2001_v51 = vunpack.c.l.bf16 %v1978_v38 }
 0x502   : > { %v1899_v49 = vadd.f32 %v1898_v0, %v3873_v6  ;;  %v2020_v14 = vadd.f32 %v1988_v20, %v1895_v47  ;;  %v2002_v20 = vunpack.c.h.bf16 %v1978_v38 }
 0x503   : > { %v2021_v15 = vadd.f32 %v1989_v39, %v1897_v54  ;;  %v2000_v39 = vunpack.c.h.bf16 %v1977_v10 }
 0x504   : > { %v2022_v33 = vadd.f32 %v1990_v59, %v1899_v49 }
 0x505   : > { %v2051_v22 = vpack.c.bf16 %v2021_v15, %v2019_v9 }
 0x506   : > { %v1902_v30 = vpop.f32.mrb[20].mxu1  ;;  %v2052_v18 = vpack.c.bf16 %v2022_v33, %v2020_v14  ;;  %v1979_v14 = vld [vmem:[%s3255_s12 + $0x40] sm:$0xff]  ;;  %v1980_v33 = vld [vmem:[%s3255_s12 + $0x48] sm:$0xff] }
 0x507   : > { %v1903_v31 = vadd.f32 %v1902_v30, %v3870_v35  ;;  %v1904_v44 = vpop.f32.mrb[21].mxu1 }
 0x508   : > { %v1905_v11 = vadd.f32 %v1904_v44, %v3873_v6  ;;  %v1906_v34 = vpop.f32.mrb[22].mxu1  ;;  %2234 = vmatprep.mubr.bf16.mxu0 %v2052_v18  ;;  %v2003_v18 = vunpack.c.l.bf16 %v1979_v14 }
 0x509   : > { %v1907_v12 = vadd.f32 %v1906_v34, %v3870_v35  ;;  %v1908_v8 = vpop.f32.mrb[23].mxu1  ;;  %2235 = vmatmul.mubr.bf16.vlgmr.msra.gmra.mrb[48].mxu0 %v2051_v22  ;;  %v2023_v25 = vadd.f32 %v1991_v1, %v1903_v31  ;;  %v2005_v1 = vunpack.c.l.bf16 %v1980_v33 }
 0x50a   : > { %v1909_v19 = vadd.f32 %v1908_v8, %v3873_v6  ;;  %v2024_v29 = vadd.f32 %v1992_v28, %v1905_v11  ;;  %v2006_v28 = vunpack.c.h.bf16 %v1980_v33 }
 0x50b   : > { %v2025_v45 = vadd.f32 %v1993_v37, %v1907_v12  ;;  %v2004_v37 = vunpack.c.h.bf16 %v1979_v14 }
 0x50c   : > { %v2026_v13 = vadd.f32 %v1994_v61, %v1909_v19 }
 0x50d   : > { %v2053_v24 = vpack.c.bf16 %v2025_v45, %v2023_v25 }
 0x50e   : > { %v2054_v40 = vpack.c.bf16 %v2026_v13, %v2024_v29  ;;  %v1981_v29 = vld [vmem:[%s3255_s12 + $0x50] sm:$0xff]  ;;  %v1982_v13 = vld [vmem:[%s3255_s12 + $0x58] sm:$0xff] }
 0x510   : > { %2242 = vmatprep.mubr.bf16.mxu0 %v2054_v40 }
 0x511   : > { %2243 = vmatmul.mubr.bf16.gmra.mrb[52].mxu0 %v2053_v24 }
 0x516   : > { %v1912_v27 = vpop.f32.mrb[24].mxu1 }
 0x517   : > { %v1913_v55 = vadd.f32 %v1912_v27, %v3870_v35  ;;  %v1914_v23 = vpop.f32.mrb[25].mxu1  ;;  %v2007_v27 = vunpack.c.l.bf16 %v1981_v29 }
 0x518   : > { %v1915_v16 = vadd.f32 %v1914_v23, %v3873_v6  ;;  %v1916_v5 = vpop.f32.mrb[26].mxu1 }
 0x519   : > { %v1917_v3 = vadd.f32 %v1916_v5, %v3870_v35  ;;  %v1918_v32 = vpop.f32.mrb[27].mxu1  ;;  %v2027_v50 = vadd.f32 %v1995_v36, %v1913_v55  ;;  %v2009_v36 = vunpack.c.l.bf16 %v1982_v13 }
 0x51a   : > { %v1919_v46 = vadd.f32 %v1918_v32, %v3873_v6  ;;  %v2028_v26 = vadd.f32 %v1996_v57, %v1915_v16  ;;  %v2010_v57 = vunpack.c.h.bf16 %v1982_v13 }
 0x51b   : > { %v2029_v7 = vadd.f32 %v1997_v56, %v1917_v3  ;;  %v2008_v56 = vunpack.c.h.bf16 %v1981_v29 }
 0x51c   : > { %v2030_v2 = vadd.f32 %v1998_v52, %v1919_v46 }
 0x51d   : > { %v2055_v41 = vpack.c.bf16 %v2029_v7, %v2027_v50 }
 0x51e   : > { %v1922_v4 = vpop.f32.mrb[28].mxu1  ;;  %v2056_v58 = vpack.c.bf16 %v2030_v2, %v2028_v26  ;;  %v1983_v26 = vld [vmem:[%s3255_s12 + $0x60] sm:$0xff]  ;;  %v1984_v2 = vld [vmem:[%s3255_s12 + $0x68] sm:$0xff] }
 0x51f   : > { %v1923_v42 = vadd.f32 %v1922_v4, %v3870_v35  ;;  %v1924_v53 = vpop.f32.mrb[29].mxu1 }
 0x520   : > { %v1925_v62 = vadd.f32 %v1924_v53, %v3873_v6  ;;  %v1926_v47 = vpop.f32.mrb[30].mxu1  ;;  %2250 = vmatprep.mubr.bf16.mxu0 %v2056_v58  ;;  %v2011_v58 = vunpack.c.l.bf16 %v1983_v26 }
 0x521   : > { %v1927_v43 = vadd.f32 %v1926_v47, %v3870_v35  ;;  %v1928_v59 = vpop.f32.mrb[31].mxu1  ;;  %2251 = vmatmul.mubr.bf16.gmra.mrb[56].mxu0 %v2055_v41  ;;  %v2031_v0 = vadd.f32 %v1999_v48, %v1923_v42  ;;  %v2013_v48 = vunpack.c.l.bf16 %v1984_v2 }
 0x522   : > { %v1929_v54 = vadd.f32 %v1928_v59, %v3873_v6  ;;  %v2032_v9 = vadd.f32 %v2000_v39, %v1925_v62  ;;  %v2014_v39 = vunpack.c.h.bf16 %v1984_v2 }
 0x523   : > { %v2033_v49 = vadd.f32 %v2001_v51, %v1927_v43  ;;  %v2012_v51 = vunpack.c.h.bf16 %v1983_v26 }
 0x524   : > { %v2034_v15 = vadd.f32 %v2002_v20, %v1929_v54 }
 0x525   : > { %v2057_v60 = vpack.c.bf16 %v2033_v49, %v2031_v0 }
 0x526   : > { %v1932_v21 = vpop.f32.mrb[32].mxu1  ;;  %v2058_v22 = vpack.c.bf16 %v2034_v15, %v2032_v9  ;;  %v1985_v9 = vld [vmem:[%s3255_s12 + $0x70] sm:$0xff]  ;;  %v1986_v15 = vld [vmem:[%s3255_s12 + $0x78] sm:$0xff] }
 0x527   : > { %v1933_v30 = vadd.f32 %v1932_v21, %v3870_v35  ;;  %v1934_v31 = vpop.f32.mrb[33].mxu1 }
 0x528   : > { %v1935_v44 = vadd.f32 %v1934_v31, %v3873_v6  ;;  %v1936_v11 = vpop.f32.mrb[34].mxu1  ;;  %2258 = vmatprep.mubr.bf16.mxu0 %v2058_v22  ;;  %v2015_v22 = vunpack.c.l.bf16 %v1985_v9 }
 0x529   : > { %v1937_v34 = vadd.f32 %v1936_v11, %v3870_v35  ;;  %v1938_v61 = vpop.f32.mrb[35].mxu1  ;;  %2259 = vmatmul.mubr.bf16.gmra.mrb[60].mxu0 %v2057_v60  ;;  %v2035_v8 = vadd.f32 %v2003_v18, %v1933_v30  ;;  %v2017_v18 = vunpack.c.l.bf16 %v1986_v15 }
 0x52a   : > { %v1939_v12 = vadd.f32 %v1938_v61, %v3873_v6  ;;  %v2036_v25 = vadd.f32 %v2004_v37, %v1935_v44  ;;  %v2018_v37 = vunpack.c.h.bf16 %v1986_v15 }
 0x52b   : > { %v2037_v19 = vadd.f32 %v2005_v1, %v1937_v34  ;;  %v2016_v1 = vunpack.c.h.bf16 %v1985_v9 }
 0x52c   : > { %v2038_v45 = vadd.f32 %v2006_v28, %v1939_v12 }
 0x52d   : > { %v2059_v24 = vpack.c.bf16 %v2037_v19, %v2035_v8 }
 0x52e   : > { %v1942_v40 = vpop.f32.mrb[36].mxu1  ;;  %v2060_v63 = vpack.c.bf16 %v2038_v45, %v2036_v25 }
 0x52f   : > { %v1943_v17 = vadd.f32 %v1942_v40, %v3870_v35  ;;  %v1944_v55 = vpop.f32.mrb[37].mxu1 }
 0x530   : > { %v1945_v23 = vadd.f32 %v1944_v55, %v3873_v6  ;;  %v1946_v16 = vpop.f32.mrb[38].mxu1  ;;  %2266 = vmatprep.mubr.bf16.mxu0 %v2060_v63 }
 0x531   : > { %v1947_v5 = vadd.f32 %v1946_v16, %v3870_v35  ;;  %v1948_v52 = vpop.f32.mrb[39].mxu1  ;;  %2267 = vmatmul.mubr.bf16.gmra.mrb[64].mxu0 %v2059_v24  ;;  %v2039_v32 = vadd.f32 %v2007_v27, %v1943_v17 }
 0x532   : > { %v1949_v3 = vadd.f32 %v1948_v52, %v3873_v6  ;;  %v2040_v50 = vadd.f32 %v2008_v56, %v1945_v23 }
 0x533   : > { %v2041_v46 = vadd.f32 %v2009_v36, %v1947_v5 }
 0x534   : > { %v2042_v7 = vadd.f32 %v2010_v57, %v1949_v3 }
 0x535   : > { %v2061_v10 = vpack.c.bf16 %v2041_v46, %v2039_v32 }
 0x536   : > { %v2062_v38 = vpack.c.bf16 %v2042_v7, %v2040_v50 }
 0x537   : > { %v1952_v41 = vpop.f32.mrb[40].mxu1 }
 0x538   : > { %v1953_v4 = vadd.f32 %v1952_v41, %v3870_v35  ;;  %v1954_v42 = vpop.f32.mrb[41].mxu1  ;;  %2274 = vmatprep.mubr.bf16.mxu0 %v2062_v38 }
 0x539   : > { %v1955_v53 = vadd.f32 %v1954_v42, %v3873_v6  ;;  %v1956_v62 = vpop.f32.mrb[42].mxu1  ;;  %2275 = vmatmul.mubr.bf16.gmra.mrb[68].mxu0 %v2061_v10 }
 0x53a   : > { %v1957_v47 = vadd.f32 %v1956_v62, %v3870_v35  ;;  %v1958_v20 = vpop.f32.mrb[43].mxu1  ;;  %v2043_v59 = vadd.f32 %v2011_v58, %v1953_v4 }
 0x53b   : > { %v1959_v43 = vadd.f32 %v1958_v20, %v3873_v6  ;;  %v2044_v0 = vadd.f32 %v2012_v51, %v1955_v53 }
 0x53c   : > { %v2045_v54 = vadd.f32 %v2013_v48, %v1957_v47 }
 0x53d   : > { %v2046_v49 = vadd.f32 %v2014_v39, %v1959_v43 }
 0x53e   : > { %v2063_v14 = vpack.c.bf16 %v2045_v54, %v2043_v59 }
 0x53f   : > { %v1962_v33 = vpop.f32.mrb[44].mxu1  ;;  %v2064_v60 = vpack.c.bf16 %v2046_v49, %v2044_v0 }
 0x540   : > { %v1963_v21 = vadd.f32 %v1962_v33, %v3870_v35  ;;  %v1964_v30 = vpop.f32.mrb[45].mxu1 }
 0x541   : > { %v1965_v31 = vadd.f32 %v1964_v30, %v3873_v6  ;;  %v1966_v44 = vpop.f32.mrb[46].mxu1  ;;  %2282 = vmatprep.mubr.bf16.mxu1 %v2064_v60 }
 0x542   : > { %v1967_v11 = vadd.f32 %v1966_v44, %v3870_v35  ;;  %v1968_v28 = vpop.f32.mrb[47].mxu1  ;;  %2283 = vmatmul.mubr.bf16.vlgmr.msra.gmra.mrb[48].mxu1 %v2063_v14  ;;  %v2047_v61 = vadd.f32 %v2015_v22, %v1963_v21  ;;  %v3925_v35 = vld [vmem:[%s3973_s7] ss:$0 sm:$0xff] }
 0x543   : > { %v1969_v34 = vadd.f32 %v1968_v28, %v3873_v6  ;;  %v2048_v8 = vadd.f32 %v2016_v1, %v1965_v31 }
 0x544   : > { %v2049_v12 = vadd.f32 %v2017_v18, %v1967_v11 }
 0x545   : > { %v2050_v19 = vadd.f32 %v2018_v37, %v1969_v34 }
 0x546   : > { %v2065_v25 = vpack.c.bf16 %v2049_v12, %v2047_v61 }
 0x547   : > { %v2066_v45 = vpack.c.bf16 %v2050_v19, %v2048_v8 }
 0x549   : > { %2290 = vmatprep.mubr.bf16.mxu1 %v2066_v45 }
 0x54a   : > { %2291 = vmatmul.mubr.bf16.gmra.mrb[52].mxu1 %v2065_v25 }
 0x5dc   : > { %v2782_v29 = vpop.f32.mrb[48].mxu0 }
 0x5dd   : > { %v2783_v13 = vpop.f32.mrb[49].mxu0 }
 0x5de   : > { %v2784_v24 = vadd.f32 %v2783_v13, %v2782_v29  ;;  %v2785_v40 = vpop.f32.mrb[50].mxu0 }
 0x5df   : > { %v2786_v63 = vpop.f32.mrb[51].mxu0 }
 0x5e0   : > { %v2787_v6 = vadd.f32 %v2786_v63, %v2785_v40  ;;  %v2237_v17 = vadd.f32 %v2784_v24, %v3925_v35 }
 0x5e2   : > { %v2240_v27 = vadd.f32 %v2787_v6, %v3925_v35 }
 0x5e4   : > { %v2626_v55 = vpack.c.bf16 %v2240_v27, %v2237_v17  ;;  %v2788_v36 = vpop.f32.mrb[52].mxu0 }
 0x5e5   : > { %v2789_v23 = vpop.f32.mrb[53].mxu0 }
 0x5e6   : > { %2627 = vst [vmem:[%s3933_s17] sm:$0xff] %v2626_v55   ;;  %v2790_v56 = vadd.f32 %v2789_v23, %v2788_v36  ;;  %v2791_v16 = vpop.f32.mrb[54].mxu0 }
 0x5e7   : > { %v2792_v57 = vpop.f32.mrb[55].mxu0 }
 0x5e8   : > { %v2793_v5 = vadd.f32 %v2792_v57, %v2791_v16  ;;  %v2245_v52 = vadd.f32 %v2790_v56, %v3925_v35 }
 0x5ea   : > { %v2248_v3 = vadd.f32 %v2793_v5, %v3925_v35 }
 0x5ec   : > { %v2631_v32 = vpack.c.bf16 %v2248_v3, %v2245_v52 }
 0x5ee   : > { %2663 = vst [vmem:[%s3933_s17 + $0x8] sm:$0xff] %v2631_v32  }
 0x5f4   : > { %v2794_v46 = vpop.f32.mrb[56].mxu0 }
 0x5f5   : > { %v2795_v50 = vpop.f32.mrb[57].mxu0 }
 0x5f6   : > { %v2796_v7 = vadd.f32 %v2795_v50, %v2794_v46  ;;  %v2797_v26 = vpop.f32.mrb[58].mxu0 }
 0x5f7   : > { %v2798_v2 = vpop.f32.mrb[59].mxu0 }
 0x5f8   : > { %v2799_v10 = vadd.f32 %v2798_v2, %v2797_v26  ;;  %v2253_v38 = vadd.f32 %v2796_v7, %v3925_v35 }
 0x5fa   : > { %v2256_v41 = vadd.f32 %v2799_v10, %v3925_v35 }
 0x5fc   : > { %v2636_v4 = vpack.c.bf16 %v2256_v41, %v2253_v38  ;;  %v2800_v58 = vpop.f32.mrb[60].mxu0 }
 0x5fd   : > { %v2801_v42 = vpop.f32.mrb[61].mxu0 }
 0x5fe   : > { %2664 = vst [vmem:[%s3933_s17 + $0x10] sm:$0xff] %v2636_v4   ;;  %v2802_v48 = vadd.f32 %v2801_v42, %v2800_v58  ;;  %v2803_v53 = vpop.f32.mrb[62].mxu0 }
 0x5ff   : > { %v2804_v51 = vpop.f32.mrb[63].mxu0 }
 0x600   : > { %v2805_v62 = vadd.f32 %v2804_v51, %v2803_v53  ;;  %v2261_v39 = vadd.f32 %v2802_v48, %v3925_v35 }
 0x602   : > { %v2264_v47 = vadd.f32 %v2805_v62, %v3925_v35 }
 0x604   : > { %v2641_v20 = vpack.c.bf16 %v2264_v47, %v2261_v39  ;;  %v2806_v43 = vpop.f32.mrb[64].mxu0 }
 0x605   : > { %v2807_v59 = vpop.f32.mrb[65].mxu0 }
 0x606   : > { %2665 = vst [vmem:[%s3933_s17 + $0x18] sm:$0xff] %v2641_v20   ;;  %v2808_v54 = vadd.f32 %v2807_v59, %v2806_v43  ;;  %v2809_v0 = vpop.f32.mrb[66].mxu0 }
 0x607   : > { %v2810_v49 = vpop.f32.mrb[67].mxu0 }
 0x608   : > { %v2811_v9 = vadd.f32 %v2810_v49, %v2809_v0  ;;  %v2269_v15 = vadd.f32 %v2808_v54, %v3925_v35 }
 0x60a   : > { %v2272_v14 = vadd.f32 %v2811_v9, %v3925_v35 }
 0x60c   : > { %v2646_v33 = vpack.c.bf16 %v2272_v14, %v2269_v15  ;;  %v2812_v60 = vpop.f32.mrb[68].mxu0 }
 0x60d   : > { %v2813_v21 = vpop.f32.mrb[69].mxu0 }
 0x60e   : > { %2666 = vst [vmem:[%s3933_s17 + $0x20] sm:$0xff] %v2646_v33   ;;  %v2814_v22 = vadd.f32 %v2813_v21, %v2812_v60  ;;  %v2815_v30 = vpop.f32.mrb[70].mxu0 }
 0x60f   : > { %v2816_v18 = vpop.f32.mrb[71].mxu0 }
 0x610   : > { %v2817_v31 = vadd.f32 %v2816_v18, %v2815_v30  ;;  %v2277_v1 = vadd.f32 %v2814_v22, %v3925_v35 }
 0x612   : > { %v2280_v44 = vadd.f32 %v2817_v31, %v3925_v35 }
 0x614   : > { %v2651_v37 = vpack.c.bf16 %v2280_v44, %v2277_v1 }
 0x615   : > { %v2818_v11 = vpop.f32.mrb[48].mxu1 }
 0x616   : > { %2667 = vst [vmem:[%s3933_s17 + $0x28] sm:$0xff] %v2651_v37   ;;  %v2819_v28 = vpop.f32.mrb[49].mxu1 }
 0x617   : > { %v2820_v34 = vadd.f32 %v2819_v28, %v2818_v11  ;;  %v2821_v61 = vpop.f32.mrb[50].mxu1 }
 0x618   : > { %v2822_v12 = vpop.f32.mrb[51].mxu1 }
 0x619   : > { %v2823_v8 = vadd.f32 %v2822_v12, %v2821_v61  ;;  %v2285_v19 = vadd.f32 %v2820_v34, %v3925_v35 }
 0x61b   : > { %v2288_v25 = vadd.f32 %v2823_v8, %v3925_v35 }
 0x61d   : > { %v2656_v45 = vpack.c.bf16 %v2288_v25, %v2285_v19  ;;  %v2824_v29 = vpop.f32.mrb[52].mxu1 }
 0x61e   : > { %v2825_v13 = vpop.f32.mrb[53].mxu1 }
 0x61f   : > { %2668 = vst [vmem:[%s3933_s17 + $0x30] sm:$0xff] %v2656_v45   ;;  %v2826_v24 = vadd.f32 %v2825_v13, %v2824_v29  ;;  %v2827_v40 = vpop.f32.mrb[54].mxu1 }
 0x620   : > { %v2828_v63 = vpop.f32.mrb[55].mxu1 }
 0x621   : > { %v2829_v6 = vadd.f32 %v2828_v63, %v2827_v40  ;;  %v2293_v17 = vadd.f32 %v2826_v24, %v3925_v35 }
 0x623   : > { %v2296_v27 = vadd.f32 %v2829_v6, %v3925_v35 }
 0x625   : > { %v2661_v55 = vpack.c.bf16 %v2296_v27, %v2293_v17 }
 0x627   : > { %2669 = vst [vmem:[%s3933_s17 + $0x38] sm:$0xff] %v2661_v55  }
 0x628 PF: > { %s18_s29 = sadd.s32 1, %s3154_s29   ;;  %s3992_s27 = smov %s3150_s28 }
 0x629   : > { %p15_p5 = scmp.ge.s32.totalorder %s18_s29, 4   ;;  %s3993_s28 = smov %s3995_s30 }
 0x62b   :  { %17 = sbr.rel (!%p15_p5) target bundleno = 2 (0x2), region = 93 }

// kernel: _lambda_.7
= control target key start
LH: loop header
LB: loop body
LE: loop exit
PB: predicated region body
PF: predicated region fallthrough
CT: control target
= control target key end

     0   :  { %s3744_s18 = smov 0   ;;  %s4668_s0 = inlined_call_operand.vmem [shape: bf16[2,8,8,256], index: 0, kind: input, shape index: {}]   ;;  %s4669_s1 = inlined_call_operand.vmem [shape: bf16[2304,128], index: 1, kind: input, shape index: {}]   ;;  %s4670_s2 = inlined_call_operand.vmem [shape: f32[1,128], index: 2, kind: input, shape index: {}]   ;;  %s4671_s3 = inlined_call_operand.vmem [shape: bf16[128,128], index: 3, kind: input, shape index: {}]   ;;  %s4672_s4 = inlined_call_operand.vmem [shape: f32[1,128], index: 4, kind: input, shape index: {}]   ;;  %s4673_s5 = inlined_call_operand.vmem [shape: bf16[2,64,128], index: 5, kind: output, shape index: {}]  }
   0x1 LB: > { %s2837_s19 = sadd.s32 4294967295, %s3711_s18   ;;  %p2841_p0 = scmp.ge.s32.totalorder %s3711_s18, 1  ;;  %s3711_s18 = sphi %s3744_s18, %s15_s18  }
   0x2   : > { %p187_p1 = scmp.lt.s32.totalorder %s3711_s18, 3 }
   0x4   : > { %p188_p2 = pnand %p2841_p0, %p187_p1 }
   0x5   : > { %v3520_v0 = vld [vmem:[%s4669_s1 + $0x40] sm:$0xff] (!%p188_p2)   ;;  %v3713_v3 = vmov (!%p188_p2), 0   ;;  %v3524_v5 = vld [vmem:[%s4669_s1 + $0x48] sm:$0xff] (!%p188_p2)   ;;  %v3528_v9 = vld [vmem:[%s4669_s1 + $0x50] sm:$0xff] (!%p188_p2)   ;;  %p215_p3 = scmp.lt.s32.totalorder (!%p188_p2), %s2837_s19, 1  ;;  %vm335_vm0 = vcmask (!%p188_p2), 1043456  }
   0x6   : > { %191 = sbr.rel (%p188_p2) target bundleno = 666 (0x29a), region = 40  ;;  %v3521_v1 = vld [vmem:[%s4669_s1] sm:$0xff] (!%p188_p2)   ;;  %3115 = vmatprep.subr.bf16.mxu0 (!%p188_p2), %v3520_v0  ;;  %226 = vst [vmem:[#allocation2] sm:$0xff] (!%p188_p2), %v3713_v3  ;;  %227 = vst [vmem:[#allocation2 + $0x8] sm:$0x11] (!%p188_p2), %v3713_v3  ;;  %v3525_v6 = vld [vmem:[%s4669_s1 + $0x8] sm:$0xff] (!%p188_p2)  }
   0x7   : > { %v3522_v2 = vld [vmem:[%s4669_s1 + $0xc0] sm:$0xff] (!%p188_p2)   ;;  %229 = vst [vmem:[#allocation2 + $0x18] sm:$0x11] (!%p188_p2), %v3713_v3  ;;  %231 = vst [vmem:[#allocation2 + $0x28] sm:$0x11] (!%p188_p2), %v3713_v3  ;;  %3116 = vmatpush3.bf16.msra.mxu0 (!%p188_p2), %v3521_v1  ;;  %v3526_v7 = vld [vmem:[%s4669_s1 + $0xc8] sm:$0xff] (!%p188_p2)  }
   0x8   : > { %233 = vst [vmem:[#allocation2 + $0x38] sm:$0x11] (!%p188_p2), %v3713_v3  ;;  %235 = vst [vmem:[#allocation2 + $0x48] sm:$0x11] (!%p188_p2), %v3713_v3  ;;  %v3523_v4 = vld [vmem:[%s4669_s1 + $0x80] sm:$0xff] (!%p188_p2)   ;;  %3155 = vmatprep.subr.bf16.mxu1 (!%p188_p2), %v3522_v2  ;;  %3117 = vmatprep.subr.bf16.mxu0 (!%p188_p2), %v3524_v5  ;;  %v3527_v8 = vld [vmem:[%s4669_s1 + $0x88] sm:$0xff] (!%p188_p2)  }
   0x9   : > { %237 = vst [vmem:[#allocation2 + $0x58] sm:$0x11] (!%p188_p2), %v3713_v3  ;;  %239 = vst [vmem:[#allocation2 + $0x68] sm:$0x11] (!%p188_p2), %v3713_v3  ;;  %3156 = vmatpush3.bf16.msra.mxu1 (!%p188_p2), %v3523_v4  ;;  %v3529_v10 = vld [vmem:[%s4669_s1 + $0x10] sm:$0xff] (!%p188_p2)   ;;  %v3532_v13 = vld [vmem:[%s4669_s1 + $0x58] sm:$0xff] (!%p188_p2)  }
   0xa   : > { %241 = vst [vmem:[#allocation2 + $0x78] sm:$0x11] (!%p188_p2), %v3713_v3  ;;  %243 = vst [vmem:[#allocation2 + $0x88] sm:$0x11] (!%p188_p2), %v3713_v3  ;;  %3157 = vmatprep.subr.bf16.mxu1 (!%p188_p2), %v3526_v7  ;;  %v3530_v11 = vld [vmem:[%s4669_s1 + $0xd0] sm:$0xff] (!%p188_p2)   ;;  %v3533_v14 = vld [vmem:[%s4669_s1 + $0x18] sm:$0xff] (!%p188_p2)  }
   0xb   : > { %245 = vst [vmem:[#allocation2 + $0x98] sm:$0x11] (!%p188_p2), %v3713_v3  ;;  %3118 = vmatpush3.bf16.msra.mxu0 (!%p188_p2), %v3525_v6  ;;  %v3531_v12 = vld [vmem:[%s4669_s1 + $0x90] sm:$0xff] (!%p188_p2)   ;;  %v3534_v15 = vld [vmem:[%s4669_s1 + $0xd8] sm:$0xff] (!%p188_p2)   ;;  %v3536_v17 = vld [vmem:[%s4669_s1 + $0x60] sm:$0xff] (!%p188_p2)   ;;  %vm338_vm1 = vcmask (!%p188_p2), 1047556  }
   0xc   : > { %3119 = vmatprep.subr.bf16.mxu0 (!%p188_p2), %v3528_v9  ;;  %v3535_v16 = vld [vmem:[%s4669_s1 + $0x98] sm:$0xff] (!%p188_p2)   ;;  %v3537_v18 = vld [vmem:[%s4669_s1 + $0x20] sm:$0xff] (!%p188_p2)   ;;  %v3540_v21 = vld [vmem:[%s4669_s1 + $0x68] sm:$0xff] (!%p188_p2)   ;;  %vm345_vm2 = vcmask (!%p188_p2), 1040384   ;;  %vm348_vm3 = vcmask (!%p188_p2), 1044484   ;;  %v423_v46 = vrot.slane (!%p188_p2), %v3713_v3, 4 }
   0xd   : > { %3158 = vmatpush3.bf16.msra.mxu1 %v3527_v8  ;;  %v3538_v19 = vld [vmem:[%s4669_s1 + $0xe0] sm:$0xff]   ;;  %v3541_v22 = vld [vmem:[%s4669_s1 + $0x28] sm:$0xff]   ;;  %s4683_s19 = smov (!%p215_p3, %s2837_s19), 1  ;;  %v3544_v25 = vld [vmem:[%s4669_s1 + $0x70] sm:$0xff]   ;;  %vm336_vm4 = vsmask.f32 7938 }
   0xe   : > { %3159 = vmatprep.subr.bf16.mxu1 %v3530_v11  ;;  %v3539_v20 = vld [vmem:[%s4669_s1 + $0xa0] sm:$0xff]   ;;  %v3542_v23 = vld [vmem:[%s4669_s1 + $0xe8] sm:$0xff]   ;;  %v3545_v26 = vld [vmem:[%s4669_s1 + $0x30] sm:$0xff]   ;;  %s3082_s26 = sshll.u32 %s4683_s19, 6  ;;  %vm339_vm5 = vsmask.f32 7954 }
   0xf   : > { %3120 = vmatpush3.bf16.msra.mxu0 %v3529_v10  ;;  %v3543_v24 = vld [vmem:[%s4669_s1 + $0xa8] sm:$0xff]   ;;  %v3546_v27 = vld [vmem:[%s4669_s1 + $0xf0] sm:$0xff]   ;;  %v3548_v29 = vld [vmem:[%s4669_s1 + $0x78] sm:$0xff]   ;;  %s3860_s10 = scalar_lea.vmem %s4668_s0, %s3082_s26  ;;  %vm346_vm8 = vsmask.f32 256  ;;  %v426_v47 = vrot.slane %v3713_v3, 5 }
  0x10   : > { %3121 = vmatprep.subr.bf16.mxu0 %v3532_v13  ;;  %v3547_v28 = vld [vmem:[%s4669_s1 + $0xb0] sm:$0xff]   ;;  %v3549_v30 = vld [vmem:[%s4669_s1 + $0x38] sm:$0xff]   ;;  %v246_v32 = vld [vmem:[%s3860_s10] sm:$0xff]  ;;  %vm349_vm10 = vsmask.f32 4352  ;;  %v3922_v6 = vrot.slane %v3713_v3, 9 }
  0x11   : > { %3160 = vmatpush3.bf16.msra.mxu1 %v3531_v12  ;;  %v3550_v31 = vld [vmem:[%s4669_s1 + $0xf8] sm:$0xff]   ;;  %v255_v34 = vshrl.u32 %v246_v32, 16  ;;  %v258_v35 = vshll.u32 %v246_v32, 16  ;;  %vm337_vm6 = vmand %vm335_vm0, %vm336_vm4  ;;  %v3552_v38 = vld [vmem:[%s4669_s1 + $0x140] sm:$0xff]   ;;  %vm417_vm14 = vsmask.f32 3328  ;;  %v427_v59 = vor.u32 %v426_v47, %v423_v46 }
  0x12   : > { %3161 = vmatprep.subr.bf16.mxu1 %v3534_v15  ;;  %v3551_v33 = vld [vmem:[%s4669_s1 + $0xb8] sm:$0xff]   ;;  %vm340_vm7 = vmand %vm338_vm1, %vm339_vm5  ;;  %v247_v39 = vld [vmem:[%s3860_s10 + $0x8] sm:$0xff]  ;;  %vm418_vm15 = vsmask.f32 7440  ;;  %vm548_vm1 = vcmask 1042432   ;;  %s3083_s13 = sshll.u32 %s4683_s19, 5 }
  0x13   : > { %3122 = vmatpush3.bf16.msra.mxu0 %v3533_v14  ;;  %v257_v36 = vrot.slane %v255_v34, 7  ;;  %vm3874_vm9 = vmor %vm340_vm7, %vm337_vm6  ;;  %v263_v40 = vshrl.u32 %v247_v39, 16  ;;  %v266_v41 = vshll.u32 %v247_v39, 16  ;;  %v352_v42 = vld [vmem:[#allocation2 + $0x18] sm:$0x11]  ;;  %v3554_v51 = vld [vmem:[%s4669_s1 + $0x1c0] sm:$0xff]   ;;  %s4652_s15 = scalar_lea.vmem %s4673_s5, %s3083_s13 }
  0x14   : > { %3123 = vmatprep.subr.bf16.mxu0 %v3536_v17  ;;  %vm347_vm11 = vmand %vm345_vm2, %vm346_vm8  ;;  %v358_v45 = vld [vmem:[#allocation2 + $0x28] sm:$0x11]  ;;  %v3553_v58 = vld [vmem:[%s4669_s1 + $0x100] sm:$0xff]   ;;  %v428_v9 = vrot.slane %v427_v59, 4  ;;  %vm549_vm2 = vcmask 1046532  }
  0x15   : > { %3162 = vmatpush3.bf16.msra.mxu1 %v3535_v16  ;;  %v260_v43 = vor.u32 %v258_v35, %v257_v36  ;;  %v261_v44 = vrot.slane %v257_v36, 4  ;;  %vm350_vm12 = vmand %vm348_vm3, %vm349_vm10  ;;  %v265_v48 = vrot.slane %v263_v40, 7  ;;  %v3890_v50 = vld [vmem:[#allocation2 + $0x8] sm:$0x11]  ;;  %v248_v11 = vld [vmem:[%s3860_s10 + $0x10] sm:$0xff] }
  0x16   : > { %3163 = vmatprep.subr.bf16.mxu1 %v3538_v19  ;;  %vm3886_vm13 = vmor %vm350_vm12, %vm347_vm11  ;;  %v430_v60 = vshll.u32 %v3890_v50, 16  ;;  %v3556_v63 = vld [vmem:[%s4669_s1 + $0x148] sm:$0xff]   ;;  %v271_v14 = vshrl.u32 %v248_v11, 16  ;;  %v274_v15 = vshll.u32 %v248_v11, 16  ;;  %v3565_v46 = vld [vmem:[%s4669_s1 + $0x118] sm:$0xff]  }
  0x17   : > { %3124 = vmatpush3.bf16.msra.mxu0 %v3537_v18  ;;  %v3897_v52 = vsel %vm3874_vm9, %v260_v43, 0  ;;  %v353_v53 = vsel %vm3886_vm13, %v261_v44, %v352_v42  ;;  %v268_v56 = vor.u32 %v266_v41, %v265_v48  ;;  %v269_v57 = vrot.slane %v265_v48, 4  ;;  %v3557_v8 = vld [vmem:[%s4669_s1 + $0x108] sm:$0xff]   ;;  %vm3931_vm0 = vmor %vm417_vm14, %vm418_vm15  ;;  %v3560_v18 = vld [vmem:[%s4669_s1 + $0x150] sm:$0xff]  }
  0x18   : > { %3125 = vmatprep.subr.bf16.mxu0 %v3540_v21  ;;  %v2857_v54 = vcombine.high %v3713_v3, %v3897_v52  ;;  %v2856_v55 = vcombine.low %v3713_v3, %v3897_v52  ;;  %354 = vst [vmem:[#allocation2 + $0x18] sm:$0x11] %v353_v53  ;;  %v435_v61 = vshrl.u32 %v3897_v52, 16  ;;  %v438_v62 = vshll.u32 %v3897_v52, 16  ;;  %v3564_v41 = vld [vmem:[%s4669_s1 + $0x158] sm:$0xff]   ;;  %v3559_v48 = vld [vmem:[%s4669_s1 + $0x188] sm:$0xff]   ;;  %vm4086_vm3 = vmor %vm548_vm1, %vm549_vm2 }
  0x19   : > { %3164 = vmatpush3.bf16.msra.mxu1 %v3539_v20  ;;  %v3916_v0 = vsel %vm3874_vm9, %v268_v56, 0  ;;  %v359_v1 = vsel %vm3886_vm13, %v269_v57, %v358_v45  ;;  %v432_v13 = vrot.slane %v430_v60, 5  ;;  %v273_v21 = vrot.slane %v271_v14, 7  ;;  %v250_v56 = vld [vmem:[%s3860_s10 + $0x20] sm:$0xff]  ;;  %v3659_v12 = vld [vmem:[%s4669_s1 + $0x428] sm:$0xff]  }
  0x1a   : > { %3165 = vmatprep.subr.bf16.mxu1 %v3542_v23  ;;  %1982 = vmatprep.mubr.bf16.mxu0 %v2857_v54  ;;  %360 = vst [vmem:[#allocation2 + $0x28] sm:$0x11] %v359_v1  ;;  %v437_v2 = vrot.slane %v435_v61, 4  ;;  %v440_v4 = vrot.slane %v438_v62, 5  ;;  %v449_v5 = vshrl.u32 %v3916_v0, 16  ;;  %v452_v7 = vshll.u32 %v3916_v0, 16 }
  0x1b   : > { %3126 = vmatpush3.bf16.msra.mxu0 %v3541_v22  ;;  %v3561_v22 = vld [vmem:[%s4669_s1 + $0x110] sm:$0xff]   ;;  %v364_v23 = vld [vmem:[#allocation2 + $0x38] sm:$0x11]  ;;  %v287_v60 = vshrl.u32 %v250_v56, 16  ;;  %v290_v61 = vshll.u32 %v250_v56, 16  ;;  %v3568_v1 = vld [vmem:[%s4669_s1 + $0x160] sm:$0xff]  }
  0x1c   : > { %3127 = vmatprep.subr.bf16.mxu0 %v3544_v25  ;;  %v441_v10 = vor.u32 %v440_v4, %v437_v2  ;;  %v451_v3 = vrot.slane %v449_v5, 4  ;;  %v454_v17 = vrot.slane %v452_v7, 5  ;;  %v433_v25 = vsel %vm3931_vm0, %v428_v9, %v432_v13  ;;  %v3563_v2 = vld [vmem:[%s4669_s1 + $0x190] sm:$0xff]   ;;  %v370_v5 = vld [vmem:[#allocation2 + $0x48] sm:$0x11]  ;;  %v3634_v49 = vld [vmem:[%s4669_s1 + $0x3e0] sm:$0xff]  }
  0x1d   : > { %3166 = vmatpush3.bf16.msra.mxu1 %v3543_v24  ;;  %v289_v4 = vrot.slane %v287_v60, 7  ;;  %v376_v7 = vld [vmem:[#allocation2 + $0x58] sm:$0x11] }
  0x1e   : > { %3167 = vmatprep.subr.bf16.mxu1 %v3546_v27  ;;  %v442_v19 = vrot.slane %v441_v10, 4  ;;  %v276_v27 = vor.u32 %v274_v15, %v273_v21 }
  0x1f   : > { %3128 = vmatpush3.bf16.msra.mxu0 %v3545_v26  ;;  %v3935_v16 = vld [vmem:[#allocation2 + $0x18] sm:$0x11]  ;;  %v292_v14 = vor.u32 %v290_v61, %v289_v4  ;;  %v293_v15 = vrot.slane %v289_v4, 4 }
  0x20   : > { %3129 = vmatprep.subr.bf16.mxu0 %v3548_v29  ;;  %v444_v20 = vshll.u32 %v3935_v16, 16  ;;  %v455_v29 = vor.u32 %v454_v17, %v451_v3  ;;  %v3961_v34 = vsel %vm3874_vm9, %v276_v27, 0  ;;  %v557_v42 = vrot.slane %v3935_v16, 5  ;;  %v3572_v27 = vld [vmem:[%s4669_s1 + $0x168] sm:$0xff]  }
  0x21   : > { %3168 = vmatpush3.bf16.msra.mxu1 %v3547_v28  ;;  %v3944_v24 = vld [vmem:[#allocation2 + $0x28] sm:$0x11]  ;;  %v277_v28 = vrot.slane %v273_v21, 4  ;;  %v3970_v40 = vcombine.high %v3916_v0, %v3961_v34  ;;  %v3978_v43 = vcombine.low %v3916_v0, %v3961_v34  ;;  %v463_v44 = vshrl.u32 %v3961_v34, 16 }
  0x22   : > { %3169 = vmatprep.subr.bf16.mxu1 %v3550_v31  ;;  %v446_v26 = vrot.slane %v444_v20, 5  ;;  %v3555_v31 = vld [vmem:[%s4669_s1 + $0x180] sm:$0xff]   ;;  %v458_v36 = vshll.u32 %v3944_v24, 16  ;;  %v466_v45 = vshll.u32 %v3961_v34, 16  ;;  %v456_v47 = vrot.slane %v455_v29, 4  ;;  %v3567_v29 = vld [vmem:[%s4669_s1 + $0x198] sm:$0xff]  }
  0x23   : > { %3130 = vmatpush3.bf16.msra.mxu0 %v3549_v30  ;;  %v553_v30 = vrot.slane %v3890_v50, 5  ;;  %v365_v35 = vsel %vm3886_vm13, %v277_v28, %v364_v23  ;;  %v465_v53 = vrot.slane %v463_v44, 4  ;;  %v2847_v21 = vrot.slane %v3897_v52, 9  ;;  %v3575_v16 = vld [vmem:[%s4669_s1 + $0x1a8] sm:$0xff]  }
  0x24   : > { %3195 = vmatprep.subr.bf16.mxu0 %v3552_v38  ;;  %v3954_v32 = vsel %vm3931_vm0, %v442_v19, %v446_v26  ;;  %366 = vst [vmem:[#allocation2 + $0x38] sm:$0x11] %v365_v35  ;;  %v468_v54 = vrot.slane %v466_v45, 5  ;;  %v4023_v23 = vsel %vm3874_vm9, %v292_v14, 0 }
  0x25   : > { %3170 = vmatpush3.bf16.msra.mxu1 %v3551_v33  ;;  %v3558_v33 = vld [vmem:[%s4669_s1 + $0x1c8] sm:$0xff]   ;;  %v2864_v38 = vcombine.low %v433_v25, %v3954_v32  ;;  %v2865_v39 = vcombine.high %v433_v25, %v3954_v32  ;;  %v377_v25 = vsel %vm3886_vm13, %v293_v15, %v376_v7  ;;  %v491_v35 = vshrl.u32 %v4023_v23, 16 }
  0x26   : > { %3235 = vmatprep.subr.bf16.mxu1 %v3554_v51  ;;  %1983 = vmatmul.mubr.bf16.vlgmr.msra.gmra.mrb[0].mxu0 %v2856_v55  ;;  %v249_v51 = vld [vmem:[%s3860_s10 + $0x18] sm:$0xff]  ;;  %v3562_v55 = vld [vmem:[%s4669_s1 + $0x1d0] sm:$0xff]   ;;  %v469_v62 = vor.u32 %v468_v54, %v465_v53  ;;  %378 = vst [vmem:[#allocation2 + $0x58] sm:$0x11] %v377_v25  ;;  %v251_v53 = vld [vmem:[%s3860_s10 + $0x28] sm:$0xff] }
  0x27   : > { %3196 = vmatpush3.bf16.msra.mxu0 %v3553_v58  ;;  %2047 = vmatprep.mubr.bf16.mxu1 %v2865_v39  ;;  %v279_v57 = vshrl.u32 %v249_v51, 16  ;;  %v460_v58 = vrot.slane %v458_v36, 5  ;;  %v282_v59 = vshll.u32 %v249_v51, 16  ;;  %v494_v39 = vshll.u32 %v4023_v23, 16  ;;  %v252_v54 = vld [vmem:[%s3860_s10 + $0x30] sm:$0xff] }
  0x28   : > { %3197 = vmatprep.subr.bf16.mxu0 %v3556_v63  ;;  %1990 = vmatprep.mubr.bf16.mxu0 %v3970_v40  ;;  %v470_v10 = vrot.slane %v469_v62, 4  ;;  %v303_v60 = vshrl.u32 %v252_v54, 16  ;;  %v3574_v62 = vld [vmem:[%s4669_s1 + $0x1e8] sm:$0xff]   ;;  %v388_v25 = vld [vmem:[#allocation2 + $0x78] sm:$0x11] }
  0x29   : > { %2048 = vmatmul.mubr.bf16.vlgmr.msra.gmra.mrb[0].mxu1 %v2864_v38  ;;  %v281_v63 = vrot.slane %v279_v57, 7  ;;  %v4009_v17 = vsel %vm3931_vm0, %v456_v47, %v460_v58  ;;  %v3570_v47 = vld [vmem:[%s4669_s1 + $0x1e0] sm:$0xff]   ;;  %v496_v51 = vrot.slane %v494_v39, 5  ;;  %v295_v58 = vshrl.u32 %v251_v53, 16 }
  0x2a   : > { %3236 = vmatpush3.bf16.msra.mxu1 %v3555_v31  ;;  %v3571_v57 = vld [vmem:[%s4669_s1 + $0x1a0] sm:$0xff]   ;;  %v305_v7 = vrot.slane %v303_v60, 7 }
  0x2b   : > { %3198 = vmatpush3.bf16.msra.mxu0 %v3557_v8  ;;  %3237 = vmatprep.subr.bf16.mxu1 %v3558_v33  ;;  %v3569_v8 = vld [vmem:[%s4669_s1 + $0x120] sm:$0xff]   ;;  %v4004_v9 = vld [vmem:[#allocation2 + $0x38] sm:$0x11]  ;;  %v284_v11 = vor.u32 %v282_v59, %v281_v63  ;;  %v285_v13 = vrot.slane %v281_v63, 4  ;;  %v298_v59 = vshll.u32 %v251_v53, 16  ;;  %v306_v63 = vshll.u32 %v252_v54, 16 }
  0x2c   : > { %3199 = vmatprep.subr.bf16.mxu0 %v3560_v18  ;;  %v472_v3 = vshll.u32 %v4004_v9, 16  ;;  %v3566_v18 = vld [vmem:[%s4669_s1 + $0x1d8] sm:$0xff]  }
  0x2d   : > { %v4016_v19 = vsel %vm3874_vm9, %v284_v11, 0  ;;  %v371_v20 = vsel %vm3886_vm13, %v285_v13, %v370_v5  ;;  %v297_v5 = vrot.slane %v295_v58, 7  ;;  %v4090_v11 = vld [vmem:[#allocation2 + $0x58] sm:$0x11] }
  0x2e   : > { %1991 = vmatmul.mubr.bf16.gmra.mrb[4].mxu0 %v3978_v43  ;;  %3238 = vmatpush3.bf16.msra.mxu1 %v3559_v48  ;;  %372 = vst [vmem:[#allocation2 + $0x48] sm:$0x11] %v371_v20  ;;  %v477_v26 = vshrl.u32 %v4016_v19, 16  ;;  %v4033_v28 = vcombine.high %v4016_v19, %v4023_v23  ;;  %v4040_v31 = vcombine.low %v4016_v19, %v4023_v23  ;;  %v480_v33 = vshll.u32 %v4016_v19, 16  ;;  %v3573_v48 = vld [vmem:[%s4669_s1 + $0x128] sm:$0xff]   ;;  %v3580_v54 = vld [vmem:[%s4669_s1 + $0x178] sm:$0xff]  }
  0x2f   : > { %3200 = vmatpush3.bf16.msra.mxu0 %v3561_v22  ;;  %3239 = vmatprep.subr.bf16.mxu1 %v3562_v55  ;;  %v474_v22 = vrot.slane %v472_v3, 5  ;;  %v2848_v55 = vrot.slane %v3916_v0, 9  ;;  %v500_v14 = vshll.u32 %v4090_v11, 16  ;;  %v300_v15 = vor.u32 %v298_v59, %v297_v5  ;;  %v3581_v59 = vld [vmem:[%s4669_s1 + $0x138] sm:$0xff]  }
  0x30   : > { %3201 = vmatprep.subr.bf16.mxu0 %v3564_v41  ;;  %v479_v38 = vrot.slane %v477_v26, 4  ;;  %1998 = vmatprep.mubr.bf16.mxu0 %v4033_v28  ;;  %v482_v45 = vrot.slane %v480_v33, 5  ;;  %v301_v20 = vrot.slane %v297_v5, 4  ;;  %v4105_v33 = vsel %vm4086_vm3, %v2847_v21, %v557_v42  ;;  %v3582_v5 = vld [vmem:[%s4669_s1 + $0x1f8] sm:$0xff]  }
  0x31   : > { %v4046_v36 = vsel %vm3931_vm0, %v470_v10, %v474_v22  ;;  %v382_v22 = vld [vmem:[#allocation2 + $0x68] sm:$0x11] }
  0x32   : > { %3240 = vmatpush3.bf16.msra.mxu1 %v3563_v2  ;;  %v4051_v41 = vcombine.high %v4009_v17, %v4046_v36  ;;  %v4055_v44 = vcombine.low %v4009_v17, %v4046_v36  ;;  %v483_v56 = vor.u32 %v482_v45, %v479_v38  ;;  %v4109_v38 = vsel %vm3874_vm9, %v300_v15, 0 }
  0x33   : > { %3202 = vmatpush3.bf16.msra.mxu0 %v3565_v46  ;;  %3241 = vmatprep.subr.bf16.mxu1 %v3566_v18  ;;  %v493_v46 = vrot.slane %v491_v35, 4  ;;  %v308_v18 = vor.u32 %v306_v63, %v305_v7  ;;  %v502_v35 = vrot.slane %v500_v14, 5  ;;  %v561_v14 = vrot.slane %v3944_v24, 5 }
  0x34   : > { %3203 = vmatprep.subr.bf16.mxu0 %v3568_v1  ;;  %2055 = vmatprep.mubr.bf16.mxu1 %v4051_v41  ;;  %v3576_v1 = vld [vmem:[%s4669_s1 + $0x170] sm:$0xff]   ;;  %v484_v4 = vrot.slane %v483_v56, 4 }
  0x35   : > { %2056 = vmatmul.mubr.bf16.gmra.mrb[4].mxu1 %v4055_v44  ;;  %v497_v61 = vor.u32 %v496_v51, %v493_v46  ;;  %v4079_v2 = vld [vmem:[#allocation2 + $0x48] sm:$0x11]  ;;  %v4113_v50 = vsel %vm3874_vm9, %v308_v18, 0  ;;  %v3578_v46 = vld [vmem:[%s4669_s1 + $0x1f0] sm:$0xff]   ;;  %v508_v51 = vshll.u32 %v4109_v38, 16 }
  0x36   : > { %1999 = vmatmul.mubr.bf16.gmra.mrb[8].mxu0 %v4040_v31  ;;  %3242 = vmatpush3.bf16.msra.mxu1 %v3567_v29  ;;  %v486_v13 = vshll.u32 %v4079_v2, 16  ;;  %v554_v29 = vsel %vm4086_vm3, %v3922_v6, %v553_v30  ;;  %v383_v30 = vsel %vm3886_vm13, %v301_v20, %v382_v22  ;;  %v4126_v21 = vcombine.high %v4109_v38, %v4113_v50  ;;  %v3585_v22 = vld [vmem:[%s4669_s1 + $0x200] sm:$0xff]  }
  0x37   : > { %3204 = vmatpush3.bf16.msra.mxu0 %v3569_v8  ;;  %v3577_v8 = vld [vmem:[%s4669_s1 + $0x130] sm:$0xff]   ;;  %v498_v3 = vrot.slane %v497_v61, 4  ;;  %3243 = vmatprep.subr.bf16.mxu1 %v3570_v47  ;;  %v4130_v39 = vcombine.low %v4109_v38, %v4113_v50  ;;  %384 = vst [vmem:[#allocation2 + $0x68] sm:$0x11] %v383_v30  ;;  %v519_v53 = vshrl.u32 %v4113_v50, 16  ;;  %v522_v58 = vshll.u32 %v4113_v50, 16 }
  0x38   : > { %3205 = vmatprep.subr.bf16.mxu0 %v3572_v27  ;;  %v488_v26 = vrot.slane %v486_v13, 5  ;;  %v309_v27 = vrot.slane %v305_v7, 4  ;;  %2006 = vmatprep.mubr.bf16.mxu0 %v4126_v21  ;;  %v2873_v60 = vcombine.high %v554_v29, %v4105_v33  ;;  %v2872_v20 = vcombine.low %v554_v29, %v4105_v33  ;;  %v3588_v29 = vld [vmem:[%s4669_s1 + $0x248] sm:$0xff]  }
  0x39   : > { %v4139_v47 = vsel %vm3931_vm0, %v498_v3, %v502_v35  ;;  %v521_v63 = vrot.slane %v519_v53, 4  ;;  %v3584_v3 = vld [vmem:[%s4669_s1 + $0x240] sm:$0xff]   ;;  %v2849_v30 = vrot.slane %v3961_v34, 9  ;;  %v565_v53 = vrot.slane %v4004_v9, 5 }
  0x3a   : > { %3244 = vmatpush3.bf16.msra.mxu1 %v3571_v57  ;;  %v4122_v42 = vsel %vm3931_vm0, %v484_v4, %v488_v26  ;;  %v389_v45 = vsel %vm3886_vm13, %v309_v27, %v388_v25  ;;  %v524_v4 = vrot.slane %v522_v58, 5  ;;  %v2881_v58 = vcombine.high %v3897_v52, %v3916_v0 }
  0x3b   : > { %3206 = vmatpush3.bf16.msra.mxu0 %v3573_v48  ;;  %3245 = vmatprep.subr.bf16.mxu1 %v3574_v62  ;;  %390 = vst [vmem:[#allocation2 + $0x78] sm:$0x11] %v389_v45  ;;  %v505_v48 = vshrl.u32 %v4109_v38, 16  ;;  %v4149_v56 = vcombine.high %v4122_v42, %v4139_v47  ;;  %v4153_v57 = vcombine.low %v4122_v42, %v4139_v47  ;;  %v510_v62 = vrot.slane %v508_v51, 5 }
  0x3c   : > { %3207 = vmatprep.subr.bf16.mxu0 %v3576_v1  ;;  %v3579_v1 = vld [vmem:[%s4669_s1 + $0x1b0] sm:$0xff]   ;;  %v525_v13 = vor.u32 %v524_v4, %v521_v63  ;;  %v4199_v51 = vsel %vm4086_vm3, %v2848_v55, %v561_v14  ;;  %v4219_v9 = vsel %vm4086_vm3, %v2849_v30, %v565_v53  ;;  %v2851_v4 = vrot.slane %v4023_v23, 9  ;;  %v3596_v14 = vld [vmem:[%s4669_s1 + $0x258] sm:$0xff]   ;;  %v3605_v53 = vld [vmem:[%s4669_s1 + $0x228] sm:$0xff]  }
  0x3d   : > { %v507_v61 = vrot.slane %v505_v48, 4  ;;  %2063 = vmatprep.mubr.bf16.mxu1 %v4149_v56  ;;  %v3589_v48 = vld [vmem:[%s4669_s1 + $0x208] sm:$0xff]   ;;  %v4228_v63 = vcombine.low %v4199_v51, %v4219_v9  ;;  %v2891_v37 = vcombine.high %v4046_v36, %v4122_v42 }
  0x3e   : > { %3246 = vmatpush3.bf16.msra.mxu1 %v3575_v16  ;;  %2007 = vmatmul.mubr.bf16.gmra.mrb[12].mxu0 %v4130_v39  ;;  %v410_v15 = vld [vmem:[#allocation2 + $0x68] sm:$0x11]  ;;  %v526_v27 = vrot.slane %v525_v13, 4  ;;  %v3586_v16 = vld [vmem:[%s4669_s1 + $0x2c0] sm:$0xff]  }
  0x3f   : > { %3208 = vmatpush3.bf16.msra.mxu0 %v3577_v8  ;;  %3247 = vmatprep.subr.bf16.mxu1 %v3578_v46  ;;  %v511_v7 = vor.u32 %v510_v62, %v507_v61  ;;  %v3583_v8 = vld [vmem:[%s4669_s1 + $0x1b8] sm:$0xff]   ;;  %v514_v26 = vshll.u32 %v410_v15, 16  ;;  %v569_v61 = vrot.slane %v4079_v2, 5  ;;  %v4224_v62 = vcombine.high %v4199_v51, %v4219_v9  ;;  %v3593_v2 = vld [vmem:[%s4669_s1 + $0x210] sm:$0xff]  }
  0x40   : > { %2064 = vmatmul.mubr.bf16.gmra.mrb[8].mxu1 %v4153_v57  ;;  %3209 = vmatprep.subr.bf16.mxu0 %v3580_v54 }
  0x41   : > { %2112 = vmatprep.mubr.bf16.mxu0 %v2873_v60  ;;  %v512_v18 = vrot.slane %v511_v7, 4  ;;  %v516_v24 = vrot.slane %v514_v26, 5  ;;  %v573_v7 = vrot.slane %v4090_v11, 5  ;;  %v3587_v26 = vld [vmem:[%s4669_s1 + $0x280] sm:$0xff]  }
  0x42   : > { %3248 = vmatpush3.bf16.msra.mxu1 %v3579_v1  ;;  %v412_v25 = vld [vmem:[#allocation2 + $0x78] sm:$0x11]  ;;  %v3592_v1 = vld [vmem:[%s4669_s1 + $0x250] sm:$0xff]  }
  0x43   : > { %3210 = vmatpush3.bf16.msra.mxu0 %v3581_v59  ;;  %3249 = vmatprep.subr.bf16.mxu1 %v3582_v5  ;;  %v528_v35 = vshll.u32 %v412_v25, 16  ;;  %v4190_v46 = vsel %vm3931_vm0, %v512_v18, %v516_v24  ;;  %v2850_v59 = vrot.slane %v4016_v19, 9  ;;  %v4248_v13 = vsel %vm4086_vm3, %v2851_v4, %v573_v7  ;;  %v3601_v24 = vld [vmem:[%s4669_s1 + $0x220] sm:$0xff]  }
  0x44   : > { %3275 = vmatprep.subr.bf16.mxu0 %v3584_v3  ;;  %v577_v3 = vrot.slane %v410_v15, 5  ;;  %v2853_v18 = vrot.slane %v4113_v50, 9  ;;  %v2880_v15 = vcombine.low %v3897_v52, %v3916_v0 }
  0x45   : > { %v530_v45 = vrot.slane %v528_v35, 5  ;;  %v4240_v5 = vsel %vm4086_vm3, %v2850_v59, %v569_v61  ;;  %v3590_v35 = vld [vmem:[%s4669_s1 + $0x2c8] sm:$0xff]   ;;  %v3595_v59 = vld [vmem:[%s4669_s1 + $0x290] sm:$0xff]   ;;  %v3598_v61 = vld [vmem:[%s4669_s1 + $0x2d8] sm:$0xff]  }
  0x46   : > { %3250 = vmatpush3.bf16.msra.mxu1 %v3583_v8  ;;  %2113 = vmatmul.mubr.bf16.vlgmr.msra.gmra.mrb[16].mxu0 %v2872_v20  ;;  %v2852_v8 = vrot.slane %v4109_v38, 9  ;;  %v4256_v11 = vcombine.high %v4240_v5, %v4248_v13  ;;  %v3597_v20 = vld [vmem:[%s4669_s1 + $0x218] sm:$0xff]   ;;  %v4283_v0 = vcombine.low %v4240_v5, %v4248_v13 }
  0x47   : > { %3276 = vmatpush3.bf16.msra.mxu0 %v3585_v22  ;;  %3315 = vmatprep.subr.bf16.mxu1 %v3586_v16  ;;  %v4204_v54 = vsel %vm3931_vm0, %v526_v27, %v530_v45  ;;  %v581_v22 = vrot.slane %v412_v25, 5  ;;  %v2883_v25 = vcombine.high %v3961_v34, %v4016_v19  ;;  %v3600_v16 = vld [vmem:[%s4669_s1 + $0x260] sm:$0xff]   ;;  %v3591_v45 = vld [vmem:[%s4669_s1 + $0x288] sm:$0xff]  }
  0x48   : > { %3277 = vmatprep.subr.bf16.mxu0 %v3588_v29  ;;  %v4211_v60 = vcombine.high %v4190_v46, %v4204_v54  ;;  %v4215_v55 = vcombine.low %v4190_v46, %v4204_v54  ;;  %2120 = vmatprep.mubr.bf16.mxu0 %v4224_v62  ;;  %v4270_v27 = vsel %vm4086_vm3, %v2852_v8, %v577_v3  ;;  %v3594_v29 = vld [vmem:[%s4669_s1 + $0x2d0] sm:$0xff]  }
  0x49   : > { %v4279_v52 = vsel %vm4086_vm3, %v2853_v18, %v581_v22  ;;  %v2889_v8 = vcombine.high %v3954_v32, %v4009_v17  ;;  %v3609_v3 = vld [vmem:[%s4669_s1 + $0x230] sm:$0xff]  }
  0x4a   : > { %2071 = vmatprep.mubr.bf16.mxu1 %v4211_v60  ;;  %v4293_v30 = vcombine.high %v4270_v27, %v4279_v52  ;;  %v4321_v4 = vcombine.low %v4270_v27, %v4279_v52 }
  0x4b   : > { %3278 = vmatpush3.bf16.msra.mxu0 %v3589_v48  ;;  %2072 = vmatmul.mubr.bf16.gmra.mrb[12].mxu1 %v4215_v55  ;;  %v3604_v48 = vld [vmem:[%s4669_s1 + $0x268] sm:$0xff]  }
  0x4c   : > { %2177 = vmatprep.mubr.bf16.mxu1 %v2881_v58  ;;  %3279 = vmatprep.subr.bf16.mxu0 %v3592_v1  ;;  %v2882_v58 = vcombine.low %v3961_v34, %v4016_v19  ;;  %v2885_v1 = vcombine.high %v4023_v23, %v4109_v38  ;;  %v3608_v34 = vld [vmem:[%s4669_s1 + $0x270] sm:$0xff]   ;;  %v253_v19 = vld [vmem:[%s3860_s10 + $0x38] sm:$0xff] }
  0x4d   : > { %v314_v7 = vshll.u32 %v253_v19, 16 }
  0x4e   : > { %2121 = vmatmul.mubr.bf16.gmra.mrb[20].mxu0 %v4228_v63 }
  0x4f   : > { %3280 = vmatpush3.bf16.msra.mxu0 %v3593_v2  ;;  %2128 = vmatprep.mubr.bf16.mxu0 %v4256_v11  ;;  %v311_v2 = vshrl.u32 %v253_v19, 16  ;;  %v3624_v19 = vld [vmem:[%s4669_s1 + $0x350] sm:$0xff]  }
  0x50   : > { %3281 = vmatprep.subr.bf16.mxu0 %v3596_v14  ;;  %v3599_v14 = vld [vmem:[%s4669_s1 + $0x298] sm:$0xff]  }
  0x51   : > { %v4335_v18 = vrot.slane %v311_v2, 7  ;;  %v2893_v2 = vcombine.high %v4139_v47, %v4190_v46 }
  0x53   : > { %3282 = vmatpush3.bf16.msra.mxu0 %v3597_v20  ;;  %2178 = vmatmul.mubr.bf16.vlgmr.msra.gmra.mrb[16].mxu1 %v2880_v15  ;;  %v3602_v20 = vld [vmem:[%s4669_s1 + $0x2e0] sm:$0xff]   ;;  %v316_v22 = vor.u32 %v314_v7, %v4335_v18  ;;  %v3612_v15 = vld [vmem:[%s4669_s1 + $0x278] sm:$0xff]   ;;  %v3625_v7 = vld [vmem:[%s4669_s1 + $0x310] sm:$0xff]  }
  0x54   : > { %3283 = vmatprep.subr.bf16.mxu0 %v3600_v16  ;;  %3316 = vmatpush3.bf16.msra.mxu1 %v3587_v26  ;;  %v2884_v26 = vcombine.low %v4023_v23, %v4109_v38  ;;  %v4353_v16 = vld [vmem:[#allocation2] sm:$0xff]  ;;  %v2888_v23 = vcombine.low %v3954_v32, %v4009_v17  ;;  %v3606_v38 = vld [vmem:[%s4669_s1 + $0x2e8] sm:$0xff]  }
  0x55   : > { %2185 = vmatprep.mubr.bf16.mxu1 %v2883_v25  ;;  %3317 = vmatprep.subr.bf16.mxu1 %v3590_v35  ;;  %v3613_v35 = vld [vmem:[%s4669_s1 + $0x238] sm:$0xff]   ;;  %v3603_v25 = vld [vmem:[%s4669_s1 + $0x2a0] sm:$0xff]   ;;  %v3607_v17 = vld [vmem:[%s4669_s1 + $0x2a8] sm:$0xff]  }
  0x56   : > { %2129 = vmatmul.mubr.bf16.gmra.mrb[24].mxu0 %v4283_v0  ;;  %v3617_v32 = vld [vmem:[%s4669_s1 + $0x300] sm:$0xff]  }
  0x57   : > { %3284 = vmatpush3.bf16.msra.mxu0 %v3601_v24  ;;  %2136 = vmatprep.mubr.bf16.mxu0 %v4293_v30  ;;  %v4358_v24 = vsel %vm3874_vm9, %v316_v22, %v4353_v16  ;;  %v2899_v22 = vcombine.high %v4219_v9, %v4240_v5 }
  0x58   : > { %3285 = vmatprep.subr.bf16.mxu0 %v3604_v48  ;;  %3318 = vmatpush3.bf16.msra.mxu1 %v3591_v45  ;;  %v2887_v45 = vcombine.high %v4113_v50, %v4358_v24  ;;  %v3610_v48 = vld [vmem:[%s4669_s1 + $0x2f0] sm:$0xff]  }
  0x59   : > { %3319 = vmatprep.subr.bf16.mxu1 %v3594_v29  ;;  %v3616_v29 = vld [vmem:[%s4669_s1 + $0x340] sm:$0xff]  }
  0x5b   : > { %3286 = vmatpush3.bf16.msra.mxu0 %v3605_v53  ;;  %2186 = vmatmul.mubr.bf16.gmra.mrb[20].mxu1 %v2882_v58  ;;  %v3620_v53 = vld [vmem:[%s4669_s1 + $0x348] sm:$0xff]   ;;  %v2886_v58 = vcombine.low %v4113_v50, %v4358_v24  ;;  %v2890_v50 = vcombine.low %v4046_v36, %v4122_v42  ;;  %v3618_v36 = vld [vmem:[%s4669_s1 + $0x3c0] sm:$0xff]   ;;  %v3628_v42 = vld [vmem:[%s4669_s1 + $0x358] sm:$0xff]  }
  0x5c   : > { %3287 = vmatprep.subr.bf16.mxu0 %v3608_v34  ;;  %3320 = vmatpush3.bf16.msra.mxu1 %v3595_v59  ;;  %v3621_v59 = vld [vmem:[%s4669_s1 + $0x308] sm:$0xff]   ;;  %v3614_v34 = vld [vmem:[%s4669_s1 + $0x2f8] sm:$0xff]  }
  0x5d   : > { %2193 = vmatprep.mubr.bf16.mxu1 %v2885_v1  ;;  %3321 = vmatprep.subr.bf16.mxu1 %v3598_v61  ;;  %v3611_v61 = vld [vmem:[%s4669_s1 + $0x2b0] sm:$0xff]   ;;  %v2897_v1 = vcombine.high %v4105_v33, %v4199_v51 }
  0x5e   : > { %2137 = vmatmul.mubr.bf16.gmra.mrb[28].mxu0 %v4321_v4 }
  0x5f   : > { %3288 = vmatpush3.bf16.msra.mxu0 %v3609_v3  ;;  %2242 = vmatprep.mubr.bf16.mxu0 %v2889_v8  ;;  %v3615_v8 = vld [vmem:[%s4669_s1 + $0x2b8] sm:$0xff]   ;;  %v2896_v3 = vcombine.low %v4105_v33, %v4199_v51  ;;  %v2892_v33 = vcombine.low %v4139_v47, %v4190_v46  ;;  %v3632_v51 = vld [vmem:[%s4669_s1 + $0x360] sm:$0xff]   ;;  %v584_v47 = vshrl.u32 %v4358_v24, 16  ;;  %v3626_v46 = vld [vmem:[%s4669_s1 + $0x3d0] sm:$0xff]  }
  0x60   : > { %3322 = vmatpush3.bf16.msra.mxu1 %v3599_v14  ;;  %3289 = vmatprep.subr.bf16.mxu0 %v3612_v15  ;;  %v3629_v14 = vld [vmem:[%s4669_s1 + $0x318] sm:$0xff]   ;;  %v3622_v15 = vld [vmem:[%s4669_s1 + $0x3c8] sm:$0xff]  }
  0x61   : > { %3323 = vmatprep.subr.bf16.mxu1 %v3602_v20  ;;  %v3619_v20 = vld [vmem:[%s4669_s1 + $0x380] sm:$0xff]  }
  0x63   : > { %3290 = vmatpush3.bf16.msra.mxu0 %v3613_v35  ;;  %2194 = vmatmul.mubr.bf16.gmra.mrb[24].mxu1 %v2884_v26  ;;  %v3633_v26 = vld [vmem:[%s4669_s1 + $0x320] sm:$0xff]   ;;  %v317_v35 = vrot.slane %v4335_v18, 4  ;;  %v3636_v18 = vld [vmem:[%s4669_s1 + $0x368] sm:$0xff]  }
  0x64   : > { %3324 = vmatpush3.bf16.msra.mxu1 %v3603_v25  ;;  %2201 = vmatprep.mubr.bf16.mxu1 %v2887_v45  ;;  %v3623_v25 = vld [vmem:[%s4669_s1 + $0x388] sm:$0xff]  }
  0x65   : > { %3325 = vmatprep.subr.bf16.mxu1 %v3606_v38  ;;  %3355 = vmatprep.subr.bf16.mxu0 %v3616_v29  ;;  %v2898_v38 = vcombine.low %v4219_v9, %v4240_v5  ;;  %v3637_v45 = vld [vmem:[%s4669_s1 + $0x328] sm:$0xff]   ;;  %v3627_v29 = vld [vmem:[%s4669_s1 + $0x390] sm:$0xff]   ;;  %v3630_v9 = vld [vmem:[%s4669_s1 + $0x3d8] sm:$0xff]  }
  0x66   : > { %2243 = vmatmul.mubr.bf16.vlgmr.msra.gmra.mrb[32].mxu0 %v2888_v23  ;;  %v587_v23 = vshll.u32 %v4358_v24, 16 }
  0x67   : > { %2250 = vmatprep.mubr.bf16.mxu0 %v2891_v37  ;;  %3356 = vmatpush3.bf16.msra.mxu0 %v3617_v32  ;;  %v2901_v37 = vcombine.high %v4248_v13, %v4270_v27  ;;  %v394_v32 = vld [vmem:[#allocation2 + $0x88] sm:$0x11] }
  0x68   : > { %3326 = vmatpush3.bf16.msra.mxu1 %v3607_v17  ;;  %3357 = vmatprep.subr.bf16.mxu0 %v3620_v53  ;;  %v586_v17 = vrot.slane %v584_v47, 4  ;;  %v395_v5 = vsel %vm3886_vm13, %v317_v35, %v394_v32  ;;  %v3640_v53 = vld [vmem:[%s4669_s1 + $0x370] sm:$0xff]   ;;  %v3646_v47 = vld [vmem:[%s4669_s1 + $0x3f8] sm:$0xff]  }
  0x69   : > { %3327 = vmatprep.subr.bf16.mxu1 %v3610_v48  ;;  %v589_v48 = vrot.slane %v587_v23, 5  ;;  %396 = vst [vmem:[#allocation2 + $0x88] sm:$0x11] %v395_v5  ;;  %v3649_v23 = vld [vmem:[%s4669_s1 + $0x400] sm:$0xff]   ;;  %v3658_v5 = vld [vmem:[%s4669_s1 + $0x468] sm:$0xff]  }
  0x6b   : > { %2202 = vmatmul.mubr.bf16.gmra.mrb[28].mxu1 %v2886_v58  ;;  %3358 = vmatpush3.bf16.msra.mxu0 %v3621_v59  ;;  %v3641_v58 = vld [vmem:[%s4669_s1 + $0x330] sm:$0xff]   ;;  %v3631_v59 = vld [vmem:[%s4669_s1 + $0x398] sm:$0xff]  }
  0x6c   : > { %3328 = vmatpush3.bf16.msra.mxu1 %v3611_v61  ;;  %2307 = vmatprep.mubr.bf16.mxu1 %v2897_v1  ;;  %v590_v61 = vor.u32 %v589_v48, %v586_v17  ;;  %v3644_v1 = vld [vmem:[%s4669_s1 + $0x378] sm:$0xff]  }
  0x6d   : > { %3329 = vmatprep.subr.bf16.mxu1 %v3614_v34  ;;  %3359 = vmatprep.subr.bf16.mxu0 %v3624_v19  ;;  %v2900_v34 = vcombine.low %v4248_v13, %v4270_v27  ;;  %v3635_v19 = vld [vmem:[%s4669_s1 + $0x3a0] sm:$0xff]   ;;  %v3654_v17 = vld [vmem:[%s4669_s1 + $0x458] sm:$0xff]  }
  0x6e   : > { %2251 = vmatmul.mubr.bf16.gmra.mrb[36].mxu0 %v2890_v50  ;;  %v3645_v50 = vld [vmem:[%s4669_s1 + $0x338] sm:$0xff]   ;;  %v591_v13 = vrot.slane %v590_v61, 4 }
  0x6f   : > { %2258 = vmatprep.mubr.bf16.mxu0 %v2893_v2  ;;  %3360 = vmatpush3.bf16.msra.mxu0 %v3625_v7  ;;  %v2854_v2 = vrot.slane %v4358_v24, 9  ;;  %v3638_v7 = vld [vmem:[%s4669_s1 + $0x3e8] sm:$0xff]  }
  0x70   : > { %3330 = vmatpush3.bf16.msra.mxu1 %v3615_v8  ;;  %3361 = vmatprep.subr.bf16.mxu0 %v3628_v42  ;;  %v414_v8 = vld [vmem:[#allocation2 + $0x88] sm:$0x11]  ;;  %v3648_v42 = vld [vmem:[%s4669_s1 + $0x440] sm:$0xff]  }
  0x71   : > { %3395 = vmatprep.subr.bf16.mxu1 %v3618_v36  ;;  %v593_v27 = vshll.u32 %v414_v8, 16  ;;  %v601_v36 = vrot.slane %v414_v8, 5 }
  0x73   : > { %2308 = vmatmul.mubr.bf16.vlgmr.msra.gmra.mrb[32].mxu1 %v2896_v3  ;;  %3362 = vmatpush3.bf16.msra.mxu0 %v3629_v14  ;;  %v595_v3 = vrot.slane %v593_v27, 5  ;;  %v3639_v14 = vld [vmem:[%s4669_s1 + $0x3a8] sm:$0xff]  }
  0x74   : > { %3396 = vmatpush3.bf16.msra.mxu1 %v3619_v20  ;;  %2315 = vmatprep.mubr.bf16.mxu1 %v2899_v22  ;;  %v4499_v20 = vsel %vm4086_vm3, %v2854_v2, %v601_v36 }
  0x75   : > { %3397 = vmatprep.subr.bf16.mxu1 %v3622_v15  ;;  %3363 = vmatprep.subr.bf16.mxu0 %v3632_v51  ;;  %v2903_v22 = vcombine.high %v4279_v52, %v4499_v20  ;;  %v3642_v15 = vld [vmem:[%s4669_s1 + $0x3f0] sm:$0xff]   ;;  %v2902_v35 = vcombine.low %v4279_v52, %v4499_v20  ;;  %v604_v52 = vshrl.u32 %v4353_v16, 16 }
  0x76   : > { %2259 = vmatmul.mubr.bf16.gmra.mrb[40].mxu0 %v2892_v33  ;;  %v4508_v33 = vsel %vm3931_vm0, %v591_v13, %v595_v3 }
  0x77   : > { %3364 = vmatpush3.bf16.msra.mxu0 %v3633_v26  ;;  %v2895_v51 = vcombine.high %v4204_v54, %v4508_v33  ;;  %v2894_v26 = vcombine.low %v4204_v54, %v4508_v33  ;;  %v3647_v54 = vld [vmem:[%s4669_s1 + $0x3b8] sm:$0xff]  }
  0x78   : > { %3398 = vmatpush3.bf16.msra.mxu1 %v3623_v25  ;;  %3365 = vmatprep.subr.bf16.mxu0 %v3636_v18  ;;  %v3643_v25 = vld [vmem:[%s4669_s1 + $0x3b0] sm:$0xff]   ;;  %v4532_v18 = vld [vmem:[#allocation2 + $0x98] sm:$0x11] }
  0x79   : > { %3399 = vmatprep.subr.bf16.mxu1 %v3626_v46  ;;  %2266 = vmatprep.mubr.bf16.mxu0 %v2895_v51  ;;  %v607_v46 = vshll.u32 %v4353_v16, 16 }
  0x7b   : > { %2316 = vmatmul.mubr.bf16.gmra.mrb[36].mxu1 %v2898_v38  ;;  %3366 = vmatpush3.bf16.msra.mxu0 %v3637_v45  ;;  %v606_v38 = vrot.slane %v604_v52, 4  ;;  %v3652_v45 = vld [vmem:[%s4669_s1 + $0x450] sm:$0xff]  }
  0x7c   : > { %3400 = vmatpush3.bf16.msra.mxu1 %v3627_v29  ;;  %2323 = vmatprep.mubr.bf16.mxu1 %v2901_v37  ;;  %v609_v29 = vrot.slane %v607_v46, 5  ;;  %v613_v37 = vshll.u32 %v4532_v18, 16 }
  0x7d   : > { %3401 = vmatprep.subr.bf16.mxu1 %v3630_v9  ;;  %3367 = vmatprep.subr.bf16.mxu0 %v3640_v53  ;;  %v2904_v53 = vcombine.low %v4358_v24, %v4353_v16 }
  0x7e   : > { %2267 = vmatmul.mubr.bf16.gmra.mrb[44].mxu0 %v2894_v26  ;;  %v610_v32 = vor.u32 %v609_v29, %v606_v38  ;;  %v3667_v26 = vld [vmem:[%s4671_s3 + $0x18] sm:$0xff]  }
  0x7f   : > { %3368 = vmatpush3.bf16.msra.mxu0 %v3641_v58  ;;  %2372 = vmatprep.mubr.bf16.mxu0 %v3970_v40  ;;  %v3650_v40 = vld [vmem:[%s4669_s1 + $0x448] sm:$0xff]   ;;  %v3662_v58 = vld [vmem:[%s4669_s1 + $0x478] sm:$0xff]  }
  0x80   : > { %3402 = vmatpush3.bf16.msra.mxu1 %v3631_v59  ;;  %3369 = vmatprep.subr.bf16.mxu0 %v3644_v1  ;;  %v611_v9 = vrot.slane %v610_v32, 4  ;;  %v3663_v59 = vld [vmem:[%s4669_s1 + $0x438] sm:$0xff]  }
  0x81   : > { %3403 = vmatprep.subr.bf16.mxu1 %v3634_v49 }
  0x83   : > { %2324 = vmatmul.mubr.bf16.gmra.mrb[40].mxu1 %v2900_v34  ;;  %3370 = vmatpush3.bf16.msra.mxu0 %v3645_v50 }
  0x84   : > { %3404 = vmatpush3.bf16.msra.mxu1 %v3635_v19  ;;  %3435 = vmatprep.subr.bf16.mxu0 %v3648_v42 }
  0x85   : > { %3405 = vmatprep.subr.bf16.mxu1 %v3638_v7  ;;  %2331 = vmatprep.mubr.bf16.mxu1 %v2903_v22  ;;  %v3665_v7 = vld [vmem:[%s4671_s3 + $0x8] sm:$0xff]  }
  0x86   : > { %2373 = vmatmul.mubr.bf16.vlgmr.msra.gmra.mrb[48].mxu0 %v3978_v43  ;;  %v3653_v43 = vld [vmem:[%s4669_s1 + $0x410] sm:$0xff]  }
  0x87   : > { %3436 = vmatpush3.bf16.msra.mxu0 %v3649_v23  ;;  %2380 = vmatprep.mubr.bf16.mxu0 %v4033_v28  ;;  %v3655_v28 = vld [vmem:[%s4669_s1 + $0x418] sm:$0xff]   ;;  %v3668_v23 = vld [vmem:[%s4671_s3 + $0x20] sm:$0xff]  }
  0x88   : > { %3406 = vmatpush3.bf16.msra.mxu1 %v3639_v14  ;;  %3437 = vmatprep.subr.bf16.mxu0 %v3650_v40 }
  0x89   : > { %3407 = vmatprep.subr.bf16.mxu1 %v3642_v15 }
  0x8b   : > { %2332 = vmatmul.mubr.bf16.gmra.mrb[44].mxu1 %v2902_v35 }
  0x8c   : > { %3408 = vmatpush3.bf16.msra.mxu1 %v3643_v25  ;;  %2437 = vmatprep.mubr.bf16.mxu1 %v4051_v41  ;;  %v3651_v41 = vld [vmem:[%s4669_s1 + $0x408] sm:$0xff]  }
  0x8d   : > { %3409 = vmatprep.subr.bf16.mxu1 %v3646_v47  ;;  %3438 = vmatpush3.bf16.msra.mxu0 %v3651_v41 }
  0x8e   : > { %3439 = vmatprep.subr.bf16.mxu0 %v3652_v45  ;;  %2381 = vmatmul.mubr.bf16.gmra.mrb[52].mxu0 %v4040_v31 }
  0x8f   : > { %2388 = vmatprep.mubr.bf16.mxu0 %v4126_v21  ;;  %v2905_v21 = vcombine.high %v4358_v24, %v4353_v16  ;;  %v621_v16 = vrot.slane %v4532_v18, 5 }
  0x90   : > { %3410 = vmatpush3.bf16.msra.mxu1 %v3647_v54 }
  0x91   : > { %3440 = vmatpush3.bf16.msra.mxu0 %v3653_v43  ;;  %v622_v24 = vsel %vm4086_vm3, %v3922_v6, %v621_v16  ;;  %v3664_v6 = vld [vmem:[%s4671_s3] sm:$0xff]  }
  0x92   : > { %3441 = vmatprep.subr.bf16.mxu0 %v3654_v17  ;;  %v2909_v49 = vcombine.high %v4499_v20, %v622_v24  ;;  %3487 = vmatprep.subr.bf16.mxu1 %v3664_v6  ;;  %v3669_v17 = vld [vmem:[%s4671_s3 + $0x28] sm:$0xff]  }
  0x93   : > { %2438 = vmatmul.mubr.bf16.vlgmr.msra.gmra.mrb[48].mxu1 %v4055_v44  ;;  %v615_v44 = vrot.slane %v613_v37, 5 }
  0x94   : > { %2445 = vmatprep.mubr.bf16.mxu1 %v4149_v56  ;;  %v3656_v56 = vld [vmem:[%s4669_s1 + $0x460] sm:$0xff]   ;;  %3488 = vmatpush3.bf16.msra.mxu1 %v3664_v6 }
  0x95   : > { %v616_v31 = vsel %vm3931_vm0, %v611_v9, %v615_v44  ;;  %3442 = vmatpush3.bf16.msra.mxu0 %v3655_v28  ;;  %3489 = vmatprep.subr.bf16.mxu1 %v3665_v7  ;;  %v3670_v44 = vld [vmem:[%s4671_s3 + $0x30] sm:$0xff]  }
  0x96   : > { %3443 = vmatprep.subr.bf16.mxu0 %v3656_v56  ;;  %v2907_v48 = vcombine.high %v4508_v33, %v616_v31  ;;  %2389 = vmatmul.mubr.bf16.gmra.mrb[56].mxu0 %v4130_v39  ;;  %v3661_v39 = vld [vmem:[%s4669_s1 + $0x430] sm:$0xff]  }
  0x97   : > { %2396 = vmatprep.mubr.bf16.mxu0 %v2905_v21 }
  0x98   : > { %3490 = vmatpush3.bf16.msra.mxu1 %v3665_v7 }
  0x9b   : > { %2446 = vmatmul.mubr.bf16.gmra.mrb[52].mxu1 %v4153_v57  ;;  %v3657_v57 = vld [vmem:[%s4669_s1 + $0x420] sm:$0xff]  }
  0x9c   : > { %2453 = vmatprep.mubr.bf16.mxu1 %v4211_v60  ;;  %3444 = vmatpush3.bf16.msra.mxu0 %v3657_v57  ;;  %v3660_v60 = vld [vmem:[%s4669_s1 + $0x470] sm:$0xff]  }
  0x9d   : > { %3445 = vmatprep.subr.bf16.mxu0 %v3658_v5 }
  0x9e   : > { %2397 = vmatmul.mubr.bf16.gmra.mrb[60].mxu0 %v2904_v53 }
  0x9f   : > { %2502 = vmatprep.mubr.bf16.mxu0 %v4224_v62  ;;  %v2908_v62 = vcombine.low %v4499_v20, %v622_v24 }
  0xa0   : > { %3446 = vmatpush3.bf16.msra.mxu0 %v3659_v12 }
  0xa1   : > { %3447 = vmatprep.subr.bf16.mxu0 %v3660_v60  ;;  %v3671_v60 = vld [vmem:[%s4671_s3 + $0x38] sm:$0xff]  }
  0xa3   : > { %2454 = vmatmul.mubr.bf16.gmra.mrb[56].mxu1 %v4215_v55  ;;  %v2906_v55 = vcombine.low %v4508_v33, %v616_v31  ;;  %v3666_v33 = vld [vmem:[%s4671_s3 + $0x10] sm:$0xff]  }
  0xa4   : > { %2461 = vmatprep.mubr.bf16.mxu1 %v2907_v48  ;;  %3448 = vmatpush3.bf16.msra.mxu0 %v3661_v39 }
  0xa5   : > { %3449 = vmatprep.subr.bf16.mxu0 %v3662_v58  ;;  %3491 = vmatprep.subr.bf16.mxu1 %v3666_v33 }
  0xa6   : > { %3492 = vmatpush3.bf16.msra.mxu1 %v3666_v33 }
  0xa7   : > { %3493 = vmatprep.subr.bf16.mxu1 %v3667_v26 }
  0xa8   : > { %3450 = vmatpush3.bf16.msra.mxu0 %v3663_v59 }
  0xaa   : > { %3494 = vmatpush3.bf16.msra.mxu1 %v3667_v26 }
  0xab   : > { %2462 = vmatmul.mubr.bf16.gmra.mrb[60].mxu1 %v2906_v55  ;;  %2503 = vmatmul.mubr.bf16.vlgmr.msra.gmra.mrb[64].mxu0 %v4228_v63 }
  0xac   : > { %2510 = vmatprep.mubr.bf16.mxu0 %v4256_v11  ;;  %3495 = vmatprep.subr.bf16.mxu1 %v3668_v23 }
  0xae   : > { %3496 = vmatpush3.bf16.msra.mxu1 %v3668_v23 }
  0xaf   : > { %3497 = vmatprep.subr.bf16.mxu1 %v3669_v17 }
  0xb2   : > { %3498 = vmatpush3.bf16.msra.mxu1 %v3669_v17 }
  0xb3   : > { %2511 = vmatmul.mubr.bf16.gmra.mrb[68].mxu0 %v4283_v0  ;;  %3499 = vmatprep.subr.bf16.mxu1 %v3670_v44 }
  0xb4   : > { %2518 = vmatprep.mubr.bf16.mxu0 %v4293_v30  ;;  %v4610_v30 = vld [vmem:[%s4670_s2] ss:$0 sm:$0xff] }
  0xb6   : > { %3500 = vmatpush3.bf16.msra.mxu1 %v3670_v44 }
  0xb7   : > { %3501 = vmatprep.subr.bf16.mxu1 %v3671_v60 }
  0xba   : > { %3502 = vmatpush3.bf16.msra.mxu1 %v3671_v60 }
  0xbb   : > { %2519 = vmatmul.mubr.bf16.gmra.mrb[72].mxu0 %v4321_v4 }
  0xbc   : > { %2526 = vmatprep.mubr.bf16.mxu0 %v2909_v49 }
  0xc3   : > { %2527 = vmatmul.mubr.bf16.gmra.mrb[76].mxu0 %v2908_v62 }
  0xf9   : > { %v3131_v63 = vpop.f32.mrb[0].mxu0 }
  0xfa   : > { %v3132_v11 = vpop.f32.mrb[1].mxu0 }
  0xfb   : > { %v3133_v61 = vadd.f32 %v3132_v11, %v3131_v63  ;;  %v3134_v1 = vpop.f32.mrb[2].mxu0 }
  0xfc   : > { %v3135_v34 = vpop.f32.mrb[3].mxu0  ;;  %v3171_v4 = vpop.f32.mrb[0].mxu1 }
  0xfd   : > { %v3136_v0 = vadd.f32 %v3135_v34, %v3134_v1  ;;  %v1985_v10 = vadd.f32 %v3133_v61, %v4610_v30  ;;  %v3172_v19 = vpop.f32.mrb[1].mxu1 }
  0xfe   : > { %v3173_v13 = vadd.f32 %v3172_v19, %v3171_v4  ;;  %v3174_v27 = vpop.f32.mrb[2].mxu1 }
  0xff   : > { %v1988_v8 = vadd.f32 %v3136_v0, %v4610_v30  ;;  %v3175_v3 = vpop.f32.mrb[3].mxu1 }
 0x100   : > { %v2050_v20 = vadd.f32 %v3173_v13, %v1985_v10  ;;  %v3176_v22 = vadd.f32 %v3175_v3, %v3174_v27 }
 0x101   : > { %v3137_v50 = vpop.f32.mrb[4].mxu0 }
 0x102   : > { %v3138_v2 = vpop.f32.mrb[5].mxu0  ;;  %v2053_v51 = vadd.f32 %v3176_v22, %v1988_v8 }
 0x103   : > { %v3139_v36 = vadd.f32 %v3138_v2, %v3137_v50  ;;  %v3140_v42 = vpop.f32.mrb[6].mxu0 }
 0x104   : > { %v3141_v14 = vpop.f32.mrb[7].mxu0 }
 0x105   : > { %v3142_v15 = vadd.f32 %v3141_v14, %v3140_v42  ;;  %v1993_v47 = vadd.f32 %v3139_v36, %v4610_v30 }
 0x107   : > { %v1996_v38 = vadd.f32 %v3142_v15, %v4610_v30 }
 0x108   : > { %v3177_v54 = vpop.f32.mrb[4].mxu1 }
 0x109   : > { %v3143_v35 = vpop.f32.mrb[8].mxu0  ;;  %v3178_v18 = vpop.f32.mrb[5].mxu1 }
 0x10a   : > { %v3144_v25 = vpop.f32.mrb[9].mxu0  ;;  %v3179_v41 = vadd.f32 %v3178_v18, %v3177_v54  ;;  %v3180_v45 = vpop.f32.mrb[6].mxu1 }
 0x10b   : > { %v3145_v52 = vadd.f32 %v3144_v25, %v3143_v35  ;;  %v3146_v46 = vpop.f32.mrb[10].mxu0  ;;  %v3181_v37 = vpop.f32.mrb[7].mxu1 }
 0x10c   : > { %v3147_v40 = vpop.f32.mrb[11].mxu0  ;;  %v2058_v43 = vadd.f32 %v3179_v41, %v1993_v47  ;;  %v3182_v32 = vadd.f32 %v3181_v37, %v3180_v45 }
 0x10d   : > { %v3148_v29 = vadd.f32 %v3147_v40, %v3146_v46  ;;  %v2001_v31 = vadd.f32 %v3145_v52, %v4610_v30 }
 0x10e   : > { %v2061_v9 = vadd.f32 %v3182_v32, %v1996_v38 }
 0x10f   : > { %v2004_v53 = vadd.f32 %v3148_v29, %v4610_v30 }
 0x111   : > { %v3149_v28 = vpop.f32.mrb[12].mxu0 }
 0x112   : > { %v3150_v56 = vpop.f32.mrb[13].mxu0 }
 0x113   : > { %v3183_v57 = vpop.f32.mrb[8].mxu1  ;;  %v3151_v5 = vadd.f32 %v3150_v56, %v3149_v28  ;;  %v3152_v21 = vpop.f32.mrb[14].mxu0 }
 0x114   : > { %v3184_v48 = vpop.f32.mrb[9].mxu1  ;;  %v3153_v12 = vpop.f32.mrb[15].mxu0 }
 0x115   : > { %v3185_v39 = vadd.f32 %v3184_v48, %v3183_v57  ;;  %v3186_v55 = vpop.f32.mrb[10].mxu1  ;;  %v3154_v58 = vadd.f32 %v3153_v12, %v3152_v21  ;;  %v2009_v6 = vadd.f32 %v3151_v5, %v4610_v30 }
 0x116   : > { %v3187_v59 = vpop.f32.mrb[11].mxu1 }
 0x117   : > { %v2066_v16 = vadd.f32 %v3185_v39, %v2001_v31  ;;  %v3188_v24 = vadd.f32 %v3187_v59, %v3186_v55  ;;  %v2012_v19 = vadd.f32 %v3154_v58, %v4610_v30 }
 0x119   : > { %v2069_v49 = vadd.f32 %v3188_v24, %v2004_v53  ;;  %v3211_v62 = vpop.f32.mrb[16].mxu0 }
 0x11a   : > { %v3212_v63 = vpop.f32.mrb[17].mxu0 }
 0x11b   : > { %v3213_v11 = vadd.f32 %v3212_v63, %v3211_v62  ;;  %v3214_v61 = vpop.f32.mrb[18].mxu0 }
 0x11c   : > { %v3215_v1 = vpop.f32.mrb[19].mxu0 }
 0x11d   : > { %v2115_v34 = vadd.f32 %v3213_v11, %v2050_v20  ;;  %v3216_v0 = vadd.f32 %v3215_v1, %v3214_v61 }
 0x11e   : > { %v3189_v10 = vpop.f32.mrb[12].mxu1 }
 0x11f   : > { %v2118_v4 = vadd.f32 %v3216_v0, %v2053_v51  ;;  %v3190_v50 = vpop.f32.mrb[13].mxu1 }
 0x120   : > { %v3191_v2 = vadd.f32 %v3190_v50, %v3189_v10  ;;  %v3192_v7 = vpop.f32.mrb[14].mxu1 }
 0x121   : > { %v3217_v8 = vpop.f32.mrb[20].mxu0  ;;  %v3193_v13 = vpop.f32.mrb[15].mxu1 }
 0x122   : > { %v3218_v27 = vpop.f32.mrb[21].mxu0  ;;  %v2074_v36 = vadd.f32 %v3191_v2, %v2009_v6  ;;  %v3194_v42 = vadd.f32 %v3193_v13, %v3192_v7 }
 0x123   : > { %v3219_v3 = vadd.f32 %v3218_v27, %v3217_v8  ;;  %v3220_v14 = vpop.f32.mrb[22].mxu0 }
 0x124   : > { %v3221_v22 = vpop.f32.mrb[23].mxu0  ;;  %v2077_v15 = vadd.f32 %v3194_v42, %v2012_v19 }
 0x125   : > { %v2123_v20 = vadd.f32 %v3219_v3, %v2058_v43  ;;  %v3222_v33 = vadd.f32 %v3221_v22, %v3220_v14 }
 0x126   : > { %v3251_v26 = vpop.f32.mrb[16].mxu1 }
 0x127   : > { %v2126_v35 = vadd.f32 %v3222_v33, %v2061_v9  ;;  %v3252_v25 = vpop.f32.mrb[17].mxu1 }
 0x128   : > { %v3253_v51 = vadd.f32 %v3252_v25, %v3251_v26  ;;  %v3254_v47 = vpop.f32.mrb[18].mxu1 }
 0x129   : > { %v3223_v54 = vpop.f32.mrb[24].mxu0  ;;  %v3255_v30 = vpop.f32.mrb[19].mxu1 }
 0x12a   : > { %v3224_v52 = vpop.f32.mrb[25].mxu0  ;;  %v2180_v46 = vadd.f32 %v3253_v51, %v2115_v34  ;;  %v3256_v23 = vadd.f32 %v3255_v30, %v3254_v47 }
 0x12b   : > { %v3225_v18 = vadd.f32 %v3224_v52, %v3223_v54  ;;  %v3226_v40 = vpop.f32.mrb[26].mxu0 }
 0x12c   : > { %v3227_v38 = vpop.f32.mrb[27].mxu0  ;;  %v2183_v41 = vadd.f32 %v3256_v23, %v2118_v4 }
 0x12d   : > { %v2131_v45 = vadd.f32 %v3225_v18, %v2066_v16  ;;  %v3228_v29 = vadd.f32 %v3227_v38, %v3226_v40 }
 0x12e   : > { %v3257_v37 = vpop.f32.mrb[20].mxu1 }
 0x12f   : > { %v2134_v32 = vadd.f32 %v3228_v29, %v2069_v49  ;;  %v3258_v43 = vpop.f32.mrb[21].mxu1 }
 0x130   : > { %v3259_v17 = vadd.f32 %v3258_v43, %v3257_v37  ;;  %v3260_v44 = vpop.f32.mrb[22].mxu1 }
 0x131   : > { %v3229_v9 = vpop.f32.mrb[28].mxu0  ;;  %v3261_v28 = vpop.f32.mrb[23].mxu1 }
 0x132   : > { %v3230_v56 = vpop.f32.mrb[29].mxu0  ;;  %v2188_v31 = vadd.f32 %v3259_v17, %v2123_v20  ;;  %v3262_v57 = vadd.f32 %v3261_v28, %v3260_v44 }
 0x133   : > { %v3231_v5 = vadd.f32 %v3230_v56, %v3229_v9  ;;  %v3232_v21 = vpop.f32.mrb[30].mxu0 }
 0x134   : > { %v3233_v48 = vpop.f32.mrb[31].mxu0  ;;  %v2191_v12 = vadd.f32 %v3262_v57, %v2126_v35 }
 0x135   : > { %v2139_v60 = vadd.f32 %v3231_v5, %v2074_v36  ;;  %v3234_v53 = vadd.f32 %v3233_v48, %v3232_v21 }
 0x136   : > { %v3263_v39 = vpop.f32.mrb[24].mxu1 }
 0x137   : > { %v2142_v55 = vadd.f32 %v3234_v53, %v2077_v15  ;;  %v3264_v58 = vpop.f32.mrb[25].mxu1 }
 0x138   : > { %v3265_v59 = vadd.f32 %v3264_v58, %v3263_v39  ;;  %v3266_v16 = vpop.f32.mrb[26].mxu1 }
 0x139   : > { %v3291_v24 = vpop.f32.mrb[32].mxu0  ;;  %v3267_v49 = vpop.f32.mrb[27].mxu1 }
 0x13a   : > { %v3292_v62 = vpop.f32.mrb[33].mxu0  ;;  %v2196_v63 = vadd.f32 %v3265_v59, %v2131_v45  ;;  %v3268_v11 = vadd.f32 %v3267_v49, %v3266_v16 }
 0x13b   : > { %v3293_v61 = vadd.f32 %v3292_v62, %v3291_v24  ;;  %v3294_v1 = vpop.f32.mrb[34].mxu0 }
 0x13c   : > { %v3295_v34 = vpop.f32.mrb[35].mxu0  ;;  %v2199_v0 = vadd.f32 %v3268_v11, %v2134_v32 }
 0x13d   : > { %v2245_v6 = vadd.f32 %v3293_v61, %v2180_v46  ;;  %v3296_v10 = vadd.f32 %v3295_v34, %v3294_v1 }
 0x13e   : > { %v3269_v4 = vpop.f32.mrb[28].mxu1 }
 0x13f   : > { %v2248_v50 = vadd.f32 %v3296_v10, %v2183_v41  ;;  %v3270_v19 = vpop.f32.mrb[29].mxu1 }
 0x140   : > { %v3271_v2 = vadd.f32 %v3270_v19, %v3269_v4  ;;  %v3272_v7 = vpop.f32.mrb[30].mxu1 }
 0x141   : > { %v3297_v8 = vpop.f32.mrb[36].mxu0  ;;  %v3273_v13 = vpop.f32.mrb[31].mxu1 }
 0x142   : > { %v3298_v27 = vpop.f32.mrb[37].mxu0  ;;  %v2204_v36 = vadd.f32 %v3271_v2, %v2139_v60  ;;  %v3274_v42 = vadd.f32 %v3273_v13, %v3272_v7 }
 0x143   : > { %v3299_v3 = vadd.f32 %v3298_v27, %v3297_v8  ;;  %v3300_v14 = vpop.f32.mrb[38].mxu0 }
 0x144   : > { %v3301_v22 = vpop.f32.mrb[39].mxu0  ;;  %v2207_v15 = vadd.f32 %v3274_v42, %v2142_v55 }
 0x145   : > { %v2253_v20 = vadd.f32 %v3299_v3, %v2188_v31  ;;  %v3302_v33 = vadd.f32 %v3301_v22, %v3300_v14 }
 0x146   : > { %v3331_v26 = vpop.f32.mrb[32].mxu1 }
 0x147   : > { %v2256_v35 = vadd.f32 %v3302_v33, %v2191_v12  ;;  %v3332_v25 = vpop.f32.mrb[33].mxu1 }
 0x148   : > { %v3333_v51 = vadd.f32 %v3332_v25, %v3331_v26  ;;  %v3334_v47 = vpop.f32.mrb[34].mxu1 }
 0x149   : > { %v3303_v54 = vpop.f32.mrb[40].mxu0  ;;  %v3335_v30 = vpop.f32.mrb[35].mxu1 }
 0x14a   : > { %v3304_v52 = vpop.f32.mrb[41].mxu0  ;;  %v2310_v46 = vadd.f32 %v3333_v51, %v2245_v6  ;;  %v3336_v23 = vadd.f32 %v3335_v30, %v3334_v47 }
 0x14b   : > { %v3305_v18 = vadd.f32 %v3304_v52, %v3303_v54  ;;  %v3306_v40 = vpop.f32.mrb[42].mxu0 }
 0x14c   : > { %v3307_v38 = vpop.f32.mrb[43].mxu0  ;;  %v2313_v41 = vadd.f32 %v3336_v23, %v2248_v50 }
 0x14d   : > { %v2261_v45 = vadd.f32 %v3305_v18, %v2196_v63  ;;  %v3308_v29 = vadd.f32 %v3307_v38, %v3306_v40 }
 0x14e   : > { %v3337_v37 = vpop.f32.mrb[36].mxu1 }
 0x14f   : > { %v2264_v32 = vadd.f32 %v3308_v29, %v2199_v0  ;;  %v3338_v43 = vpop.f32.mrb[37].mxu1 }
 0x150   : > { %v3339_v17 = vadd.f32 %v3338_v43, %v3337_v37  ;;  %v3340_v44 = vpop.f32.mrb[38].mxu1 }
 0x151   : > { %v3341_v9 = vpop.f32.mrb[39].mxu1  ;;  %v3309_v55 = vpop.f32.mrb[44].mxu0 }
 0x152   : > { %v2318_v28 = vadd.f32 %v3339_v17, %v2253_v20  ;;  %v3342_v56 = vadd.f32 %v3341_v9, %v3340_v44  ;;  %v3310_v58 = vpop.f32.mrb[45].mxu0 }
 0x153   : > { %v3311_v16 = vadd.f32 %v3310_v58, %v3309_v55  ;;  %v3312_v24 = vpop.f32.mrb[46].mxu0 }
 0x154   : > { %v2321_v31 = vadd.f32 %v3342_v56, %v2256_v35  ;;  %v3313_v62 = vpop.f32.mrb[47].mxu0 }
 0x155   : > { %v2269_v61 = vadd.f32 %v3311_v16, %v2204_v36  ;;  %v3314_v1 = vadd.f32 %v3313_v62, %v3312_v24 }
 0x156   : > { %v3343_v57 = vpop.f32.mrb[40].mxu1 }
 0x157   : > { %v3344_v5 = vpop.f32.mrb[41].mxu1  ;;  %v2272_v6 = vadd.f32 %v3314_v1, %v2207_v15 }
 0x158   : > { %v3345_v21 = vadd.f32 %v3344_v5, %v3343_v57  ;;  %v3346_v48 = vpop.f32.mrb[42].mxu1 }
 0x159   : > { %v3347_v12 = vpop.f32.mrb[43].mxu1  ;;  %v3371_v50 = vpop.f32.mrb[48].mxu0 }
 0x15a   : > { %v2326_v60 = vadd.f32 %v3345_v21, %v2261_v45  ;;  %v3348_v53 = vadd.f32 %v3347_v12, %v3346_v48  ;;  %v3372_v19 = vpop.f32.mrb[49].mxu0 }
 0x15b   : > { %v3373_v7 = vadd.f32 %v3372_v19, %v3371_v50  ;;  %v3374_v8 = vpop.f32.mrb[50].mxu0 }
 0x15c   : > { %v2329_v39 = vadd.f32 %v3348_v53, %v2264_v32  ;;  %v3375_v27 = vpop.f32.mrb[51].mxu0 }
 0x15d   : > { %v2375_v14 = vadd.f32 %v3373_v7, %v2310_v46  ;;  %v3376_v22 = vadd.f32 %v3375_v27, %v3374_v8 }
 0x15e   : > { %v3349_v59 = vpop.f32.mrb[44].mxu1 }
 0x15f   : > { %v3350_v49 = vpop.f32.mrb[45].mxu1  ;;  %v2378_v36 = vadd.f32 %v3376_v22, %v2313_v41 }
 0x160   : > { %v3351_v63 = vadd.f32 %v3350_v49, %v3349_v59  ;;  %v3352_v11 = vpop.f32.mrb[46].mxu1 }
 0x161   : > { %v3353_v34 = vpop.f32.mrb[47].mxu1  ;;  %v3377_v25 = vpop.f32.mrb[52].mxu0 }
 0x162   : > { %v3354_v0 = vadd.f32 %v3353_v34, %v3352_v11  ;;  %v2334_v10 = vadd.f32 %v3351_v63, %v2269_v61  ;;  %v3378_v15 = vpop.f32.mrb[53].mxu0 }
 0x163   : > { %v3379_v47 = vadd.f32 %v3378_v15, %v3377_v25  ;;  %v3380_v54 = vpop.f32.mrb[54].mxu0 }
 0x164   : > { %v2337_v4 = vadd.f32 %v3354_v0, %v2272_v6  ;;  %v3381_v52 = vpop.f32.mrb[55].mxu0 }
 0x165   : > { %v2383_v40 = vadd.f32 %v3379_v47, %v2318_v28  ;;  %v3382_v38 = vadd.f32 %v3381_v52, %v3380_v54 }
 0x166   : > { %v3411_v2 = vpop.f32.mrb[48].mxu1 }
 0x167   : > { %v3412_v13 = vpop.f32.mrb[49].mxu1  ;;  %v2386_v46 = vadd.f32 %v3382_v38, %v2321_v31 }
 0x168   : > { %v3413_v42 = vadd.f32 %v3412_v13, %v3411_v2  ;;  %v3414_v3 = vpop.f32.mrb[50].mxu1 }
 0x169   : > { %v3415_v20 = vpop.f32.mrb[51].mxu1  ;;  %v3383_v43 = vpop.f32.mrb[56].mxu0 }
 0x16a   : > { %v3416_v33 = vadd.f32 %v3415_v20, %v3414_v3  ;;  %v2440_v26 = vadd.f32 %v3413_v42, %v2375_v14  ;;  %v3384_v41 = vpop.f32.mrb[57].mxu0 }
 0x16b   : > { %v3385_v44 = vadd.f32 %v3384_v41, %v3383_v43  ;;  %v3386_v9 = vpop.f32.mrb[58].mxu0 }
 0x16c   : > { %v2443_v35 = vadd.f32 %v3416_v33, %v2378_v36  ;;  %v3387_v57 = vpop.f32.mrb[59].mxu0 }
 0x16d   : > { %v2391_v48 = vadd.f32 %v3385_v44, %v2326_v60  ;;  %v3388_v12 = vadd.f32 %v3387_v57, %v3386_v9 }
 0x16e   : > { %v3417_v51 = vpop.f32.mrb[52].mxu1 }
 0x16f   : > { %v3418_v30 = vpop.f32.mrb[53].mxu1  ;;  %v2394_v28 = vadd.f32 %v3388_v12, %v2329_v39 }
 0x170   : > { %v3419_v23 = vadd.f32 %v3418_v30, %v3417_v51  ;;  %v3420_v18 = vpop.f32.mrb[54].mxu1 }
 0x171   : > { %v3421_v45 = vpop.f32.mrb[55].mxu1  ;;  %v3389_v16 = vpop.f32.mrb[60].mxu0 }
 0x172   : > { %v3422_v29 = vadd.f32 %v3421_v45, %v3420_v18  ;;  %v2448_v37 = vadd.f32 %v3419_v23, %v2383_v40  ;;  %v3390_v31 = vpop.f32.mrb[61].mxu0 }
 0x173   : > { %v3391_v49 = vadd.f32 %v3390_v31, %v3389_v16  ;;  %v3392_v62 = vpop.f32.mrb[62].mxu0 }
 0x174   : > { %v2451_v32 = vadd.f32 %v3422_v29, %v2386_v46  ;;  %v3393_v11 = vpop.f32.mrb[63].mxu0 }
 0x175   : > { %v2399_v34 = vadd.f32 %v3391_v49, %v2334_v10  ;;  %v3394_v0 = vadd.f32 %v3393_v11, %v3392_v62 }
 0x176   : > { %v3423_v17 = vpop.f32.mrb[56].mxu1 }
 0x177   : > { %v3424_v56 = vpop.f32.mrb[57].mxu1  ;;  %v2402_v60 = vadd.f32 %v3394_v0, %v2337_v4 }
 0x178   : > { %v3425_v5 = vadd.f32 %v3424_v56, %v3423_v17  ;;  %v3426_v21 = vpop.f32.mrb[58].mxu1 }
 0x179   : > { %v3427_v53 = vpop.f32.mrb[59].mxu1 }
 0x17a   : > { %v3428_v55 = vadd.f32 %v3427_v53, %v3426_v21  ;;  %v2456_v58 = vadd.f32 %v3425_v5, %v2391_v48 }
 0x17c   : > { %v2459_v59 = vadd.f32 %v3428_v55, %v2394_v28  ;;  %v3055_v55 = vld [vmem:[%s4672_s4] ss:$0 sm:$0xff] }
 0x17e   : > { %v3429_v24 = vpop.f32.mrb[60].mxu1  ;;  %v3451_v7 = vpop.f32.mrb[64].mxu0 }
 0x17f   : > { %v3430_v63 = vpop.f32.mrb[61].mxu1  ;;  %v3452_v39 = vpop.f32.mrb[65].mxu0 }
 0x180   : > { %v3431_v61 = vadd.f32 %v3430_v63, %v3429_v24  ;;  %v3432_v1 = vpop.f32.mrb[62].mxu1  ;;  %v3453_v8 = vadd.f32 %v3452_v39, %v3451_v7  ;;  %v3454_v13 = vpop.f32.mrb[66].mxu0 }
 0x181   : > { %v3433_v6 = vpop.f32.mrb[63].mxu1  ;;  %v3455_v27 = vpop.f32.mrb[67].mxu0 }
 0x182   : > { %v3434_v50 = vadd.f32 %v3433_v6, %v3432_v1  ;;  %v2464_v19 = vadd.f32 %v3431_v61, %v2399_v34  ;;  %v2505_v42 = vadd.f32 %v3453_v8, %v2440_v26  ;;  %v3456_v3 = vadd.f32 %v3455_v27, %v3454_v13 }
 0x184   : > { %v2467_v2 = vadd.f32 %v3434_v50, %v2402_v60  ;;  %v2508_v14 = vadd.f32 %v3456_v3, %v2443_v35  ;;  %v2535_v22 = vmax.f32 %v2505_v42, 0.0 }
 0x186   : > { %v2536_v20 = vmax.f32 %v2508_v14, 0.0  ;;  %v3457_v33 = vpop.f32.mrb[68].mxu0 }
 0x187   : > { %v3458_v36 = vpop.f32.mrb[69].mxu0 }
 0x188   : > { %v3459_v25 = vadd.f32 %v3458_v36, %v3457_v33  ;;  %v3460_v10 = vpop.f32.mrb[70].mxu0  ;;  %v2543_v15 = vpack.c.bf16 %v2536_v20, %v2535_v22  ;;  %v2683_v20 = vlaneseq }
 0x189   : > { %v3461_v51 = vpop.f32.mrb[71].mxu0 }
 0x18a   : > { %v2513_v47 = vadd.f32 %v3459_v25, %v2448_v37  ;;  %v3462_v4 = vadd.f32 %v3461_v51, %v3460_v10  ;;  %3503 = vmatprep.mubr.bf16.mxu1 %v2543_v15  ;;  %v2684_v15 = vand.u32 127, %v2683_v20 }
 0x18c   : > { %v2516_v54 = vadd.f32 %v3462_v4, %v2451_v32  ;;  %v2537_v30 = vmax.f32 %v2513_v47, 0.0  ;;  %vm2685_vm4 = vcmp.lt.s32.totalorder %v2684_v15, 3 }
 0x18e   : > { %v2538_v52 = vmax.f32 %v2516_v54, 0.0  ;;  %v3463_v23 = vpop.f32.mrb[72].mxu0 }
 0x18f   : > { %v3464_v18 = vpop.f32.mrb[73].mxu0 }
 0x190   : > { %v2544_v40 = vpack.c.bf16 %v2538_v52, %v2537_v30  ;;  %v3465_v26 = vadd.f32 %v3464_v18, %v3463_v23  ;;  %v3466_v38 = vpop.f32.mrb[74].mxu0 }
 0x191   : > { %v3467_v35 = vpop.f32.mrb[75].mxu0 }
 0x192   : > { %v2521_v45 = vadd.f32 %v3465_v26, %v2456_v58  ;;  %v3468_v29 = vadd.f32 %v3467_v35, %v3466_v38  ;;  %3504 = vmatmul.mubr.bf16.vlgmr.msra.gmra.mrb[64].mxu1 %v2544_v40 }
 0x194   : > { %v2524_v46 = vadd.f32 %v3468_v29, %v2459_v59  ;;  %v2539_v43 = vmax.f32 %v2521_v45, 0.0 }
 0x196   : > { %v2540_v41 = vmax.f32 %v2524_v46, 0.0  ;;  %v3469_v17 = vpop.f32.mrb[76].mxu0 }
 0x197   : > { %v3470_v44 = vpop.f32.mrb[77].mxu0 }
 0x198   : > { %v3471_v37 = vadd.f32 %v3470_v44, %v3469_v17  ;;  %v3472_v9 = vpop.f32.mrb[78].mxu0  ;;  %v2545_v56 = vpack.c.bf16 %v2540_v41, %v2539_v43 }
 0x199   : > { %v3473_v32 = vpop.f32.mrb[79].mxu0 }
 0x19a   : > { %v2529_v57 = vadd.f32 %v3471_v37, %v2464_v19  ;;  %v3474_v5 = vadd.f32 %v3473_v32, %v3472_v9  ;;  %3507 = vmatprep.mubr.bf16.mxu1 %v2545_v56 }
 0x19c   : > { %v2532_v21 = vadd.f32 %v3474_v5, %v2467_v2  ;;  %v2541_v48 = vmax.f32 %v2529_v57, 0.0 }
 0x19e   : > { %v2542_v12 = vmax.f32 %v2532_v21, 0.0 }
 0x1a0   : > { %v2546_v53 = vpack.c.bf16 %v2542_v12, %v2541_v48 }
 0x1a2   : > { %3508 = vmatmul.mubr.bf16.gmra.mrb[68].mxu1 %v2546_v53 }
 0x265   : > { %v3505_v28 = vpop.f32.mrb[64].mxu1 }
 0x266   : > { %v2661_v58 = vadd.f32 %v3505_v28, %v3055_v55  ;;  %v2652_v59 = vpop.f32.mrb[65].mxu1 }
 0x267   : > { %v2653_v16 = vadd.f32 %v3055_v55, %v2652_v59  ;;  %v3506_v31 = vpop.f32.mrb[66].mxu1 }
 0x268   : > { %v3066_v24 = vmul.f32 -1.442695, %v2661_v58  ;;  %v2664_v49 = vadd.f32 %v3506_v31, %v3055_v55  ;;  %v2655_v62 = vpop.f32.mrb[67].mxu1 }
 0x269   : > { %v3064_v63 = vmul.f32 -1.442695, %v2653_v16  ;;  %v2656_v11 = vadd.f32 %v3055_v55, %v2655_v62 }
 0x26a   : > { %3672 = vpow2.f32 %v3066_v24  ;;  %v3067_v61 = vmul.f32 -1.442695, %v2664_v49 }
 0x26b   : > { %3674 = vpow2.f32 %v3064_v63  ;;  %v3065_v1 = vmul.f32 -1.442695, %v2656_v11 }
 0x26c   : > { %3676 = vpow2.f32 %v3067_v61 }
 0x26d   : > { %3678 = vpow2.f32 %v3065_v1 }
 0x274   : > { %v3673_v34 = vpop.eup %3672 }
 0x275   : > { %v3675_v0 = vpop.eup %3674  ;;  %v2712_v6 = vadd.f32 1.0, %v3673_v34  ;;  %v3509_v50 = vpop.f32.mrb[68].mxu1 }
 0x276   : > { %v3677_v60 = vpop.eup %3676  ;;  %v2710_v19 = vadd.f32 1.0, %v3675_v0  ;;  %v2677_v2 = vadd.f32 %v3509_v50, %v3055_v55  ;;  %v2668_v7 = vpop.f32.mrb[69].mxu1 }
 0x277   : > { %v3679_v39 = vpop.eup %3678  ;;  %3680 = vrcp.f32 %v2712_v6  ;;  %v2713_v8 = vadd.f32 1.0, %v3677_v60  ;;  %v2669_v13 = vadd.f32 %v3055_v55, %v2668_v7  ;;  %v3510_v27 = vpop.f32.mrb[70].mxu1 }
 0x278   : > { %3682 = vrcp.f32 %v2710_v19  ;;  %v2711_v42 = vadd.f32 1.0, %v3679_v39  ;;  %v3070_v3 = vmul.f32 -1.442695, %v2677_v2  ;;  %v2680_v14 = vadd.f32 %v3510_v27, %v3055_v55  ;;  %v2671_v22 = vpop.f32.mrb[71].mxu1 }
 0x279   : > { %3684 = vrcp.f32 %v2713_v8  ;;  %v3068_v33 = vmul.f32 -1.442695, %v2669_v13  ;;  %v2672_v36 = vadd.f32 %v3055_v55, %v2671_v22 }
 0x27a   : > { %3686 = vrcp.f32 %v2711_v42  ;;  %v3071_v25 = vmul.f32 -1.442695, %v2680_v14 }
 0x27b   : > { %3688 = vpow2.f32 %v3070_v3  ;;  %v3069_v10 = vmul.f32 -1.442695, %v2672_v36 }
 0x27c   : > { %3690 = vpow2.f32 %v3068_v33 }
 0x27d   : > { %3692 = vpow2.f32 %v3071_v25 }
 0x27e   : > { %3694 = vpow2.f32 %v3069_v10 }
 0x281   : > { %v3681_v51 = vpop.eup %3680 }
 0x282   : > { %v3683_v47 = vpop.eup %3682  ;;  %v2736_v30 = vsel %vm2685_vm4, %v3681_v51, %v2661_v58 }
 0x283   : > { %v3685_v4 = vpop.eup %3684  ;;  %v2734_v18 = vsel %vm2685_vm4, %v3683_v47, %v2653_v16 }
 0x284   : > { %v3687_v54 = vpop.eup %3686  ;;  %v2737_v52 = vsel %vm2685_vm4, %v3685_v4, %v2664_v49 }
 0x285   : > { %v3689_v23 = vpop.eup %3688  ;;  %v3100_v40 = vpack.c.bf16 %v2737_v52, %v2736_v30  ;;  %v2735_v26 = vsel %vm2685_vm4, %v3687_v54, %v2656_v11 }
 0x286   : > { %v3691_v38 = vpop.eup %3690  ;;  %v3095_v35 = vpack.c.bf16 %v2735_v26, %v2734_v18  ;;  %v2716_v45 = vadd.f32 1.0, %v3689_v23 }
 0x287   : > { %v3693_v29 = vpop.eup %3692  ;;  %3112 = vst [vmem:[%s4652_s15 + $0x8] sm:$0xff] %v3100_v40   ;;  %v2714_v46 = vadd.f32 1.0, %v3691_v38 }
 0x288   : > { %v3695_v43 = vpop.eup %3694  ;;  %3096 = vst [vmem:[%s4652_s15] sm:$0xff] %v3095_v35   ;;  %3696 = vrcp.f32 %v2716_v45  ;;  %v2717_v41 = vadd.f32 1.0, %v3693_v29 }
 0x289   : > { %3698 = vrcp.f32 %v2714_v46  ;;  %v2715_v17 = vadd.f32 1.0, %v3695_v43 }
 0x28a   : > { %3700 = vrcp.f32 %v2717_v41 }
 0x28b   : > { %3702 = vrcp.f32 %v2715_v17 }
 0x292   : > { %v3697_v44 = vpop.eup %3696 }
 0x293   : > { %v3699_v37 = vpop.eup %3698  ;;  %v2740_v32 = vsel %vm2685_vm4, %v3697_v44, %v2677_v2 }
 0x294   : > { %v3701_v9 = vpop.eup %3700  ;;  %v2738_v5 = vsel %vm2685_vm4, %v3699_v37, %v2669_v13 }
 0x295   : > { %v3703_v56 = vpop.eup %3702  ;;  %v2741_v57 = vsel %vm2685_vm4, %v3701_v9, %v2680_v14 }
 0x296   : > { %v3110_v21 = vpack.c.bf16 %v2741_v57, %v2740_v32  ;;  %v2739_v48 = vsel %vm2685_vm4, %v3703_v56, %v2672_v36 }
 0x297   : > { %v3105_v12 = vpack.c.bf16 %v2739_v48, %v2738_v5 }
 0x298   : > { %3114 = vst [vmem:[%s4652_s15 + $0x18] sm:$0xff] %v3110_v21  }
 0x299   : > { %3113 = vst [vmem:[%s4652_s15 + $0x10] sm:$0xff] %v3105_v12  }
 0x29a PF: > { %s15_s18 = sadd.s32 1, %s3711_s18  }
 0x29b   : > { %p12_p4 = scmp.ge.s32.totalorder %s15_s18, 4  }
 0x29d   :  { %14 = sbr.rel (!%p12_p4) target bundleno = 1 (0x1), region = 71 }

// kernel: _lambda_.6
= control target key start
LH: loop header
LB: loop body
LE: loop exit
PB: predicated region body
PF: predicated region fallthrough
CT: control target
= control target key end

     0   :  { %s3298_s18 = smov 0   ;;  %s4233_s0 = inlined_call_operand.vmem [shape: bf16[4,8,8,128], index: 0, kind: input, shape index: {}]   ;;  %s4234_s1 = inlined_call_operand.vmem [shape: bf16[1152,128], index: 1, kind: input, shape index: {}]   ;;  %s4235_s2 = inlined_call_operand.vmem [shape: f32[1,128], index: 2, kind: input, shape index: {}]   ;;  %s4236_s3 = inlined_call_operand.vmem [shape: bf16[128,128], index: 3, kind: input, shape index: {}]   ;;  %s4237_s4 = inlined_call_operand.vmem [shape: f32[1,128], index: 4, kind: input, shape index: {}]   ;;  %s4238_s5 = inlined_call_operand.vmem [shape: bf16[4,64,128], index: 5, kind: output, shape index: {}]  }
   0x1 LB: > { %s2565_s19 = sadd.s32 4294967295, %s3265_s18   ;;  %p2569_p0 = scmp.ge.s32.totalorder %s3265_s18, 1  ;;  %s3265_s18 = sphi %s3298_s18, %s15_s18  }
   0x2   : > { %p189_p1 = scmp.lt.s32.totalorder %s3265_s18, 3 }
   0x4   : > { %p190_p2 = pnand %p2569_p0, %p189_p1 }
   0x6   : > { %193 = sbr.rel (%p190_p2) target bundleno = 671 (0x29f), region = 40 }
   0xd   : > { %v3176_v0 = vld [vmem:[%s4234_s1 + $0x40] sm:$0xff]   ;;  %v3267_v4 = vmov 0   ;;  %v3180_v5 = vld [vmem:[%s4234_s1 + $0x48] sm:$0xff]   ;;  %v3184_v9 = vld [vmem:[%s4234_s1 + $0x50] sm:$0xff]   ;;  %s2570_s27 = sshll.u32 %s2565_s19, 1  ;;  %vm451_vm0 = vcmask 1043456  }
   0xe   : > { %v3177_v1 = vld [vmem:[%s4234_s1] sm:$0xff]   ;;  %2815 = vmatprep.subr.bf16.mxu0 %v3176_v0  ;;  %234 = vst [vmem:[#allocation2] sm:$0xf] %v3267_v4  ;;  %235 = vst [vmem:[#allocation2 + $0x4] sm:$0x1] %v3267_v4  ;;  %v3181_v6 = vld [vmem:[%s4234_s1 + $0x8] sm:$0xff]  }
   0xf   : > { %v3178_v2 = vld [vmem:[%s4234_s1 + $0xc0] sm:$0xff]   ;;  %2816 = vmatpush3.bf16.msra.mxu0 %v3177_v1  ;;  %236 = vst [vmem:[#allocation2 + $0x8] sm:$0xf] %v3267_v4  ;;  %237 = vst [vmem:[#allocation2 + $0xc] sm:$0x1] %v3267_v4  ;;  %v3182_v7 = vld [vmem:[%s4234_s1 + $0xc8] sm:$0xff]  }
  0x10   : > { %v3179_v3 = vld [vmem:[%s4234_s1 + $0x80] sm:$0xff]   ;;  %238 = vst [vmem:[#allocation2 + $0x10] sm:$0xf] %v3267_v4  ;;  %239 = vst [vmem:[#allocation2 + $0x14] sm:$0x1] %v3267_v4  ;;  %2879 = vmatprep.subr.bf16.mxu1 %v3178_v2  ;;  %2817 = vmatprep.subr.bf16.mxu0 %v3180_v5  ;;  %v3183_v8 = vld [vmem:[%s4234_s1 + $0x88] sm:$0xff]  }
  0x11   : > { %240 = vst [vmem:[#allocation2 + $0x18] sm:$0xf] %v3267_v4  ;;  %241 = vst [vmem:[#allocation2 + $0x1c] sm:$0x1] %v3267_v4  ;;  %2880 = vmatpush3.bf16.msra.mxu1 %v3179_v3  ;;  %v3185_v10 = vld [vmem:[%s4234_s1 + $0x10] sm:$0xff]   ;;  %v3188_v13 = vld [vmem:[%s4234_s1 + $0x58] sm:$0xff]  }
  0x12   : > { %242 = vst [vmem:[#allocation2 + $0x20] sm:$0xf] %v3267_v4  ;;  %243 = vst [vmem:[#allocation2 + $0x24] sm:$0x1] %v3267_v4  ;;  %2881 = vmatprep.subr.bf16.mxu1 %v3182_v7  ;;  %v3186_v11 = vld [vmem:[%s4234_s1 + $0xd0] sm:$0xff]   ;;  %v3189_v14 = vld [vmem:[%s4234_s1 + $0x18] sm:$0xff]  }
  0x13   : > { %244 = vst [vmem:[#allocation2 + $0x28] sm:$0xf] %v3267_v4  ;;  %245 = vst [vmem:[#allocation2 + $0x2c] sm:$0x1] %v3267_v4  ;;  %2818 = vmatpush3.bf16.msra.mxu0 %v3181_v6  ;;  %v3187_v12 = vld [vmem:[%s4234_s1 + $0x90] sm:$0xff]   ;;  %v3190_v15 = vld [vmem:[%s4234_s1 + $0xd8] sm:$0xff]  }
  0x14   : > { %246 = vst [vmem:[#allocation2 + $0x30] sm:$0xf] %v3267_v4  ;;  %247 = vst [vmem:[#allocation2 + $0x34] sm:$0x1] %v3267_v4  ;;  %2819 = vmatprep.subr.bf16.mxu0 %v3184_v9  ;;  %v3191_v16 = vld [vmem:[%s4234_s1 + $0x98] sm:$0xff]   ;;  %v3192_v17 = vld [vmem:[%s4234_s1 + $0x60] sm:$0xff]  }
  0x15   : > { %248 = vst [vmem:[#allocation2 + $0x38] sm:$0xf] %v3267_v4  ;;  %249 = vst [vmem:[#allocation2 + $0x3c] sm:$0x1] %v3267_v4  ;;  %2882 = vmatpush3.bf16.msra.mxu1 %v3183_v8  ;;  %v3193_v18 = vld [vmem:[%s4234_s1 + $0x20] sm:$0xff]   ;;  %p220_p3 = scmp.lt.s32.totalorder %s2570_s27, 3 }
  0x16   : > { %250 = vst [vmem:[#allocation2 + $0x40] sm:$0xf] %v3267_v4  ;;  %251 = vst [vmem:[#allocation2 + $0x44] sm:$0x1] %v3267_v4  ;;  %2883 = vmatprep.subr.bf16.mxu1 %v3186_v11  ;;  %v3194_v19 = vld [vmem:[%s4234_s1 + $0xe0] sm:$0xff]   ;;  %v3196_v21 = vld [vmem:[%s4234_s1 + $0x68] sm:$0xff]  }
  0x17   : > { %252 = vst [vmem:[#allocation2 + $0x48] sm:$0xf] %v3267_v4  ;;  %253 = vst [vmem:[#allocation2 + $0x4c] sm:$0x1] %v3267_v4  ;;  %2820 = vmatpush3.bf16.msra.mxu0 %v3185_v10  ;;  %v3195_v20 = vld [vmem:[%s4234_s1 + $0xa0] sm:$0xff]   ;;  %v3197_v22 = vld [vmem:[%s4234_s1 + $0x28] sm:$0xff]  }
  0x18   : > { %254 = vst [vmem:[#allocation2 + $0x50] sm:$0xf] %v3267_v4  ;;  %255 = vst [vmem:[#allocation2 + $0x54] sm:$0x1] %v3267_v4  ;;  %2821 = vmatprep.subr.bf16.mxu0 %v3188_v13  ;;  %s4276_s27 = smov (!%p220_p3, %s2570_s27), 3  ;;  %v3198_v23 = vld [vmem:[%s4234_s1 + $0xe8] sm:$0xff]  }
  0x19   : > { %256 = vst [vmem:[#allocation2 + $0x58] sm:$0xf] %v3267_v4  ;;  %257 = vst [vmem:[#allocation2 + $0x5c] sm:$0x1] %v3267_v4  ;;  %2884 = vmatpush3.bf16.msra.mxu1 %v3187_v12  ;;  %v3199_v24 = vld [vmem:[%s4234_s1 + $0xa8] sm:$0xff]   ;;  %v3200_v25 = vld [vmem:[%s4234_s1 + $0x70] sm:$0xff]  }
  0x1a   : > { %258 = vst [vmem:[#allocation2 + $0x60] sm:$0xf] %v3267_v4  ;;  %259 = vst [vmem:[#allocation2 + $0x64] sm:$0x1] %v3267_v4  ;;  %2885 = vmatprep.subr.bf16.mxu1 %v3190_v15  ;;  %v3201_v26 = vld [vmem:[%s4234_s1 + $0x30] sm:$0xff]   ;;  %s2750_s26 = sshll.u32 %s4276_s27, 5 }
  0x1b   : > { %260 = vst [vmem:[#allocation2 + $0x68] sm:$0xf] %v3267_v4  ;;  %261 = vst [vmem:[#allocation2 + $0x6c] sm:$0x1] %v3267_v4  ;;  %2822 = vmatpush3.bf16.msra.mxu0 %v3189_v14  ;;  %v3202_v27 = vld [vmem:[%s4234_s1 + $0xf0] sm:$0xff]   ;;  %v3204_v29 = vld [vmem:[%s4234_s1 + $0x78] sm:$0xff]   ;;  %s3403_s19 = scalar_lea.vmem %s4233_s0, %s2750_s26  ;;  %s4220_s12 = scalar_lea.vmem %s4238_s5, %s2750_s26 }
  0x1c   : > { %262 = vst [vmem:[#allocation2 + $0x70] sm:$0xf] %v3267_v4  ;;  %263 = vst [vmem:[#allocation2 + $0x74] sm:$0x1] %v3267_v4  ;;  %2823 = vmatprep.subr.bf16.mxu0 %v3192_v17  ;;  %v3203_v28 = vld [vmem:[%s4234_s1 + $0xb0] sm:$0xff]   ;;  %v3205_v30 = vld [vmem:[%s4234_s1 + $0x38] sm:$0xff]  }
  0x1d   : > { %264 = vst [vmem:[#allocation2 + $0x78] sm:$0xf] %v3267_v4  ;;  %265 = vst [vmem:[#allocation2 + $0x7c] sm:$0x1] %v3267_v4  ;;  %2886 = vmatpush3.bf16.msra.mxu1 %v3191_v16  ;;  %v3206_v31 = vld [vmem:[%s4234_s1 + $0xf8] sm:$0xff]   ;;  %vm457_vm1 = vcmask 1040384  }
  0x1e   : > { %266 = vst [vmem:[#allocation2 + $0x80] sm:$0xf] %v3267_v4  ;;  %267 = vst [vmem:[#allocation2 + $0x84] sm:$0x1] %v3267_v4  ;;  %2887 = vmatprep.subr.bf16.mxu1 %v3194_v19  ;;  %v274_v32 = vld [vmem:[%s3403_s19] sm:$0xf] }
  0x1f   : > { %268 = vst [vmem:[#allocation2 + $0x88] sm:$0xf] %v3267_v4  ;;  %269 = vst [vmem:[#allocation2 + $0x8c] sm:$0x1] %v3267_v4  ;;  %2824 = vmatpush3.bf16.msra.mxu0 %v3193_v18  ;;  %v275_v33 = vld [vmem:[%s3403_s19 + $0x4] sm:$0xf] }
  0x20   : > { %270 = vst [vmem:[#allocation2 + $0x90] sm:$0xf] %v3267_v4  ;;  %271 = vst [vmem:[#allocation2 + $0x94] sm:$0x1] %v3267_v4  ;;  %2825 = vmatprep.subr.bf16.mxu0 %v3196_v21  ;;  %vm452_vm2 = vsmask.f32 7938 }
  0x21   : > { %272 = vst [vmem:[#allocation2 + $0x98] sm:$0xf] %v3267_v4  ;;  %273 = vst [vmem:[#allocation2 + $0x9c] sm:$0x1] %v3267_v4  ;;  %2888 = vmatpush3.bf16.msra.mxu1 %v3195_v20  ;;  %v291_v34 = vshrl.u32 %v274_v32, 16  ;;  %v294_v35 = vshll.u32 %v274_v32, 16 }
  0x22   : > { %2889 = vmatprep.subr.bf16.mxu1 %v3198_v23  ;;  %v299_v36 = vshrl.u32 %v275_v33, 16  ;;  %v302_v37 = vshll.u32 %v275_v33, 16  ;;  %v454_v38 = vld [vmem:[#allocation2 + $0x8] sm:$0xf]  ;;  %vm458_vm3 = vsmask.f32 256  ;;  %vm3414_vm4 = vmand %vm451_vm0, %vm452_vm2 }
  0x23   : > { %2826 = vmatpush3.bf16.msra.mxu0 %v3197_v22  ;;  %v460_v39 = vld [vmem:[#allocation2 + $0xc] sm:$0x1]  ;;  %v293_v40 = vrot.slane %v291_v34, 7  ;;  %v463_v43 = vld [vmem:[#allocation2 + $0x10] sm:$0xf]  ;;  %vm3421_vm5 = vmand %vm457_vm1, %vm458_vm3  ;;  %vm852_vm6 = vcmask 1042432  }
  0x24   : > { %2827 = vmatprep.subr.bf16.mxu0 %v3200_v25  ;;  %v301_v41 = vrot.slane %v299_v36, 7  ;;  %v3418_v44 = vld [vmem:[#allocation2] sm:$0xf]  ;;  %v466_v46 = vld [vmem:[#allocation2 + $0x14] sm:$0x1]  ;;  %v3207_v55 = vld [vmem:[%s4234_s1 + $0xb8] sm:$0xff]  }
  0x25   : > { %2890 = vmatpush3.bf16.msra.mxu1 %v3199_v24  ;;  %v554_v47 = vld [vmem:[#allocation2 + $0x4] sm:$0x1]  ;;  %v296_v48 = vor.u32 %v294_v35, %v293_v40  ;;  %v297_v49 = vrot.slane %v293_v40, 4  ;;  %v597_v52 = vshrl.u32 %v3418_v44, 16  ;;  %v600_v53 = vshll.u32 %v3418_v44, 16  ;;  %v3254_v4 = vld [vmem:[%s4236_s3 + $0x18] sm:$0xff]  }
  0x26   : > { %2891 = vmatprep.subr.bf16.mxu1 %v3202_v27  ;;  %v304_v50 = vor.u32 %v302_v37, %v301_v41  ;;  %v305_v51 = vrot.slane %v301_v41, 4  ;;  %v606_v54 = vshll.u32 %v554_v47, 16  ;;  %v3209_v56 = vld [vmem:[%s4234_s1 + $0x140] sm:$0xff]   ;;  %vm853_vm7 = vcmask 1046532   ;;  %v276_v63 = vld [vmem:[%s3403_s19 + $0x8] sm:$0xf] }
  0x27   : > { %2828 = vmatpush3.bf16.msra.mxu0 %v3201_v26  ;;  %v455_v57 = vsel %vm3414_vm4, %v296_v48, %v454_v38  ;;  %v461_v58 = vsel %vm3421_vm5, %v297_v49, %v460_v39  ;;  %v599_v61 = vrot.slane %v597_v52, 4  ;;  %v602_v62 = vrot.slane %v600_v53, 5  ;;  %vm3444_vm10 = vmor %vm852_vm6, %vm853_vm7  ;;  %v277_v7 = vld [vmem:[%s3403_s19 + $0xc] sm:$0xf]  ;;  %v469_v21 = vld [vmem:[#allocation2 + $0x18] sm:$0xf] }
  0x28   : > { %2829 = vmatprep.subr.bf16.mxu0 %v3204_v29  ;;  %v464_v59 = vsel %vm3414_vm4, %v304_v50, %v463_v43  ;;  %v467_v60 = vsel %vm3421_vm5, %v305_v51, %v466_v46  ;;  %456 = vst [vmem:[#allocation2 + $0x8] sm:$0xf] %v455_v57  ;;  %462 = vst [vmem:[#allocation2 + $0xc] sm:$0x1] %v461_v58  ;;  %vm593_vm8 = vsmask.f32 3328 }
  0x29   : > { %2892 = vmatpush3.bf16.msra.mxu1 %v3203_v28  ;;  %465 = vst [vmem:[#allocation2 + $0x10] sm:$0xf] %v464_v59  ;;  %468 = vst [vmem:[#allocation2 + $0x14] sm:$0x1] %v467_v60  ;;  %vm594_vm9 = vsmask.f32 7440  ;;  %v603_v0 = vor.u32 %v602_v62, %v599_v61 }
  0x2a   : > { %2893 = vmatprep.subr.bf16.mxu1 %v3206_v31  ;;  %v3442_v1 = vrot.slane %v606_v54, 5  ;;  %v857_v2 = vrot.slane %v554_v47, 5  ;;  %v307_v3 = vshrl.u32 %v276_v63, 16  ;;  %v2576_v5 = vrot.slane %v3418_v44, 9  ;;  %vm3450_vm11 = vmor %vm593_vm8, %vm594_vm9  ;;  %v472_v22 = vld [vmem:[#allocation2 + $0x1c] sm:$0x1] }
  0x2b   : > { %2830 = vmatpush3.bf16.msra.mxu0 %v3205_v30  ;;  %v310_v6 = vshll.u32 %v276_v63, 16  ;;  %v3454_v9 = vrot.slane %v603_v0, 4  ;;  %v315_v11 = vshrl.u32 %v277_v7, 16  ;;  %v318_v14 = vshll.u32 %v277_v7, 16  ;;  %v475_v32 = vld [vmem:[#allocation2 + $0x20] sm:$0xf] }
  0x2c   : > { %2943 = vmatprep.subr.bf16.mxu0 %v3209_v56  ;;  %v309_v10 = vrot.slane %v307_v3, 7  ;;  %v858_v19 = vsel %vm3444_vm10, %v2576_v5, %v857_v2  ;;  %v278_v47 = vld [vmem:[%s3403_s19 + $0x10] sm:$0xf]  ;;  %v478_v48 = vld [vmem:[#allocation2 + $0x24] sm:$0x1] }
  0x2d   : > { %2894 = vmatpush3.bf16.msra.mxu1 %v3207_v55  ;;  %v317_v13 = vrot.slane %v315_v11, 7  ;;  %v609_v18 = vsel %vm3450_vm11, %v3454_v9, %v3442_v1  ;;  %v279_v53 = vld [vmem:[%s3403_s19 + $0x14] sm:$0xf]  ;;  %v3490_v58 = vld [vmem:[%s3403_s19 + $0x18] sm:$0xf]  ;;  %v3211_v60 = vld [vmem:[%s4234_s1 + $0x100] sm:$0xff]  }
  0x2e   : > { %v313_v12 = vrot.slane %v309_v10, 4  ;;  %v312_v20 = vor.u32 %v310_v6, %v309_v10  ;;  %v323_v62 = vshrl.u32 %v278_v47, 16  ;;  %v326_v63 = vshll.u32 %v278_v47, 16  ;;  %v481_v9 = vld [vmem:[#allocation2 + $0x28] sm:$0xf] }
  0x2f   : > { %v3456_v15 = vld [vmem:[#allocation2 + $0x8] sm:$0xf]  ;;  %v556_v16 = vld [vmem:[#allocation2 + $0xc] sm:$0x1]  ;;  %v320_v46 = vor.u32 %v318_v14, %v317_v13  ;;  %v321_v57 = vrot.slane %v317_v13, 4  ;;  %v331_v2 = vshrl.u32 %v279_v53, 16 }
  0x30   : > { %v3458_v17 = vld [vmem:[#allocation2 + $0x10] sm:$0xf]  ;;  %v558_v23 = vld [vmem:[#allocation2 + $0x14] sm:$0x1]  ;;  %v611_v24 = vshrl.u32 %v3456_v15, 16  ;;  %v614_v25 = vshll.u32 %v3456_v15, 16  ;;  %v2596_v31 = vcombine.low %v3418_v44, %v3456_v15  ;;  %v470_v43 = vsel %vm3414_vm4, %v312_v20, %v469_v21 }
  0x31   : > { %v620_v26 = vshll.u32 %v556_v16, 16  ;;  %v625_v27 = vshrl.u32 %v3458_v17, 16  ;;  %v628_v28 = vshll.u32 %v3458_v17, 16  ;;  %v634_v29 = vshll.u32 %v558_v23, 16  ;;  %471 = vst [vmem:[#allocation2 + $0x18] sm:$0xf] %v470_v43 }
  0x32   : > { %v861_v30 = vrot.slane %v556_v16, 5  ;;  %v613_v33 = vrot.slane %v611_v24, 4  ;;  %v616_v34 = vrot.slane %v614_v25, 5  ;;  %v2620_v39 = vcombine.low %v3456_v15, %v3458_v17  ;;  %v484_v10 = vld [vmem:[#allocation2 + $0x2c] sm:$0x1]  ;;  %v3218_v25 = vld [vmem:[%s4234_s1 + $0x1c0] sm:$0xff]  }
  0x33   : > { %v622_v35 = vrot.slane %v620_v26, 5  ;;  %v627_v36 = vrot.slane %v625_v27, 4  ;;  %v630_v37 = vrot.slane %v628_v28, 5  ;;  %v636_v38 = vrot.slane %v634_v29, 5  ;;  %v3212_v14 = vld [vmem:[%s4234_s1 + $0x148] sm:$0xff]   ;;  %v3214_v28 = vld [vmem:[%s4234_s1 + $0x150] sm:$0xff]   ;;  %3007 = vmatprep.subr.bf16.mxu1 %v3218_v25 }
  0x34   : > { %v2577_v40 = vrot.slane %v3456_v15, 9  ;;  %v617_v41 = vor.u32 %v616_v34, %v613_v33  ;;  %v473_v44 = vsel %vm3421_vm5, %v313_v12, %v472_v22  ;;  %1879 = vmatprep.mubr.bf16.mxu1 %v2620_v39  ;;  %v2578_v51 = vrot.slane %v3458_v17, 9  ;;  %v3512_v12 = vld [vmem:[%s3403_s19 + $0x1c] sm:$0xf]  ;;  %v487_v22 = vld [vmem:[#allocation2 + $0x30] sm:$0xf] }
  0x35   : > { %v631_v49 = vor.u32 %v630_v37, %v627_v36  ;;  %474 = vst [vmem:[#allocation2 + $0x1c] sm:$0x1] %v473_v44  ;;  %v865_v52 = vrot.slane %v558_v23, 5  ;;  %v476_v56 = vsel %vm3414_vm4, %v320_v46, %v475_v32  ;;  %v479_v1 = vsel %vm3421_vm5, %v321_v57, %v478_v48  ;;  %v490_v43 = vld [vmem:[#allocation2 + $0x34] sm:$0x1]  ;;  %v3217_v25 = vld [vmem:[%s4234_s1 + $0x118] sm:$0xff]  }
  0x36   : > { %v3482_v50 = vsel %vm3444_vm10, %v2577_v40, %v861_v30  ;;  %v618_v54 = vrot.slane %v617_v41, 4  ;;  %477 = vst [vmem:[#allocation2 + $0x20] sm:$0xf] %v476_v56  ;;  %v334_v3 = vshll.u32 %v279_v53, 16  ;;  %v325_v7 = vrot.slane %v323_v62, 7 }
  0x37   : > { %v2612_v55 = vcombine.low %v858_v19, %v3482_v50  ;;  %v632_v59 = vrot.slane %v631_v49, 4  ;;  %v3497_v61 = vsel %vm3444_vm10, %v2578_v51, %v865_v52  ;;  %480 = vst [vmem:[#allocation2 + $0x24] sm:$0x1] %v479_v1  ;;  %v339_v11 = vshrl.u32 %v3490_v58, 16  ;;  %v3213_v19 = vld [vmem:[%s4234_s1 + $0x108] sm:$0xff]   ;;  %v3215_v49 = vld [vmem:[%s4234_s1 + $0x110] sm:$0xff]  }
  0x38   : > { %v3501_v0 = vsel %vm3450_vm11, %v618_v54, %v622_v35  ;;  %v3519_v15 = vrot.slane %v331_v2, 7  ;;  %v342_v16 = vshll.u32 %v3490_v58, 16  ;;  %v328_v20 = vor.u32 %v326_v63, %v325_v7  ;;  %v559_v26 = vld [vmem:[#allocation2 + $0x18] sm:$0xf]  ;;  %v499_v62 = vld [vmem:[#allocation2 + $0x40] sm:$0xf] }
  0x39   : > { %1880 = vmatmul.mubr.bf16.vlgmr.msra.gmra.mrb[0].mxu1 %v2612_v55  ;;  %v3507_v5 = vsel %vm3450_vm11, %v632_v59, %v636_v38  ;;  %v2604_v6 = vcombine.low %v609_v18, %v3501_v0  ;;  %v347_v18 = vshrl.u32 %v3512_v12, 16  ;;  %v329_v21 = vrot.slane %v325_v7, 4  ;;  %v493_v51 = vld [vmem:[#allocation2 + $0x38] sm:$0xf]  ;;  %v3575_v7 = vld [vmem:[%s3403_s19 + $0x20] sm:$0xf] }
  0x3a   : > { %v3526_v23 = vrot.slane %v339_v11, 7  ;;  %v350_v24 = vshll.u32 %v3512_v12, 16  ;;  %v336_v29 = vor.u32 %v334_v3, %v3519_v15  ;;  %v337_v30 = vrot.slane %v3519_v15, 4  ;;  %v3581_v15 = vld [vmem:[#allocation2 + $0x50] sm:$0xf]  ;;  %v3221_v12 = vld [vmem:[%s4234_s1 + $0x160] sm:$0xff]  }
  0x3b   : > { %1782 = vmatprep.mubr.bf16.mxu0 %v2604_v6  ;;  %v3537_v32 = vrot.slane %v347_v18, 7  ;;  %v639_v34 = vshrl.u32 %v559_v26, 16  ;;  %v642_v35 = vshll.u32 %v559_v26, 16  ;;  %v2579_v38 = vrot.slane %v559_v26, 9  ;;  %v3216_v6 = vld [vmem:[%s4234_s1 + $0x158] sm:$0xff]  }
  0x3c   : > { %1783 = vmatmul.mubr.bf16.vlgmr.msra.gmra.mrb[0].mxu0 %v2596_v31  ;;  %v560_v27 = vld [vmem:[#allocation2 + $0x1c] sm:$0x1]  ;;  %v3219_v31 = vld [vmem:[%s4234_s1 + $0x180] sm:$0xff]   ;;  %v482_v40 = vsel %vm3414_vm4, %v328_v20, %v481_v9  ;;  %v485_v41 = vsel %vm3421_vm5, %v329_v21, %v484_v10  ;;  %v3551_v47 = vcombine.low %v3458_v17, %v559_v26  ;;  %v488_v55 = vsel %vm3414_vm4, %v336_v29, %v487_v22  ;;  %v544_v13 = vld [vmem:[#allocation2 + $0x8c] sm:$0x1] }
  0x3d   : > { %2944 = vmatpush3.bf16.msra.mxu0 %v3211_v60  ;;  %v648_v36 = vshll.u32 %v560_v27, 16  ;;  %v3544_v37 = vld [vmem:[#allocation2 + $0x20] sm:$0xf]  ;;  %v869_v39 = vrot.slane %v560_v27, 5  ;;  %v641_v44 = vrot.slane %v639_v34, 4  ;;  %v644_v46 = vrot.slane %v642_v35, 5  ;;  %3008 = vmatpush3.bf16.msra.mxu1 %v3219_v31 }
  0x3e   : > { %2945 = vmatprep.subr.bf16.mxu0 %v3212_v14  ;;  %v2621_v48 = vcombine.low %v559_v26, %v3544_v37  ;;  %483 = vst [vmem:[#allocation2 + $0x28] sm:$0xf] %v482_v40  ;;  %486 = vst [vmem:[#allocation2 + $0x2c] sm:$0x1] %v485_v41  ;;  %v562_v53 = vld [vmem:[#allocation2 + $0x24] sm:$0x1]  ;;  %v344_v3 = vor.u32 %v342_v16, %v3526_v23  ;;  %v491_v14 = vsel %vm3421_vm5, %v337_v30, %v490_v43 }
  0x3f   : > { %v3559_v52 = vsel %vm3444_vm10, %v2579_v38, %v869_v39  ;;  %v653_v54 = vshrl.u32 %v3544_v37, 16  ;;  %v656_v17 = vshll.u32 %v3544_v37, 16  ;;  %v645_v56 = vor.u32 %v644_v46, %v641_v44  ;;  %489 = vst [vmem:[#allocation2 + $0x30] sm:$0xf] %v488_v55  ;;  %v496_v60 = vld [vmem:[#allocation2 + $0x3c] sm:$0x1] }
  0x40   : > { %v650_v57 = vrot.slane %v648_v36, 5  ;;  %1887 = vmatprep.mubr.bf16.mxu1 %v2621_v48  ;;  %v3567_v58 = vcombine.low %v3497_v61, %v3559_v52  ;;  %v662_v59 = vshll.u32 %v562_v53, 16  ;;  %v2580_v2 = vrot.slane %v3544_v37, 9  ;;  %v3223_v16 = vld [vmem:[%s4234_s1 + $0x1c8] sm:$0xff]   ;;  %492 = vst [vmem:[#allocation2 + $0x34] sm:$0x1] %v491_v14 }
  0x41   : > { %2946 = vmatpush3.bf16.msra.mxu0 %v3213_v19  ;;  %v655_v63 = vrot.slane %v653_v54, 4  ;;  %v658_v1 = vrot.slane %v656_v17, 5  ;;  %v646_v9 = vrot.slane %v645_v56, 4  ;;  %v873_v10 = vrot.slane %v562_v53, 5  ;;  %3009 = vmatprep.subr.bf16.mxu1 %v3223_v16  ;;  %v3224_v40 = vld [vmem:[%s4234_s1 + $0x188] sm:$0xff]  }
  0x42   : > { %4254 = vst [vmem:[#allocation3_spill] sm:$0xff] %v3567_v58  ;;  %2947 = vmatprep.subr.bf16.mxu0 %v3214_v28  ;;  %1888 = vmatmul.mubr.bf16.gmra.mrb[4].mxu1 %v3567_v58  ;;  %v345_v11 = vrot.slane %v3526_v23, 4  ;;  %v664_v19 = vrot.slane %v662_v59, 5  ;;  %v494_v20 = vsel %vm3414_vm4, %v344_v3, %v493_v51  ;;  %v352_v21 = vor.u32 %v350_v24, %v3537_v32  ;;  %v505_v16 = vld [vmem:[#allocation2 + $0x58] sm:$0xf] }
  0x43   : > { %v659_v18 = vor.u32 %v658_v1, %v655_v63  ;;  %v3593_v22 = vsel %vm3450_vm11, %v646_v9, %v650_v57  ;;  %495 = vst [vmem:[#allocation2 + $0x38] sm:$0xf] %v494_v20  ;;  %v355_v26 = vshrl.u32 %v3575_v7, 16  ;;  %v358_v27 = vshll.u32 %v3575_v7, 16  ;;  %3010 = vmatpush3.bf16.msra.mxu1 %v3224_v40 }
  0x44   : > { %v497_v23 = vsel %vm3421_vm5, %v345_v11, %v496_v60  ;;  %v3607_v24 = vcombine.low %v3507_v5, %v3593_v22  ;;  %v500_v34 = vsel %vm3414_vm4, %v352_v21, %v499_v62  ;;  %v709_v35 = vshrl.u32 %v3581_v15, 16  ;;  %v3227_v60 = vld [vmem:[%s4234_s1 + $0x1d0] sm:$0xff]  }
  0x45   : > { %2948 = vmatpush3.bf16.msra.mxu0 %v3215_v49  ;;  %v563_v28 = vld [vmem:[#allocation2 + $0x28] sm:$0xf]  ;;  %v564_v29 = vld [vmem:[#allocation2 + $0x2c] sm:$0x1]  ;;  %v660_v30 = vrot.slane %v659_v18, 4  ;;  %v3614_v39 = vsel %vm3444_vm10, %v2580_v2, %v873_v10  ;;  %v3625_v48 = vrot.slane %v355_v26, 7  ;;  %3011 = vmatprep.subr.bf16.mxu1 %v3227_v60 }
  0x46   : > { %498 = vst [vmem:[#allocation2 + $0x3c] sm:$0x1] %v497_v23  ;;  %2949 = vmatprep.subr.bf16.mxu0 %v3216_v6  ;;  %v667_v36 = vshrl.u32 %v563_v28, 16  ;;  %v670_v31 = vshll.u32 %v563_v28, 16  ;;  %v676_v38 = vshll.u32 %v564_v29, 16  ;;  %1790 = vmatprep.mubr.bf16.mxu0 %v3607_v24  ;;  %v3621_v41 = vcombine.low %v3544_v37, %v563_v28  ;;  %v3222_v49 = vld [vmem:[%s4234_s1 + $0x120] sm:$0xff]  }
  0x47   : > { %501 = vst [vmem:[#allocation2 + $0x40] sm:$0xf] %v500_v34  ;;  %v3623_v43 = vld [vmem:[#allocation2 + $0x30] sm:$0xf]  ;;  %v2581_v44 = vrot.slane %v563_v28, 9  ;;  %v877_v46 = vrot.slane %v564_v29, 5  ;;  %1791 = vmatmul.mubr.bf16.gmra.mrb[4].mxu0 %v3551_v47  ;;  %v3647_v62 = vsel %vm3450_vm11, %v660_v30, %v664_v19  ;;  %v360_v26 = vor.u32 %v358_v27, %v3625_v48 }
  0x48   : > { %v669_v51 = vrot.slane %v667_v36, 4  ;;  %v672_v53 = vrot.slane %v670_v31, 5  ;;  %v678_v54 = vrot.slane %v676_v38, 5  ;;  %v2622_v17 = vcombine.low %v563_v28, %v3623_v43  ;;  %v3225_v37 = vld [vmem:[%s4234_s1 + $0x168] sm:$0xff]   ;;  %v566_v2 = vld [vmem:[#allocation2 + $0x34] sm:$0x1] }
  0x49   : > { %v3637_v55 = vsel %vm3444_vm10, %v2581_v44, %v877_v46  ;;  %v681_v56 = vshrl.u32 %v3623_v43, 16  ;;  %v684_v57 = vshll.u32 %v3623_v43, 16  ;;  %2950 = vmatpush3.bf16.msra.mxu0 %v3217_v25  ;;  %v2582_v59 = vrot.slane %v3623_v43, 9  ;;  %v3228_v6 = vld [vmem:[%s4234_s1 + $0x190] sm:$0xff]   ;;  %v508_v18 = vld [vmem:[#allocation2 + $0x5c] sm:$0x1] }
  0x4a   : > { %v673_v63 = vor.u32 %v672_v53, %v669_v51  ;;  %1895 = vmatprep.mubr.bf16.mxu1 %v2622_v17  ;;  %v3651_v1 = vcombine.low %v3614_v39, %v3637_v55  ;;  %v361_v3 = vrot.slane %v3625_v48, 4  ;;  %2951 = vmatprep.subr.bf16.mxu0 %v3221_v12  ;;  %v3657_v7 = vld [vmem:[#allocation2 + $0x38] sm:$0xf]  ;;  %v690_v11 = vshll.u32 %v566_v2, 16  ;;  %v3226_v19 = vld [vmem:[%s4234_s1 + $0x128] sm:$0xff]   ;;  %v3231_v60 = vld [vmem:[%s4234_s1 + $0x170] sm:$0xff]  }
  0x4b   : > { %v683_v9 = vrot.slane %v681_v56, 4  ;;  %v686_v10 = vrot.slane %v684_v57, 5  ;;  %v881_v14 = vrot.slane %v566_v2, 5  ;;  %v695_v23 = vshrl.u32 %v3657_v7, 16  ;;  %v3229_v12 = vld [vmem:[%s4234_s1 + $0x1d8] sm:$0xff]   ;;  %3012 = vmatpush3.bf16.msra.mxu1 %v3228_v6 }
  0x4c   : > { %4255 = vst [vmem:[#allocation4_spill] sm:$0xff] %v3651_v1  ;;  %v674_v20 = vrot.slane %v673_v63, 4  ;;  %1896 = vmatmul.mubr.bf16.gmra.mrb[8].mxu1 %v3651_v1  ;;  %v698_v25 = vshll.u32 %v3657_v7, 16  ;;  %v692_v29 = vrot.slane %v690_v11, 5  ;;  %v3681_v44 = vld [vmem:[#allocation2 + $0x54] sm:$0x1]  ;;  %3013 = vmatprep.subr.bf16.mxu1 %v3229_v12  ;;  %v509_v57 = vsel %vm3421_vm5, %v361_v3, %v508_v18 }
  0x4d   : > { %v568_v21 = vld [vmem:[#allocation2 + $0x3c] sm:$0x1]  ;;  %v687_v28 = vor.u32 %v686_v10, %v683_v9  ;;  %v3673_v36 = vsel %vm3444_vm10, %v2582_v59, %v881_v14  ;;  %2952 = vmatpush3.bf16.msra.mxu0 %v3222_v49  ;;  %v697_v27 = vrot.slane %v695_v23, 4  ;;  %v2583_v51 = vrot.slane %v3657_v7, 9  ;;  %v283_v53 = vld [vmem:[%s3403_s19 + $0x24] sm:$0xf] }
  0x4e   : > { %v704_v30 = vshll.u32 %v568_v21, 16  ;;  %v3669_v34 = vld [vmem:[#allocation2 + $0x40] sm:$0xf]  ;;  %v3677_v31 = vsel %vm3450_vm11, %v674_v20, %v678_v54  ;;  %v700_v38 = vrot.slane %v698_v25, 5  ;;  %2953 = vmatprep.subr.bf16.mxu0 %v3225_v37  ;;  %v3230_v54 = vld [vmem:[%s4234_s1 + $0x198] sm:$0xff]   ;;  %v885_v56 = vrot.slane %v568_v21, 5 }
  0x4f   : > { %v2623_v40 = vcombine.low %v3657_v7, %v3669_v34  ;;  %v3685_v46 = vcombine.low %v3647_v62, %v3677_v31  ;;  %v688_v48 = vrot.slane %v687_v28, 4  ;;  %v506_v37 = vsel %vm3414_vm4, %v360_v26, %v505_v16  ;;  %v284_v59 = vld [vmem:[%s3403_s19 + $0x28] sm:$0xf]  ;;  %510 = vst [vmem:[#allocation2 + $0x5c] sm:$0x1] %v509_v57  ;;  %v3232_v9 = vld [vmem:[%s4234_s1 + $0x130] sm:$0xff]   ;;  %3014 = vmatpush3.bf16.msra.mxu1 %v3230_v54 }
  0x50   : > { %v706_v49 = vrot.slane %v704_v30, 5  ;;  %v701_v17 = vor.u32 %v700_v38, %v697_v27  ;;  %507 = vst [vmem:[#allocation2 + $0x58] sm:$0xf] %v506_v37  ;;  %v3707_v2 = vrot.slane %v709_v35, 4  ;;  %v712_v6 = vshll.u32 %v3581_v15, 16  ;;  %v3233_v16 = vld [vmem:[%s4234_s1 + $0x1e0] sm:$0xff]  }
  0x51   : > { %1903 = vmatprep.mubr.bf16.mxu1 %v2623_v40  ;;  %1798 = vmatprep.mubr.bf16.mxu0 %v3685_v46  ;;  %v3703_v63 = vsel %vm3450_vm11, %v688_v48, %v692_v29  ;;  %v718_v3 = vshll.u32 %v3681_v44, 16  ;;  %v3717_v11 = vsel %vm3444_vm10, %v2583_v51, %v885_v56  ;;  %v363_v14 = vshrl.u32 %v283_v53, 16  ;;  %v511_v21 = vld [vmem:[#allocation2 + $0x60] sm:$0xf]  ;;  %v285_v25 = vld [vmem:[%s3403_s19 + $0x2c] sm:$0xf] }
  0x52   : > { %2954 = vmatpush3.bf16.msra.mxu0 %v3226_v19  ;;  %v702_v10 = vrot.slane %v701_v17, 4  ;;  %v366_v35 = vshll.u32 %v283_v53, 16  ;;  %v3724_v18 = vcombine.low %v3673_v36, %v3717_v11  ;;  %v714_v19 = vrot.slane %v712_v6, 5  ;;  %v3234_v26 = vld [vmem:[%s4234_s1 + $0x1a0] sm:$0xff]   ;;  %3015 = vmatprep.subr.bf16.mxu1 %v3233_v16  ;;  %v3235_v38 = vld [vmem:[%s4234_s1 + $0x1e8] sm:$0xff]  }
  0x53   : > { %1799 = vmatmul.mubr.bf16.gmra.mrb[8].mxu0 %v3621_v41  ;;  %v3726_v20 = vrot.slane %v718_v3, 5  ;;  %v2584_v23 = vrot.slane %v3581_v15, 9  ;;  %2955 = vmatprep.subr.bf16.mxu0 %v3231_v60  ;;  %v365_v28 = vrot.slane %v363_v14, 7  ;;  %v889_v29 = vrot.slane %v3681_v44, 5  ;;  %v514_v27 = vld [vmem:[#allocation2 + $0x64] sm:$0x1] }
  0x54   : > { %4256 = vst [vmem:[#allocation5_spill] sm:$0xff] %v3724_v18  ;;  %v3735_v12 = vsel %vm3450_vm11, %v702_v10, %v706_v49  ;;  %v371_v30 = vshrl.u32 %v284_v59, 16  ;;  %1904 = vmatmul.mubr.bf16.gmra.mrb[12].mxu1 %v3724_v18  ;;  %v374_v48 = vshll.u32 %v284_v59, 16  ;;  %v517_v51 = vld [vmem:[#allocation2 + $0x68] sm:$0xf]  ;;  %v379_v49 = vshrl.u32 %v285_v25, 16 }
  0x55   : > { %v3743_v40 = vcombine.low %v3703_v63, %v3735_v12  ;;  %v3748_v44 = vcombine.low %v3623_v43, %v3657_v7  ;;  %v368_v53 = vor.u32 %v366_v35, %v365_v28  ;;  %v369_v54 = vrot.slane %v365_v28, 4  ;;  %v520_v56 = vld [vmem:[#allocation2 + $0x6c] sm:$0x1]  ;;  %3016 = vmatpush3.bf16.msra.mxu1 %v3234_v26  ;;  %v3237_v14 = vld [vmem:[%s4234_s1 + $0x178] sm:$0xff]  }
  0x56   : > { %2956 = vmatpush3.bf16.msra.mxu0 %v3232_v9  ;;  %v373_v17 = vrot.slane %v371_v30, 7  ;;  %v715_v37 = vor.u32 %v714_v19, %v3707_v2  ;;  %v381_v57 = vrot.slane %v379_v49, 7  ;;  %v382_v60 = vshll.u32 %v285_v25, 16  ;;  %3017 = vmatprep.subr.bf16.mxu1 %v3235_v38  ;;  %v3236_v59 = vld [vmem:[%s4234_s1 + $0x1a8] sm:$0xff]   ;;  %v576_v6 = vld [vmem:[#allocation2 + $0x5c] sm:$0x1] }
  0x57   : > { %1806 = vmatprep.mubr.bf16.mxu0 %v3743_v40  ;;  %v3757_v7 = vld [vmem:[#allocation2 + $0x58] sm:$0xf]  ;;  %v512_v3 = vsel %vm3414_vm4, %v368_v53, %v511_v21  ;;  %v515_v2 = vsel %vm3421_vm5, %v369_v54, %v514_v27  ;;  %v732_v19 = vshll.u32 %v576_v6, 16  ;;  %v523_v25 = vld [vmem:[#allocation2 + $0x70] sm:$0xf]  ;;  %v3774_v26 = vsel %vm3444_vm10, %v2584_v23, %v889_v29  ;;  %2957 = vmatprep.subr.bf16.mxu0 %v3237_v14 }
  0x58   : > { %v376_v9 = vor.u32 %v374_v48, %v373_v17  ;;  %v377_v10 = vrot.slane %v373_v17, 4  ;;  %v723_v35 = vshrl.u32 %v3757_v7, 16  ;;  %v726_v16 = vshll.u32 %v3757_v7, 16  ;;  %513 = vst [vmem:[#allocation2 + $0x60] sm:$0xf] %v512_v3  ;;  %v3238_v21 = vld [vmem:[%s4234_s1 + $0x138] sm:$0xff]  }
  0x59   : > { %516 = vst [vmem:[#allocation2 + $0x64] sm:$0x1] %v515_v2  ;;  %v2585_v28 = vrot.slane %v3757_v7, 9  ;;  %v893_v30 = vrot.slane %v576_v6, 5  ;;  %3018 = vmatpush3.bf16.msra.mxu1 %v3236_v59  ;;  %v716_v38 = vrot.slane %v715_v37, 4  ;;  %v3239_v23 = vld [vmem:[%s4234_s1 + $0x1f0] sm:$0xff]   ;;  %v384_v17 = vor.u32 %v382_v60, %v381_v57 }
  0x5a   : > { %v518_v27 = vsel %vm3414_vm4, %v376_v9, %v517_v51  ;;  %v725_v48 = vrot.slane %v723_v35, 4  ;;  %v728_v49 = vrot.slane %v726_v16, 5  ;;  %v521_v53 = vsel %vm3421_vm5, %v377_v10, %v520_v56  ;;  %v286_v54 = vld [vmem:[%s3403_s19 + $0x30] sm:$0xf]  ;;  %v526_v51 = vld [vmem:[#allocation2 + $0x74] sm:$0x1]  ;;  %2958 = vmatpush3.bf16.msra.mxu0 %v3238_v21  ;;  %3019 = vmatprep.subr.bf16.mxu1 %v3239_v23 }
  0x5b   : > { %1807 = vmatmul.mubr.bf16.gmra.mrb[12].mxu0 %v3748_v44  ;;  %519 = vst [vmem:[#allocation2 + $0x68] sm:$0xf] %v518_v27  ;;  %v734_v29 = vrot.slane %v732_v19, 5  ;;  %522 = vst [vmem:[#allocation2 + $0x6c] sm:$0x1] %v521_v53  ;;  %v385_v6 = vrot.slane %v381_v57, 4  ;;  %v3787_v59 = vsel %vm3444_vm10, %v2585_v28, %v893_v30  ;;  %v524_v57 = vsel %vm3414_vm4, %v384_v17, %v523_v25 }
  0x5c   : > { %v387_v3 = vshrl.u32 %v286_v54, 16  ;;  %v729_v37 = vor.u32 %v728_v49, %v725_v48  ;;  %v390_v56 = vshll.u32 %v286_v54, 16  ;;  %v3240_v9 = vld [vmem:[%s4234_s1 + $0x1b0] sm:$0xff]   ;;  %v3241_v14 = vld [vmem:[%s4234_s1 + $0x1f8] sm:$0xff]   ;;  %v721_v16 = vsel %vm3450_vm11, %v716_v38, %v3726_v20  ;;  %525 = vst [vmem:[#allocation2 + $0x70] sm:$0xf] %v524_v57 }
  0x5d   : > { %v527_v2 = vsel %vm3421_vm5, %v385_v6, %v526_v51  ;;  %v2600_v21 = vcombine.low %v3581_v15, %v3757_v7  ;;  %v3809_v25 = vld [vmem:[%s3403_s19 + $0x34] sm:$0xf]  ;;  %3020 = vmatpush3.bf16.msra.mxu1 %v3240_v9  ;;  %v3242_v28 = vld [vmem:[%s4234_s1 + $0x1b8] sm:$0xff]   ;;  %v2616_v20 = vcombine.low %v3774_v26, %v3787_v59  ;;  %v3828_v57 = vld [vmem:[%s4234_s1 + $0x200] sm:$0xff]  }
  0x5e   : > { %v389_v60 = vrot.slane %v387_v3, 7  ;;  %v730_v19 = vrot.slane %v729_v37, 4  ;;  %528 = vst [vmem:[#allocation2 + $0x74] sm:$0x1] %v527_v2  ;;  %v395_v15 = vshrl.u32 %v3809_v25, 16  ;;  %3021 = vmatprep.subr.bf16.mxu1 %v3241_v14  ;;  %3103 = vmatprep.subr.bf16.mxu0 %v3828_v57 }
  0x5f   : > { %v577_v27 = vld [vmem:[#allocation2 + $0x60] sm:$0xf]  ;;  %v529_v6 = vld [vmem:[#allocation2 + $0x78] sm:$0xf]  ;;  %v532_v3 = vld [vmem:[#allocation2 + $0x7c] sm:$0x1] }
  0x60   : > { %v578_v38 = vld [vmem:[#allocation2 + $0x64] sm:$0x1]  ;;  %v392_v48 = vor.u32 %v390_v56, %v389_v60  ;;  %v393_v49 = vrot.slane %v389_v60, 4  ;;  %v3821_v53 = vsel %vm3450_vm11, %v730_v19, %v734_v29  ;;  %v2624_v54 = vcombine.low %v3757_v7, %v577_v27 }
  0x61   : > { %v737_v23 = vshrl.u32 %v577_v27, 16  ;;  %v740_v17 = vshll.u32 %v577_v27, 16  ;;  %v2608_v51 = vcombine.low %v721_v16, %v3821_v53  ;;  %v746_v26 = vshll.u32 %v578_v38, 16  ;;  %3022 = vmatpush3.bf16.msra.mxu1 %v3242_v28 }
  0x62   : > { %v579_v37 = vld [vmem:[#allocation2 + $0x68] sm:$0xf]  ;;  %v2586_v9 = vrot.slane %v577_v27, 9  ;;  %v897_v56 = vrot.slane %v578_v38, 5  ;;  %1911 = vmatprep.mubr.bf16.mxu1 %v2624_v54  ;;  %v580_v29 = vld [vmem:[#allocation2 + $0x6c] sm:$0x1]  ;;  %v530_v28 = vsel %vm3414_vm4, %v392_v48, %v529_v6 }
  0x63   : > { %v739_v60 = vrot.slane %v737_v23, 4  ;;  %v742_v2 = vrot.slane %v740_v17, 5  ;;  %v751_v7 = vshrl.u32 %v579_v37, 16  ;;  %v754_v14 = vshll.u32 %v579_v37, 16  ;;  %1814 = vmatprep.mubr.bf16.mxu0 %v2608_v51  ;;  %1912 = vmatmul.mubr.bf16.gmra.mrb[16].mxu1 %v2616_v20  ;;  %v3835_v23 = vld [vmem:[#allocation2 + $0x70] sm:$0xf] }
  0x64   : > { %v748_v19 = vrot.slane %v746_v26, 5  ;;  %v760_v16 = vshll.u32 %v580_v29, 16  ;;  %v3832_v30 = vsel %vm3444_vm10, %v2586_v9, %v897_v56  ;;  %1815 = vmatmul.mubr.bf16.gmra.mrb[16].mxu0 %v2600_v21  ;;  %v2587_v43 = vrot.slane %v579_v37, 9  ;;  %531 = vst [vmem:[#allocation2 + $0x78] sm:$0xf] %v530_v28 }
  0x65   : > { %v743_v38 = vor.u32 %v742_v2, %v739_v60  ;;  %v753_v35 = vrot.slane %v751_v7, 4  ;;  %v756_v10 = vrot.slane %v754_v14, 5  ;;  %v901_v17 = vrot.slane %v580_v29, 5  ;;  %v582_v51 = vld [vmem:[#allocation2 + $0x74] sm:$0x1] }
  0x66   : > { %v762_v54 = vrot.slane %v760_v16, 5  ;;  %v533_v20 = vsel %vm3421_vm5, %v393_v49, %v532_v3  ;;  %v2625_v9 = vcombine.low %v579_v37, %v3835_v23  ;;  %v765_v56 = vshrl.u32 %v3835_v23, 16  ;;  %v288_v3 = vld [vmem:[%s3403_s19 + $0x38] sm:$0xf]  ;;  %v538_v16 = vld [vmem:[#allocation2 + $0x84] sm:$0x1] }
  0x67   : > { %v744_v26 = vrot.slane %v743_v38, 4  ;;  %v757_v21 = vor.u32 %v756_v10, %v753_v35  ;;  %534 = vst [vmem:[#allocation2 + $0x7c] sm:$0x1] %v533_v20  ;;  %v3845_v60 = vsel %vm3444_vm10, %v2587_v43, %v901_v17  ;;  %v768_v29 = vshll.u32 %v3835_v23, 16 }
  0x68   : > { %v397_v48 = vrot.slane %v395_v15, 7  ;;  %1919 = vmatprep.mubr.bf16.mxu1 %v2625_v9  ;;  %v3854_v10 = vcombine.low %v3832_v30, %v3845_v60  ;;  %v767_v35 = vrot.slane %v765_v56, 4  ;;  %v3857_v2 = vcombine.low %v577_v27, %v579_v37  ;;  %v541_v9 = vld [vmem:[#allocation2 + $0x88] sm:$0xf] }
  0x69   : > { %v3850_v49 = vsel %vm3450_vm11, %v744_v26, %v748_v19  ;;  %v758_v6 = vrot.slane %v757_v21, 4  ;;  %v770_v7 = vrot.slane %v768_v29, 5  ;;  %v774_v43 = vshll.u32 %v582_v51, 16  ;;  %v535_v19 = vld [vmem:[#allocation2 + $0x80] sm:$0xf] }
  0x6a   : > { %4257 = vst [vmem:[#allocation6_spill] sm:$0xff] %v3854_v10  ;;  %v398_v14 = vshll.u32 %v3809_v25, 16  ;;  %v2588_v38 = vrot.slane %v3835_v23, 9  ;;  %v401_v17 = vrot.slane %v397_v48, 4  ;;  %v403_v28 = vshrl.u32 %v288_v3, 16 }
  0x6b   : > { %v3862_v15 = vsel %vm3450_vm11, %v758_v6, %v762_v54  ;;  %1920 = vmatmul.mubr.bf16.gmra.mrb[20].mxu1 %v3854_v10  ;;  %v771_v27 = vor.u32 %v770_v7, %v767_v35  ;;  %v406_v26 = vshll.u32 %v288_v3, 16  ;;  %v905_v25 = vrot.slane %v582_v51, 5  ;;  %v583_v56 = vld [vmem:[#allocation2 + $0x78] sm:$0xf] }
  0x6c   : > { %v3867_v20 = vcombine.low %v3850_v49, %v3862_v15  ;;  %v400_v37 = vor.u32 %v398_v14, %v397_v48  ;;  %v405_v21 = vrot.slane %v403_v28, 7  ;;  %v539_v54 = vsel %vm3421_vm5, %v401_v17, %v538_v16  ;;  %v289_v28 = vld [vmem:[%s3403_s19 + $0x3c] sm:$0xf] }
  0x6d   : > { %540 = vst [vmem:[#allocation2 + $0x84] sm:$0x1] %v539_v54  ;;  %v776_v48 = vrot.slane %v774_v43, 5  ;;  %v779_v35 = vshrl.u32 %v583_v56, 16  ;;  %v782_v51 = vshll.u32 %v583_v56, 16  ;;  %v772_v7 = vrot.slane %v771_v27, 4 }
  0x6e   : > { %1822 = vmatprep.mubr.bf16.mxu0 %v3867_v20  ;;  %v584_v29 = vld [vmem:[#allocation2 + $0x7c] sm:$0x1]  ;;  %v536_v6 = vsel %vm3414_vm4, %v400_v37, %v535_v19  ;;  %v2589_v14 = vrot.slane %v583_v56, 9  ;;  %v408_v17 = vor.u32 %v406_v26, %v405_v21  ;;  %v409_v1 = vrot.slane %v405_v21, 4 }
  0x6f   : > { %1823 = vmatmul.mubr.bf16.gmra.mrb[20].mxu0 %v3857_v2  ;;  %v788_v3 = vshll.u32 %v584_v29, 16  ;;  %537 = vst [vmem:[#allocation2 + $0x80] sm:$0xf] %v536_v6  ;;  %v909_v16 = vrot.slane %v584_v29, 5  ;;  %v781_v33 = vrot.slane %v779_v35, 4  ;;  %v784_v10 = vrot.slane %v782_v51, 5 }
  0x70   : > { %v3879_v19 = vsel %vm3444_vm10, %v2588_v38, %v905_v25  ;;  %v542_v43 = vsel %vm3414_vm4, %v408_v17, %v541_v9  ;;  %v411_v37 = vshrl.u32 %v289_v28, 16  ;;  %v414_v54 = vshll.u32 %v289_v28, 16  ;;  %v547_v29 = vld [vmem:[#allocation2 + $0x90] sm:$0xf] }
  0x71   : > { %v790_v18 = vrot.slane %v788_v3, 5  ;;  %v785_v58 = vor.u32 %v784_v10, %v781_v33  ;;  %v3885_v27 = vsel %vm3444_vm10, %v2589_v14, %v909_v16  ;;  %543 = vst [vmem:[#allocation2 + $0x88] sm:$0xf] %v542_v43  ;;  %v545_v26 = vsel %vm3421_vm5, %v409_v1, %v544_v13 }
  0x72   : > { %4258 = vst [vmem:[#allocation7_spill] sm:$0xff] %v3885_v27  ;;  %546 = vst [vmem:[#allocation2 + $0x8c] sm:$0x1] %v545_v26  ;;  %v3891_v38 = vrot.slane %v411_v37, 7  ;;  %v353_v25 = vrot.slane %v3537_v32, 4  ;;  %v3896_v33 = vsel %vm3450_vm11, %v772_v7, %v776_v48  ;;  %v3899_v9 = vcombine.low %v3835_v23, %v583_v56 }
  0x73   : > { %v786_v10 = vrot.slane %v785_v58, 4  ;;  %v920_v13 = vshrl.u32 %v3669_v34, 16  ;;  %v3904_v35 = vcombine.low %v3879_v19, %v3885_v27  ;;  %v923_v28 = vshll.u32 %v3669_v34, 16 }
  0x74   : > { %v586_v6 = vld [vmem:[#allocation2 + $0x84] sm:$0x1]  ;;  %v416_v3 = vor.u32 %v414_v54, %v3891_v38 }
  0x75   : > { %4259 = vst [vmem:[#allocation8_spill] sm:$0xff] %v3904_v35  ;;  %v802_v51 = vshll.u32 %v586_v6, 16  ;;  %v913_v32 = vrot.slane %v586_v6, 5  ;;  %v3909_v48 = vsel %vm3450_vm11, %v786_v10, %v790_v18  ;;  %v502_v54 = vld [vmem:[#allocation2 + $0x44] sm:$0x1]  ;;  %v922_v26 = vrot.slane %v920_v13, 4 }
  0x76   : > { %v585_v1 = vld [vmem:[#allocation2 + $0x80] sm:$0xf]  ;;  %4260 = vst [vmem:[#allocation9_spill] sm:$0xff] %v3909_v48  ;;  %v3913_v14 = vcombine.low %v3896_v33, %v3909_v48  ;;  %v548_v16 = vsel %vm3414_vm4, %v416_v3, %v547_v29  ;;  %v925_v13 = vrot.slane %v923_v28, 5 }
  0x77   : > { %v2626_v58 = vcombine.low %v583_v56, %v585_v1  ;;  %v793_v7 = vshrl.u32 %v585_v1, 16  ;;  %v796_v23 = vshll.u32 %v585_v1, 16  ;;  %v2590_v17 = vrot.slane %v585_v1, 9  ;;  %549 = vst [vmem:[#allocation2 + $0x90] sm:$0xf] %v548_v16 }
  0x78   : > { %1830 = vmatprep.mubr.bf16.mxu0 %v3913_v14  ;;  %v587_v18 = vld [vmem:[#allocation2 + $0x88] sm:$0xf]  ;;  %v804_v56 = vrot.slane %v802_v51, 5  ;;  %v503_v16 = vsel %vm3421_vm5, %v353_v25, %v502_v54  ;;  %v926_v28 = vor.u32 %v925_v13, %v922_v26  ;;  %v4261_v13 = vcombine.low %v3482_v50, %v3497_v61 }
  0x79   : > { %1927 = vmatprep.mubr.bf16.mxu1 %v2626_v58  ;;  %v795_v43 = vrot.slane %v793_v7, 4  ;;  %v798_v37 = vrot.slane %v796_v23, 5  ;;  %1831 = vmatmul.mubr.bf16.gmra.mrb[24].mxu0 %v3899_v9  ;;  %v588_v10 = vld [vmem:[#allocation2 + $0x8c] sm:$0x1]  ;;  %v807_v29 = vshrl.u32 %v587_v18, 16  ;;  %v810_v6 = vshll.u32 %v587_v18, 16 }
  0x7a   : > { %1928 = vmatmul.mubr.bf16.gmra.mrb[24].mxu1 %v3904_v35  ;;  %v3923_v3 = vsel %vm3444_vm10, %v2590_v17, %v913_v32  ;;  %v816_v58 = vshll.u32 %v588_v10, 16  ;;  %v2591_v7 = vrot.slane %v587_v18, 9  ;;  %v917_v23 = vrot.slane %v588_v10, 5  ;;  %504 = vst [vmem:[#allocation2 + $0x44] sm:$0x1] %v503_v16  ;;  %v3244_v50 = vld [vmem:[%s4234_s1 + $0x208] sm:$0xff]  }
  0x7b   : > { %v799_v42 = vor.u32 %v798_v37, %v795_v43  ;;  %v809_v51 = vrot.slane %v807_v29, 4  ;;  %v812_v35 = vrot.slane %v810_v6, 5  ;;  %v417_v10 = vrot.slane %v3891_v38, 4  ;;  %v3950_v6 = vld [vmem:[#allocation2 + $0x48] sm:$0xf] }
  0x7c   : > { %v3929_v43 = vsel %vm3444_vm10, %v2591_v7, %v917_v23  ;;  %v818_v48 = vrot.slane %v816_v58, 5  ;;  %v2592_v29 = vrot.slane %v3669_v34, 9  ;;  %v550_v58 = vld [vmem:[#allocation2 + $0x94] sm:$0x1]  ;;  %v572_v38 = vld [vmem:[#allocation2 + $0x4c] sm:$0x1] }
  0x7d   : > { %v800_v21 = vrot.slane %v799_v42, 4  ;;  %v813_v37 = vor.u32 %v812_v35, %v809_v51  ;;  %v3935_v32 = vcombine.low %v3923_v3, %v3929_v43  ;;  %v3947_v42 = vcombine.low %v585_v1, %v587_v18 }
  0x7e   : > { %v3931_v27 = vld [vmem:[#allocation2 + $0x90] sm:$0xf]  ;;  %v2594_v7 = vrot.slane %v3950_v6, 9  ;;  %v960_v23 = vshrl.u32 %v3950_v6, 16  ;;  %v963_v16 = vshll.u32 %v3950_v6, 16  ;;  %v993_v51 = vrot.slane %v572_v38, 5 }
  0x7f   : > { %v3939_v25 = vsel %vm3450_vm11, %v800_v21, %v804_v56  ;;  %v814_v17 = vrot.slane %v813_v37, 4  ;;  %v2627_v54 = vcombine.low %v587_v18, %v3931_v27  ;;  %v927_v18 = vrot.slane %v926_v28, 4 }
  0x81   : > { %v3945_v35 = vsel %vm3450_vm11, %v814_v17, %v818_v48  ;;  %1935 = vmatprep.mubr.bf16.mxu1 %v2627_v54  ;;  %v570_v56 = vld [vmem:[#allocation2 + $0x44] sm:$0x1]  ;;  %v551_v48 = vsel %vm3421_vm5, %v417_v10, %v550_v58  ;;  %v3978_v54 = vsel %vm3444_vm10, %v2594_v7, %v993_v51  ;;  %v962_v10 = vrot.slane %v960_v23, 4 }
  0x82   : > { %v3954_v21 = vcombine.low %v3939_v25, %v3945_v35  ;;  %1936 = vmatmul.mubr.bf16.gmra.mrb[28].mxu1 %v3935_v32  ;;  %v953_v1 = vrot.slane %v570_v56, 5  ;;  %v929_v26 = vshll.u32 %v570_v56, 16  ;;  %552 = vst [vmem:[#allocation2 + $0x94] sm:$0x1] %v551_v48  ;;  %v4262_v56 = vcombine.low %v3501_v0, %v3507_v5  ;;  %v3246_v0 = vld [vmem:[%s4234_s1 + $0x218] sm:$0xff]  }
  0x83   : > { %2073 = vmatprep.mubr.bf16.mxu1 %v3607_v24  ;;  %v2641_v7 = vcombine.low %v3845_v60, %v3879_v19  ;;  %v4268_v60 = vld [vmem:[#allocation7_spill] sm:$0xff] }
  0x84   : > { %1838 = vmatprep.mubr.bf16.mxu0 %v3954_v21  ;;  %v3967_v45 = vsel %vm3444_vm10, %v2592_v29, %v953_v1  ;;  %v931_v24 = vrot.slane %v929_v26, 5  ;;  %v965_v29 = vrot.slane %v963_v16, 5  ;;  %v592_v26 = vld [vmem:[#allocation2 + $0x9c] sm:$0x1]  ;;  %v2642_v19 = vcombine.low %v4268_v60, %v3923_v3 }
  0x85   : > { %1839 = vmatmul.mubr.bf16.gmra.mrb[28].mxu0 %v3947_v42  ;;  %v2639_v37 = vcombine.low %v3717_v11, %v3967_v45  ;;  %v2648_v58 = vcombine.low %v3967_v45, %v3978_v54  ;;  %v969_v11 = vshll.u32 %v572_v38, 16  ;;  %v3252_v45 = vld [vmem:[%s4236_s3 + $0x8] sm:$0xff]  }
  0x86   : > { %1976 = vmatprep.mubr.bf16.mxu0 %v4261_v13  ;;  %v932_v17 = vsel %vm3450_vm11, %v927_v18, %v931_v24  ;;  %v966_v61 = vor.u32 %v965_v29, %v962_v10  ;;  %v983_v24 = vshll.u32 %v592_v26, 16  ;;  %v4267_v13 = vcombine.low %v3821_v53, %v3850_v49 }
  0x87   : > { %v2631_v28 = vcombine.low %v3735_v12, %v932_v17  ;;  %v4263_v12 = vcombine.low %v3559_v52, %v3614_v39  ;;  %v971_v1 = vrot.slane %v969_v11, 5  ;;  %v4264_v52 = vcombine.low %v3593_v22, %v3647_v62  ;;  %v3248_v22 = vld [vmem:[%s4234_s1 + $0x228] sm:$0xff]  }
  0x88   : > { %v967_v48 = vrot.slane %v966_v61, 4  ;;  %v4265_v39 = vcombine.low %v3637_v55, %v3673_v36  ;;  %v4266_v55 = vcombine.low %v3677_v31, %v3703_v63  ;;  %v2644_v62 = vcombine.low %v3669_v34, %v3950_v6  ;;  %v3249_v36 = vld [vmem:[%s4234_s1 + $0x230] sm:$0xff]   ;;  %v3250_v34 = vld [vmem:[%s4234_s1 + $0x238] sm:$0xff]   ;;  %v4270_v61 = vld [vmem:[#allocation3_spill] sm:$0xff] }
  0x89   : > { %v934_v31 = vshrl.u32 %v3931_v27, 16  ;;  %v937_v63 = vshll.u32 %v3931_v27, 16  ;;  %v590_v18 = vld [vmem:[#allocation2 + $0x94] sm:$0x1]  ;;  %v985_v10 = vrot.slane %v983_v24, 5  ;;  %v4271_v11 = vld [vmem:[#allocation4_spill] sm:$0xff] }
  0x8a   : > { %2074 = vmatmul.mubr.bf16.vlgmr.msra.gmra.mrb[32].mxu1 %v3551_v47  ;;  %v3245_v47 = vld [vmem:[%s4234_s1 + $0x210] sm:$0xff]   ;;  %v972_v5 = vsel %vm3450_vm11, %v967_v48, %v971_v1  ;;  %v943_v16 = vshll.u32 %v590_v18, 16  ;;  %v957_v29 = vrot.slane %v590_v18, 5 }
  0x8b   : > { %2081 = vmatprep.mubr.bf16.mxu1 %v3685_v46  ;;  %v3247_v46 = vld [vmem:[%s4234_s1 + $0x220] sm:$0xff]  }
  0x8d   : > { %1977 = vmatmul.mubr.bf16.vlgmr.msra.gmra.mrb[32].mxu0 %v4262_v56  ;;  %v4272_v56 = vld [vmem:[#allocation5_spill] sm:$0xff] }
  0x8e   : > { %3104 = vmatpush3.bf16.msra.mxu0 %v3828_v57  ;;  %1984 = vmatprep.mubr.bf16.mxu0 %v4263_v12 }
  0x8f   : > { %3105 = vmatprep.subr.bf16.mxu0 %v3244_v50 }
  0x92   : > { %3106 = vmatpush3.bf16.msra.mxu0 %v3244_v50  ;;  %2082 = vmatmul.mubr.bf16.gmra.mrb[36].mxu1 %v3621_v41  ;;  %v2646_v41 = vcombine.low %v932_v17, %v972_v5  ;;  %v945_v17 = vrot.slane %v943_v16, 5 }
  0x93   : > { %3107 = vmatprep.subr.bf16.mxu0 %v3245_v47  ;;  %2089 = vmatprep.mubr.bf16.mxu1 %v3743_v40  ;;  %v4026_v40 = vld [vmem:[#allocation2 + $0x98] sm:$0xf] }
  0x94   : > { %v974_v57 = vshrl.u32 %v4026_v40, 16  ;;  %v977_v6 = vshll.u32 %v4026_v40, 16  ;;  %v2645_v8 = vcombine.low %v3931_v27, %v4026_v40 }
  0x95   : > { %1985 = vmatmul.mubr.bf16.gmra.mrb[36].mxu0 %v4264_v52 }
  0x96   : > { %1992 = vmatprep.mubr.bf16.mxu0 %v4265_v39  ;;  %3108 = vmatpush3.bf16.msra.mxu0 %v3245_v47  ;;  %v979_v38 = vrot.slane %v977_v6, 5  ;;  %v3251_v47 = vld [vmem:[%s4236_s3] sm:$0xff]  }
  0x97   : > { %3109 = vmatprep.subr.bf16.mxu0 %v3246_v0  ;;  %3135 = vmatprep.subr.bf16.mxu1 %v3251_v47  ;;  %v4092_v39 = vld [vmem:[%s4235_s2] ss:$0 sm:$0xff] }
  0x98   : > { %3136 = vmatpush3.bf16.msra.mxu1 %v3251_v47 }
  0x99   : > { %3137 = vmatprep.subr.bf16.mxu1 %v3252_v45 }
  0x9a   : > { %2090 = vmatmul.mubr.bf16.gmra.mrb[40].mxu1 %v3748_v44  ;;  %3110 = vmatpush3.bf16.msra.mxu0 %v3246_v0  ;;  %v2640_v44 = vcombine.low %v3787_v59, %v3832_v30  ;;  %v936_v59 = vrot.slane %v934_v31, 4  ;;  %v939_v30 = vrot.slane %v937_v63, 5 }
  0x9b   : > { %2097 = vmatprep.mubr.bf16.mxu1 %v2646_v41  ;;  %3111 = vmatprep.subr.bf16.mxu0 %v3247_v46 }
  0x9c   : > { %v940_v23 = vor.u32 %v939_v30, %v936_v59  ;;  %3138 = vmatpush3.bf16.msra.mxu1 %v3252_v45 }
  0x9d   : > { %1993 = vmatmul.mubr.bf16.gmra.mrb[40].mxu0 %v4266_v55  ;;  %v3255_v55 = vld [vmem:[%s4236_s3 + $0x20] sm:$0xff]  }
  0x9e   : > { %2000 = vmatprep.mubr.bf16.mxu0 %v2639_v37  ;;  %3112 = vmatpush3.bf16.msra.mxu0 %v3247_v46  ;;  %v941_v37 = vrot.slane %v940_v23, 4 }
  0x9f   : > { %3113 = vmatprep.subr.bf16.mxu0 %v3248_v22 }
  0xa0   : > { %v946_v53 = vsel %vm3450_vm11, %v941_v37, %v945_v17  ;;  %v3257_v17 = vld [vmem:[%s4236_s3 + $0x30] sm:$0xff]  }
  0xa1   : > { %v2635_v50 = vcombine.low %v3945_v35, %v946_v53 }
  0xa2   : > { %2098 = vmatmul.mubr.bf16.gmra.mrb[44].mxu1 %v2644_v62  ;;  %3114 = vmatpush3.bf16.msra.mxu0 %v3248_v22 }
  0xa3   : > { %2105 = vmatprep.mubr.bf16.mxu1 %v3867_v20  ;;  %3115 = vmatprep.subr.bf16.mxu0 %v3249_v36  ;;  %v976_v20 = vrot.slane %v974_v57, 4 }
  0xa5   : > { %2001 = vmatmul.mubr.bf16.gmra.mrb[44].mxu0 %v2631_v28  ;;  %v980_v51 = vor.u32 %v979_v38, %v976_v20  ;;  %v3256_v20 = vld [vmem:[%s4236_s3 + $0x28] sm:$0xff]  }
  0xa6   : > { %2008 = vmatprep.mubr.bf16.mxu0 %v2640_v44  ;;  %3116 = vmatpush3.bf16.msra.mxu0 %v3249_v36 }
  0xa7   : > { %3117 = vmatprep.subr.bf16.mxu0 %v3250_v34  ;;  %v981_v28 = vrot.slane %v980_v51, 4 }
  0xa9   : > { %v986_v49 = vsel %vm3450_vm11, %v981_v28, %v985_v10 }
  0xaa   : > { %2106 = vmatmul.mubr.bf16.gmra.mrb[48].mxu1 %v3857_v2  ;;  %3118 = vmatpush3.bf16.msra.mxu0 %v3250_v34  ;;  %v2633_v2 = vcombine.low %v3862_v15, %v3896_v33  ;;  %v2647_v33 = vcombine.low %v946_v53, %v986_v49 }
  0xab   : > { %2113 = vmatprep.mubr.bf16.mxu1 %v3913_v14  ;;  %v2593_v14 = vrot.slane %v3931_v27, 9  ;;  %v4274_v27 = vld [vmem:[#allocation8_spill] sm:$0xff] }
  0xad   : > { %2009 = vmatmul.mubr.bf16.gmra.mrb[48].mxu0 %v4267_v13  ;;  %v958_v15 = vsel %vm3444_vm10, %v2593_v14, %v957_v29 }
  0xae   : > { %2016 = vmatprep.mubr.bf16.mxu0 %v2641_v7 }
  0xb2   : > { %2114 = vmatmul.mubr.bf16.gmra.mrb[52].mxu1 %v3899_v9  ;;  %v4269_v9 = vld [vmem:[#allocation9_spill] sm:$0xff] }
  0xb3   : > { %2121 = vmatprep.mubr.bf16.mxu1 %v3954_v21  ;;  %v2634_v3 = vcombine.low %v4269_v9, %v3939_v25  ;;  %v2643_v21 = vcombine.low %v3929_v43, %v958_v15  ;;  %v4273_v43 = vld [vmem:[#allocation6_spill] sm:$0xff]  ;;  %v2595_v25 = vrot.slane %v4026_v40, 9 }
  0xb4   : > { %v3258_v9 = vld [vmem:[%s4236_s3 + $0x38] sm:$0xff]  }
  0xb5   : > { %2017 = vmatmul.mubr.bf16.gmra.mrb[52].mxu0 %v2633_v2 }
  0xb6   : > { %2024 = vmatprep.mubr.bf16.mxu0 %v2642_v19 }
  0xba   : > { %2122 = vmatmul.mubr.bf16.gmra.mrb[56].mxu1 %v3947_v42  ;;  %v997_v42 = vrot.slane %v592_v26, 5 }
  0xbb   : > { %2129 = vmatprep.mubr.bf16.mxu1 %v2647_v33 }
  0xbc   : > { %v998_v35 = vsel %vm3444_vm10, %v2595_v25, %v997_v42 }
  0xbd   : > { %2025 = vmatmul.mubr.bf16.gmra.mrb[56].mxu0 %v2634_v3  ;;  %v2649_v12 = vcombine.low %v958_v15, %v998_v35 }
  0xbe   : > { %2032 = vmatprep.mubr.bf16.mxu0 %v2643_v21 }
  0xc2   : > { %2130 = vmatmul.mubr.bf16.gmra.mrb[60].mxu1 %v2645_v8 }
  0xc5   : > { %2033 = vmatmul.mubr.bf16.gmra.mrb[60].mxu0 %v2635_v50 }
  0xc6   : > { %3119 = vmatprep.mubr.bf16.mxu0 %v4270_v61 }
  0xcd   : > { %3120 = vmatmul.mubr.bf16.vlgmr.msra.gmra.mrb[64].mxu0 %v4271_v11 }
  0xce   : > { %3123 = vmatprep.mubr.bf16.mxu0 %v4272_v56 }
  0xd5   : > { %3124 = vmatmul.mubr.bf16.gmra.mrb[68].mxu0 %v2648_v58 }
  0xd6   : > { %3127 = vmatprep.mubr.bf16.mxu0 %v4273_v43 }
  0xdd   : > { %3128 = vmatmul.mubr.bf16.gmra.mrb[72].mxu0 %v4274_v27 }
  0xde   : > { %3131 = vmatprep.mubr.bf16.mxu0 %v3935_v32  ;;  %v3253_v32 = vld [vmem:[%s4236_s3 + $0x10] sm:$0xff]  }
  0xdf   : > { %3139 = vmatprep.subr.bf16.mxu1 %v3253_v32 }
  0xe0   : > { %3140 = vmatpush3.bf16.msra.mxu1 %v3253_v32 }
  0xe1   : > { %3141 = vmatprep.subr.bf16.mxu1 %v3254_v4 }
  0xe4   : > { %3142 = vmatpush3.bf16.msra.mxu1 %v3254_v4 }
  0xe5   : > { %3132 = vmatmul.mubr.bf16.gmra.mrb[76].mxu0 %v2649_v12  ;;  %3143 = vmatprep.subr.bf16.mxu1 %v3255_v55 }
  0xe8   : > { %3144 = vmatpush3.bf16.msra.mxu1 %v3255_v55 }
  0xe9   : > { %3145 = vmatprep.subr.bf16.mxu1 %v3256_v20 }
  0xec   : > { %3146 = vmatpush3.bf16.msra.mxu1 %v3256_v20 }
  0xed   : > { %3147 = vmatprep.subr.bf16.mxu1 %v3257_v17 }
  0xf0   : > { %3148 = vmatpush3.bf16.msra.mxu1 %v3257_v17 }
  0xf1   : > { %3149 = vmatprep.subr.bf16.mxu1 %v3258_v9 }
  0xf4   : > { %3150 = vmatpush3.bf16.msra.mxu1 %v3258_v9 }
 0x10c   : > { %v2895_v54 = vpop.f32.mrb[0].mxu1 }
 0x10d   : > { %v2896_v58 = vpop.f32.mrb[1].mxu1 }
 0x10e   : > { %v2897_v48 = vadd.f32 %v2896_v58, %v2895_v54  ;;  %v2898_v1 = vpop.f32.mrb[2].mxu1 }
 0x10f   : > { %v2899_v0 = vpop.f32.mrb[3].mxu1  ;;  %v2831_v5 = vpop.f32.mrb[0].mxu0 }
 0x110   : > { %v2900_v52 = vadd.f32 %v2899_v0, %v2898_v1  ;;  %v2832_v41 = vpop.f32.mrb[1].mxu0 }
 0x111   : > { %v2833_v46 = vadd.f32 %v2832_v41, %v2831_v5  ;;  %v2834_v22 = vpop.f32.mrb[2].mxu0 }
 0x112   : > { %v2835_v62 = vpop.f32.mrb[3].mxu0 }
 0x113   : > { %v1785_v36 = vadd.f32 %v2833_v46, %v4092_v39  ;;  %v2836_v40 = vadd.f32 %v2835_v62, %v2834_v22 }
 0x115   : > { %v1788_v44 = vadd.f32 %v2836_v40, %v4092_v39  ;;  %v4099_v34 = vadd.f32 %v2897_v48, %v1785_v36  ;;  %v2901_v31 = vpop.f32.mrb[4].mxu1 }
 0x116   : > { %v2902_v57 = vpop.f32.mrb[5].mxu1 }
 0x117   : > { %v4101_v63 = vadd.f32 %v2900_v52, %v1788_v44  ;;  %v2903_v6 = vadd.f32 %v2902_v57, %v2901_v31  ;;  %v2904_v59 = vpop.f32.mrb[6].mxu1 }
 0x118   : > { %v2905_v30 = vpop.f32.mrb[7].mxu1 }
 0x119   : > { %v2906_v38 = vadd.f32 %v2905_v30, %v2904_v59 }
 0x11a   : > { %v2837_v18 = vpop.f32.mrb[4].mxu0 }
 0x11b   : > { %v2838_v26 = vpop.f32.mrb[5].mxu0 }
 0x11c   : > { %v2839_v7 = vadd.f32 %v2838_v26, %v2837_v18  ;;  %v2840_v23 = vpop.f32.mrb[6].mxu0 }
 0x11d   : > { %v2841_v16 = vpop.f32.mrb[7].mxu0 }
 0x11e   : > { %v1793_v51 = vadd.f32 %v2839_v7, %v4092_v39  ;;  %v2842_v24 = vadd.f32 %v2841_v16, %v2840_v23 }
 0x11f   : > { %v2907_v13 = vpop.f32.mrb[8].mxu1 }
 0x120   : > { %v2908_v37 = vpop.f32.mrb[9].mxu1  ;;  %v1796_v28 = vadd.f32 %v2842_v24, %v4092_v39  ;;  %v4111_v10 = vadd.f32 %v2903_v6, %v1793_v51 }
 0x121   : > { %v2909_v2 = vadd.f32 %v2908_v37, %v2907_v13  ;;  %v2910_v60 = vpop.f32.mrb[10].mxu1 }
 0x122   : > { %v2911_v19 = vpop.f32.mrb[11].mxu1  ;;  %v4113_v14 = vadd.f32 %v2906_v38, %v1796_v28 }
 0x123   : > { %v2912_v29 = vadd.f32 %v2911_v19, %v2910_v60 }
 0x126   : > { %v2843_v53 = vpop.f32.mrb[8].mxu0 }
 0x127   : > { %v2844_v49 = vpop.f32.mrb[9].mxu0  ;;  %v2913_v21 = vpop.f32.mrb[12].mxu1 }
 0x128   : > { %v2845_v15 = vadd.f32 %v2844_v49, %v2843_v53  ;;  %v2846_v33 = vpop.f32.mrb[10].mxu0  ;;  %v2914_v61 = vpop.f32.mrb[13].mxu1 }
 0x129   : > { %v2847_v3 = vpop.f32.mrb[11].mxu0  ;;  %v2915_v11 = vadd.f32 %v2914_v61, %v2913_v21  ;;  %v2916_v56 = vpop.f32.mrb[14].mxu1 }
 0x12a   : > { %v1801_v8 = vadd.f32 %v2845_v15, %v4092_v39  ;;  %v2848_v50 = vadd.f32 %v2847_v3, %v2846_v33  ;;  %v2917_v42 = vpop.f32.mrb[15].mxu1 }
 0x12b   : > { %v2918_v27 = vadd.f32 %v2917_v42, %v2916_v56 }
 0x12c   : > { %v1804_v43 = vadd.f32 %v2848_v50, %v4092_v39  ;;  %v4120_v25 = vadd.f32 %v2909_v2, %v1801_v8 }
 0x12e   : > { %v4122_v35 = vadd.f32 %v2912_v29, %v1804_v43  ;;  %v2849_v12 = vpop.f32.mrb[12].mxu0 }
 0x12f   : > { %v2850_v47 = vpop.f32.mrb[13].mxu0 }
 0x130   : > { %v2851_v45 = vadd.f32 %v2850_v47, %v2849_v12  ;;  %v2852_v32 = vpop.f32.mrb[14].mxu0 }
 0x131   : > { %v2853_v4 = vpop.f32.mrb[15].mxu0 }
 0x132   : > { %v1809_v54 = vadd.f32 %v2851_v45, %v4092_v39  ;;  %v2854_v58 = vadd.f32 %v2853_v4, %v2852_v32 }
 0x134   : > { %v1812_v48 = vadd.f32 %v2854_v58, %v4092_v39  ;;  %v4126_v1 = vadd.f32 %v2915_v11, %v1809_v54 }
 0x136   : > { %v4128_v0 = vadd.f32 %v2918_v27, %v1812_v48  ;;  %v2919_v5 = vpop.f32.mrb[16].mxu1 }
 0x137   : > { %v2855_v52 = vpop.f32.mrb[16].mxu0  ;;  %v2920_v41 = vpop.f32.mrb[17].mxu1 }
 0x138   : > { %v2856_v46 = vpop.f32.mrb[17].mxu0  ;;  %v2921_v22 = vadd.f32 %v2920_v41, %v2919_v5  ;;  %v2922_v55 = vpop.f32.mrb[18].mxu1 }
 0x139   : > { %v2857_v62 = vadd.f32 %v2856_v46, %v2855_v52  ;;  %v2858_v36 = vpop.f32.mrb[18].mxu0  ;;  %v2923_v40 = vpop.f32.mrb[19].mxu1 }
 0x13a   : > { %v2859_v44 = vpop.f32.mrb[19].mxu0  ;;  %v2924_v31 = vadd.f32 %v2923_v40, %v2922_v55 }
 0x13b   : > { %v1817_v57 = vadd.f32 %v2857_v62, %v4092_v39  ;;  %v2860_v6 = vadd.f32 %v2859_v44, %v2858_v36 }
 0x13d   : > { %v1820_v59 = vadd.f32 %v2860_v6, %v4092_v39  ;;  %v4132_v30 = vadd.f32 %v2921_v22, %v1817_v57 }
 0x13e   : > { %v2925_v20 = vpop.f32.mrb[20].mxu1 }
 0x13f   : > { %v4134_v38 = vadd.f32 %v2924_v31, %v1820_v59  ;;  %v2926_v18 = vpop.f32.mrb[21].mxu1 }
 0x140   : > { %v2927_v26 = vadd.f32 %v2926_v18, %v2925_v20  ;;  %v2928_v7 = vpop.f32.mrb[22].mxu1 }
 0x141   : > { %v2929_v16 = vpop.f32.mrb[23].mxu1 }
 0x142   : > { %v2861_v23 = vpop.f32.mrb[20].mxu0  ;;  %v2930_v24 = vadd.f32 %v2929_v16, %v2928_v7 }
 0x143   : > { %v2862_v51 = vpop.f32.mrb[21].mxu0 }
 0x144   : > { %v2863_v13 = vadd.f32 %v2862_v51, %v2861_v23  ;;  %v2864_v37 = vpop.f32.mrb[22].mxu0 }
 0x145   : > { %v2865_v17 = vpop.f32.mrb[23].mxu0 }
 0x146   : > { %v1825_v28 = vadd.f32 %v2863_v13, %v4092_v39  ;;  %v2866_v2 = vadd.f32 %v2865_v17, %v2864_v37 }
 0x148   : > { %v1828_v60 = vadd.f32 %v2866_v2, %v4092_v39  ;;  %v4138_v19 = vadd.f32 %v2927_v26, %v1825_v28 }
 0x14a   : > { %v4140_v29 = vadd.f32 %v2930_v24, %v1828_v60 }
 0x14c   : > { %v2867_v49 = vpop.f32.mrb[24].mxu0 }
 0x14d   : > { %v2931_v53 = vpop.f32.mrb[24].mxu1  ;;  %v2868_v33 = vpop.f32.mrb[25].mxu0 }
 0x14e   : > { %v2932_v15 = vpop.f32.mrb[25].mxu1  ;;  %v2869_v21 = vadd.f32 %v2868_v33, %v2867_v49  ;;  %v2870_v8 = vpop.f32.mrb[26].mxu0 }
 0x14f   : > { %v2933_v9 = vadd.f32 %v2932_v15, %v2931_v53  ;;  %v2934_v3 = vpop.f32.mrb[26].mxu1  ;;  %v2871_v61 = vpop.f32.mrb[27].mxu0 }
 0x150   : > { %v2935_v50 = vpop.f32.mrb[27].mxu1  ;;  %v1833_v56 = vadd.f32 %v2869_v21, %v4092_v39  ;;  %v2872_v43 = vadd.f32 %v2871_v61, %v2870_v8 }
 0x151   : > { %v2936_v11 = vadd.f32 %v2935_v50, %v2934_v3 }
 0x152   : > { %v1836_v42 = vadd.f32 %v2872_v43, %v4092_v39  ;;  %v4144_v27 = vadd.f32 %v2933_v9, %v1833_v56 }
 0x154   : > { %v4146_v12 = vadd.f32 %v2936_v11, %v1836_v42 }
 0x155   : > { %v2937_v47 = vpop.f32.mrb[28].mxu1 }
 0x156   : > { %v2938_v45 = vpop.f32.mrb[29].mxu1 }
 0x157   : > { %v2939_v32 = vadd.f32 %v2938_v45, %v2937_v47  ;;  %v2940_v4 = vpop.f32.mrb[30].mxu1 }
 0x158   : > { %v2873_v54 = vpop.f32.mrb[28].mxu0  ;;  %v2941_v58 = vpop.f32.mrb[31].mxu1 }
 0x159   : > { %v2874_v48 = vpop.f32.mrb[29].mxu0  ;;  %v2942_v5 = vadd.f32 %v2941_v58, %v2940_v4 }
 0x15a   : > { %v2875_v52 = vadd.f32 %v2874_v48, %v2873_v54  ;;  %v2876_v41 = vpop.f32.mrb[30].mxu0 }
 0x15b   : > { %v2877_v46 = vpop.f32.mrb[31].mxu0 }
 0x15c   : > { %v1841_v22 = vadd.f32 %v2875_v52, %v4092_v39  ;;  %v2878_v55 = vadd.f32 %v2877_v46, %v2876_v41 }
 0x15d   : > { %v3023_v62 = vpop.f32.mrb[32].mxu1 }
 0x15e   : > { %v1844_v36 = vadd.f32 %v2878_v55, %v4092_v39  ;;  %v4150_v40 = vadd.f32 %v2939_v32, %v1841_v22  ;;  %v3024_v44 = vpop.f32.mrb[33].mxu1 }
 0x15f   : > { %v3025_v31 = vadd.f32 %v3024_v44, %v3023_v62  ;;  %v3026_v57 = vpop.f32.mrb[34].mxu1 }
 0x160   : > { %v4152_v6 = vadd.f32 %v2942_v5, %v1844_v36  ;;  %v2959_v59 = vpop.f32.mrb[32].mxu0  ;;  %v3027_v20 = vpop.f32.mrb[35].mxu1 }
 0x161   : > { %v2960_v18 = vpop.f32.mrb[33].mxu0  ;;  %v3028_v26 = vadd.f32 %v3027_v20, %v3026_v57 }
 0x162   : > { %v2961_v7 = vadd.f32 %v2960_v18, %v2959_v59  ;;  %v2962_v23 = vpop.f32.mrb[34].mxu0 }
 0x163   : > { %v2963_v16 = vpop.f32.mrb[35].mxu0 }
 0x164   : > { %v1979_v51 = vadd.f32 %v2961_v7, %v4099_v34  ;;  %v2964_v24 = vadd.f32 %v2963_v16, %v2962_v23 }
 0x165   : > { %v3029_v13 = vpop.f32.mrb[36].mxu1 }
 0x166   : > { %v1982_v39 = vadd.f32 %v2964_v24, %v4101_v63  ;;  %v3030_v37 = vpop.f32.mrb[37].mxu1  ;;  %v4156_v17 = vadd.f32 %v3025_v31, %v1979_v51 }
 0x167   : > { %v3031_v28 = vadd.f32 %v3030_v37, %v3029_v13  ;;  %v3032_v2 = vpop.f32.mrb[38].mxu1 }
 0x168   : > { %v2965_v60 = vpop.f32.mrb[36].mxu0  ;;  %v3033_v53 = vpop.f32.mrb[39].mxu1  ;;  %v4158_v49 = vadd.f32 %v3028_v26, %v1982_v39 }
 0x169   : > { %v2966_v15 = vpop.f32.mrb[37].mxu0  ;;  %v3034_v33 = vadd.f32 %v3033_v53, %v3032_v2 }
 0x16a   : > { %v2967_v9 = vadd.f32 %v2966_v15, %v2965_v60  ;;  %v2968_v3 = vpop.f32.mrb[38].mxu0 }
 0x16b   : > { %v2969_v21 = vpop.f32.mrb[39].mxu0 }
 0x16c   : > { %v1987_v34 = vadd.f32 %v2967_v9, %v4111_v10  ;;  %v2970_v8 = vadd.f32 %v2969_v21, %v2968_v3 }
 0x16d   : > { %v3035_v50 = vpop.f32.mrb[40].mxu1 }
 0x16e   : > { %v1990_v63 = vadd.f32 %v2970_v8, %v4113_v14  ;;  %v3036_v61 = vpop.f32.mrb[41].mxu1  ;;  %v4162_v11 = vadd.f32 %v3031_v28, %v1987_v34 }
 0x16f   : > { %v3037_v56 = vadd.f32 %v3036_v61, %v3035_v50  ;;  %v3038_v43 = vpop.f32.mrb[42].mxu1 }
 0x170   : > { %v2971_v42 = vpop.f32.mrb[40].mxu0  ;;  %v3039_v47 = vpop.f32.mrb[43].mxu1  ;;  %v4164_v45 = vadd.f32 %v3034_v33, %v1990_v63 }
 0x171   : > { %v2972_v32 = vpop.f32.mrb[41].mxu0  ;;  %v3040_v4 = vadd.f32 %v3039_v47, %v3038_v43 }
 0x172   : > { %v2973_v54 = vadd.f32 %v2972_v32, %v2971_v42  ;;  %v2974_v58 = vpop.f32.mrb[42].mxu0 }
 0x173   : > { %v2975_v48 = vpop.f32.mrb[43].mxu0 }
 0x174   : > { %v1995_v10 = vadd.f32 %v2973_v54, %v4120_v25  ;;  %v2976_v5 = vadd.f32 %v2975_v48, %v2974_v58 }
 0x175   : > { %v3041_v52 = vpop.f32.mrb[44].mxu1 }
 0x176   : > { %v1998_v14 = vadd.f32 %v2976_v5, %v4122_v35  ;;  %v3042_v41 = vpop.f32.mrb[45].mxu1  ;;  %v4168_v46 = vadd.f32 %v3037_v56, %v1995_v10 }
 0x177   : > { %v3043_v22 = vadd.f32 %v3042_v41, %v3041_v52  ;;  %v3044_v55 = vpop.f32.mrb[46].mxu1 }
 0x178   : > { %v2977_v62 = vpop.f32.mrb[44].mxu0  ;;  %v3045_v36 = vpop.f32.mrb[47].mxu1  ;;  %v4170_v44 = vadd.f32 %v3040_v4, %v1998_v14 }
 0x179   : > { %v2978_v31 = vpop.f32.mrb[45].mxu0  ;;  %v3046_v57 = vadd.f32 %v3045_v36, %v3044_v55 }
 0x17a   : > { %v2979_v59 = vadd.f32 %v2978_v31, %v2977_v62  ;;  %v2980_v20 = vpop.f32.mrb[46].mxu0 }
 0x17b   : > { %v2981_v18 = vpop.f32.mrb[47].mxu0 }
 0x17c   : > { %v2003_v25 = vadd.f32 %v2979_v59, %v4126_v1  ;;  %v2982_v26 = vadd.f32 %v2981_v18, %v2980_v20 }
 0x17d   : > { %v3047_v7 = vpop.f32.mrb[48].mxu1 }
 0x17e   : > { %v2006_v35 = vadd.f32 %v2982_v26, %v4128_v0  ;;  %v3048_v23 = vpop.f32.mrb[49].mxu1  ;;  %v4174_v16 = vadd.f32 %v3043_v22, %v2003_v25 }
 0x17f   : > { %v3049_v51 = vadd.f32 %v3048_v23, %v3047_v7  ;;  %v3050_v24 = vpop.f32.mrb[50].mxu1 }
 0x180   : > { %v2983_v13 = vpop.f32.mrb[48].mxu0  ;;  %v3051_v39 = vpop.f32.mrb[51].mxu1  ;;  %v4176_v37 = vadd.f32 %v3046_v57, %v2006_v35 }
 0x181   : > { %v2984_v28 = vpop.f32.mrb[49].mxu0  ;;  %v3052_v2 = vadd.f32 %v3051_v39, %v3050_v24 }
 0x182   : > { %v2985_v60 = vadd.f32 %v2984_v28, %v2983_v13  ;;  %v2986_v53 = vpop.f32.mrb[50].mxu0 }
 0x183   : > { %v2987_v15 = vpop.f32.mrb[51].mxu0 }
 0x184   : > { %v2011_v1 = vadd.f32 %v2985_v60, %v4132_v30  ;;  %v2988_v33 = vadd.f32 %v2987_v15, %v2986_v53 }
 0x185   : > { %v3053_v9 = vpop.f32.mrb[52].mxu1 }
 0x186   : > { %v2014_v0 = vadd.f32 %v2988_v33, %v4134_v38  ;;  %v3054_v3 = vpop.f32.mrb[53].mxu1  ;;  %v4180_v21 = vadd.f32 %v3049_v51, %v2011_v1 }
 0x187   : > { %v3055_v34 = vadd.f32 %v3054_v3, %v3053_v9  ;;  %v3056_v8 = vpop.f32.mrb[54].mxu1 }
 0x188   : > { %v2989_v50 = vpop.f32.mrb[52].mxu0  ;;  %v3057_v63 = vpop.f32.mrb[55].mxu1  ;;  %v4182_v61 = vadd.f32 %v3052_v2, %v2014_v0 }
 0x189   : > { %v2990_v56 = vpop.f32.mrb[53].mxu0  ;;  %v3058_v43 = vadd.f32 %v3057_v63, %v3056_v8 }
 0x18a   : > { %v2991_v42 = vadd.f32 %v2990_v56, %v2989_v50  ;;  %v2992_v47 = vpop.f32.mrb[54].mxu0 }
 0x18b   : > { %v2993_v32 = vpop.f32.mrb[55].mxu0 }
 0x18c   : > { %v2019_v30 = vadd.f32 %v2991_v42, %v4138_v19  ;;  %v2994_v4 = vadd.f32 %v2993_v32, %v2992_v47 }
 0x18d   : > { %v3059_v54 = vpop.f32.mrb[56].mxu1 }
 0x18e   : > { %v2022_v38 = vadd.f32 %v2994_v4, %v4140_v29  ;;  %v3060_v58 = vpop.f32.mrb[57].mxu1  ;;  %v4186_v48 = vadd.f32 %v3055_v34, %v2019_v30 }
 0x18f   : > { %v3061_v10 = vadd.f32 %v3060_v58, %v3059_v54  ;;  %v3062_v5 = vpop.f32.mrb[58].mxu1 }
 0x190   : > { %v2995_v52 = vpop.f32.mrb[56].mxu0  ;;  %v3063_v14 = vpop.f32.mrb[59].mxu1  ;;  %v4188_v41 = vadd.f32 %v3058_v43, %v2022_v38 }
 0x191   : > { %v2996_v22 = vpop.f32.mrb[57].mxu0  ;;  %v3064_v55 = vadd.f32 %v3063_v14, %v3062_v5 }
 0x192   : > { %v2997_v62 = vadd.f32 %v2996_v22, %v2995_v52  ;;  %v2998_v36 = vpop.f32.mrb[58].mxu0 }
 0x193   : > { %v2999_v31 = vpop.f32.mrb[59].mxu0 }
 0x194   : > { %v2027_v19 = vadd.f32 %v2997_v62, %v4144_v27  ;;  %v3000_v57 = vadd.f32 %v2999_v31, %v2998_v36 }
 0x195   : > { %v3065_v59 = vpop.f32.mrb[60].mxu1 }
 0x196   : > { %v2030_v29 = vadd.f32 %v3000_v57, %v4146_v12  ;;  %v3066_v20 = vpop.f32.mrb[61].mxu1  ;;  %v4192_v18 = vadd.f32 %v3061_v10, %v2027_v19 }
 0x197   : > { %v3067_v25 = vadd.f32 %v3066_v20, %v3065_v59  ;;  %v3068_v26 = vpop.f32.mrb[62].mxu1 }
 0x198   : > { %v3001_v7 = vpop.f32.mrb[60].mxu0  ;;  %v3069_v35 = vpop.f32.mrb[63].mxu1  ;;  %v4194_v23 = vadd.f32 %v3064_v55, %v2030_v29 }
 0x199   : > { %v3002_v51 = vpop.f32.mrb[61].mxu0  ;;  %v3070_v24 = vadd.f32 %v3069_v35, %v3068_v26 }
 0x19a   : > { %v3003_v13 = vadd.f32 %v3002_v51, %v3001_v7  ;;  %v3004_v39 = vpop.f32.mrb[62].mxu0 }
 0x19b   : > { %v3005_v28 = vpop.f32.mrb[63].mxu0 }
 0x19c   : > { %v2035_v27 = vadd.f32 %v3003_v13, %v4150_v40  ;;  %v3006_v2 = vadd.f32 %v3005_v28, %v3004_v39 }
 0x19e   : > { %v2038_v60 = vadd.f32 %v3006_v2, %v4152_v6  ;;  %v2132_v12 = vadd.f32 %v3067_v25, %v2035_v27 }
 0x1a0   : > { %v3121_v53 = vpop.f32.mrb[64].mxu0  ;;  %v2135_v15 = vadd.f32 %v3070_v24, %v2038_v60 }
 0x1a1   : > { %v2181_v1 = vadd.f32 %v3121_v53, %v4162_v11  ;;  %v2172_v33 = vpop.f32.mrb[65].mxu0 }
 0x1a2   : > { %v2173_v9 = vadd.f32 %v2172_v33, %v4156_v17  ;;  %v3122_v0 = vpop.f32.mrb[66].mxu0 }
 0x1a3   : > { %v2184_v3 = vadd.f32 %v3122_v0, %v4164_v45  ;;  %v2175_v34 = vpop.f32.mrb[67].mxu0  ;;  %v2237_v50 = vmax.f32 %v2181_v1, 0.0 }
 0x1a4   : > { %v2176_v8 = vadd.f32 %v2175_v34, %v4158_v49  ;;  %v2235_v40 = vmax.f32 %v2173_v9, 0.0 }
 0x1a5   : > { %v2238_v63 = vmax.f32 %v2184_v3, 0.0 }
 0x1a6   : > { %v2236_v56 = vmax.f32 %v2176_v8, 0.0 }
 0x1a7   : > { %v2252_v43 = vpack.c.bf16 %v2238_v63, %v2237_v50 }
 0x1a8   : > { %v2251_v6 = vpack.c.bf16 %v2236_v56, %v2235_v40  ;;  %v3125_v42 = vpop.f32.mrb[68].mxu0 }
 0x1a9   : > { %v2197_v47 = vadd.f32 %v3125_v42, %v4174_v16  ;;  %v2188_v32 = vpop.f32.mrb[69].mxu0 }
 0x1aa   : > { %v2189_v11 = vadd.f32 %v2188_v32, %v4168_v46  ;;  %v3126_v30 = vpop.f32.mrb[70].mxu0  ;;  %3151 = vmatprep.mubr.bf16.mxu1 %v2251_v6 }
 0x1ab   : > { %v2200_v17 = vadd.f32 %v3126_v30, %v4176_v37  ;;  %v2191_v45 = vpop.f32.mrb[71].mxu0  ;;  %3152 = vmatmul.mubr.bf16.vlgmr.msra.gmra.mrb[64].mxu1 %v2252_v43  ;;  %v2241_v4 = vmax.f32 %v2197_v47, 0.0 }
 0x1ac   : > { %v2192_v49 = vadd.f32 %v2191_v45, %v4170_v44  ;;  %v2239_v38 = vmax.f32 %v2189_v11, 0.0 }
 0x1ad   : > { %v2242_v54 = vmax.f32 %v2200_v17, 0.0 }
 0x1ae   : > { %v2240_v58 = vmax.f32 %v2192_v49, 0.0 }
 0x1af   : > { %v2254_v10 = vpack.c.bf16 %v2242_v54, %v2241_v4 }
 0x1b0   : > { %v2253_v5 = vpack.c.bf16 %v2240_v58, %v2239_v38  ;;  %v3129_v52 = vpop.f32.mrb[72].mxu0 }
 0x1b1   : > { %v2213_v16 = vadd.f32 %v3129_v52, %v4186_v48  ;;  %v2204_v14 = vpop.f32.mrb[73].mxu0 }
 0x1b2   : > { %v2205_v46 = vadd.f32 %v2204_v14, %v4180_v21  ;;  %v3130_v22 = vpop.f32.mrb[74].mxu0  ;;  %3155 = vmatprep.mubr.bf16.mxu1 %v2253_v5 }
 0x1b3   : > { %v2216_v37 = vadd.f32 %v3130_v22, %v4188_v41  ;;  %v2207_v55 = vpop.f32.mrb[75].mxu0  ;;  %3156 = vmatmul.mubr.bf16.gmra.mrb[68].mxu1 %v2254_v10  ;;  %v2245_v62 = vmax.f32 %v2213_v16, 0.0 }
 0x1b4   : > { %v2208_v44 = vadd.f32 %v2207_v55, %v4182_v61  ;;  %v2243_v31 = vmax.f32 %v2205_v46, 0.0 }
 0x1b5   : > { %v2246_v36 = vmax.f32 %v2216_v37, 0.0 }
 0x1b6   : > { %v2244_v19 = vmax.f32 %v2208_v44, 0.0 }
 0x1b7   : > { %v2256_v57 = vpack.c.bf16 %v2246_v36, %v2245_v62 }
 0x1b8   : > { %v2255_v59 = vpack.c.bf16 %v2244_v19, %v2243_v31  ;;  %v3133_v29 = vpop.f32.mrb[76].mxu0 }
 0x1b9   : > { %v2229_v20 = vadd.f32 %v3133_v29, %v2132_v12  ;;  %v2220_v48 = vpop.f32.mrb[77].mxu0 }
 0x1ba   : > { %v2221_v25 = vadd.f32 %v2220_v48, %v4192_v18  ;;  %v3134_v21 = vpop.f32.mrb[78].mxu0  ;;  %3159 = vmatprep.mubr.bf16.mxu1 %v2255_v59  ;;  %v2723_v18 = vld [vmem:[%s4237_s4] ss:$0 sm:$0xff] }
 0x1bb   : > { %v2232_v26 = vadd.f32 %v3134_v21, %v2135_v15  ;;  %v2223_v7 = vpop.f32.mrb[79].mxu0  ;;  %3160 = vmatmul.mubr.bf16.gmra.mrb[72].mxu1 %v2256_v57  ;;  %v2249_v35 = vmax.f32 %v2229_v20, 0.0 }
 0x1bc   : > { %v2224_v41 = vadd.f32 %v2223_v7, %v4194_v23  ;;  %v2247_v51 = vmax.f32 %v2221_v25, 0.0 }
 0x1bd   : > { %v2250_v61 = vmax.f32 %v2232_v26, 0.0 }
 0x1be   : > { %v2248_v24 = vmax.f32 %v2224_v41, 0.0 }
 0x1bf   : > { %v2258_v13 = vpack.c.bf16 %v2250_v61, %v2249_v35 }
 0x1c0   : > { %v2257_v39 = vpack.c.bf16 %v2248_v24, %v2247_v51 }
 0x1c2   : > { %3163 = vmatprep.mubr.bf16.mxu1 %v2257_v39 }
 0x1c3   : > { %3164 = vmatmul.mubr.bf16.gmra.mrb[76].mxu1 %v2258_v13 }
 0x27e   : > { %v3153_v28 = vpop.f32.mrb[64].mxu1 }
 0x27f   : > { %v2364_v27 = vpop.f32.mrb[65].mxu1  ;;  %v2373_v60 = vadd.f32 %v3153_v28, %v2723_v18 }
 0x280   : > { %v3154_v2 = vpop.f32.mrb[66].mxu1  ;;  %v2365_v23 = vadd.f32 %v2723_v18, %v2364_v27 }
 0x281   : > { %v2376_v12 = vadd.f32 %v3154_v2, %v2723_v18  ;;  %v2367_v53 = vpop.f32.mrb[67].mxu1 }
 0x282   : > { %v2368_v15 = vadd.f32 %v2723_v18, %v2367_v53 }
 0x283   : > { %v2776_v1 = vpack.c.bf16 %v2376_v12, %v2373_v60 }
 0x284   : > { %v2771_v33 = vpack.c.bf16 %v2368_v15, %v2365_v23 }
 0x285   : > { %2808 = vst [vmem:[%s4220_s12 + $0x8] sm:$0xff] %v2776_v1  }
 0x286   : > { %2772 = vst [vmem:[%s4220_s12] sm:$0xff] %v2771_v33   ;;  %v3157_v9 = vpop.f32.mrb[68].mxu1 }
 0x287   : > { %v2380_v0 = vpop.f32.mrb[69].mxu1  ;;  %v2389_v34 = vadd.f32 %v3157_v9, %v2723_v18 }
 0x288   : > { %v3158_v3 = vpop.f32.mrb[70].mxu1  ;;  %v2381_v63 = vadd.f32 %v2723_v18, %v2380_v0 }
 0x289   : > { %v2392_v8 = vadd.f32 %v3158_v3, %v2723_v18  ;;  %v2383_v50 = vpop.f32.mrb[71].mxu1 }
 0x28a   : > { %v2384_v40 = vadd.f32 %v2723_v18, %v2383_v50 }
 0x28b   : > { %v2786_v56 = vpack.c.bf16 %v2392_v8, %v2389_v34 }
 0x28c   : > { %v2781_v43 = vpack.c.bf16 %v2384_v40, %v2381_v63 }
 0x28d   : > { %2810 = vst [vmem:[%s4220_s12 + $0x18] sm:$0xff] %v2786_v56  }
 0x28e   : > { %2809 = vst [vmem:[%s4220_s12 + $0x10] sm:$0xff] %v2781_v43   ;;  %v3161_v6 = vpop.f32.mrb[72].mxu1 }
 0x28f   : > { %v2396_v42 = vpop.f32.mrb[73].mxu1  ;;  %v2405_v32 = vadd.f32 %v3161_v6, %v2723_v18 }
 0x290   : > { %v3162_v47 = vpop.f32.mrb[74].mxu1  ;;  %v2397_v17 = vadd.f32 %v2723_v18, %v2396_v42 }
 0x291   : > { %v2408_v11 = vadd.f32 %v3162_v47, %v2723_v18  ;;  %v2399_v30 = vpop.f32.mrb[75].mxu1 }
 0x292   : > { %v2400_v45 = vadd.f32 %v2723_v18, %v2399_v30 }
 0x293   : > { %v2796_v49 = vpack.c.bf16 %v2408_v11, %v2405_v32 }
 0x294   : > { %v2791_v4 = vpack.c.bf16 %v2400_v45, %v2397_v17 }
 0x295   : > { %2812 = vst [vmem:[%s4220_s12 + $0x28] sm:$0xff] %v2796_v49  }
 0x296   : > { %2811 = vst [vmem:[%s4220_s12 + $0x20] sm:$0xff] %v2791_v4   ;;  %v3165_v54 = vpop.f32.mrb[76].mxu1 }
 0x297   : > { %v2412_v38 = vpop.f32.mrb[77].mxu1  ;;  %v2421_v10 = vadd.f32 %v3165_v54, %v2723_v18 }
 0x298   : > { %v3166_v58 = vpop.f32.mrb[78].mxu1  ;;  %v2413_v16 = vadd.f32 %v2723_v18, %v2412_v38 }
 0x299   : > { %v2424_v5 = vadd.f32 %v3166_v58, %v2723_v18  ;;  %v2415_v52 = vpop.f32.mrb[79].mxu1 }
 0x29a   : > { %v2416_v14 = vadd.f32 %v2723_v18, %v2415_v52 }
 0x29b   : > { %v2806_v46 = vpack.c.bf16 %v2424_v5, %v2421_v10 }
 0x29c   : > { %v2801_v22 = vpack.c.bf16 %v2416_v14, %v2413_v16 }
 0x29d   : > { %2814 = vst [vmem:[%s4220_s12 + $0x38] sm:$0xff] %v2806_v46  }
 0x29e   : > { %2813 = vst [vmem:[%s4220_s12 + $0x30] sm:$0xff] %v2801_v22  }
 0x29f PF: > { %s15_s18 = sadd.s32 1, %s3265_s18  }
 0x2a0   : > { %p12_p4 = scmp.ge.s32.totalorder %s15_s18, 4  }
 0x2a2   :  { %14 = sbr.rel (!%p12_p4) target bundleno = 1 (0x1), region = 71 }

</bundles_post_ra>
